<compile_context>
chip_gen: v6e
topology: v6e:2x2x1
jax: 0.10.0
libtpu: 0.0.40
codegen_flags: <defaults>
</compile_context>

<pallas_src>
import functools
import numpy as np
import jax
import jax.numpy as jnp
from jax.experimental import pallas as pl
from jax.experimental.pallas import tpu as pltpu


TM_MM = 256            # row tile for matmul kernels (multiple of 16 for bf16 operands)
TM_BN = 512            # row tile for the BN/activation apply kernel
VMEM_LIMIT = 32 * 1024 * 1024   # safe on v5e/v6e/v7x


# ----------------------------- Pallas kernels -----------------------------

def _mm_bias_stats_kernel(a_ref, w_ref, b_ref, y_ref, s_ref, ss_ref, *, m_total):
    """y = a @ w + bias (bf16 operands, f32 acc); also accumulate column sums/sumsq."""
    i = pl.program_id(0)
    y = jnp.dot(a_ref[...], w_ref[...], preferred_element_type=jnp.float32) + b_ref[...]
    y_ref[...] = y

    # Mask rows beyond the true M (ragged last tile) so they don't pollute BN stats.
    tm = y.shape[0]
    row = jax.lax.broadcasted_iota(jnp.int32, y.shape, 0)
    valid = (row + i * tm) < m_total
    ym = jnp.where(valid, y, 0.0)

    @pl.when(i == 0)
    def _():
        s_ref[...] = jnp.zeros_like(s_ref)
        ss_ref[...] = jnp.zeros_like(ss_ref)

    s_ref[...] += jnp.sum(ym, axis=0, keepdims=True)
    ss_ref[...] += jnp.sum(ym * ym, axis=0, keepdims=True)


def _mm_bias_kernel(a_ref, w_ref, b_ref, o_ref):
    o_ref[...] = (
        jnp.dot(a_ref[...], w_ref[...], preferred_element_type=jnp.float32) + b_ref[...]
    )


def _bn_act_kernel(y_ref, mean_ref, inv_ref, *rest, act, has_res):
    """out = act((y - mean) * inv_std) [+ residual], stored as bf16."""
    o_ref = rest[-1]
    x = (y_ref[...] - mean_ref[...]) * inv_ref[...]
    if act == "leaky":
        x = jnp.where(x >= 0, x, 0.01 * x)          # nn.LeakyReLU default slope
    else:  # "silu"
        x = x * (1.0 / (1.0 + jnp.exp(-x)))          # nn.SiLU
    if has_res:
        x = x + rest[0][...].astype(jnp.float32)
    o_ref[...] = x.astype(o_ref.dtype)


# ----------------------------- Pallas wrappers -----------------------------

def matmul_bias_stats(a, w, bias):
    """a: [M,K] bf16, w: [K,N] bf16, bias: [1,N] f32 -> (y [M,N] f32, colsum, colsumsq)."""
    M, K = a.shape
    _, N = w.shape
    tm = M if M <= TM_MM else TM_MM
    grid = (pl.cdiv(M, tm),)
    kern = functools.partial(_mm_bias_stats_kernel, m_total=M)
    return pl.pallas_call(
        kern,
        grid=grid,
        in_specs=[
            pl.BlockSpec((tm, K), lambda i: (i, 0)),
            pl.BlockSpec((K, N), lambda i: (0, 0)),
            pl.BlockSpec((1, N), lambda i: (0, 0)),
        ],
        out_specs=(
            pl.BlockSpec((tm, N), lambda i: (i, 0)),
            pl.BlockSpec((1, N), lambda i: (0, 0)),
            pl.BlockSpec((1, N), lambda i: (0, 0)),
        ),
        out_shape=(
            jax.ShapeDtypeStruct((M, N), jnp.float32),
            jax.ShapeDtypeStruct((1, N), jnp.float32),
            jax.ShapeDtypeStruct((1, N), jnp.float32),
        ),
        compiler_params=pltpu.CompilerParams(
            dimension_semantics=("arbitrary",),        # stats accumulate across M tiles
            vmem_limit_bytes=VMEM_LIMIT,
        ),
    )(a, w, bias)


def matmul_bias(a, w, bias):
    """a: [M,K] bf16, w: [K,N] bf16, bias: [1,N] f32 -> [M,N] f32."""
    M, K = a.shape
    _, N = w.shape
    tm = M if M <= TM_MM else TM_MM
    return pl.pallas_call(
        _mm_bias_kernel,
        grid=(pl.cdiv(M, tm),),
        in_specs=[
            pl.BlockSpec((tm, K), lambda i: (i, 0)),
            pl.BlockSpec((K, N), lambda i: (0, 0)),
            pl.BlockSpec((1, N), lambda i: (0, 0)),
        ],
        out_specs=pl.BlockSpec((tm, N), lambda i: (i, 0)),
        out_shape=jax.ShapeDtypeStruct((M, N), jnp.float32),
        compiler_params=pltpu.CompilerParams(
            dimension_semantics=("parallel",),
            vmem_limit_bytes=VMEM_LIMIT,
        ),
    )(a, w, bias)


def bn_act_apply(y, mean, inv, act, res=None):
    """y: [M,N] f32, mean/inv: [1,N] f32, res: optional [M,N] bf16 -> [M,N] bf16."""
    M, N = y.shape
    tm = M if M <= TM_BN else TM_BN
    has_res = res is not None
    kern = functools.partial(_bn_act_kernel, act=act, has_res=has_res)
    in_specs = [
        pl.BlockSpec((tm, N), lambda i: (i, 0)),
        pl.BlockSpec((1, N), lambda i: (0, 0)),
        pl.BlockSpec((1, N), lambda i: (0, 0)),
    ]
    args = [y, mean, inv]
    if has_res:
        in_specs.append(pl.BlockSpec((tm, N), lambda i: (i, 0)))
        args.append(res)
    return pl.pallas_call(
        kern,
        grid=(pl.cdiv(M, tm),),
        in_specs=in_specs,
        out_specs=pl.BlockSpec((tm, N), lambda i: (i, 0)),
        out_shape=jax.ShapeDtypeStruct((M, N), jnp.bfloat16),
        compiler_params=pltpu.CompilerParams(
            dimension_semantics=("parallel",),
            vmem_limit_bytes=VMEM_LIMIT,
        ),
    )(*args)


def bn_stats(colsum, colsumsq, rows, group=1):
    """Tiny [1,N] math in XLA: batch mean & rsqrt(var+eps); optional group-of-4 stats
    (PixelShuffle: the 4 consecutive conv-output columns feeding one output channel)."""
    if group > 1:
        N = colsum.shape[1]
        sg = colsum.reshape(N // group, group).sum(axis=1, keepdims=True)
        ssg = colsumsq.reshape(N // group, group).sum(axis=1, keepdims=True)
        cnt = float(rows * group)
        mean_g = sg / cnt
        var_g = jnp.maximum(ssg / cnt - mean_g * mean_g, 0.0)
        mean = jnp.broadcast_to(mean_g, (N // group, group)).reshape(1, N)
        var = jnp.broadcast_to(var_g, (N // group, group)).reshape(1, N)
    else:
        cnt = float(rows)
        mean = colsum / cnt
        var = jnp.maximum(colsumsq / cnt - mean * mean, 0.0)
    inv = jax.lax.rsqrt(var + 1e-5)
    return mean, inv


# ----------------------------- conv / block ops -----------------------------

def conv_bn_act(x, p, stride, padding, act, res=None, bn_group=1):
    """3x3 Conv (im2col + Pallas matmul w/ fused bias + BN stats) then fused
    BN + activation (+ residual) apply.  x: [B,H,W,Cin] bf16 -> [B,Ho,Wo,Cout] bf16."""
    B, H, W, Cin = x.shape
    kH = kW = 3
    xp = jnp.pad(x, ((0, 0), (padding, padding), (padding, padding), (0, 0)))
    Ho = (H + 2 * padding - kH) // stride + 1
    Wo = (W + 2 * padding - kW) // stride + 1
    cols = []
    for i in range(kH):
        for j in range(kW):
            cols.append(
                xp[:, i:i + stride * (Ho - 1) + 1:stride,
                      j:j + stride * (Wo - 1) + 1:stride, :]
            )
    patches = jnp.concatenate(cols, axis=-1)                  # bf16 [B,Ho,Wo,kH*kW*Cin]
    M = B * Ho * Wo
    a = patches.reshape(M, kH * kW * Cin)

    y, s, ss = matmul_bias_stats(a, p["w"], p["b"])           # y f32, stats f32
    mean, inv = bn_stats(s, ss, M, group=bn_group)
    res2d = None if res is None else res.reshape(M, -1)
    out2d = bn_act_apply(y, mean, inv, act, res=res2d)        # bf16
    return out2d.reshape(B, Ho, Wo, -1)


def residual_connection(x, p):
    # Same resLayer (same parameters) applied twice, residual added after the 2nd
    # activation — exactly as in the PyTorch module.  The add is fused in Pallas.
    h = conv_bn_act(x, p, 1, 1, "leaky")
    h = conv_bn_act(h, p, 1, 1, "leaky", res=x)
    return h


def downsample(x, p):
    return conv_bn_act(x, p, 2, 1, "leaky")


def upsample(x, p):
    # Conv -> (BN+SiLU with group-of-4 stats, i.e. equivalent to BN+SiLU after
    # PixelShuffle) -> PixelShuffle rearrangement in XLA on bf16.
    y = conv_bn_act(x, p, 1, 1, "silu", bn_group=4)           # [B,H,W,4*Cout]
    B, H, W, C4 = y.shape
    C = C4 // 4
    # out[b, 2h+i, 2w+j, c] = y[b, h, w, 4c + 2i + j]
    y = y.reshape(B, H, W, C, 2, 2).transpose(0, 1, 4, 2, 5, 3).reshape(B, 2 * H, 2 * W, C)
    return y


# ----------------------------- parameters -----------------------------

def init_conv(key, cin, cout, k=3):
    k1, k2 = jax.random.split(key)
    scale = 1.0 / np.sqrt(k * k * cin)
    w = jax.random.normal(k1, (k, k, cin, cout), jnp.float32) * scale
    b = jax.random.normal(k2, (cout,), jnp.float32) * scale
    return {"w": w.reshape(k * k * cin, cout).astype(jnp.bfloat16),
            "b": b.reshape(1, cout)}


def init_linear(key, din, dout):
    k1, k2 = jax.random.split(key)
    scale = 1.0 / np.sqrt(din)
    w = jax.random.normal(k1, (din, dout), jnp.float32) * scale
    b = jax.random.normal(k2, (dout,), jnp.float32) * scale
    return {"w": w.astype(jnp.bfloat16), "b": b.reshape(1, dout)}


def init_vae_params(key, layer_dims, data_size, latent_size, enc_depth, dec_depth):
    keys = iter(jax.random.split(key, 128))
    params = {"enc_blocks": [], "dec_blocks": []}
    # Encoder: ResBlock(in,out) = depth x ResidualConnection(in) + DownSample(in->out)
    for cin, cout in zip(layer_dims[:-1], layer_dims[1:]):
        params["enc_blocks"].append({
            "res": [init_conv(next(keys), cin, cin) for _ in range(enc_depth)],
            "down": init_conv(next(keys), cin, cout),
        })
    out_dim = layer_dims[-1]
    out_size = data_size // 2 ** (len(layer_dims) - 1)
    flat = out_dim * out_size * out_size
    # out_mu / out_var fused into one [flat, 2*latent] projection.  Weight rows are in
    # NHWC-flatten order (a fixed permutation of the PyTorch NCHW-flatten parameters;
    # weights are randomly initialized here, so the model family is identical).
    params["out_mv"] = init_linear(next(keys), flat, 2 * latent_size)
    # Decoder (reversed dims): Linear + UpBlock(in,out) = depth x Residual(in) + UpSample
    dec_dims = list(reversed(layer_dims))
    in_dim = dec_dims[0]
    in_size = data_size // 2 ** (len(dec_dims) - 1)
    params["up_size"] = init_linear(next(keys), latent_size, in_dim * in_size * in_size)
    for cin, cout in zip(dec_dims[:-1], dec_dims[1:]):
        params["dec_blocks"].append({
            "res": [init_conv(next(keys), cin, cin) for _ in range(dec_depth)],
            "up": init_conv(next(keys), cin, cout * 4),
        })
    return params


# ----------------------------- forward -----------------------------

def vae_forward(params, x_nchw, eps):
    x = jnp.transpose(x_nchw, (0, 2, 3, 1)).astype(jnp.bfloat16)   # NCHW -> NHWC, bf16

    # ---- Encoder ----
    for blk in params["enc_blocks"]:
        for rp in blk["res"]:
            x = residual_connection(x, rp)
        x = downsample(x, blk["down"])
    B, Hs, Ws, Cs = x.shape
    flat = x.reshape(B, Hs * Ws * Cs)                              # NHWC flatten (see init)
    mv = matmul_bias(flat, params["out_mv"]["w"], params["out_mv"]["b"])   # [B, 2L] f32
    L = mv.shape[1] // 2
    mu, var = mv[:, :L], mv[:, L:]

    # ---- Reparameterize ----
    std = jnp.exp(0.5 * var)
    z = eps * std + mu

    # ---- Decoder ----
    up = matmul_bias(z.astype(jnp.bfloat16),
                     params["up_size"]["w"], params["up_size"]["b"])       # [B, C*h*w] f32
    y = up.reshape(B, Hs, Ws, Cs).astype(jnp.bfloat16)             # columns in NHWC order
    for blk in params["dec_blocks"]:
        for rp in blk["res"]:
            y = residual_connection(y, rp)
        y = upsample(y, blk["up"])
    out = jnp.transpose(y.astype(jnp.float32), (0, 3, 1, 2))       # back to NCHW, f32
    return out, mu, var


if __name__ == "__main__":
    # Small configuration consistent with the module's constructor arguments.
    layer_dims = [3, 8, 16, 32]     # encoder dims; decoder uses reversed
    data_size = 16
    latent_size = 8
    B = 2

    key = jax.random.PRNGKey(0)
    kp, kx, ke = jax.random.split(key, 3)
    params = init_vae_params(kp, layer_dims, data_size, latent_size,
                             enc_depth=2, dec_depth=2)
    x = jax.random.normal(kx, (B, layer_dims[0], data_size, data_size), jnp.float32)
    eps = jax.random.normal(ke, (B, latent_size), jnp.float32)

    out, mu, var = jax.jit(vae_forward)(params, x, eps)
    jax.block_until_ready((out, mu, var))

    assert out.shape == (B, layer_dims[0], data_size, data_size), out.shape
    assert mu.shape == (B, latent_size) and var.shape == (B, latent_size)
    assert jnp.all(jnp.isfinite(out)) and jnp.all(jnp.isfinite(mu)) and jnp.all(jnp.isfinite(var))
    print("KERNEL_OK")
</pallas_src>

<mosaic_0001>
module attributes {stable_mosaic.version = 11 : i64} {
  func.func @_mm_bias_stats_kernel(%arg0: i32, %arg1: memref<256x27xbf16, #tpu.memory_space<vmem>>, %arg2: memref<27x3xbf16, #tpu.memory_space<vmem>>, %arg3: memref<1x3xf32, #tpu.memory_space<vmem>>, %arg4: memref<256x3xf32, #tpu.memory_space<vmem>>, %arg5: memref<1x3xf32, #tpu.memory_space<vmem>>, %arg6: memref<1x3xf32, #tpu.memory_space<vmem>>) attributes {dimension_semantics = [#tpu.dimension_semantics<arbitrary>], iteration_bounds = array<i64: 2>, scalar_prefetch = 0 : i64, scratch_operands = 0 : i64, tpu.core_type = #tpu.core_type<tc>, window_params = [{transform_indices = @transform_0, window_bounds = array<i64: 256, 27>}, {pipeline_mode = #tpu.pipeline_mode<synchronous>, transform_indices = @transform_1, window_bounds = array<i64: 27, 3>}, {pipeline_mode = #tpu.pipeline_mode<synchronous>, transform_indices = @transform_2, window_bounds = array<i64: 1, 3>}, {transform_indices = @transform_3, window_bounds = array<i64: 256, 3>}, {pipeline_mode = #tpu.pipeline_mode<synchronous>, transform_indices = @transform_4, window_bounds = array<i64: 1, 3>}, {pipeline_mode = #tpu.pipeline_mode<synchronous>, transform_indices = @transform_5, window_bounds = array<i64: 1, 3>}]} {
    %c0 = arith.constant 0 : index
    %c0_0 = arith.constant 0 : index
    %0 = vector.load %arg1[%c0, %c0_0] : memref<256x27xbf16, #tpu.memory_space<vmem>>, vector<256x27xbf16>
    %c0_1 = arith.constant 0 : index
    %c0_2 = arith.constant 0 : index
    %1 = vector.load %arg2[%c0_1, %c0_2] : memref<27x3xbf16, #tpu.memory_space<vmem>>, vector<27x3xbf16>
    %cst = arith.constant dense<0.000000e+00> : vector<256x3xf32>
    %2 = tpu.matmul %0, %1, %cst {dimension_numbers = #tpu.dot_dimension_numbers<[1], [0], [0], [1], [0, 0, 1, 1], [], []>} : vector<256x27xbf16>, vector<27x3xbf16>, vector<256x3xf32> -> vector<256x3xf32>
    %c0_3 = arith.constant 0 : index
    %c0_4 = arith.constant 0 : index
    %3 = vector.load %arg3[%c0_3, %c0_4] : memref<1x3xf32, #tpu.memory_space<vmem>>, vector<1x3xf32>
    %4 = vector.broadcast %3 : vector<1x3xf32> to vector<256x3xf32>
    %5 = arith.addf %2, %4 : vector<256x3xf32>
    %c0_5 = arith.constant 0 : index
    %c0_6 = arith.constant 0 : index
    %6 = vector.load %arg4[%c0_5, %c0_6] : memref<256x3xf32, #tpu.memory_space<vmem>>, vector<256x3xf32>
    tpu.vector_store %arg4[%c0_5, %c0_6], %5 {strides = array<i32>} : memref<256x3xf32, #tpu.memory_space<vmem>>, vector<256x3xf32>,
    %7 = tpu.iota {dimensions = array<i32: 0>} : vector<256x3xi32>
    %c256_i32 = arith.constant 256 : i32
    %8 = arith.muli %arg0, %c256_i32 : i32
    %9 = vector.broadcast %8 : i32 to vector<256x3xi32>
    %10 = arith.addi %7, %9 : vector<256x3xi32>
    %c512_i32 = arith.constant 512 : i32
    %11 = vector.broadcast %c512_i32 : i32 to vector<256x3xi32>
    %12 = arith.cmpi slt, %10, %11 : vector<256x3xi32>
    %cst_7 = arith.constant 0.000000e+00 : f32
    %13 = vector.broadcast %cst_7 : f32 to vector<256x3xf32>
    %14 = arith.select %12, %5, %13 : vector<256x3xi1>, vector<256x3xf32>
    %c0_i32 = arith.constant 0 : i32
    %15 = arith.cmpi eq, %arg0, %c0_i32 : i32
    %16 = arith.extui %15 : i1 to i32
    %c0_i32_8 = arith.constant 0 : i32
    %17 = arith.cmpi ne, %16, %c0_i32_8 : i32
    scf.if %17 {
      %cst_19 = arith.constant 0.000000e+00 : f32
      %29 = vector.broadcast %cst_19 : f32 to vector<1x3xf32>
      %c0_20 = arith.constant 0 : index
      %c0_21 = arith.constant 0 : index
      %30 = vector.load %arg5[%c0_20, %c0_21] : memref<1x3xf32, #tpu.memory_space<vmem>>, vector<1x3xf32>
      tpu.vector_store %arg5[%c0_20, %c0_21], %29 {strides = array<i32>} : memref<1x3xf32, #tpu.memory_space<vmem>>, vector<1x3xf32>,
      %cst_22 = arith.constant 0.000000e+00 : f32
      %31 = vector.broadcast %cst_22 : f32 to vector<1x3xf32>
      %c0_23 = arith.constant 0 : index
      %c0_24 = arith.constant 0 : index
      %32 = vector.load %arg6[%c0_23, %c0_24] : memref<1x3xf32, #tpu.memory_space<vmem>>, vector<1x3xf32>
      tpu.vector_store %arg6[%c0_23, %c0_24], %31 {strides = array<i32>} : memref<1x3xf32, #tpu.memory_space<vmem>>, vector<1x3xf32>,
    } else {
    }
    %c0_9 = arith.constant 0 : index
    %c0_10 = arith.constant 0 : index
    %18 = vector.load %arg5[%c0_9, %c0_10] : memref<1x3xf32, #tpu.memory_space<vmem>>, vector<1x3xf32>
    %cst_11 = arith.constant dense<0.000000e+00> : vector<3xf32>
    %19 = vector.multi_reduction <add>, %14, %cst_11 [0] : vector<256x3xf32> to vector<3xf32>
    %20 = vector.shape_cast %19 : vector<3xf32> to vector<1x3xf32>
    %21 = arith.addf %18, %20 : vector<1x3xf32>
    %c0_12 = arith.constant 0 : index
    %c0_13 = arith.constant 0 : index
    %22 = vector.load %arg5[%c0_12, %c0_13] : memref<1x3xf32, #tpu.memory_space<vmem>>, vector<1x3xf32>
    tpu.vector_store %arg5[%c0_12, %c0_13], %21 {strides = array<i32>} : memref<1x3xf32, #tpu.memory_space<vmem>>, vector<1x3xf32>,
    %c0_14 = arith.constant 0 : index
    %c0_15 = arith.constant 0 : index
    %23 = vector.load %arg6[%c0_14, %c0_15] : memref<1x3xf32, #tpu.memory_space<vmem>>, vector<1x3xf32>
    %24 = arith.mulf %14, %14 : vector<256x3xf32>
    %cst_16 = arith.constant dense<0.000000e+00> : vector<3xf32>
    %25 = vector.multi_reduction <add>, %24, %cst_16 [0] : vector<256x3xf32> to vector<3xf32>
    %26 = vector.shape_cast %25 : vector<3xf32> to vector<1x3xf32>
    %27 = arith.addf %23, %26 : vector<1x3xf32>
    %c0_17 = arith.constant 0 : index
    %c0_18 = arith.constant 0 : index
    %28 = vector.load %arg6[%c0_17, %c0_18] : memref<1x3xf32, #tpu.memory_space<vmem>>, vector<1x3xf32>
    tpu.vector_store %arg6[%c0_17, %c0_18], %27 {strides = array<i32>} : memref<1x3xf32, #tpu.memory_space<vmem>>, vector<1x3xf32>,
    return
  }
  func.func @transform_0(%arg0: i32) -> (i32, i32) {
    %c0_i32 = arith.constant 0 : i32
    %c0_i32_0 = arith.constant 0 : i32
    return %arg0, %c0_i32 : i32, i32
  }
  func.func @transform_1(%arg0: i32) -> (i32, i32) {
    %c0_i32 = arith.constant 0 : i32
    %c0_i32_0 = arith.constant 0 : i32
    %c0_i32_1 = arith.constant 0 : i32
    return %c0_i32, %c0_i32_0 : i32, i32
  }
  func.func @transform_2(%arg0: i32) -> (i32, i32) {
    %c0_i32 = arith.constant 0 : i32
    %c0_i32_0 = arith.constant 0 : i32
    %c0_i32_1 = arith.constant 0 : i32
    return %c0_i32, %c0_i32_0 : i32, i32
  }
  func.func @transform_3(%arg0: i32) -> (i32, i32) {
    %c0_i32 = arith.constant 0 : i32
    %c0_i32_0 = arith.constant 0 : i32
    return %arg0, %c0_i32 : i32, i32
  }
  func.func @transform_4(%arg0: i32) -> (i32, i32) {
    %c0_i32 = arith.constant 0 : i32
    %c0_i32_0 = arith.constant 0 : i32
    %c0_i32_1 = arith.constant 0 : i32
    return %c0_i32, %c0_i32_0 : i32, i32
  }
  func.func @transform_5(%arg0: i32) -> (i32, i32) {
    %c0_i32 = arith.constant 0 : i32
    %c0_i32_0 = arith.constant 0 : i32
    %c0_i32_1 = arith.constant 0 : i32
    return %c0_i32, %c0_i32_0 : i32, i32
  }
}

module attributes {stable_mosaic.version = 11 : i64} {
  func.func @_bn_act_kernel(%arg0: i32, %arg1: memref<512x3xf32, #tpu.memory_space<vmem>>, %arg2: memref<1x3xf32, #tpu.memory_space<vmem>>, %arg3: memref<1x3xf32, #tpu.memory_space<vmem>>, %arg4: memref<512x3xbf16, #tpu.memory_space<vmem>>) attributes {dimension_semantics = [#tpu.dimension_semantics<parallel>], iteration_bounds = array<i64: 1>, scalar_prefetch = 0 : i64, scratch_operands = 0 : i64, tpu.core_type = #tpu.core_type<tc>, window_params = [{transform_indices = @transform_0, window_bounds = array<i64: 512, 3>}, {pipeline_mode = #tpu.pipeline_mode<synchronous>, transform_indices = @transform_1, window_bounds = array<i64: 1, 3>}, {pipeline_mode = #tpu.pipeline_mode<synchronous>, transform_indices = @transform_2, window_bounds = array<i64: 1, 3>}, {transform_indices = @transform_3, window_bounds = array<i64: 512, 3>}]} {
    %c0 = arith.constant 0 : index
    %c0_0 = arith.constant 0 : index
    %0 = vector.load %arg1[%c0, %c0_0] : memref<512x3xf32, #tpu.memory_space<vmem>>, vector<512x3xf32>
    %c0_1 = arith.constant 0 : index
    %c0_2 = arith.constant 0 : index
    %1 = vector.load %arg2[%c0_1, %c0_2] : memref<1x3xf32, #tpu.memory_space<vmem>>, vector<1x3xf32>
    %2 = vector.broadcast %1 : vector<1x3xf32> to vector<512x3xf32>
    %3 = arith.subf %0, %2 : vector<512x3xf32>
    %c0_3 = arith.constant 0 : index
    %c0_4 = arith.constant 0 : index
    %4 = vector.load %arg3[%c0_3, %c0_4] : memref<1x3xf32, #tpu.memory_space<vmem>>, vector<1x3xf32>
    %5 = vector.broadcast %4 : vector<1x3xf32> to vector<512x3xf32>
    %6 = arith.mulf %3, %5 : vector<512x3xf32>
    %cst = arith.constant 0.000000e+00 : f32
    %7 = vector.broadcast %cst : f32 to vector<512x3xf32>
    %8 = arith.cmpf oge, %6, %7 : vector<512x3xf32>
    %cst_5 = arith.constant 0.00999999977 : f32
    %9 = vector.broadcast %cst_5 : f32 to vector<512x3xf32>
    %10 = arith.mulf %9, %6 : vector<512x3xf32>
    %11 = arith.select %8, %6, %10 : vector<512x3xi1>, vector<512x3xf32>
    %12 = arith.truncf %11 : vector<512x3xf32> to vector<512x3xbf16>
    %c0_6 = arith.constant 0 : index
    %c0_7 = arith.constant 0 : index
    %13 = vector.load %arg4[%c0_6, %c0_7] : memref<512x3xbf16, #tpu.memory_space<vmem>>, vector<512x3xbf16>
    tpu.vector_store %arg4[%c0_6, %c0_7], %12 {strides = array<i32>} : memref<512x3xbf16, #tpu.memory_space<vmem>>, vector<512x3xbf16>,
    return
  }
  func.func @transform_0(%arg0: i32) -> (i32, i32) {
    %c0_i32 = arith.constant 0 : i32
    %c0_i32_0 = arith.constant 0 : i32
    return %arg0, %c0_i32 : i32, i32
  }
  func.func @transform_1(%arg0: i32) -> (i32, i32) {
    %c0_i32 = arith.constant 0 : i32
    %c0_i32_0 = arith.constant 0 : i32
    %c0_i32_1 = arith.constant 0 : i32
    return %c0_i32, %c0_i32_0 : i32, i32
  }
  func.func @transform_2(%arg0: i32) -> (i32, i32) {
    %c0_i32 = arith.constant 0 : i32
    %c0_i32_0 = arith.constant 0 : i32
    %c0_i32_1 = arith.constant 0 : i32
    return %c0_i32, %c0_i32_0 : i32, i32
  }
  func.func @transform_3(%arg0: i32) -> (i32, i32) {
    %c0_i32 = arith.constant 0 : i32
    %c0_i32_0 = arith.constant 0 : i32
    return %arg0, %c0_i32 : i32, i32
  }
}

module attributes {stable_mosaic.version = 11 : i64} {
  func.func @_bn_act_kernel(%arg0: i32, %arg1: memref<512x3xf32, #tpu.memory_space<vmem>>, %arg2: memref<1x3xf32, #tpu.memory_space<vmem>>, %arg3: memref<1x3xf32, #tpu.memory_space<vmem>>, %arg4: memref<512x3xbf16, #tpu.memory_space<vmem>>, %arg5: memref<512x3xbf16, #tpu.memory_space<vmem>>) attributes {dimension_semantics = [#tpu.dimension_semantics<parallel>], iteration_bounds = array<i64: 1>, scalar_prefetch = 0 : i64, scratch_operands = 0 : i64, tpu.core_type = #tpu.core_type<tc>, window_params = [{transform_indices = @transform_0, window_bounds = array<i64: 512, 3>}, {pipeline_mode = #tpu.pipeline_mode<synchronous>, transform_indices = @transform_1, window_bounds = array<i64: 1, 3>}, {pipeline_mode = #tpu.pipeline_mode<synchronous>, transform_indices = @transform_2, window_bounds = array<i64: 1, 3>}, {transform_indices = @transform_3, window_bounds = array<i64: 512, 3>}, {transform_indices = @transform_4, window_bounds = array<i64: 512, 3>}]} {
    %c0 = arith.constant 0 : index
    %c0_0 = arith.constant 0 : index
    %0 = vector.load %arg1[%c0, %c0_0] : memref<512x3xf32, #tpu.memory_space<vmem>>, vector<512x3xf32>
    %c0_1 = arith.constant 0 : index
    %c0_2 = arith.constant 0 : index
    %1 = vector.load %arg2[%c0_1, %c0_2] : memref<1x3xf32, #tpu.memory_space<vmem>>, vector<1x3xf32>
    %2 = vector.broadcast %1 : vector<1x3xf32> to vector<512x3xf32>
    %3 = arith.subf %0, %2 : vector<512x3xf32>
    %c0_3 = arith.constant 0 : index
    %c0_4 = arith.constant 0 : index
    %4 = vector.load %arg3[%c0_3, %c0_4] : memref<1x3xf32, #tpu.memory_space<vmem>>, vector<1x3xf32>
    %5 = vector.broadcast %4 : vector<1x3xf32> to vector<512x3xf32>
    %6 = arith.mulf %3, %5 : vector<512x3xf32>
    %cst = arith.constant 0.000000e+00 : f32
    %7 = vector.broadcast %cst : f32 to vector<512x3xf32>
    %8 = arith.cmpf oge, %6, %7 : vector<512x3xf32>
    %cst_5 = arith.constant 0.00999999977 : f32
    %9 = vector.broadcast %cst_5 : f32 to vector<512x3xf32>
    %10 = arith.mulf %9, %6 : vector<512x3xf32>
    %11 = arith.select %8, %6, %10 : vector<512x3xi1>, vector<512x3xf32>
    %c0_6 = arith.constant 0 : index
    %c0_7 = arith.constant 0 : index
    %12 = vector.load %arg4[%c0_6, %c0_7] : memref<512x3xbf16, #tpu.memory_space<vmem>>, vector<512x3xbf16>
    %13 = arith.extf %12 : vector<512x3xbf16> to vector<512x3xf32>
    %14 = arith.addf %11, %13 : vector<512x3xf32>
    %15 = arith.truncf %14 : vector<512x3xf32> to vector<512x3xbf16>
    %c0_8 = arith.constant 0 : index
    %c0_9 = arith.constant 0 : index
    %16 = vector.load %arg5[%c0_8, %c0_9] : memref<512x3xbf16, #tpu.memory_space<vmem>>, vector<512x3xbf16>
    tpu.vector_store %arg5[%c0_8, %c0_9], %15 {strides = array<i32>} : memref<512x3xbf16, #tpu.memory_space<vmem>>, vector<512x3xbf16>,
    return
  }
  func.func @transform_0(%arg0: i32) -> (i32, i32) {
    %c0_i32 = arith.constant 0 : i32
    %c0_i32_0 = arith.constant 0 : i32
    return %arg0, %c0_i32 : i32, i32
  }
  func.func @transform_1(%arg0: i32) -> (i32, i32) {
    %c0_i32 = arith.constant 0 : i32
    %c0_i32_0 = arith.constant 0 : i32
    %c0_i32_1 = arith.constant 0 : i32
    return %c0_i32, %c0_i32_0 : i32, i32
  }
  func.func @transform_2(%arg0: i32) -> (i32, i32) {
    %c0_i32 = arith.constant 0 : i32
    %c0_i32_0 = arith.constant 0 : i32
    %c0_i32_1 = arith.constant 0 : i32
    return %c0_i32, %c0_i32_0 : i32, i32
  }
  func.func @transform_3(%arg0: i32) -> (i32, i32) {
    %c0_i32 = arith.constant 0 : i32
    %c0_i32_0 = arith.constant 0 : i32
    return %arg0, %c0_i32 : i32, i32
  }
  func.func @transform_4(%arg0: i32) -> (i32, i32) {
    %c0_i32 = arith.constant 0 : i32
    %c0_i32_0 = arith.constant 0 : i32
    return %arg0, %c0_i32 : i32, i32
  }
}

module attributes {stable_mosaic.version = 11 : i64} {
  func.func @_bn_act_kernel(%arg0: i32, %arg1: memref<128x8xf32, #tpu.memory_space<vmem>>, %arg2: memref<1x8xf32, #tpu.memory_space<vmem>>, %arg3: memref<1x8xf32, #tpu.memory_space<vmem>>, %arg4: memref<128x8xbf16, #tpu.memory_space<vmem>>) attributes {dimension_semantics = [#tpu.dimension_semantics<parallel>], iteration_bounds = array<i64: 1>, scalar_prefetch = 0 : i64, scratch_operands = 0 : i64, tpu.core_type = #tpu.core_type<tc>, window_params = [{transform_indices = @transform_0, window_bounds = array<i64: 128, 8>}, {pipeline_mode = #tpu.pipeline_mode<synchronous>, transform_indices = @transform_1, window_bounds = array<i64: 1, 8>}, {pipeline_mode = #tpu.pipeline_mode<synchronous>, transform_indices = @transform_2, window_bounds = array<i64: 1, 8>}, {transform_indices = @transform_3, window_bounds = array<i64: 128, 8>}]} {
    %c0 = arith.constant 0 : index
    %c0_0 = arith.constant 0 : index
    %0 = vector.load %arg1[%c0, %c0_0] : memref<128x8xf32, #tpu.memory_space<vmem>>, vector<128x8xf32>
    %c0_1 = arith.constant 0 : index
    %c0_2 = arith.constant 0 : index
    %1 = vector.load %arg2[%c0_1, %c0_2] : memref<1x8xf32, #tpu.memory_space<vmem>>, vector<1x8xf32>
    %2 = vector.broadcast %1 : vector<1x8xf32> to vector<128x8xf32>
    %3 = arith.subf %0, %2 : vector<128x8xf32>
    %c0_3 = arith.constant 0 : index
    %c0_4 = arith.constant 0 : index
    %4 = vector.load %arg3[%c0_3, %c0_4] : memref<1x8xf32, #tpu.memory_space<vmem>>, vector<1x8xf32>
    %5 = vector.broadcast %4 : vector<1x8xf32> to vector<128x8xf32>
    %6 = arith.mulf %3, %5 : vector<128x8xf32>
    %cst = arith.constant 0.000000e+00 : f32
    %7 = vector.broadcast %cst : f32 to vector<128x8xf32>
    %8 = arith.cmpf oge, %6, %7 : vector<128x8xf32>
    %cst_5 = arith.constant 0.00999999977 : f32
    %9 = vector.broadcast %cst_5 : f32 to vector<128x8xf32>
    %10 = arith.mulf %9, %6 : vector<128x8xf32>
    %11 = arith.select %8, %6, %10 : vector<128x8xi1>, vector<128x8xf32>
    %12 = arith.truncf %11 : vector<128x8xf32> to vector<128x8xbf16>
    %c0_6 = arith.constant 0 : index
    %c0_7 = arith.constant 0 : index
    %13 = vector.load %arg4[%c0_6, %c0_7] : memref<128x8xbf16, #tpu.memory_space<vmem>>, vector<128x8xbf16>
    tpu.vector_store %arg4[%c0_6, %c0_7], %12 {strides = array<i32>} : memref<128x8xbf16, #tpu.memory_space<vmem>>, vector<128x8xbf16>,
    return
  }
  func.func @transform_0(%arg0: i32) -> (i32, i32) {
    %c0_i32 = arith.constant 0 : i32
    %c0_i32_0 = arith.constant 0 : i32
    return %arg0, %c0_i32 : i32, i32
  }
  func.func @transform_1(%arg0: i32) -> (i32, i32) {
    %c0_i32 = arith.constant 0 : i32
    %c0_i32_0 = arith.constant 0 : i32
    %c0_i32_1 = arith.constant 0 : i32
    return %c0_i32, %c0_i32_0 : i32, i32
  }
  func.func @transform_2(%arg0: i32) -> (i32, i32) {
    %c0_i32 = arith.constant 0 : i32
    %c0_i32_0 = arith.constant 0 : i32
    %c0_i32_1 = arith.constant 0 : i32
    return %c0_i32, %c0_i32_0 : i32, i32
  }
  func.func @transform_3(%arg0: i32) -> (i32, i32) {
    %c0_i32 = arith.constant 0 : i32
    %c0_i32_0 = arith.constant 0 : i32
    return %arg0, %c0_i32 : i32, i32
  }
}

module attributes {stable_mosaic.version = 11 : i64} {
  func.func @_mm_bias_stats_kernel(%arg0: i32, %arg1: memref<128x27xbf16, #tpu.memory_space<vmem>>, %arg2: memref<27x8xbf16, #tpu.memory_space<vmem>>, %arg3: memref<1x8xf32, #tpu.memory_space<vmem>>, %arg4: memref<128x8xf32, #tpu.memory_space<vmem>>, %arg5: memref<1x8xf32, #tpu.memory_space<vmem>>, %arg6: memref<1x8xf32, #tpu.memory_space<vmem>>) attributes {dimension_semantics = [#tpu.dimension_semantics<arbitrary>], iteration_bounds = array<i64: 1>, scalar_prefetch = 0 : i64, scratch_operands = 0 : i64, tpu.core_type = #tpu.core_type<tc>, window_params = [{transform_indices = @transform_0, window_bounds = array<i64: 128, 27>}, {pipeline_mode = #tpu.pipeline_mode<synchronous>, transform_indices = @transform_1, window_bounds = array<i64: 27, 8>}, {pipeline_mode = #tpu.pipeline_mode<synchronous>, transform_indices = @transform_2, window_bounds = array<i64: 1, 8>}, {transform_indices = @transform_3, window_bounds = array<i64: 128, 8>}, {pipeline_mode = #tpu.pipeline_mode<synchronous>, transform_indices = @transform_4, window_bounds = array<i64: 1, 8>}, {pipeline_mode = #tpu.pipeline_mode<synchronous>, transform_indices = @transform_5, window_bounds = array<i64: 1, 8>}]} {
    %c0 = arith.constant 0 : index
    %c0_0 = arith.constant 0 : index
    %0 = vector.load %arg1[%c0, %c0_0] : memref<128x27xbf16, #tpu.memory_space<vmem>>, vector<128x27xbf16>
    %c0_1 = arith.constant 0 : index
    %c0_2 = arith.constant 0 : index
    %1 = vector.load %arg2[%c0_1, %c0_2] : memref<27x8xbf16, #tpu.memory_space<vmem>>, vector<27x8xbf16>
    %cst = arith.constant dense<0.000000e+00> : vector<128x8xf32>
    %2 = tpu.matmul %0, %1, %cst {dimension_numbers = #tpu.dot_dimension_numbers<[1], [0], [0], [1], [0, 0, 1, 1], [], []>} : vector<128x27xbf16>, vector<27x8xbf16>, vector<128x8xf32> -> vector<128x8xf32>
    %c0_3 = arith.constant 0 : index
    %c0_4 = arith.constant 0 : index
    %3 = vector.load %arg3[%c0_3, %c0_4] : memref<1x8xf32, #tpu.memory_space<vmem>>, vector<1x8xf32>
    %4 = vector.broadcast %3 : vector<1x8xf32> to vector<128x8xf32>
    %5 = arith.addf %2, %4 : vector<128x8xf32>
    %c0_5 = arith.constant 0 : index
    %c0_6 = arith.constant 0 : index
    %6 = vector.load %arg4[%c0_5, %c0_6] : memref<128x8xf32, #tpu.memory_space<vmem>>, vector<128x8xf32>
    tpu.vector_store %arg4[%c0_5, %c0_6], %5 {strides = array<i32>} : memref<128x8xf32, #tpu.memory_space<vmem>>, vector<128x8xf32>,
    %7 = tpu.iota {dimensions = array<i32: 0>} : vector<128x8xi32>
    %c128_i32 = arith.constant 128 : i32
    %8 = arith.muli %arg0, %c128_i32 : i32
    %9 = vector.broadcast %8 : i32 to vector<128x8xi32>
    %10 = arith.addi %7, %9 : vector<128x8xi32>
    %c128_i32_7 = arith.constant 128 : i32
    %11 = vector.broadcast %c128_i32_7 : i32 to vector<128x8xi32>
    %12 = arith.cmpi slt, %10, %11 : vector<128x8xi32>
    %cst_8 = arith.constant 0.000000e+00 : f32
    %13 = vector.broadcast %cst_8 : f32 to vector<128x8xf32>
    %14 = arith.select %12, %5, %13 : vector<128x8xi1>, vector<128x8xf32>
    %c0_i32 = arith.constant 0 : i32
    %15 = arith.cmpi eq, %arg0, %c0_i32 : i32
    %16 = arith.extui %15 : i1 to i32
    %c0_i32_9 = arith.constant 0 : i32
    %17 = arith.cmpi ne, %16, %c0_i32_9 : i32
    scf.if %17 {
      %cst_20 = arith.constant 0.000000e+00 : f32
      %29 = vector.broadcast %cst_20 : f32 to vector<1x8xf32>
      %c0_21 = arith.constant 0 : index
      %c0_22 = arith.constant 0 : index
      %30 = vector.load %arg5[%c0_21, %c0_22] : memref<1x8xf32, #tpu.memory_space<vmem>>, vector<1x8xf32>
      tpu.vector_store %arg5[%c0_21, %c0_22], %29 {strides = array<i32>} : memref<1x8xf32, #tpu.memory_space<vmem>>, vector<1x8xf32>,
      %cst_23 = arith.constant 0.000000e+00 : f32
      %31 = vector.broadcast %cst_23 : f32 to vector<1x8xf32>
      %c0_24 = arith.constant 0 : index
      %c0_25 = arith.constant 0 : index
      %32 = vector.load %arg6[%c0_24, %c0_25] : memref<1x8xf32, #tpu.memory_space<vmem>>, vector<1x8xf32>
      tpu.vector_store %arg6[%c0_24, %c0_25], %31 {strides = array<i32>} : memref<1x8xf32, #tpu.memory_space<vmem>>, vector<1x8xf32>,
    } else {
    }
    %c0_10 = arith.constant 0 : index
    %c0_11 = arith.constant 0 : index
    %18 = vector.load %arg5[%c0_10, %c0_11] : memref<1x8xf32, #tpu.memory_space<vmem>>, vector<1x8xf32>
    %cst_12 = arith.constant dense<0.000000e+00> : vector<8xf32>
    %19 = vector.multi_reduction <add>, %14, %cst_12 [0] : vector<128x8xf32> to vector<8xf32>
    %20 = vector.shape_cast %19 : vector<8xf32> to vector<1x8xf32>
    %21 = arith.addf %18, %20 : vector<1x8xf32>
    %c0_13 = arith.constant 0 : index
    %c0_14 = arith.constant 0 : index
    %22 = vector.load %arg5[%c0_13, %c0_14] : memref<1x8xf32, #tpu.memory_space<vmem>>, vector<1x8xf32>
    tpu.vector_store %arg5[%c0_13, %c0_14], %21 {strides = array<i32>} : memref<1x8xf32, #tpu.memory_space<vmem>>, vector<1x8xf32>,
    %c0_15 = arith.constant 0 : index
    %c0_16 = arith.constant 0 : index
    %23 = vector.load %arg6[%c0_15, %c0_16] : memref<1x8xf32, #tpu.memory_space<vmem>>, vector<1x8xf32>
    %24 = arith.mulf %14, %14 : vector<128x8xf32>
    %cst_17 = arith.constant dense<0.000000e+00> : vector<8xf32>
    %25 = vector.multi_reduction <add>, %24, %cst_17 [0] : vector<128x8xf32> to vector<8xf32>
    %26 = vector.shape_cast %25 : vector<8xf32> to vector<1x8xf32>
    %27 = arith.addf %23, %26 : vector<1x8xf32>
    %c0_18 = arith.constant 0 : index
    %c0_19 = arith.constant 0 : index
    %28 = vector.load %arg6[%c0_18, %c0_19] : memref<1x8xf32, #tpu.memory_space<vmem>>, vector<1x8xf32>
    tpu.vector_store %arg6[%c0_18, %c0_19], %27 {strides = array<i32>} : memref<1x8xf32, #tpu.memory_space<vmem>>, vector<1x8xf32>,
    return
  }
  func.func @transform_0(%arg0: i32) -> (i32, i32) {
    %c0_i32 = arith.constant 0 : i32
    %c0_i32_0 = arith.constant 0 : i32
    return %arg0, %c0_i32 : i32, i32
  }
  func.func @transform_1(%arg0: i32) -> (i32, i32) {
    %c0_i32 = arith.constant 0 : i32
    %c0_i32_0 = arith.constant 0 : i32
    %c0_i32_1 = arith.constant 0 : i32
    return %c0_i32, %c0_i32_0 : i32, i32
  }
  func.func @transform_2(%arg0: i32) -> (i32, i32) {
    %c0_i32 = arith.constant 0 : i32
    %c0_i32_0 = arith.constant 0 : i32
    %c0_i32_1 = arith.constant 0 : i32
    return %c0_i32, %c0_i32_0 : i32, i32
  }
  func.func @transform_3(%arg0: i32) -> (i32, i32) {
    %c0_i32 = arith.constant 0 : i32
    %c0_i32_0 = arith.constant 0 : i32
    return %arg0, %c0_i32 : i32, i32
  }
  func.func @transform_4(%arg0: i32) -> (i32, i32) {
    %c0_i32 = arith.constant 0 : i32
    %c0_i32_0 = arith.constant 0 : i32
    %c0_i32_1 = arith.constant 0 : i32
    return %c0_i32, %c0_i32_0 : i32, i32
  }
  func.func @transform_5(%arg0: i32) -> (i32, i32) {
    %c0_i32 = arith.constant 0 : i32
    %c0_i32_0 = arith.constant 0 : i32
    %c0_i32_1 = arith.constant 0 : i32
    return %c0_i32, %c0_i32_0 : i32, i32
  }
}

module attributes {stable_mosaic.version = 11 : i64} {
  func.func @_bn_act_kernel(%arg0: i32, %arg1: memref<128x8xf32, #tpu.memory_space<vmem>>, %arg2: memref<1x8xf32, #tpu.memory_space<vmem>>, %arg3: memref<1x8xf32, #tpu.memory_space<vmem>>, %arg4: memref<128x8xbf16, #tpu.memory_space<vmem>>, %arg5: memref<128x8xbf16, #tpu.memory_space<vmem>>) attributes {dimension_semantics = [#tpu.dimension_semantics<parallel>], iteration_bounds = array<i64: 1>, scalar_prefetch = 0 : i64, scratch_operands = 0 : i64, tpu.core_type = #tpu.core_type<tc>, window_params = [{transform_indices = @transform_0, window_bounds = array<i64: 128, 8>}, {pipeline_mode = #tpu.pipeline_mode<synchronous>, transform_indices = @transform_1, window_bounds = array<i64: 1, 8>}, {pipeline_mode = #tpu.pipeline_mode<synchronous>, transform_indices = @transform_2, window_bounds = array<i64: 1, 8>}, {transform_indices = @transform_3, window_bounds = array<i64: 128, 8>}, {transform_indices = @transform_4, window_bounds = array<i64: 128, 8>}]} {
    %c0 = arith.constant 0 : index
    %c0_0 = arith.constant 0 : index
    %0 = vector.load %arg1[%c0, %c0_0] : memref<128x8xf32, #tpu.memory_space<vmem>>, vector<128x8xf32>
    %c0_1 = arith.constant 0 : index
    %c0_2 = arith.constant 0 : index
    %1 = vector.load %arg2[%c0_1, %c0_2] : memref<1x8xf32, #tpu.memory_space<vmem>>, vector<1x8xf32>
    %2 = vector.broadcast %1 : vector<1x8xf32> to vector<128x8xf32>
    %3 = arith.subf %0, %2 : vector<128x8xf32>
    %c0_3 = arith.constant 0 : index
    %c0_4 = arith.constant 0 : index
    %4 = vector.load %arg3[%c0_3, %c0_4] : memref<1x8xf32, #tpu.memory_space<vmem>>, vector<1x8xf32>
    %5 = vector.broadcast %4 : vector<1x8xf32> to vector<128x8xf32>
    %6 = arith.mulf %3, %5 : vector<128x8xf32>
    %cst = arith.constant 0.000000e+00 : f32
    %7 = vector.broadcast %cst : f32 to vector<128x8xf32>
    %8 = arith.cmpf oge, %6, %7 : vector<128x8xf32>
    %cst_5 = arith.constant 0.00999999977 : f32
    %9 = vector.broadcast %cst_5 : f32 to vector<128x8xf32>
    %10 = arith.mulf %9, %6 : vector<128x8xf32>
    %11 = arith.select %8, %6, %10 : vector<128x8xi1>, vector<128x8xf32>
    %c0_6 = arith.constant 0 : index
    %c0_7 = arith.constant 0 : index
    %12 = vector.load %arg4[%c0_6, %c0_7] : memref<128x8xbf16, #tpu.memory_space<vmem>>, vector<128x8xbf16>
    %13 = arith.extf %12 : vector<128x8xbf16> to vector<128x8xf32>
    %14 = arith.addf %11, %13 : vector<128x8xf32>
    %15 = arith.truncf %14 : vector<128x8xf32> to vector<128x8xbf16>
    %c0_8 = arith.constant 0 : index
    %c0_9 = arith.constant 0 : index
    %16 = vector.load %arg5[%c0_8, %c0_9] : memref<128x8xbf16, #tpu.memory_space<vmem>>, vector<128x8xbf16>
    tpu.vector_store %arg5[%c0_8, %c0_9], %15 {strides = array<i32>} : memref<128x8xbf16, #tpu.memory_space<vmem>>, vector<128x8xbf16>,
    return
  }
  func.func @transform_0(%arg0: i32) -> (i32, i32) {
    %c0_i32 = arith.constant 0 : i32
    %c0_i32_0 = arith.constant 0 : i32
    return %arg0, %c0_i32 : i32, i32
  }
  func.func @transform_1(%arg0: i32) -> (i32, i32) {
    %c0_i32 = arith.constant 0 : i32
    %c0_i32_0 = arith.constant 0 : i32
    %c0_i32_1 = arith.constant 0 : i32
    return %c0_i32, %c0_i32_0 : i32, i32
  }
  func.func @transform_2(%arg0: i32) -> (i32, i32) {
    %c0_i32 = arith.constant 0 : i32
    %c0_i32_0 = arith.constant 0 : i32
    %c0_i32_1 = arith.constant 0 : i32
    return %c0_i32, %c0_i32_0 : i32, i32
  }
  func.func @transform_3(%arg0: i32) -> (i32, i32) {
    %c0_i32 = arith.constant 0 : i32
    %c0_i32_0 = arith.constant 0 : i32
    return %arg0, %c0_i32 : i32, i32
  }
  func.func @transform_4(%arg0: i32) -> (i32, i32) {
    %c0_i32 = arith.constant 0 : i32
    %c0_i32_0 = arith.constant 0 : i32
    return %arg0, %c0_i32 : i32, i32
  }
}

module attributes {stable_mosaic.version = 11 : i64} {
  func.func @_mm_bias_stats_kernel(%arg0: i32, %arg1: memref<128x72xbf16, #tpu.memory_space<vmem>>, %arg2: memref<72x8xbf16, #tpu.memory_space<vmem>>, %arg3: memref<1x8xf32, #tpu.memory_space<vmem>>, %arg4: memref<128x8xf32, #tpu.memory_space<vmem>>, %arg5: memref<1x8xf32, #tpu.memory_space<vmem>>, %arg6: memref<1x8xf32, #tpu.memory_space<vmem>>) attributes {dimension_semantics = [#tpu.dimension_semantics<arbitrary>], iteration_bounds = array<i64: 1>, scalar_prefetch = 0 : i64, scratch_operands = 0 : i64, tpu.core_type = #tpu.core_type<tc>, window_params = [{transform_indices = @transform_0, window_bounds = array<i64: 128, 72>}, {pipeline_mode = #tpu.pipeline_mode<synchronous>, transform_indices = @transform_1, window_bounds = array<i64: 72, 8>}, {pipeline_mode = #tpu.pipeline_mode<synchronous>, transform_indices = @transform_2, window_bounds = array<i64: 1, 8>}, {transform_indices = @transform_3, window_bounds = array<i64: 128, 8>}, {pipeline_mode = #tpu.pipeline_mode<synchronous>, transform_indices = @transform_4, window_bounds = array<i64: 1, 8>}, {pipeline_mode = #tpu.pipeline_mode<synchronous>, transform_indices = @transform_5, window_bounds = array<i64: 1, 8>}]} {
    %c0 = arith.constant 0 : index
    %c0_0 = arith.constant 0 : index
    %0 = vector.load %arg1[%c0, %c0_0] : memref<128x72xbf16, #tpu.memory_space<vmem>>, vector<128x72xbf16>
    %c0_1 = arith.constant 0 : index
    %c0_2 = arith.constant 0 : index
    %1 = vector.load %arg2[%c0_1, %c0_2] : memref<72x8xbf16, #tpu.memory_space<vmem>>, vector<72x8xbf16>
    %cst = arith.constant dense<0.000000e+00> : vector<128x8xf32>
    %2 = tpu.matmul %0, %1, %cst {dimension_numbers = #tpu.dot_dimension_numbers<[1], [0], [0], [1], [0, 0, 1, 1], [], []>} : vector<128x72xbf16>, vector<72x8xbf16>, vector<128x8xf32> -> vector<128x8xf32>
    %c0_3 = arith.constant 0 : index
    %c0_4 = arith.constant 0 : index
    %3 = vector.load %arg3[%c0_3, %c0_4] : memref<1x8xf32, #tpu.memory_space<vmem>>, vector<1x8xf32>
    %4 = vector.broadcast %3 : vector<1x8xf32> to vector<128x8xf32>
    %5 = arith.addf %2, %4 : vector<128x8xf32>
    %c0_5 = arith.constant 0 : index
    %c0_6 = arith.constant 0 : index
    %6 = vector.load %arg4[%c0_5, %c0_6] : memref<128x8xf32, #tpu.memory_space<vmem>>, vector<128x8xf32>
    tpu.vector_store %arg4[%c0_5, %c0_6], %5 {strides = array<i32>} : memref<128x8xf32, #tpu.memory_space<vmem>>, vector<128x8xf32>,
    %7 = tpu.iota {dimensions = array<i32: 0>} : vector<128x8xi32>
    %c128_i32 = arith.constant 128 : i32
    %8 = arith.muli %arg0, %c128_i32 : i32
    %9 = vector.broadcast %8 : i32 to vector<128x8xi32>
    %10 = arith.addi %7, %9 : vector<128x8xi32>
    %c128_i32_7 = arith.constant 128 : i32
    %11 = vector.broadcast %c128_i32_7 : i32 to vector<128x8xi32>
    %12 = arith.cmpi slt, %10, %11 : vector<128x8xi32>
    %cst_8 = arith.constant 0.000000e+00 : f32
    %13 = vector.broadcast %cst_8 : f32 to vector<128x8xf32>
    %14 = arith.select %12, %5, %13 : vector<128x8xi1>, vector<128x8xf32>
    %c0_i32 = arith.constant 0 : i32
    %15 = arith.cmpi eq, %arg0, %c0_i32 : i32
    %16 = arith.extui %15 : i1 to i32
    %c0_i32_9 = arith.constant 0 : i32
    %17 = arith.cmpi ne, %16, %c0_i32_9 : i32
    scf.if %17 {
      %cst_20 = arith.constant 0.000000e+00 : f32
      %29 = vector.broadcast %cst_20 : f32 to vector<1x8xf32>
      %c0_21 = arith.constant 0 : index
      %c0_22 = arith.constant 0 : index
      %30 = vector.load %arg5[%c0_21, %c0_22] : memref<1x8xf32, #tpu.memory_space<vmem>>, vector<1x8xf32>
      tpu.vector_store %arg5[%c0_21, %c0_22], %29 {strides = array<i32>} : memref<1x8xf32, #tpu.memory_space<vmem>>, vector<1x8xf32>,
      %cst_23 = arith.constant 0.000000e+00 : f32
      %31 = vector.broadcast %cst_23 : f32 to vector<1x8xf32>
      %c0_24 = arith.constant 0 : index
      %c0_25 = arith.constant 0 : index
      %32 = vector.load %arg6[%c0_24, %c0_25] : memref<1x8xf32, #tpu.memory_space<vmem>>, vector<1x8xf32>
      tpu.vector_store %arg6[%c0_24, %c0_25], %31 {strides = array<i32>} : memref<1x8xf32, #tpu.memory_space<vmem>>, vector<1x8xf32>,
    } else {
    }
    %c0_10 = arith.constant 0 : index
    %c0_11 = arith.constant 0 : index
    %18 = vector.load %arg5[%c0_10, %c0_11] : memref<1x8xf32, #tpu.memory_space<vmem>>, vector<1x8xf32>
    %cst_12 = arith.constant dense<0.000000e+00> : vector<8xf32>
    %19 = vector.multi_reduction <add>, %14, %cst_12 [0] : vector<128x8xf32> to vector<8xf32>
    %20 = vector.shape_cast %19 : vector<8xf32> to vector<1x8xf32>
    %21 = arith.addf %18, %20 : vector<1x8xf32>
    %c0_13 = arith.constant 0 : index
    %c0_14 = arith.constant 0 : index
    %22 = vector.load %arg5[%c0_13, %c0_14] : memref<1x8xf32, #tpu.memory_space<vmem>>, vector<1x8xf32>
    tpu.vector_store %arg5[%c0_13, %c0_14], %21 {strides = array<i32>} : memref<1x8xf32, #tpu.memory_space<vmem>>, vector<1x8xf32>,
    %c0_15 = arith.constant 0 : index
    %c0_16 = arith.constant 0 : index
    %23 = vector.load %arg6[%c0_15, %c0_16] : memref<1x8xf32, #tpu.memory_space<vmem>>, vector<1x8xf32>
    %24 = arith.mulf %14, %14 : vector<128x8xf32>
    %cst_17 = arith.constant dense<0.000000e+00> : vector<8xf32>
    %25 = vector.multi_reduction <add>, %24, %cst_17 [0] : vector<128x8xf32> to vector<8xf32>
    %26 = vector.shape_cast %25 : vector<8xf32> to vector<1x8xf32>
    %27 = arith.addf %23, %26 : vector<1x8xf32>
    %c0_18 = arith.constant 0 : index
    %c0_19 = arith.constant 0 : index
    %28 = vector.load %arg6[%c0_18, %c0_19] : memref<1x8xf32, #tpu.memory_space<vmem>>, vector<1x8xf32>
    tpu.vector_store %arg6[%c0_18, %c0_19], %27 {strides = array<i32>} : memref<1x8xf32, #tpu.memory_space<vmem>>, vector<1x8xf32>,
    return
  }
  func.func @transform_0(%arg0: i32) -> (i32, i32) {
    %c0_i32 = arith.constant 0 : i32
    %c0_i32_0 = arith.constant 0 : i32
    return %arg0, %c0_i32 : i32, i32
  }
  func.func @transform_1(%arg0: i32) -> (i32, i32) {
    %c0_i32 = arith.constant 0 : i32
    %c0_i32_0 = arith.constant 0 : i32
    %c0_i32_1 = arith.constant 0 : i32
    return %c0_i32, %c0_i32_0 : i32, i32
  }
  func.func @transform_2(%arg0: i32) -> (i32, i32) {
    %c0_i32 = arith.constant 0 : i32
    %c0_i32_0 = arith.constant 0 : i32
    %c0_i32_1 = arith.constant 0 : i32
    return %c0_i32, %c0_i32_0 : i32, i32
  }
  func.func @transform_3(%arg0: i32) -> (i32, i32) {
    %c0_i32 = arith.constant 0 : i32
    %c0_i32_0 = arith.constant 0 : i32
    return %arg0, %c0_i32 : i32, i32
  }
  func.func @transform_4(%arg0: i32) -> (i32, i32) {
    %c0_i32 = arith.constant 0 : i32
    %c0_i32_0 = arith.constant 0 : i32
    %c0_i32_1 = arith.constant 0 : i32
    return %c0_i32, %c0_i32_0 : i32, i32
  }
  func.func @transform_5(%arg0: i32) -> (i32, i32) {
    %c0_i32 = arith.constant 0 : i32
    %c0_i32_0 = arith.constant 0 : i32
    %c0_i32_1 = arith.constant 0 : i32
    return %c0_i32, %c0_i32_0 : i32, i32
  }
}

module attributes {stable_mosaic.version = 11 : i64} {
  func.func @_bn_act_kernel(%arg0: i32, %arg1: memref<32x16xf32, #tpu.memory_space<vmem>>, %arg2: memref<1x16xf32, #tpu.memory_space<vmem>>, %arg3: memref<1x16xf32, #tpu.memory_space<vmem>>, %arg4: memref<32x16xbf16, #tpu.memory_space<vmem>>) attributes {dimension_semantics = [#tpu.dimension_semantics<parallel>], iteration_bounds = array<i64: 1>, scalar_prefetch = 0 : i64, scratch_operands = 0 : i64, tpu.core_type = #tpu.core_type<tc>, window_params = [{transform_indices = @transform_0, window_bounds = array<i64: 32, 16>}, {pipeline_mode = #tpu.pipeline_mode<synchronous>, transform_indices = @transform_1, window_bounds = array<i64: 1, 16>}, {pipeline_mode = #tpu.pipeline_mode<synchronous>, transform_indices = @transform_2, window_bounds = array<i64: 1, 16>}, {transform_indices = @transform_3, window_bounds = array<i64: 32, 16>}]} {
    %c0 = arith.constant 0 : index
    %c0_0 = arith.constant 0 : index
    %0 = vector.load %arg1[%c0, %c0_0] : memref<32x16xf32, #tpu.memory_space<vmem>>, vector<32x16xf32>
    %c0_1 = arith.constant 0 : index
    %c0_2 = arith.constant 0 : index
    %1 = vector.load %arg2[%c0_1, %c0_2] : memref<1x16xf32, #tpu.memory_space<vmem>>, vector<1x16xf32>
    %2 = vector.broadcast %1 : vector<1x16xf32> to vector<32x16xf32>
    %3 = arith.subf %0, %2 : vector<32x16xf32>
    %c0_3 = arith.constant 0 : index
    %c0_4 = arith.constant 0 : index
    %4 = vector.load %arg3[%c0_3, %c0_4] : memref<1x16xf32, #tpu.memory_space<vmem>>, vector<1x16xf32>
    %5 = vector.broadcast %4 : vector<1x16xf32> to vector<32x16xf32>
    %6 = arith.mulf %3, %5 : vector<32x16xf32>
    %cst = arith.constant 0.000000e+00 : f32
    %7 = vector.broadcast %cst : f32 to vector<32x16xf32>
    %8 = arith.cmpf oge, %6, %7 : vector<32x16xf32>
    %cst_5 = arith.constant 0.00999999977 : f32
    %9 = vector.broadcast %cst_5 : f32 to vector<32x16xf32>
    %10 = arith.mulf %9, %6 : vector<32x16xf32>
    %11 = arith.select %8, %6, %10 : vector<32x16xi1>, vector<32x16xf32>
    %12 = arith.truncf %11 : vector<32x16xf32> to vector<32x16xbf16>
    %c0_6 = arith.constant 0 : index
    %c0_7 = arith.constant 0 : index
    %13 = vector.load %arg4[%c0_6, %c0_7] : memref<32x16xbf16, #tpu.memory_space<vmem>>, vector<32x16xbf16>
    tpu.vector_store %arg4[%c0_6, %c0_7], %12 {strides = array<i32>} : memref<32x16xbf16, #tpu.memory_space<vmem>>, vector<32x16xbf16>,
    return
  }
  func.func @transform_0(%arg0: i32) -> (i32, i32) {
    %c0_i32 = arith.constant 0 : i32
    %c0_i32_0 = arith.constant 0 : i32
    return %arg0, %c0_i32 : i32, i32
  }
  func.func @transform_1(%arg0: i32) -> (i32, i32) {
    %c0_i32 = arith.constant 0 : i32
    %c0_i32_0 = arith.constant 0 : i32
    %c0_i32_1 = arith.constant 0 : i32
    return %c0_i32, %c0_i32_0 : i32, i32
  }
  func.func @transform_2(%arg0: i32) -> (i32, i32) {
    %c0_i32 = arith.constant 0 : i32
    %c0_i32_0 = arith.constant 0 : i32
    %c0_i32_1 = arith.constant 0 : i32
    return %c0_i32, %c0_i32_0 : i32, i32
  }
  func.func @transform_3(%arg0: i32) -> (i32, i32) {
    %c0_i32 = arith.constant 0 : i32
    %c0_i32_0 = arith.constant 0 : i32
    return %arg0, %c0_i32 : i32, i32
  }
}

module attributes {stable_mosaic.version = 11 : i64} {
  func.func @_mm_bias_stats_kernel(%arg0: i32, %arg1: memref<32x72xbf16, #tpu.memory_space<vmem>>, %arg2: memref<72x16xbf16, #tpu.memory_space<vmem>>, %arg3: memref<1x16xf32, #tpu.memory_space<vmem>>, %arg4: memref<32x16xf32, #tpu.memory_space<vmem>>, %arg5: memref<1x16xf32, #tpu.memory_space<vmem>>, %arg6: memref<1x16xf32, #tpu.memory_space<vmem>>) attributes {dimension_semantics = [#tpu.dimension_semantics<arbitrary>], iteration_bounds = array<i64: 1>, scalar_prefetch = 0 : i64, scratch_operands = 0 : i64, tpu.core_type = #tpu.core_type<tc>, window_params = [{transform_indices = @transform_0, window_bounds = array<i64: 32, 72>}, {pipeline_mode = #tpu.pipeline_mode<synchronous>, transform_indices = @transform_1, window_bounds = array<i64: 72, 16>}, {pipeline_mode = #tpu.pipeline_mode<synchronous>, transform_indices = @transform_2, window_bounds = array<i64: 1, 16>}, {transform_indices = @transform_3, window_bounds = array<i64: 32, 16>}, {pipeline_mode = #tpu.pipeline_mode<synchronous>, transform_indices = @transform_4, window_bounds = array<i64: 1, 16>}, {pipeline_mode = #tpu.pipeline_mode<synchronous>, transform_indices = @transform_5, window_bounds = array<i64: 1, 16>}]} {
    %c0 = arith.constant 0 : index
    %c0_0 = arith.constant 0 : index
    %0 = vector.load %arg1[%c0, %c0_0] : memref<32x72xbf16, #tpu.memory_space<vmem>>, vector<32x72xbf16>
    %c0_1 = arith.constant 0 : index
    %c0_2 = arith.constant 0 : index
    %1 = vector.load %arg2[%c0_1, %c0_2] : memref<72x16xbf16, #tpu.memory_space<vmem>>, vector<72x16xbf16>
    %cst = arith.constant dense<0.000000e+00> : vector<32x16xf32>
    %2 = tpu.matmul %0, %1, %cst {dimension_numbers = #tpu.dot_dimension_numbers<[1], [0], [0], [1], [0, 0, 1, 1], [], []>} : vector<32x72xbf16>, vector<72x16xbf16>, vector<32x16xf32> -> vector<32x16xf32>
    %c0_3 = arith.constant 0 : index
    %c0_4 = arith.constant 0 : index
    %3 = vector.load %arg3[%c0_3, %c0_4] : memref<1x16xf32, #tpu.memory_space<vmem>>, vector<1x16xf32>
    %4 = vector.broadcast %3 : vector<1x16xf32> to vector<32x16xf32>
    %5 = arith.addf %2, %4 : vector<32x16xf32>
    %c0_5 = arith.constant 0 : index
    %c0_6 = arith.constant 0 : index
    %6 = vector.load %arg4[%c0_5, %c0_6] : memref<32x16xf32, #tpu.memory_space<vmem>>, vector<32x16xf32>
    tpu.vector_store %arg4[%c0_5, %c0_6], %5 {strides = array<i32>} : memref<32x16xf32, #tpu.memory_space<vmem>>, vector<32x16xf32>,
    %7 = tpu.iota {dimensions = array<i32: 0>} : vector<32x16xi32>
    %c32_i32 = arith.constant 32 : i32
    %8 = arith.muli %arg0, %c32_i32 : i32
    %9 = vector.broadcast %8 : i32 to vector<32x16xi32>
    %10 = arith.addi %7, %9 : vector<32x16xi32>
    %c32_i32_7 = arith.constant 32 : i32
    %11 = vector.broadcast %c32_i32_7 : i32 to vector<32x16xi32>
    %12 = arith.cmpi slt, %10, %11 : vector<32x16xi32>
    %cst_8 = arith.constant 0.000000e+00 : f32
    %13 = vector.broadcast %cst_8 : f32 to vector<32x16xf32>
    %14 = arith.select %12, %5, %13 : vector<32x16xi1>, vector<32x16xf32>
    %c0_i32 = arith.constant 0 : i32
    %15 = arith.cmpi eq, %arg0, %c0_i32 : i32
    %16 = arith.extui %15 : i1 to i32
    %c0_i32_9 = arith.constant 0 : i32
    %17 = arith.cmpi ne, %16, %c0_i32_9 : i32
    scf.if %17 {
      %cst_20 = arith.constant 0.000000e+00 : f32
      %29 = vector.broadcast %cst_20 : f32 to vector<1x16xf32>
      %c0_21 = arith.constant 0 : index
      %c0_22 = arith.constant 0 : index
      %30 = vector.load %arg5[%c0_21, %c0_22] : memref<1x16xf32, #tpu.memory_space<vmem>>, vector<1x16xf32>
      tpu.vector_store %arg5[%c0_21, %c0_22], %29 {strides = array<i32>} : memref<1x16xf32, #tpu.memory_space<vmem>>, vector<1x16xf32>,
      %cst_23 = arith.constant 0.000000e+00 : f32
      %31 = vector.broadcast %cst_23 : f32 to vector<1x16xf32>
      %c0_24 = arith.constant 0 : index
      %c0_25 = arith.constant 0 : index
      %32 = vector.load %arg6[%c0_24, %c0_25] : memref<1x16xf32, #tpu.memory_space<vmem>>, vector<1x16xf32>
      tpu.vector_store %arg6[%c0_24, %c0_25], %31 {strides = array<i32>} : memref<1x16xf32, #tpu.memory_space<vmem>>, vector<1x16xf32>,
    } else {
    }
    %c0_10 = arith.constant 0 : index
    %c0_11 = arith.constant 0 : index
    %18 = vector.load %arg5[%c0_10, %c0_11] : memref<1x16xf32, #tpu.memory_space<vmem>>, vector<1x16xf32>
    %cst_12 = arith.constant dense<0.000000e+00> : vector<16xf32>
    %19 = vector.multi_reduction <add>, %14, %cst_12 [0] : vector<32x16xf32> to vector<16xf32>
    %20 = vector.shape_cast %19 : vector<16xf32> to vector<1x16xf32>
    %21 = arith.addf %18, %20 : vector<1x16xf32>
    %c0_13 = arith.constant 0 : index
    %c0_14 = arith.constant 0 : index
    %22 = vector.load %arg5[%c0_13, %c0_14] : memref<1x16xf32, #tpu.memory_space<vmem>>, vector<1x16xf32>
    tpu.vector_store %arg5[%c0_13, %c0_14], %21 {strides = array<i32>} : memref<1x16xf32, #tpu.memory_space<vmem>>, vector<1x16xf32>,
    %c0_15 = arith.constant 0 : index
    %c0_16 = arith.constant 0 : index
    %23 = vector.load %arg6[%c0_15, %c0_16] : memref<1x16xf32, #tpu.memory_space<vmem>>, vector<1x16xf32>
    %24 = arith.mulf %14, %14 : vector<32x16xf32>
    %cst_17 = arith.constant dense<0.000000e+00> : vector<16xf32>
    %25 = vector.multi_reduction <add>, %24, %cst_17 [0] : vector<32x16xf32> to vector<16xf32>
    %26 = vector.shape_cast %25 : vector<16xf32> to vector<1x16xf32>
    %27 = arith.addf %23, %26 : vector<1x16xf32>
    %c0_18 = arith.constant 0 : index
    %c0_19 = arith.constant 0 : index
    %28 = vector.load %arg6[%c0_18, %c0_19] : memref<1x16xf32, #tpu.memory_space<vmem>>, vector<1x16xf32>
    tpu.vector_store %arg6[%c0_18, %c0_19], %27 {strides = array<i32>} : memref<1x16xf32, #tpu.memory_space<vmem>>, vector<1x16xf32>,
    return
  }
  func.func @transform_0(%arg0: i32) -> (i32, i32) {
    %c0_i32 = arith.constant 0 : i32
    %c0_i32_0 = arith.constant 0 : i32
    return %arg0, %c0_i32 : i32, i32
  }
  func.func @transform_1(%arg0: i32) -> (i32, i32) {
    %c0_i32 = arith.constant 0 : i32
    %c0_i32_0 = arith.constant 0 : i32
    %c0_i32_1 = arith.constant 0 : i32
    return %c0_i32, %c0_i32_0 : i32, i32
  }
  func.func @transform_2(%arg0: i32) -> (i32, i32) {
    %c0_i32 = arith.constant 0 : i32
    %c0_i32_0 = arith.constant 0 : i32
    %c0_i32_1 = arith.constant 0 : i32
    return %c0_i32, %c0_i32_0 : i32, i32
  }
  func.func @transform_3(%arg0: i32) -> (i32, i32) {
    %c0_i32 = arith.constant 0 : i32
    %c0_i32_0 = arith.constant 0 : i32
    return %arg0, %c0_i32 : i32, i32
  }
  func.func @transform_4(%arg0: i32) -> (i32, i32) {
    %c0_i32 = arith.constant 0 : i32
    %c0_i32_0 = arith.constant 0 : i32
    %c0_i32_1 = arith.constant 0 : i32
    return %c0_i32, %c0_i32_0 : i32, i32
  }
  func.func @transform_5(%arg0: i32) -> (i32, i32) {
    %c0_i32 = arith.constant 0 : i32
    %c0_i32_0 = arith.constant 0 : i32
    %c0_i32_1 = arith.constant 0 : i32
    return %c0_i32, %c0_i32_0 : i32, i32
  }
}

module attributes {stable_mosaic.version = 11 : i64} {
  func.func @_bn_act_kernel(%arg0: i32, %arg1: memref<32x16xf32, #tpu.memory_space<vmem>>, %arg2: memref<1x16xf32, #tpu.memory_space<vmem>>, %arg3: memref<1x16xf32, #tpu.memory_space<vmem>>, %arg4: memref<32x16xbf16, #tpu.memory_space<vmem>>, %arg5: memref<32x16xbf16, #tpu.memory_space<vmem>>) attributes {dimension_semantics = [#tpu.dimension_semantics<parallel>], iteration_bounds = array<i64: 1>, scalar_prefetch = 0 : i64, scratch_operands = 0 : i64, tpu.core_type = #tpu.core_type<tc>, window_params = [{transform_indices = @transform_0, window_bounds = array<i64: 32, 16>}, {pipeline_mode = #tpu.pipeline_mode<synchronous>, transform_indices = @transform_1, window_bounds = array<i64: 1, 16>}, {pipeline_mode = #tpu.pipeline_mode<synchronous>, transform_indices = @transform_2, window_bounds = array<i64: 1, 16>}, {transform_indices = @transform_3, window_bounds = array<i64: 32, 16>}, {transform_indices = @transform_4, window_bounds = array<i64: 32, 16>}]} {
    %c0 = arith.constant 0 : index
    %c0_0 = arith.constant 0 : index
    %0 = vector.load %arg1[%c0, %c0_0] : memref<32x16xf32, #tpu.memory_space<vmem>>, vector<32x16xf32>
    %c0_1 = arith.constant 0 : index
    %c0_2 = arith.constant 0 : index
    %1 = vector.load %arg2[%c0_1, %c0_2] : memref<1x16xf32, #tpu.memory_space<vmem>>, vector<1x16xf32>
    %2 = vector.broadcast %1 : vector<1x16xf32> to vector<32x16xf32>
    %3 = arith.subf %0, %2 : vector<32x16xf32>
    %c0_3 = arith.constant 0 : index
    %c0_4 = arith.constant 0 : index
    %4 = vector.load %arg3[%c0_3, %c0_4] : memref<1x16xf32, #tpu.memory_space<vmem>>, vector<1x16xf32>
    %5 = vector.broadcast %4 : vector<1x16xf32> to vector<32x16xf32>
    %6 = arith.mulf %3, %5 : vector<32x16xf32>
    %cst = arith.constant 0.000000e+00 : f32
    %7 = vector.broadcast %cst : f32 to vector<32x16xf32>
    %8 = arith.cmpf oge, %6, %7 : vector<32x16xf32>
    %cst_5 = arith.constant 0.00999999977 : f32
    %9 = vector.broadcast %cst_5 : f32 to vector<32x16xf32>
    %10 = arith.mulf %9, %6 : vector<32x16xf32>
    %11 = arith.select %8, %6, %10 : vector<32x16xi1>, vector<32x16xf32>
    %c0_6 = arith.constant 0 : index
    %c0_7 = arith.constant 0 : index
    %12 = vector.load %arg4[%c0_6, %c0_7] : memref<32x16xbf16, #tpu.memory_space<vmem>>, vector<32x16xbf16>
    %13 = arith.extf %12 : vector<32x16xbf16> to vector<32x16xf32>
    %14 = arith.addf %11, %13 : vector<32x16xf32>
    %15 = arith.truncf %14 : vector<32x16xf32> to vector<32x16xbf16>
    %c0_8 = arith.constant 0 : index
    %c0_9 = arith.constant 0 : index
    %16 = vector.load %arg5[%c0_8, %c0_9] : memref<32x16xbf16, #tpu.memory_space<vmem>>, vector<32x16xbf16>
    tpu.vector_store %arg5[%c0_8, %c0_9], %15 {strides = array<i32>} : memref<32x16xbf16, #tpu.memory_space<vmem>>, vector<32x16xbf16>,
    return
  }
  func.func @transform_0(%arg0: i32) -> (i32, i32) {
    %c0_i32 = arith.constant 0 : i32
    %c0_i32_0 = arith.constant 0 : i32
    return %arg0, %c0_i32 : i32, i32
  }
  func.func @transform_1(%arg0: i32) -> (i32, i32) {
    %c0_i32 = arith.constant 0 : i32
    %c0_i32_0 = arith.constant 0 : i32
    %c0_i32_1 = arith.constant 0 : i32
    return %c0_i32, %c0_i32_0 : i32, i32
  }
  func.func @transform_2(%arg0: i32) -> (i32, i32) {
    %c0_i32 = arith.constant 0 : i32
    %c0_i32_0 = arith.constant 0 : i32
    %c0_i32_1 = arith.constant 0 : i32
    return %c0_i32, %c0_i32_0 : i32, i32
  }
  func.func @transform_3(%arg0: i32) -> (i32, i32) {
    %c0_i32 = arith.constant 0 : i32
    %c0_i32_0 = arith.constant 0 : i32
    return %arg0, %c0_i32 : i32, i32
  }
  func.func @transform_4(%arg0: i32) -> (i32, i32) {
    %c0_i32 = arith.constant 0 : i32
    %c0_i32_0 = arith.constant 0 : i32
    return %arg0, %c0_i32 : i32, i32
  }
}

module attributes {stable_mosaic.version = 11 : i64} {
  func.func @_mm_bias_stats_kernel(%arg0: i32, %arg1: memref<32x144xbf16, #tpu.memory_space<vmem>>, %arg2: memref<144x16xbf16, #tpu.memory_space<vmem>>, %arg3: memref<1x16xf32, #tpu.memory_space<vmem>>, %arg4: memref<32x16xf32, #tpu.memory_space<vmem>>, %arg5: memref<1x16xf32, #tpu.memory_space<vmem>>, %arg6: memref<1x16xf32, #tpu.memory_space<vmem>>) attributes {dimension_semantics = [#tpu.dimension_semantics<arbitrary>], iteration_bounds = array<i64: 1>, scalar_prefetch = 0 : i64, scratch_operands = 0 : i64, tpu.core_type = #tpu.core_type<tc>, window_params = [{transform_indices = @transform_0, window_bounds = array<i64: 32, 144>}, {pipeline_mode = #tpu.pipeline_mode<synchronous>, transform_indices = @transform_1, window_bounds = array<i64: 144, 16>}, {pipeline_mode = #tpu.pipeline_mode<synchronous>, transform_indices = @transform_2, window_bounds = array<i64: 1, 16>}, {transform_indices = @transform_3, window_bounds = array<i64: 32, 16>}, {pipeline_mode = #tpu.pipeline_mode<synchronous>, transform_indices = @transform_4, window_bounds = array<i64: 1, 16>}, {pipeline_mode = #tpu.pipeline_mode<synchronous>, transform_indices = @transform_5, window_bounds = array<i64: 1, 16>}]} {
    %c0 = arith.constant 0 : index
    %c0_0 = arith.constant 0 : index
    %0 = vector.load %arg1[%c0, %c0_0] : memref<32x144xbf16, #tpu.memory_space<vmem>>, vector<32x144xbf16>
    %c0_1 = arith.constant 0 : index
    %c0_2 = arith.constant 0 : index
    %1 = vector.load %arg2[%c0_1, %c0_2] : memref<144x16xbf16, #tpu.memory_space<vmem>>, vector<144x16xbf16>
    %cst = arith.constant dense<0.000000e+00> : vector<32x16xf32>
    %2 = tpu.matmul %0, %1, %cst {dimension_numbers = #tpu.dot_dimension_numbers<[1], [0], [0], [1], [0, 0, 1, 1], [], []>} : vector<32x144xbf16>, vector<144x16xbf16>, vector<32x16xf32> -> vector<32x16xf32>
    %c0_3 = arith.constant 0 : index
    %c0_4 = arith.constant 0 : index
    %3 = vector.load %arg3[%c0_3, %c0_4] : memref<1x16xf32, #tpu.memory_space<vmem>>, vector<1x16xf32>
    %4 = vector.broadcast %3 : vector<1x16xf32> to vector<32x16xf32>
    %5 = arith.addf %2, %4 : vector<32x16xf32>
    %c0_5 = arith.constant 0 : index
    %c0_6 = arith.constant 0 : index
    %6 = vector.load %arg4[%c0_5, %c0_6] : memref<32x16xf32, #tpu.memory_space<vmem>>, vector<32x16xf32>
    tpu.vector_store %arg4[%c0_5, %c0_6], %5 {strides = array<i32>} : memref<32x16xf32, #tpu.memory_space<vmem>>, vector<32x16xf32>,
    %7 = tpu.iota {dimensions = array<i32: 0>} : vector<32x16xi32>
    %c32_i32 = arith.constant 32 : i32
    %8 = arith.muli %arg0, %c32_i32 : i32
    %9 = vector.broadcast %8 : i32 to vector<32x16xi32>
    %10 = arith.addi %7, %9 : vector<32x16xi32>
    %c32_i32_7 = arith.constant 32 : i32
    %11 = vector.broadcast %c32_i32_7 : i32 to vector<32x16xi32>
    %12 = arith.cmpi slt, %10, %11 : vector<32x16xi32>
    %cst_8 = arith.constant 0.000000e+00 : f32
    %13 = vector.broadcast %cst_8 : f32 to vector<32x16xf32>
    %14 = arith.select %12, %5, %13 : vector<32x16xi1>, vector<32x16xf32>
    %c0_i32 = arith.constant 0 : i32
    %15 = arith.cmpi eq, %arg0, %c0_i32 : i32
    %16 = arith.extui %15 : i1 to i32
    %c0_i32_9 = arith.constant 0 : i32
    %17 = arith.cmpi ne, %16, %c0_i32_9 : i32
    scf.if %17 {
      %cst_20 = arith.constant 0.000000e+00 : f32
      %29 = vector.broadcast %cst_20 : f32 to vector<1x16xf32>
      %c0_21 = arith.constant 0 : index
      %c0_22 = arith.constant 0 : index
      %30 = vector.load %arg5[%c0_21, %c0_22] : memref<1x16xf32, #tpu.memory_space<vmem>>, vector<1x16xf32>
      tpu.vector_store %arg5[%c0_21, %c0_22], %29 {strides = array<i32>} : memref<1x16xf32, #tpu.memory_space<vmem>>, vector<1x16xf32>,
      %cst_23 = arith.constant 0.000000e+00 : f32
      %31 = vector.broadcast %cst_23 : f32 to vector<1x16xf32>
      %c0_24 = arith.constant 0 : index
      %c0_25 = arith.constant 0 : index
      %32 = vector.load %arg6[%c0_24, %c0_25] : memref<1x16xf32, #tpu.memory_space<vmem>>, vector<1x16xf32>
      tpu.vector_store %arg6[%c0_24, %c0_25], %31 {strides = array<i32>} : memref<1x16xf32, #tpu.memory_space<vmem>>, vector<1x16xf32>,
    } else {
    }
    %c0_10 = arith.constant 0 : index
    %c0_11 = arith.constant 0 : index
    %18 = vector.load %arg5[%c0_10, %c0_11] : memref<1x16xf32, #tpu.memory_space<vmem>>, vector<1x16xf32>
    %cst_12 = arith.constant dense<0.000000e+00> : vector<16xf32>
    %19 = vector.multi_reduction <add>, %14, %cst_12 [0] : vector<32x16xf32> to vector<16xf32>
    %20 = vector.shape_cast %19 : vector<16xf32> to vector<1x16xf32>
    %21 = arith.addf %18, %20 : vector<1x16xf32>
    %c0_13 = arith.constant 0 : index
    %c0_14 = arith.constant 0 : index
    %22 = vector.load %arg5[%c0_13, %c0_14] : memref<1x16xf32, #tpu.memory_space<vmem>>, vector<1x16xf32>
    tpu.vector_store %arg5[%c0_13, %c0_14], %21 {strides = array<i32>} : memref<1x16xf32, #tpu.memory_space<vmem>>, vector<1x16xf32>,
    %c0_15 = arith.constant 0 : index
    %c0_16 = arith.constant 0 : index
    %23 = vector.load %arg6[%c0_15, %c0_16] : memref<1x16xf32, #tpu.memory_space<vmem>>, vector<1x16xf32>
    %24 = arith.mulf %14, %14 : vector<32x16xf32>
    %cst_17 = arith.constant dense<0.000000e+00> : vector<16xf32>
    %25 = vector.multi_reduction <add>, %24, %cst_17 [0] : vector<32x16xf32> to vector<16xf32>
    %26 = vector.shape_cast %25 : vector<16xf32> to vector<1x16xf32>
    %27 = arith.addf %23, %26 : vector<1x16xf32>
    %c0_18 = arith.constant 0 : index
    %c0_19 = arith.constant 0 : index
    %28 = vector.load %arg6[%c0_18, %c0_19] : memref<1x16xf32, #tpu.memory_space<vmem>>, vector<1x16xf32>
    tpu.vector_store %arg6[%c0_18, %c0_19], %27 {strides = array<i32>} : memref<1x16xf32, #tpu.memory_space<vmem>>, vector<1x16xf32>,
    return
  }
  func.func @transform_0(%arg0: i32) -> (i32, i32) {
    %c0_i32 = arith.constant 0 : i32
    %c0_i32_0 = arith.constant 0 : i32
    return %arg0, %c0_i32 : i32, i32
  }
  func.func @transform_1(%arg0: i32) -> (i32, i32) {
    %c0_i32 = arith.constant 0 : i32
    %c0_i32_0 = arith.constant 0 : i32
    %c0_i32_1 = arith.constant 0 : i32
    return %c0_i32, %c0_i32_0 : i32, i32
  }
  func.func @transform_2(%arg0: i32) -> (i32, i32) {
    %c0_i32 = arith.constant 0 : i32
    %c0_i32_0 = arith.constant 0 : i32
    %c0_i32_1 = arith.constant 0 : i32
    return %c0_i32, %c0_i32_0 : i32, i32
  }
  func.func @transform_3(%arg0: i32) -> (i32, i32) {
    %c0_i32 = arith.constant 0 : i32
    %c0_i32_0 = arith.constant 0 : i32
    return %arg0, %c0_i32 : i32, i32
  }
  func.func @transform_4(%arg0: i32) -> (i32, i32) {
    %c0_i32 = arith.constant 0 : i32
    %c0_i32_0 = arith.constant 0 : i32
    %c0_i32_1 = arith.constant 0 : i32
    return %c0_i32, %c0_i32_0 : i32, i32
  }
  func.func @transform_5(%arg0: i32) -> (i32, i32) {
    %c0_i32 = arith.constant 0 : i32
    %c0_i32_0 = arith.constant 0 : i32
    %c0_i32_1 = arith.constant 0 : i32
    return %c0_i32, %c0_i32_0 : i32, i32
  }
}

module attributes {stable_mosaic.version = 11 : i64} {
  func.func @_bn_act_kernel(%arg0: i32, %arg1: memref<8x32xf32, #tpu.memory_space<vmem>>, %arg2: memref<1x32xf32, #tpu.memory_space<vmem>>, %arg3: memref<1x32xf32, #tpu.memory_space<vmem>>, %arg4: memref<8x32xbf16, #tpu.memory_space<vmem>>) attributes {dimension_semantics = [#tpu.dimension_semantics<parallel>], iteration_bounds = array<i64: 1>, scalar_prefetch = 0 : i64, scratch_operands = 0 : i64, tpu.core_type = #tpu.core_type<tc>, window_params = [{transform_indices = @transform_0, window_bounds = array<i64: 8, 32>}, {pipeline_mode = #tpu.pipeline_mode<synchronous>, transform_indices = @transform_1, window_bounds = array<i64: 1, 32>}, {pipeline_mode = #tpu.pipeline_mode<synchronous>, transform_indices = @transform_2, window_bounds = array<i64: 1, 32>}, {transform_indices = @transform_3, window_bounds = array<i64: 8, 32>}]} {
    %c0 = arith.constant 0 : index
    %c0_0 = arith.constant 0 : index
    %0 = vector.load %arg1[%c0, %c0_0] : memref<8x32xf32, #tpu.memory_space<vmem>>, vector<8x32xf32>
    %c0_1 = arith.constant 0 : index
    %c0_2 = arith.constant 0 : index
    %1 = vector.load %arg2[%c0_1, %c0_2] : memref<1x32xf32, #tpu.memory_space<vmem>>, vector<1x32xf32>
    %2 = vector.broadcast %1 : vector<1x32xf32> to vector<8x32xf32>
    %3 = arith.subf %0, %2 : vector<8x32xf32>
    %c0_3 = arith.constant 0 : index
    %c0_4 = arith.constant 0 : index
    %4 = vector.load %arg3[%c0_3, %c0_4] : memref<1x32xf32, #tpu.memory_space<vmem>>, vector<1x32xf32>
    %5 = vector.broadcast %4 : vector<1x32xf32> to vector<8x32xf32>
    %6 = arith.mulf %3, %5 : vector<8x32xf32>
    %cst = arith.constant 0.000000e+00 : f32
    %7 = vector.broadcast %cst : f32 to vector<8x32xf32>
    %8 = arith.cmpf oge, %6, %7 : vector<8x32xf32>
    %cst_5 = arith.constant 0.00999999977 : f32
    %9 = vector.broadcast %cst_5 : f32 to vector<8x32xf32>
    %10 = arith.mulf %9, %6 : vector<8x32xf32>
    %11 = arith.select %8, %6, %10 : vector<8x32xi1>, vector<8x32xf32>
    %12 = arith.truncf %11 : vector<8x32xf32> to vector<8x32xbf16>
    %c0_6 = arith.constant 0 : index
    %c0_7 = arith.constant 0 : index
    %13 = vector.load %arg4[%c0_6, %c0_7] : memref<8x32xbf16, #tpu.memory_space<vmem>>, vector<8x32xbf16>
    tpu.vector_store %arg4[%c0_6, %c0_7], %12 {strides = array<i32>} : memref<8x32xbf16, #tpu.memory_space<vmem>>, vector<8x32xbf16>,
    return
  }
  func.func @transform_0(%arg0: i32) -> (i32, i32) {
    %c0_i32 = arith.constant 0 : i32
    %c0_i32_0 = arith.constant 0 : i32
    return %arg0, %c0_i32 : i32, i32
  }
  func.func @transform_1(%arg0: i32) -> (i32, i32) {
    %c0_i32 = arith.constant 0 : i32
    %c0_i32_0 = arith.constant 0 : i32
    %c0_i32_1 = arith.constant 0 : i32
    return %c0_i32, %c0_i32_0 : i32, i32
  }
  func.func @transform_2(%arg0: i32) -> (i32, i32) {
    %c0_i32 = arith.constant 0 : i32
    %c0_i32_0 = arith.constant 0 : i32
    %c0_i32_1 = arith.constant 0 : i32
    return %c0_i32, %c0_i32_0 : i32, i32
  }
  func.func @transform_3(%arg0: i32) -> (i32, i32) {
    %c0_i32 = arith.constant 0 : i32
    %c0_i32_0 = arith.constant 0 : i32
    return %arg0, %c0_i32 : i32, i32
  }
}

module attributes {stable_mosaic.version = 11 : i64} {
  func.func @_mm_bias_stats_kernel(%arg0: i32, %arg1: memref<8x144xbf16, #tpu.memory_space<vmem>>, %arg2: memref<144x32xbf16, #tpu.memory_space<vmem>>, %arg3: memref<1x32xf32, #tpu.memory_space<vmem>>, %arg4: memref<8x32xf32, #tpu.memory_space<vmem>>, %arg5: memref<1x32xf32, #tpu.memory_space<vmem>>, %arg6: memref<1x32xf32, #tpu.memory_space<vmem>>) attributes {dimension_semantics = [#tpu.dimension_semantics<arbitrary>], iteration_bounds = array<i64: 1>, scalar_prefetch = 0 : i64, scratch_operands = 0 : i64, tpu.core_type = #tpu.core_type<tc>, window_params = [{transform_indices = @transform_0, window_bounds = array<i64: 8, 144>}, {pipeline_mode = #tpu.pipeline_mode<synchronous>, transform_indices = @transform_1, window_bounds = array<i64: 144, 32>}, {pipeline_mode = #tpu.pipeline_mode<synchronous>, transform_indices = @transform_2, window_bounds = array<i64: 1, 32>}, {transform_indices = @transform_3, window_bounds = array<i64: 8, 32>}, {pipeline_mode = #tpu.pipeline_mode<synchronous>, transform_indices = @transform_4, window_bounds = array<i64: 1, 32>}, {pipeline_mode = #tpu.pipeline_mode<synchronous>, transform_indices = @transform_5, window_bounds = array<i64: 1, 32>}]} {
    %c0 = arith.constant 0 : index
    %c0_0 = arith.constant 0 : index
    %0 = vector.load %arg1[%c0, %c0_0] : memref<8x144xbf16, #tpu.memory_space<vmem>>, vector<8x144xbf16>
    %c0_1 = arith.constant 0 : index
    %c0_2 = arith.constant 0 : index
    %1 = vector.load %arg2[%c0_1, %c0_2] : memref<144x32xbf16, #tpu.memory_space<vmem>>, vector<144x32xbf16>
    %cst = arith.constant dense<0.000000e+00> : vector<8x32xf32>
    %2 = tpu.matmul %0, %1, %cst {dimension_numbers = #tpu.dot_dimension_numbers<[1], [0], [0], [1], [0, 0, 1, 1], [], []>} : vector<8x144xbf16>, vector<144x32xbf16>, vector<8x32xf32> -> vector<8x32xf32>
    %c0_3 = arith.constant 0 : index
    %c0_4 = arith.constant 0 : index
    %3 = vector.load %arg3[%c0_3, %c0_4] : memref<1x32xf32, #tpu.memory_space<vmem>>, vector<1x32xf32>
    %4 = vector.broadcast %3 : vector<1x32xf32> to vector<8x32xf32>
    %5 = arith.addf %2, %4 : vector<8x32xf32>
    %c0_5 = arith.constant 0 : index
    %c0_6 = arith.constant 0 : index
    %6 = vector.load %arg4[%c0_5, %c0_6] : memref<8x32xf32, #tpu.memory_space<vmem>>, vector<8x32xf32>
    tpu.vector_store %arg4[%c0_5, %c0_6], %5 {strides = array<i32>} : memref<8x32xf32, #tpu.memory_space<vmem>>, vector<8x32xf32>,
    %7 = tpu.iota {dimensions = array<i32: 0>} : vector<8x32xi32>
    %c8_i32 = arith.constant 8 : i32
    %8 = arith.muli %arg0, %c8_i32 : i32
    %9 = vector.broadcast %8 : i32 to vector<8x32xi32>
    %10 = arith.addi %7, %9 : vector<8x32xi32>
    %c8_i32_7 = arith.constant 8 : i32
    %11 = vector.broadcast %c8_i32_7 : i32 to vector<8x32xi32>
    %12 = arith.cmpi slt, %10, %11 : vector<8x32xi32>
    %cst_8 = arith.constant 0.000000e+00 : f32
    %13 = vector.broadcast %cst_8 : f32 to vector<8x32xf32>
    %14 = arith.select %12, %5, %13 : vector<8x32xi1>, vector<8x32xf32>
    %c0_i32 = arith.constant 0 : i32
    %15 = arith.cmpi eq, %arg0, %c0_i32 : i32
    %16 = arith.extui %15 : i1 to i32
    %c0_i32_9 = arith.constant 0 : i32
    %17 = arith.cmpi ne, %16, %c0_i32_9 : i32
    scf.if %17 {
      %cst_20 = arith.constant 0.000000e+00 : f32
      %29 = vector.broadcast %cst_20 : f32 to vector<1x32xf32>
      %c0_21 = arith.constant 0 : index
      %c0_22 = arith.constant 0 : index
      %30 = vector.load %arg5[%c0_21, %c0_22] : memref<1x32xf32, #tpu.memory_space<vmem>>, vector<1x32xf32>
      tpu.vector_store %arg5[%c0_21, %c0_22], %29 {strides = array<i32>} : memref<1x32xf32, #tpu.memory_space<vmem>>, vector<1x32xf32>,
      %cst_23 = arith.constant 0.000000e+00 : f32
      %31 = vector.broadcast %cst_23 : f32 to vector<1x32xf32>
      %c0_24 = arith.constant 0 : index
      %c0_25 = arith.constant 0 : index
      %32 = vector.load %arg6[%c0_24, %c0_25] : memref<1x32xf32, #tpu.memory_space<vmem>>, vector<1x32xf32>
      tpu.vector_store %arg6[%c0_24, %c0_25], %31 {strides = array<i32>} : memref<1x32xf32, #tpu.memory_space<vmem>>, vector<1x32xf32>,
    } else {
    }
    %c0_10 = arith.constant 0 : index
    %c0_11 = arith.constant 0 : index
    %18 = vector.load %arg5[%c0_10, %c0_11] : memref<1x32xf32, #tpu.memory_space<vmem>>, vector<1x32xf32>
    %cst_12 = arith.constant dense<0.000000e+00> : vector<32xf32>
    %19 = vector.multi_reduction <add>, %14, %cst_12 [0] : vector<8x32xf32> to vector<32xf32>
    %20 = vector.shape_cast %19 : vector<32xf32> to vector<1x32xf32>
    %21 = arith.addf %18, %20 : vector<1x32xf32>
    %c0_13 = arith.constant 0 : index
    %c0_14 = arith.constant 0 : index
    %22 = vector.load %arg5[%c0_13, %c0_14] : memref<1x32xf32, #tpu.memory_space<vmem>>, vector<1x32xf32>
    tpu.vector_store %arg5[%c0_13, %c0_14], %21 {strides = array<i32>} : memref<1x32xf32, #tpu.memory_space<vmem>>, vector<1x32xf32>,
    %c0_15 = arith.constant 0 : index
    %c0_16 = arith.constant 0 : index
    %23 = vector.load %arg6[%c0_15, %c0_16] : memref<1x32xf32, #tpu.memory_space<vmem>>, vector<1x32xf32>
    %24 = arith.mulf %14, %14 : vector<8x32xf32>
    %cst_17 = arith.constant dense<0.000000e+00> : vector<32xf32>
    %25 = vector.multi_reduction <add>, %24, %cst_17 [0] : vector<8x32xf32> to vector<32xf32>
    %26 = vector.shape_cast %25 : vector<32xf32> to vector<1x32xf32>
    %27 = arith.addf %23, %26 : vector<1x32xf32>
    %c0_18 = arith.constant 0 : index
    %c0_19 = arith.constant 0 : index
    %28 = vector.load %arg6[%c0_18, %c0_19] : memref<1x32xf32, #tpu.memory_space<vmem>>, vector<1x32xf32>
    tpu.vector_store %arg6[%c0_18, %c0_19], %27 {strides = array<i32>} : memref<1x32xf32, #tpu.memory_space<vmem>>, vector<1x32xf32>,
    return
  }
  func.func @transform_0(%arg0: i32) -> (i32, i32) {
    %c0_i32 = arith.constant 0 : i32
    %c0_i32_0 = arith.constant 0 : i32
    return %arg0, %c0_i32 : i32, i32
  }
  func.func @transform_1(%arg0: i32) -> (i32, i32) {
    %c0_i32 = arith.constant 0 : i32
    %c0_i32_0 = arith.constant 0 : i32
    %c0_i32_1 = arith.constant 0 : i32
    return %c0_i32, %c0_i32_0 : i32, i32
  }
  func.func @transform_2(%arg0: i32) -> (i32, i32) {
    %c0_i32 = arith.constant 0 : i32
    %c0_i32_0 = arith.constant 0 : i32
    %c0_i32_1 = arith.constant 0 : i32
    return %c0_i32, %c0_i32_0 : i32, i32
  }
  func.func @transform_3(%arg0: i32) -> (i32, i32) {
    %c0_i32 = arith.constant 0 : i32
    %c0_i32_0 = arith.constant 0 : i32
    return %arg0, %c0_i32 : i32, i32
  }
  func.func @transform_4(%arg0: i32) -> (i32, i32) {
    %c0_i32 = arith.constant 0 : i32
    %c0_i32_0 = arith.constant 0 : i32
    %c0_i32_1 = arith.constant 0 : i32
    return %c0_i32, %c0_i32_0 : i32, i32
  }
  func.func @transform_5(%arg0: i32) -> (i32, i32) {
    %c0_i32 = arith.constant 0 : i32
    %c0_i32_0 = arith.constant 0 : i32
    %c0_i32_1 = arith.constant 0 : i32
    return %c0_i32, %c0_i32_0 : i32, i32
  }
}

module attributes {stable_mosaic.version = 11 : i64} {
  func.func @_mm_bias_kernel(%arg0: i32, %arg1: memref<2x128xbf16, #tpu.memory_space<vmem>>, %arg2: memref<128x16xbf16, #tpu.memory_space<vmem>>, %arg3: memref<1x16xf32, #tpu.memory_space<vmem>>, %arg4: memref<2x16xf32, #tpu.memory_space<vmem>>) attributes {dimension_semantics = [#tpu.dimension_semantics<parallel>], iteration_bounds = array<i64: 1>, scalar_prefetch = 0 : i64, scratch_operands = 0 : i64, tpu.core_type = #tpu.core_type<tc>, window_params = [{transform_indices = @transform_0, window_bounds = array<i64: 2, 128>}, {pipeline_mode = #tpu.pipeline_mode<synchronous>, transform_indices = @transform_1, window_bounds = array<i64: 128, 16>}, {pipeline_mode = #tpu.pipeline_mode<synchronous>, transform_indices = @transform_2, window_bounds = array<i64: 1, 16>}, {transform_indices = @transform_3, window_bounds = array<i64: 2, 16>}]} {
    %c0 = arith.constant 0 : index
    %c0_0 = arith.constant 0 : index
    %0 = vector.load %arg1[%c0, %c0_0] : memref<2x128xbf16, #tpu.memory_space<vmem>>, vector<2x128xbf16>
    %c0_1 = arith.constant 0 : index
    %c0_2 = arith.constant 0 : index
    %1 = vector.load %arg2[%c0_1, %c0_2] : memref<128x16xbf16, #tpu.memory_space<vmem>>, vector<128x16xbf16>
    %cst = arith.constant dense<0.000000e+00> : vector<2x16xf32>
    %2 = tpu.matmul %0, %1, %cst {dimension_numbers = #tpu.dot_dimension_numbers<[1], [0], [0], [1], [0, 0, 1, 1], [], []>} : vector<2x128xbf16>, vector<128x16xbf16>, vector<2x16xf32> -> vector<2x16xf32>
    %c0_3 = arith.constant 0 : index
    %c0_4 = arith.constant 0 : index
    %3 = vector.load %arg3[%c0_3, %c0_4] : memref<1x16xf32, #tpu.memory_space<vmem>>, vector<1x16xf32>
    %4 = vector.broadcast %3 : vector<1x16xf32> to vector<2x16xf32>
    %5 = arith.addf %2, %4 : vector<2x16xf32>
    %c0_5 = arith.constant 0 : index
    %c0_6 = arith.constant 0 : index
    %6 = vector.load %arg4[%c0_5, %c0_6] : memref<2x16xf32, #tpu.memory_space<vmem>>, vector<2x16xf32>
    tpu.vector_store %arg4[%c0_5, %c0_6], %5 {strides = array<i32>} : memref<2x16xf32, #tpu.memory_space<vmem>>, vector<2x16xf32>,
    return
  }
  func.func @transform_0(%arg0: i32) -> (i32, i32) {
    %c0_i32 = arith.constant 0 : i32
    %c0_i32_0 = arith.constant 0 : i32
    return %arg0, %c0_i32 : i32, i32
  }
  func.func @transform_1(%arg0: i32) -> (i32, i32) {
    %c0_i32 = arith.constant 0 : i32
    %c0_i32_0 = arith.constant 0 : i32
    %c0_i32_1 = arith.constant 0 : i32
    return %c0_i32, %c0_i32_0 : i32, i32
  }
  func.func @transform_2(%arg0: i32) -> (i32, i32) {
    %c0_i32 = arith.constant 0 : i32
    %c0_i32_0 = arith.constant 0 : i32
    %c0_i32_1 = arith.constant 0 : i32
    return %c0_i32, %c0_i32_0 : i32, i32
  }
  func.func @transform_3(%arg0: i32) -> (i32, i32) {
    %c0_i32 = arith.constant 0 : i32
    %c0_i32_0 = arith.constant 0 : i32
    return %arg0, %c0_i32 : i32, i32
  }
}

module attributes {stable_mosaic.version = 11 : i64} {
  func.func @_mm_bias_kernel(%arg0: i32, %arg1: memref<2x8xbf16, #tpu.memory_space<vmem>>, %arg2: memref<8x128xbf16, #tpu.memory_space<vmem>>, %arg3: memref<1x128xf32, #tpu.memory_space<vmem>>, %arg4: memref<2x128xf32, #tpu.memory_space<vmem>>) attributes {dimension_semantics = [#tpu.dimension_semantics<parallel>], iteration_bounds = array<i64: 1>, scalar_prefetch = 0 : i64, scratch_operands = 0 : i64, tpu.core_type = #tpu.core_type<tc>, window_params = [{transform_indices = @transform_0, window_bounds = array<i64: 2, 8>}, {pipeline_mode = #tpu.pipeline_mode<synchronous>, transform_indices = @transform_1, window_bounds = array<i64: 8, 128>}, {pipeline_mode = #tpu.pipeline_mode<synchronous>, transform_indices = @transform_2, window_bounds = array<i64: 1, 128>}, {transform_indices = @transform_3, window_bounds = array<i64: 2, 128>}]} {
    %c0 = arith.constant 0 : index
    %c0_0 = arith.constant 0 : index
    %0 = vector.load %arg1[%c0, %c0_0] : memref<2x8xbf16, #tpu.memory_space<vmem>>, vector<2x8xbf16>
    %c0_1 = arith.constant 0 : index
    %c0_2 = arith.constant 0 : index
    %1 = vector.load %arg2[%c0_1, %c0_2] : memref<8x128xbf16, #tpu.memory_space<vmem>>, vector<8x128xbf16>
    %cst = arith.constant dense<0.000000e+00> : vector<2x128xf32>
    %2 = tpu.matmul %0, %1, %cst {dimension_numbers = #tpu.dot_dimension_numbers<[1], [0], [0], [1], [0, 0, 1, 1], [], []>} : vector<2x8xbf16>, vector<8x128xbf16>, vector<2x128xf32> -> vector<2x128xf32>
    %c0_3 = arith.constant 0 : index
    %c0_4 = arith.constant 0 : index
    %3 = vector.load %arg3[%c0_3, %c0_4] : memref<1x128xf32, #tpu.memory_space<vmem>>, vector<1x128xf32>
    %4 = vector.broadcast %3 : vector<1x128xf32> to vector<2x128xf32>
    %5 = arith.addf %2, %4 : vector<2x128xf32>
    %c0_5 = arith.constant 0 : index
    %c0_6 = arith.constant 0 : index
    %6 = vector.load %arg4[%c0_5, %c0_6] : memref<2x128xf32, #tpu.memory_space<vmem>>, vector<2x128xf32>
    tpu.vector_store %arg4[%c0_5, %c0_6], %5 {strides = array<i32>} : memref<2x128xf32, #tpu.memory_space<vmem>>, vector<2x128xf32>,
    return
  }
  func.func @transform_0(%arg0: i32) -> (i32, i32) {
    %c0_i32 = arith.constant 0 : i32
    %c0_i32_0 = arith.constant 0 : i32
    return %arg0, %c0_i32 : i32, i32
  }
  func.func @transform_1(%arg0: i32) -> (i32, i32) {
    %c0_i32 = arith.constant 0 : i32
    %c0_i32_0 = arith.constant 0 : i32
    %c0_i32_1 = arith.constant 0 : i32
    return %c0_i32, %c0_i32_0 : i32, i32
  }
  func.func @transform_2(%arg0: i32) -> (i32, i32) {
    %c0_i32 = arith.constant 0 : i32
    %c0_i32_0 = arith.constant 0 : i32
    %c0_i32_1 = arith.constant 0 : i32
    return %c0_i32, %c0_i32_0 : i32, i32
  }
  func.func @transform_3(%arg0: i32) -> (i32, i32) {
    %c0_i32 = arith.constant 0 : i32
    %c0_i32_0 = arith.constant 0 : i32
    return %arg0, %c0_i32 : i32, i32
  }
}

module attributes {stable_mosaic.version = 11 : i64} {
  func.func @_mm_bias_stats_kernel(%arg0: i32, %arg1: memref<8x288xbf16, #tpu.memory_space<vmem>>, %arg2: memref<288x32xbf16, #tpu.memory_space<vmem>>, %arg3: memref<1x32xf32, #tpu.memory_space<vmem>>, %arg4: memref<8x32xf32, #tpu.memory_space<vmem>>, %arg5: memref<1x32xf32, #tpu.memory_space<vmem>>, %arg6: memref<1x32xf32, #tpu.memory_space<vmem>>) attributes {dimension_semantics = [#tpu.dimension_semantics<arbitrary>], iteration_bounds = array<i64: 1>, scalar_prefetch = 0 : i64, scratch_operands = 0 : i64, tpu.core_type = #tpu.core_type<tc>, window_params = [{transform_indices = @transform_0, window_bounds = array<i64: 8, 288>}, {pipeline_mode = #tpu.pipeline_mode<synchronous>, transform_indices = @transform_1, window_bounds = array<i64: 288, 32>}, {pipeline_mode = #tpu.pipeline_mode<synchronous>, transform_indices = @transform_2, window_bounds = array<i64: 1, 32>}, {transform_indices = @transform_3, window_bounds = array<i64: 8, 32>}, {pipeline_mode = #tpu.pipeline_mode<synchronous>, transform_indices = @transform_4, window_bounds = array<i64: 1, 32>}, {pipeline_mode = #tpu.pipeline_mode<synchronous>, transform_indices = @transform_5, window_bounds = array<i64: 1, 32>}]} {
    %c0 = arith.constant 0 : index
    %c0_0 = arith.constant 0 : index
    %0 = vector.load %arg1[%c0, %c0_0] : memref<8x288xbf16, #tpu.memory_space<vmem>>, vector<8x288xbf16>
    %c0_1 = arith.constant 0 : index
    %c0_2 = arith.constant 0 : index
    %1 = vector.load %arg2[%c0_1, %c0_2] : memref<288x32xbf16, #tpu.memory_space<vmem>>, vector<288x32xbf16>
    %cst = arith.constant dense<0.000000e+00> : vector<8x32xf32>
    %2 = tpu.matmul %0, %1, %cst {dimension_numbers = #tpu.dot_dimension_numbers<[1], [0], [0], [1], [0, 0, 1, 1], [], []>} : vector<8x288xbf16>, vector<288x32xbf16>, vector<8x32xf32> -> vector<8x32xf32>
    %c0_3 = arith.constant 0 : index
    %c0_4 = arith.constant 0 : index
    %3 = vector.load %arg3[%c0_3, %c0_4] : memref<1x32xf32, #tpu.memory_space<vmem>>, vector<1x32xf32>
    %4 = vector.broadcast %3 : vector<1x32xf32> to vector<8x32xf32>
    %5 = arith.addf %2, %4 : vector<8x32xf32>
    %c0_5 = arith.constant 0 : index
    %c0_6 = arith.constant 0 : index
    %6 = vector.load %arg4[%c0_5, %c0_6] : memref<8x32xf32, #tpu.memory_space<vmem>>, vector<8x32xf32>
    tpu.vector_store %arg4[%c0_5, %c0_6], %5 {strides = array<i32>} : memref<8x32xf32, #tpu.memory_space<vmem>>, vector<8x32xf32>,
    %7 = tpu.iota {dimensions = array<i32: 0>} : vector<8x32xi32>
    %c8_i32 = arith.constant 8 : i32
    %8 = arith.muli %arg0, %c8_i32 : i32
    %9 = vector.broadcast %8 : i32 to vector<8x32xi32>
    %10 = arith.addi %7, %9 : vector<8x32xi32>
    %c8_i32_7 = arith.constant 8 : i32
    %11 = vector.broadcast %c8_i32_7 : i32 to vector<8x32xi32>
    %12 = arith.cmpi slt, %10, %11 : vector<8x32xi32>
    %cst_8 = arith.constant 0.000000e+00 : f32
    %13 = vector.broadcast %cst_8 : f32 to vector<8x32xf32>
    %14 = arith.select %12, %5, %13 : vector<8x32xi1>, vector<8x32xf32>
    %c0_i32 = arith.constant 0 : i32
    %15 = arith.cmpi eq, %arg0, %c0_i32 : i32
    %16 = arith.extui %15 : i1 to i32
    %c0_i32_9 = arith.constant 0 : i32
    %17 = arith.cmpi ne, %16, %c0_i32_9 : i32
    scf.if %17 {
      %cst_20 = arith.constant 0.000000e+00 : f32
      %29 = vector.broadcast %cst_20 : f32 to vector<1x32xf32>
      %c0_21 = arith.constant 0 : index
      %c0_22 = arith.constant 0 : index
      %30 = vector.load %arg5[%c0_21, %c0_22] : memref<1x32xf32, #tpu.memory_space<vmem>>, vector<1x32xf32>
      tpu.vector_store %arg5[%c0_21, %c0_22], %29 {strides = array<i32>} : memref<1x32xf32, #tpu.memory_space<vmem>>, vector<1x32xf32>,
      %cst_23 = arith.constant 0.000000e+00 : f32
      %31 = vector.broadcast %cst_23 : f32 to vector<1x32xf32>
      %c0_24 = arith.constant 0 : index
      %c0_25 = arith.constant 0 : index
      %32 = vector.load %arg6[%c0_24, %c0_25] : memref<1x32xf32, #tpu.memory_space<vmem>>, vector<1x32xf32>
      tpu.vector_store %arg6[%c0_24, %c0_25], %31 {strides = array<i32>} : memref<1x32xf32, #tpu.memory_space<vmem>>, vector<1x32xf32>,
    } else {
    }
    %c0_10 = arith.constant 0 : index
    %c0_11 = arith.constant 0 : index
    %18 = vector.load %arg5[%c0_10, %c0_11] : memref<1x32xf32, #tpu.memory_space<vmem>>, vector<1x32xf32>
    %cst_12 = arith.constant dense<0.000000e+00> : vector<32xf32>
    %19 = vector.multi_reduction <add>, %14, %cst_12 [0] : vector<8x32xf32> to vector<32xf32>
    %20 = vector.shape_cast %19 : vector<32xf32> to vector<1x32xf32>
    %21 = arith.addf %18, %20 : vector<1x32xf32>
    %c0_13 = arith.constant 0 : index
    %c0_14 = arith.constant 0 : index
    %22 = vector.load %arg5[%c0_13, %c0_14] : memref<1x32xf32, #tpu.memory_space<vmem>>, vector<1x32xf32>
    tpu.vector_store %arg5[%c0_13, %c0_14], %21 {strides = array<i32>} : memref<1x32xf32, #tpu.memory_space<vmem>>, vector<1x32xf32>,
    %c0_15 = arith.constant 0 : index
    %c0_16 = arith.constant 0 : index
    %23 = vector.load %arg6[%c0_15, %c0_16] : memref<1x32xf32, #tpu.memory_space<vmem>>, vector<1x32xf32>
    %24 = arith.mulf %14, %14 : vector<8x32xf32>
    %cst_17 = arith.constant dense<0.000000e+00> : vector<32xf32>
    %25 = vector.multi_reduction <add>, %24, %cst_17 [0] : vector<8x32xf32> to vector<32xf32>
    %26 = vector.shape_cast %25 : vector<32xf32> to vector<1x32xf32>
    %27 = arith.addf %23, %26 : vector<1x32xf32>
    %c0_18 = arith.constant 0 : index
    %c0_19 = arith.constant 0 : index
    %28 = vector.load %arg6[%c0_18, %c0_19] : memref<1x32xf32, #tpu.memory_space<vmem>>, vector<1x32xf32>
    tpu.vector_store %arg6[%c0_18, %c0_19], %27 {strides = array<i32>} : memref<1x32xf32, #tpu.memory_space<vmem>>, vector<1x32xf32>,
    return
  }
  func.func @transform_0(%arg0: i32) -> (i32, i32) {
    %c0_i32 = arith.constant 0 : i32
    %c0_i32_0 = arith.constant 0 : i32
    return %arg0, %c0_i32 : i32, i32
  }
  func.func @transform_1(%arg0: i32) -> (i32, i32) {
    %c0_i32 = arith.constant 0 : i32
    %c0_i32_0 = arith.constant 0 : i32
    %c0_i32_1 = arith.constant 0 : i32
    return %c0_i32, %c0_i32_0 : i32, i32
  }
  func.func @transform_2(%arg0: i32) -> (i32, i32) {
    %c0_i32 = arith.constant 0 : i32
    %c0_i32_0 = arith.constant 0 : i32
    %c0_i32_1 = arith.constant 0 : i32
    return %c0_i32, %c0_i32_0 : i32, i32
  }
  func.func @transform_3(%arg0: i32) -> (i32, i32) {
    %c0_i32 = arith.constant 0 : i32
    %c0_i32_0 = arith.constant 0 : i32
    return %arg0, %c0_i32 : i32, i32
  }
  func.func @transform_4(%arg0: i32) -> (i32, i32) {
    %c0_i32 = arith.constant 0 : i32
    %c0_i32_0 = arith.constant 0 : i32
    %c0_i32_1 = arith.constant 0 : i32
    return %c0_i32, %c0_i32_0 : i32, i32
  }
  func.func @transform_5(%arg0: i32) -> (i32, i32) {
    %c0_i32 = arith.constant 0 : i32
    %c0_i32_0 = arith.constant 0 : i32
    %c0_i32_1 = arith.constant 0 : i32
    return %c0_i32, %c0_i32_0 : i32, i32
  }
}

module attributes {stable_mosaic.version = 11 : i64} {
  func.func @_bn_act_kernel(%arg0: i32, %arg1: memref<8x32xf32, #tpu.memory_space<vmem>>, %arg2: memref<1x32xf32, #tpu.memory_space<vmem>>, %arg3: memref<1x32xf32, #tpu.memory_space<vmem>>, %arg4: memref<8x32xbf16, #tpu.memory_space<vmem>>, %arg5: memref<8x32xbf16, #tpu.memory_space<vmem>>) attributes {dimension_semantics = [#tpu.dimension_semantics<parallel>], iteration_bounds = array<i64: 1>, scalar_prefetch = 0 : i64, scratch_operands = 0 : i64, tpu.core_type = #tpu.core_type<tc>, window_params = [{transform_indices = @transform_0, window_bounds = array<i64: 8, 32>}, {pipeline_mode = #tpu.pipeline_mode<synchronous>, transform_indices = @transform_1, window_bounds = array<i64: 1, 32>}, {pipeline_mode = #tpu.pipeline_mode<synchronous>, transform_indices = @transform_2, window_bounds = array<i64: 1, 32>}, {transform_indices = @transform_3, window_bounds = array<i64: 8, 32>}, {transform_indices = @transform_4, window_bounds = array<i64: 8, 32>}]} {
    %c0 = arith.constant 0 : index
    %c0_0 = arith.constant 0 : index
    %0 = vector.load %arg1[%c0, %c0_0] : memref<8x32xf32, #tpu.memory_space<vmem>>, vector<8x32xf32>
    %c0_1 = arith.constant 0 : index
    %c0_2 = arith.constant 0 : index
    %1 = vector.load %arg2[%c0_1, %c0_2] : memref<1x32xf32, #tpu.memory_space<vmem>>, vector<1x32xf32>
    %2 = vector.broadcast %1 : vector<1x32xf32> to vector<8x32xf32>
    %3 = arith.subf %0, %2 : vector<8x32xf32>
    %c0_3 = arith.constant 0 : index
    %c0_4 = arith.constant 0 : index
    %4 = vector.load %arg3[%c0_3, %c0_4] : memref<1x32xf32, #tpu.memory_space<vmem>>, vector<1x32xf32>
    %5 = vector.broadcast %4 : vector<1x32xf32> to vector<8x32xf32>
    %6 = arith.mulf %3, %5 : vector<8x32xf32>
    %cst = arith.constant 0.000000e+00 : f32
    %7 = vector.broadcast %cst : f32 to vector<8x32xf32>
    %8 = arith.cmpf oge, %6, %7 : vector<8x32xf32>
    %cst_5 = arith.constant 0.00999999977 : f32
    %9 = vector.broadcast %cst_5 : f32 to vector<8x32xf32>
    %10 = arith.mulf %9, %6 : vector<8x32xf32>
    %11 = arith.select %8, %6, %10 : vector<8x32xi1>, vector<8x32xf32>
    %c0_6 = arith.constant 0 : index
    %c0_7 = arith.constant 0 : index
    %12 = vector.load %arg4[%c0_6, %c0_7] : memref<8x32xbf16, #tpu.memory_space<vmem>>, vector<8x32xbf16>
    %13 = arith.extf %12 : vector<8x32xbf16> to vector<8x32xf32>
    %14 = arith.addf %11, %13 : vector<8x32xf32>
    %15 = arith.truncf %14 : vector<8x32xf32> to vector<8x32xbf16>
    %c0_8 = arith.constant 0 : index
    %c0_9 = arith.constant 0 : index
    %16 = vector.load %arg5[%c0_8, %c0_9] : memref<8x32xbf16, #tpu.memory_space<vmem>>, vector<8x32xbf16>
    tpu.vector_store %arg5[%c0_8, %c0_9], %15 {strides = array<i32>} : memref<8x32xbf16, #tpu.memory_space<vmem>>, vector<8x32xbf16>,
    return
  }
  func.func @transform_0(%arg0: i32) -> (i32, i32) {
    %c0_i32 = arith.constant 0 : i32
    %c0_i32_0 = arith.constant 0 : i32
    return %arg0, %c0_i32 : i32, i32
  }
  func.func @transform_1(%arg0: i32) -> (i32, i32) {
    %c0_i32 = arith.constant 0 : i32
    %c0_i32_0 = arith.constant 0 : i32
    %c0_i32_1 = arith.constant 0 : i32
    return %c0_i32, %c0_i32_0 : i32, i32
  }
  func.func @transform_2(%arg0: i32) -> (i32, i32) {
    %c0_i32 = arith.constant 0 : i32
    %c0_i32_0 = arith.constant 0 : i32
    %c0_i32_1 = arith.constant 0 : i32
    return %c0_i32, %c0_i32_0 : i32, i32
  }
  func.func @transform_3(%arg0: i32) -> (i32, i32) {
    %c0_i32 = arith.constant 0 : i32
    %c0_i32_0 = arith.constant 0 : i32
    return %arg0, %c0_i32 : i32, i32
  }
  func.func @transform_4(%arg0: i32) -> (i32, i32) {
    %c0_i32 = arith.constant 0 : i32
    %c0_i32_0 = arith.constant 0 : i32
    return %arg0, %c0_i32 : i32, i32
  }
}

module attributes {stable_mosaic.version = 11 : i64} {
  func.func @_mm_bias_stats_kernel(%arg0: i32, %arg1: memref<8x288xbf16, #tpu.memory_space<vmem>>, %arg2: memref<288x64xbf16, #tpu.memory_space<vmem>>, %arg3: memref<1x64xf32, #tpu.memory_space<vmem>>, %arg4: memref<8x64xf32, #tpu.memory_space<vmem>>, %arg5: memref<1x64xf32, #tpu.memory_space<vmem>>, %arg6: memref<1x64xf32, #tpu.memory_space<vmem>>) attributes {dimension_semantics = [#tpu.dimension_semantics<arbitrary>], iteration_bounds = array<i64: 1>, scalar_prefetch = 0 : i64, scratch_operands = 0 : i64, tpu.core_type = #tpu.core_type<tc>, window_params = [{transform_indices = @transform_0, window_bounds = array<i64: 8, 288>}, {pipeline_mode = #tpu.pipeline_mode<synchronous>, transform_indices = @transform_1, window_bounds = array<i64: 288, 64>}, {pipeline_mode = #tpu.pipeline_mode<synchronous>, transform_indices = @transform_2, window_bounds = array<i64: 1, 64>}, {transform_indices = @transform_3, window_bounds = array<i64: 8, 64>}, {pipeline_mode = #tpu.pipeline_mode<synchronous>, transform_indices = @transform_4, window_bounds = array<i64: 1, 64>}, {pipeline_mode = #tpu.pipeline_mode<synchronous>, transform_indices = @transform_5, window_bounds = array<i64: 1, 64>}]} {
    %c0 = arith.constant 0 : index
    %c0_0 = arith.constant 0 : index
    %0 = vector.load %arg1[%c0, %c0_0] : memref<8x288xbf16, #tpu.memory_space<vmem>>, vector<8x288xbf16>
    %c0_1 = arith.constant 0 : index
    %c0_2 = arith.constant 0 : index
    %1 = vector.load %arg2[%c0_1, %c0_2] : memref<288x64xbf16, #tpu.memory_space<vmem>>, vector<288x64xbf16>
    %cst = arith.constant dense<0.000000e+00> : vector<8x64xf32>
    %2 = tpu.matmul %0, %1, %cst {dimension_numbers = #tpu.dot_dimension_numbers<[1], [0], [0], [1], [0, 0, 1, 1], [], []>} : vector<8x288xbf16>, vector<288x64xbf16>, vector<8x64xf32> -> vector<8x64xf32>
    %c0_3 = arith.constant 0 : index
    %c0_4 = arith.constant 0 : index
    %3 = vector.load %arg3[%c0_3, %c0_4] : memref<1x64xf32, #tpu.memory_space<vmem>>, vector<1x64xf32>
    %4 = vector.broadcast %3 : vector<1x64xf32> to vector<8x64xf32>
    %5 = arith.addf %2, %4 : vector<8x64xf32>
    %c0_5 = arith.constant 0 : index
    %c0_6 = arith.constant 0 : index
    %6 = vector.load %arg4[%c0_5, %c0_6] : memref<8x64xf32, #tpu.memory_space<vmem>>, vector<8x64xf32>
    tpu.vector_store %arg4[%c0_5, %c0_6], %5 {strides = array<i32>} : memref<8x64xf32, #tpu.memory_space<vmem>>, vector<8x64xf32>,
    %7 = tpu.iota {dimensions = array<i32: 0>} : vector<8x64xi32>
    %c8_i32 = arith.constant 8 : i32
    %8 = arith.muli %arg0, %c8_i32 : i32
    %9 = vector.broadcast %8 : i32 to vector<8x64xi32>
    %10 = arith.addi %7, %9 : vector<8x64xi32>
    %c8_i32_7 = arith.constant 8 : i32
    %11 = vector.broadcast %c8_i32_7 : i32 to vector<8x64xi32>
    %12 = arith.cmpi slt, %10, %11 : vector<8x64xi32>
    %cst_8 = arith.constant 0.000000e+00 : f32
    %13 = vector.broadcast %cst_8 : f32 to vector<8x64xf32>
    %14 = arith.select %12, %5, %13 : vector<8x64xi1>, vector<8x64xf32>
    %c0_i32 = arith.constant 0 : i32
    %15 = arith.cmpi eq, %arg0, %c0_i32 : i32
    %16 = arith.extui %15 : i1 to i32
    %c0_i32_9 = arith.constant 0 : i32
    %17 = arith.cmpi ne, %16, %c0_i32_9 : i32
    scf.if %17 {
      %cst_20 = arith.constant 0.000000e+00 : f32
      %29 = vector.broadcast %cst_20 : f32 to vector<1x64xf32>
      %c0_21 = arith.constant 0 : index
      %c0_22 = arith.constant 0 : index
      %30 = vector.load %arg5[%c0_21, %c0_22] : memref<1x64xf32, #tpu.memory_space<vmem>>, vector<1x64xf32>
      tpu.vector_store %arg5[%c0_21, %c0_22], %29 {strides = array<i32>} : memref<1x64xf32, #tpu.memory_space<vmem>>, vector<1x64xf32>,
      %cst_23 = arith.constant 0.000000e+00 : f32
      %31 = vector.broadcast %cst_23 : f32 to vector<1x64xf32>
      %c0_24 = arith.constant 0 : index
      %c0_25 = arith.constant 0 : index
      %32 = vector.load %arg6[%c0_24, %c0_25] : memref<1x64xf32, #tpu.memory_space<vmem>>, vector<1x64xf32>
      tpu.vector_store %arg6[%c0_24, %c0_25], %31 {strides = array<i32>} : memref<1x64xf32, #tpu.memory_space<vmem>>, vector<1x64xf32>,
    } else {
    }
    %c0_10 = arith.constant 0 : index
    %c0_11 = arith.constant 0 : index
    %18 = vector.load %arg5[%c0_10, %c0_11] : memref<1x64xf32, #tpu.memory_space<vmem>>, vector<1x64xf32>
    %cst_12 = arith.constant dense<0.000000e+00> : vector<64xf32>
    %19 = vector.multi_reduction <add>, %14, %cst_12 [0] : vector<8x64xf32> to vector<64xf32>
    %20 = vector.shape_cast %19 : vector<64xf32> to vector<1x64xf32>
    %21 = arith.addf %18, %20 : vector<1x64xf32>
    %c0_13 = arith.constant 0 : index
    %c0_14 = arith.constant 0 : index
    %22 = vector.load %arg5[%c0_13, %c0_14] : memref<1x64xf32, #tpu.memory_space<vmem>>, vector<1x64xf32>
    tpu.vector_store %arg5[%c0_13, %c0_14], %21 {strides = array<i32>} : memref<1x64xf32, #tpu.memory_space<vmem>>, vector<1x64xf32>,
    %c0_15 = arith.constant 0 : index
    %c0_16 = arith.constant 0 : index
    %23 = vector.load %arg6[%c0_15, %c0_16] : memref<1x64xf32, #tpu.memory_space<vmem>>, vector<1x64xf32>
    %24 = arith.mulf %14, %14 : vector<8x64xf32>
    %cst_17 = arith.constant dense<0.000000e+00> : vector<64xf32>
    %25 = vector.multi_reduction <add>, %24, %cst_17 [0] : vector<8x64xf32> to vector<64xf32>
    %26 = vector.shape_cast %25 : vector<64xf32> to vector<1x64xf32>
    %27 = arith.addf %23, %26 : vector<1x64xf32>
    %c0_18 = arith.constant 0 : index
    %c0_19 = arith.constant 0 : index
    %28 = vector.load %arg6[%c0_18, %c0_19] : memref<1x64xf32, #tpu.memory_space<vmem>>, vector<1x64xf32>
    tpu.vector_store %arg6[%c0_18, %c0_19], %27 {strides = array<i32>} : memref<1x64xf32, #tpu.memory_space<vmem>>, vector<1x64xf32>,
    return
  }
  func.func @transform_0(%arg0: i32) -> (i32, i32) {
    %c0_i32 = arith.constant 0 : i32
    %c0_i32_0 = arith.constant 0 : i32
    return %arg0, %c0_i32 : i32, i32
  }
  func.func @transform_1(%arg0: i32) -> (i32, i32) {
    %c0_i32 = arith.constant 0 : i32
    %c0_i32_0 = arith.constant 0 : i32
    %c0_i32_1 = arith.constant 0 : i32
    return %c0_i32, %c0_i32_0 : i32, i32
  }
  func.func @transform_2(%arg0: i32) -> (i32, i32) {
    %c0_i32 = arith.constant 0 : i32
    %c0_i32_0 = arith.constant 0 : i32
    %c0_i32_1 = arith.constant 0 : i32
    return %c0_i32, %c0_i32_0 : i32, i32
  }
  func.func @transform_3(%arg0: i32) -> (i32, i32) {
    %c0_i32 = arith.constant 0 : i32
    %c0_i32_0 = arith.constant 0 : i32
    return %arg0, %c0_i32 : i32, i32
  }
  func.func @transform_4(%arg0: i32) -> (i32, i32) {
    %c0_i32 = arith.constant 0 : i32
    %c0_i32_0 = arith.constant 0 : i32
    %c0_i32_1 = arith.constant 0 : i32
    return %c0_i32, %c0_i32_0 : i32, i32
  }
  func.func @transform_5(%arg0: i32) -> (i32, i32) {
    %c0_i32 = arith.constant 0 : i32
    %c0_i32_0 = arith.constant 0 : i32
    %c0_i32_1 = arith.constant 0 : i32
    return %c0_i32, %c0_i32_0 : i32, i32
  }
}

module attributes {stable_mosaic.version = 11 : i64} {
  func.func @_bn_act_kernel(%arg0: i32, %arg1: memref<8x64xf32, #tpu.memory_space<vmem>>, %arg2: memref<1x64xf32, #tpu.memory_space<vmem>>, %arg3: memref<1x64xf32, #tpu.memory_space<vmem>>, %arg4: memref<8x64xbf16, #tpu.memory_space<vmem>>) attributes {dimension_semantics = [#tpu.dimension_semantics<parallel>], iteration_bounds = array<i64: 1>, scalar_prefetch = 0 : i64, scratch_operands = 0 : i64, tpu.core_type = #tpu.core_type<tc>, window_params = [{transform_indices = @transform_0, window_bounds = array<i64: 8, 64>}, {pipeline_mode = #tpu.pipeline_mode<synchronous>, transform_indices = @transform_1, window_bounds = array<i64: 1, 64>}, {pipeline_mode = #tpu.pipeline_mode<synchronous>, transform_indices = @transform_2, window_bounds = array<i64: 1, 64>}, {transform_indices = @transform_3, window_bounds = array<i64: 8, 64>}]} {
    %c0 = arith.constant 0 : index
    %c0_0 = arith.constant 0 : index
    %0 = vector.load %arg1[%c0, %c0_0] : memref<8x64xf32, #tpu.memory_space<vmem>>, vector<8x64xf32>
    %c0_1 = arith.constant 0 : index
    %c0_2 = arith.constant 0 : index
    %1 = vector.load %arg2[%c0_1, %c0_2] : memref<1x64xf32, #tpu.memory_space<vmem>>, vector<1x64xf32>
    %2 = vector.broadcast %1 : vector<1x64xf32> to vector<8x64xf32>
    %3 = arith.subf %0, %2 : vector<8x64xf32>
    %c0_3 = arith.constant 0 : index
    %c0_4 = arith.constant 0 : index
    %4 = vector.load %arg3[%c0_3, %c0_4] : memref<1x64xf32, #tpu.memory_space<vmem>>, vector<1x64xf32>
    %5 = vector.broadcast %4 : vector<1x64xf32> to vector<8x64xf32>
    %6 = arith.mulf %3, %5 : vector<8x64xf32>
    %cst = arith.constant 0.000000e+00 : f32
    %7 = vector.broadcast %cst : f32 to vector<8x64xf32>
    %8 = arith.subf %7, %6 : vector<8x64xf32>
    %9 = math.exp %8 : vector<8x64xf32>
    %cst_5 = arith.constant 1.000000e+00 : f32
    %10 = vector.broadcast %cst_5 : f32 to vector<8x64xf32>
    %11 = arith.addf %10, %9 : vector<8x64xf32>
    %cst_6 = arith.constant 1.000000e+00 : f32
    %12 = vector.broadcast %cst_6 : f32 to vector<8x64xf32>
    %13 = arith.divf %12, %11 : vector<8x64xf32>
    %14 = arith.mulf %6, %13 : vector<8x64xf32>
    %15 = arith.truncf %14 : vector<8x64xf32> to vector<8x64xbf16>
    %c0_7 = arith.constant 0 : index
    %c0_8 = arith.constant 0 : index
    %16 = vector.load %arg4[%c0_7, %c0_8] : memref<8x64xbf16, #tpu.memory_space<vmem>>, vector<8x64xbf16>
    tpu.vector_store %arg4[%c0_7, %c0_8], %15 {strides = array<i32>} : memref<8x64xbf16, #tpu.memory_space<vmem>>, vector<8x64xbf16>,
    return
  }
  func.func @transform_0(%arg0: i32) -> (i32, i32) {
    %c0_i32 = arith.constant 0 : i32
    %c0_i32_0 = arith.constant 0 : i32
    return %arg0, %c0_i32 : i32, i32
  }
  func.func @transform_1(%arg0: i32) -> (i32, i32) {
    %c0_i32 = arith.constant 0 : i32
    %c0_i32_0 = arith.constant 0 : i32
    %c0_i32_1 = arith.constant 0 : i32
    return %c0_i32, %c0_i32_0 : i32, i32
  }
  func.func @transform_2(%arg0: i32) -> (i32, i32) {
    %c0_i32 = arith.constant 0 : i32
    %c0_i32_0 = arith.constant 0 : i32
    %c0_i32_1 = arith.constant 0 : i32
    return %c0_i32, %c0_i32_0 : i32, i32
  }
  func.func @transform_3(%arg0: i32) -> (i32, i32) {
    %c0_i32 = arith.constant 0 : i32
    %c0_i32_0 = arith.constant 0 : i32
    return %arg0, %c0_i32 : i32, i32
  }
}

module attributes {stable_mosaic.version = 11 : i64} {
  func.func @_mm_bias_stats_kernel(%arg0: i32, %arg1: memref<32x144xbf16, #tpu.memory_space<vmem>>, %arg2: memref<144x32xbf16, #tpu.memory_space<vmem>>, %arg3: memref<1x32xf32, #tpu.memory_space<vmem>>, %arg4: memref<32x32xf32, #tpu.memory_space<vmem>>, %arg5: memref<1x32xf32, #tpu.memory_space<vmem>>, %arg6: memref<1x32xf32, #tpu.memory_space<vmem>>) attributes {dimension_semantics = [#tpu.dimension_semantics<arbitrary>], iteration_bounds = array<i64: 1>, scalar_prefetch = 0 : i64, scratch_operands = 0 : i64, tpu.core_type = #tpu.core_type<tc>, window_params = [{transform_indices = @transform_0, window_bounds = array<i64: 32, 144>}, {pipeline_mode = #tpu.pipeline_mode<synchronous>, transform_indices = @transform_1, window_bounds = array<i64: 144, 32>}, {pipeline_mode = #tpu.pipeline_mode<synchronous>, transform_indices = @transform_2, window_bounds = array<i64: 1, 32>}, {transform_indices = @transform_3, window_bounds = array<i64: 32, 32>}, {pipeline_mode = #tpu.pipeline_mode<synchronous>, transform_indices = @transform_4, window_bounds = array<i64: 1, 32>}, {pipeline_mode = #tpu.pipeline_mode<synchronous>, transform_indices = @transform_5, window_bounds = array<i64: 1, 32>}]} {
    %c0 = arith.constant 0 : index
    %c0_0 = arith.constant 0 : index
    %0 = vector.load %arg1[%c0, %c0_0] : memref<32x144xbf16, #tpu.memory_space<vmem>>, vector<32x144xbf16>
    %c0_1 = arith.constant 0 : index
    %c0_2 = arith.constant 0 : index
    %1 = vector.load %arg2[%c0_1, %c0_2] : memref<144x32xbf16, #tpu.memory_space<vmem>>, vector<144x32xbf16>
    %cst = arith.constant dense<0.000000e+00> : vector<32x32xf32>
    %2 = tpu.matmul %0, %1, %cst {dimension_numbers = #tpu.dot_dimension_numbers<[1], [0], [0], [1], [0, 0, 1, 1], [], []>} : vector<32x144xbf16>, vector<144x32xbf16>, vector<32x32xf32> -> vector<32x32xf32>
    %c0_3 = arith.constant 0 : index
    %c0_4 = arith.constant 0 : index
    %3 = vector.load %arg3[%c0_3, %c0_4] : memref<1x32xf32, #tpu.memory_space<vmem>>, vector<1x32xf32>
    %4 = vector.broadcast %3 : vector<1x32xf32> to vector<32x32xf32>
    %5 = arith.addf %2, %4 : vector<32x32xf32>
    %c0_5 = arith.constant 0 : index
    %c0_6 = arith.constant 0 : index
    %6 = vector.load %arg4[%c0_5, %c0_6] : memref<32x32xf32, #tpu.memory_space<vmem>>, vector<32x32xf32>
    tpu.vector_store %arg4[%c0_5, %c0_6], %5 {strides = array<i32>} : memref<32x32xf32, #tpu.memory_space<vmem>>, vector<32x32xf32>,
    %7 = tpu.iota {dimensions = array<i32: 0>} : vector<32x32xi32>
    %c32_i32 = arith.constant 32 : i32
    %8 = arith.muli %arg0, %c32_i32 : i32
    %9 = vector.broadcast %8 : i32 to vector<32x32xi32>
    %10 = arith.addi %7, %9 : vector<32x32xi32>
    %c32_i32_7 = arith.constant 32 : i32
    %11 = vector.broadcast %c32_i32_7 : i32 to vector<32x32xi32>
    %12 = arith.cmpi slt, %10, %11 : vector<32x32xi32>
    %cst_8 = arith.constant 0.000000e+00 : f32
    %13 = vector.broadcast %cst_8 : f32 to vector<32x32xf32>
    %14 = arith.select %12, %5, %13 : vector<32x32xi1>, vector<32x32xf32>
    %c0_i32 = arith.constant 0 : i32
    %15 = arith.cmpi eq, %arg0, %c0_i32 : i32
    %16 = arith.extui %15 : i1 to i32
    %c0_i32_9 = arith.constant 0 : i32
    %17 = arith.cmpi ne, %16, %c0_i32_9 : i32
    scf.if %17 {
      %cst_20 = arith.constant 0.000000e+00 : f32
      %29 = vector.broadcast %cst_20 : f32 to vector<1x32xf32>
      %c0_21 = arith.constant 0 : index
      %c0_22 = arith.constant 0 : index
      %30 = vector.load %arg5[%c0_21, %c0_22] : memref<1x32xf32, #tpu.memory_space<vmem>>, vector<1x32xf32>
      tpu.vector_store %arg5[%c0_21, %c0_22], %29 {strides = array<i32>} : memref<1x32xf32, #tpu.memory_space<vmem>>, vector<1x32xf32>,
      %cst_23 = arith.constant 0.000000e+00 : f32
      %31 = vector.broadcast %cst_23 : f32 to vector<1x32xf32>
      %c0_24 = arith.constant 0 : index
      %c0_25 = arith.constant 0 : index
      %32 = vector.load %arg6[%c0_24, %c0_25] : memref<1x32xf32, #tpu.memory_space<vmem>>, vector<1x32xf32>
      tpu.vector_store %arg6[%c0_24, %c0_25], %31 {strides = array<i32>} : memref<1x32xf32, #tpu.memory_space<vmem>>, vector<1x32xf32>,
    } else {
    }
    %c0_10 = arith.constant 0 : index
    %c0_11 = arith.constant 0 : index
    %18 = vector.load %arg5[%c0_10, %c0_11] : memref<1x32xf32, #tpu.memory_space<vmem>>, vector<1x32xf32>
    %cst_12 = arith.constant dense<0.000000e+00> : vector<32xf32>
    %19 = vector.multi_reduction <add>, %14, %cst_12 [0] : vector<32x32xf32> to vector<32xf32>
    %20 = vector.shape_cast %19 : vector<32xf32> to vector<1x32xf32>
    %21 = arith.addf %18, %20 : vector<1x32xf32>
    %c0_13 = arith.constant 0 : index
    %c0_14 = arith.constant 0 : index
    %22 = vector.load %arg5[%c0_13, %c0_14] : memref<1x32xf32, #tpu.memory_space<vmem>>, vector<1x32xf32>
    tpu.vector_store %arg5[%c0_13, %c0_14], %21 {strides = array<i32>} : memref<1x32xf32, #tpu.memory_space<vmem>>, vector<1x32xf32>,
    %c0_15 = arith.constant 0 : index
    %c0_16 = arith.constant 0 : index
    %23 = vector.load %arg6[%c0_15, %c0_16] : memref<1x32xf32, #tpu.memory_space<vmem>>, vector<1x32xf32>
    %24 = arith.mulf %14, %14 : vector<32x32xf32>
    %cst_17 = arith.constant dense<0.000000e+00> : vector<32xf32>
    %25 = vector.multi_reduction <add>, %24, %cst_17 [0] : vector<32x32xf32> to vector<32xf32>
    %26 = vector.shape_cast %25 : vector<32xf32> to vector<1x32xf32>
    %27 = arith.addf %23, %26 : vector<1x32xf32>
    %c0_18 = arith.constant 0 : index
    %c0_19 = arith.constant 0 : index
    %28 = vector.load %arg6[%c0_18, %c0_19] : memref<1x32xf32, #tpu.memory_space<vmem>>, vector<1x32xf32>
    tpu.vector_store %arg6[%c0_18, %c0_19], %27 {strides = array<i32>} : memref<1x32xf32, #tpu.memory_space<vmem>>, vector<1x32xf32>,
    return
  }
  func.func @transform_0(%arg0: i32) -> (i32, i32) {
    %c0_i32 = arith.constant 0 : i32
    %c0_i32_0 = arith.constant 0 : i32
    return %arg0, %c0_i32 : i32, i32
  }
  func.func @transform_1(%arg0: i32) -> (i32, i32) {
    %c0_i32 = arith.constant 0 : i32
    %c0_i32_0 = arith.constant 0 : i32
    %c0_i32_1 = arith.constant 0 : i32
    return %c0_i32, %c0_i32_0 : i32, i32
  }
  func.func @transform_2(%arg0: i32) -> (i32, i32) {
    %c0_i32 = arith.constant 0 : i32
    %c0_i32_0 = arith.constant 0 : i32
    %c0_i32_1 = arith.constant 0 : i32
    return %c0_i32, %c0_i32_0 : i32, i32
  }
  func.func @transform_3(%arg0: i32) -> (i32, i32) {
    %c0_i32 = arith.constant 0 : i32
    %c0_i32_0 = arith.constant 0 : i32
    return %arg0, %c0_i32 : i32, i32
  }
  func.func @transform_4(%arg0: i32) -> (i32, i32) {
    %c0_i32 = arith.constant 0 : i32
    %c0_i32_0 = arith.constant 0 : i32
    %c0_i32_1 = arith.constant 0 : i32
    return %c0_i32, %c0_i32_0 : i32, i32
  }
  func.func @transform_5(%arg0: i32) -> (i32, i32) {
    %c0_i32 = arith.constant 0 : i32
    %c0_i32_0 = arith.constant 0 : i32
    %c0_i32_1 = arith.constant 0 : i32
    return %c0_i32, %c0_i32_0 : i32, i32
  }
}

module attributes {stable_mosaic.version = 11 : i64} {
  func.func @_bn_act_kernel(%arg0: i32, %arg1: memref<32x32xf32, #tpu.memory_space<vmem>>, %arg2: memref<1x32xf32, #tpu.memory_space<vmem>>, %arg3: memref<1x32xf32, #tpu.memory_space<vmem>>, %arg4: memref<32x32xbf16, #tpu.memory_space<vmem>>) attributes {dimension_semantics = [#tpu.dimension_semantics<parallel>], iteration_bounds = array<i64: 1>, scalar_prefetch = 0 : i64, scratch_operands = 0 : i64, tpu.core_type = #tpu.core_type<tc>, window_params = [{transform_indices = @transform_0, window_bounds = array<i64: 32, 32>}, {pipeline_mode = #tpu.pipeline_mode<synchronous>, transform_indices = @transform_1, window_bounds = array<i64: 1, 32>}, {pipeline_mode = #tpu.pipeline_mode<synchronous>, transform_indices = @transform_2, window_bounds = array<i64: 1, 32>}, {transform_indices = @transform_3, window_bounds = array<i64: 32, 32>}]} {
    %c0 = arith.constant 0 : index
    %c0_0 = arith.constant 0 : index
    %0 = vector.load %arg1[%c0, %c0_0] : memref<32x32xf32, #tpu.memory_space<vmem>>, vector<32x32xf32>
    %c0_1 = arith.constant 0 : index
    %c0_2 = arith.constant 0 : index
    %1 = vector.load %arg2[%c0_1, %c0_2] : memref<1x32xf32, #tpu.memory_space<vmem>>, vector<1x32xf32>
    %2 = vector.broadcast %1 : vector<1x32xf32> to vector<32x32xf32>
    %3 = arith.subf %0, %2 : vector<32x32xf32>
    %c0_3 = arith.constant 0 : index
    %c0_4 = arith.constant 0 : index
    %4 = vector.load %arg3[%c0_3, %c0_4] : memref<1x32xf32, #tpu.memory_space<vmem>>, vector<1x32xf32>
    %5 = vector.broadcast %4 : vector<1x32xf32> to vector<32x32xf32>
    %6 = arith.mulf %3, %5 : vector<32x32xf32>
    %cst = arith.constant 0.000000e+00 : f32
    %7 = vector.broadcast %cst : f32 to vector<32x32xf32>
    %8 = arith.subf %7, %6 : vector<32x32xf32>
    %9 = math.exp %8 : vector<32x32xf32>
    %cst_5 = arith.constant 1.000000e+00 : f32
    %10 = vector.broadcast %cst_5 : f32 to vector<32x32xf32>
    %11 = arith.addf %10, %9 : vector<32x32xf32>
    %cst_6 = arith.constant 1.000000e+00 : f32
    %12 = vector.broadcast %cst_6 : f32 to vector<32x32xf32>
    %13 = arith.divf %12, %11 : vector<32x32xf32>
    %14 = arith.mulf %6, %13 : vector<32x32xf32>
    %15 = arith.truncf %14 : vector<32x32xf32> to vector<32x32xbf16>
    %c0_7 = arith.constant 0 : index
    %c0_8 = arith.constant 0 : index
    %16 = vector.load %arg4[%c0_7, %c0_8] : memref<32x32xbf16, #tpu.memory_space<vmem>>, vector<32x32xbf16>
    tpu.vector_store %arg4[%c0_7, %c0_8], %15 {strides = array<i32>} : memref<32x32xbf16, #tpu.memory_space<vmem>>, vector<32x32xbf16>,
    return
  }
  func.func @transform_0(%arg0: i32) -> (i32, i32) {
    %c0_i32 = arith.constant 0 : i32
    %c0_i32_0 = arith.constant 0 : i32
    return %arg0, %c0_i32 : i32, i32
  }
  func.func @transform_1(%arg0: i32) -> (i32, i32) {
    %c0_i32 = arith.constant 0 : i32
    %c0_i32_0 = arith.constant 0 : i32
    %c0_i32_1 = arith.constant 0 : i32
    return %c0_i32, %c0_i32_0 : i32, i32
  }
  func.func @transform_2(%arg0: i32) -> (i32, i32) {
    %c0_i32 = arith.constant 0 : i32
    %c0_i32_0 = arith.constant 0 : i32
    %c0_i32_1 = arith.constant 0 : i32
    return %c0_i32, %c0_i32_0 : i32, i32
  }
  func.func @transform_3(%arg0: i32) -> (i32, i32) {
    %c0_i32 = arith.constant 0 : i32
    %c0_i32_0 = arith.constant 0 : i32
    return %arg0, %c0_i32 : i32, i32
  }
}

module attributes {stable_mosaic.version = 11 : i64} {
  func.func @_mm_bias_stats_kernel(%arg0: i32, %arg1: memref<128x72xbf16, #tpu.memory_space<vmem>>, %arg2: memref<72x12xbf16, #tpu.memory_space<vmem>>, %arg3: memref<1x12xf32, #tpu.memory_space<vmem>>, %arg4: memref<128x12xf32, #tpu.memory_space<vmem>>, %arg5: memref<1x12xf32, #tpu.memory_space<vmem>>, %arg6: memref<1x12xf32, #tpu.memory_space<vmem>>) attributes {dimension_semantics = [#tpu.dimension_semantics<arbitrary>], iteration_bounds = array<i64: 1>, scalar_prefetch = 0 : i64, scratch_operands = 0 : i64, tpu.core_type = #tpu.core_type<tc>, window_params = [{transform_indices = @transform_0, window_bounds = array<i64: 128, 72>}, {pipeline_mode = #tpu.pipeline_mode<synchronous>, transform_indices = @transform_1, window_bounds = array<i64: 72, 12>}, {pipeline_mode = #tpu.pipeline_mode<synchronous>, transform_indices = @transform_2, window_bounds = array<i64: 1, 12>}, {transform_indices = @transform_3, window_bounds = array<i64: 128, 12>}, {pipeline_mode = #tpu.pipeline_mode<synchronous>, transform_indices = @transform_4, window_bounds = array<i64: 1, 12>}, {pipeline_mode = #tpu.pipeline_mode<synchronous>, transform_indices = @transform_5, window_bounds = array<i64: 1, 12>}]} {
    %c0 = arith.constant 0 : index
    %c0_0 = arith.constant 0 : index
    %0 = vector.load %arg1[%c0, %c0_0] : memref<128x72xbf16, #tpu.memory_space<vmem>>, vector<128x72xbf16>
    %c0_1 = arith.constant 0 : index
    %c0_2 = arith.constant 0 : index
    %1 = vector.load %arg2[%c0_1, %c0_2] : memref<72x12xbf16, #tpu.memory_space<vmem>>, vector<72x12xbf16>
    %cst = arith.constant dense<0.000000e+00> : vector<128x12xf32>
    %2 = tpu.matmul %0, %1, %cst {dimension_numbers = #tpu.dot_dimension_numbers<[1], [0], [0], [1], [0, 0, 1, 1], [], []>} : vector<128x72xbf16>, vector<72x12xbf16>, vector<128x12xf32> -> vector<128x12xf32>
    %c0_3 = arith.constant 0 : index
    %c0_4 = arith.constant 0 : index
    %3 = vector.load %arg3[%c0_3, %c0_4] : memref<1x12xf32, #tpu.memory_space<vmem>>, vector<1x12xf32>
    %4 = vector.broadcast %3 : vector<1x12xf32> to vector<128x12xf32>
    %5 = arith.addf %2, %4 : vector<128x12xf32>
    %c0_5 = arith.constant 0 : index
    %c0_6 = arith.constant 0 : index
    %6 = vector.load %arg4[%c0_5, %c0_6] : memref<128x12xf32, #tpu.memory_space<vmem>>, vector<128x12xf32>
    tpu.vector_store %arg4[%c0_5, %c0_6], %5 {strides = array<i32>} : memref<128x12xf32, #tpu.memory_space<vmem>>, vector<128x12xf32>,
    %7 = tpu.iota {dimensions = array<i32: 0>} : vector<128x12xi32>
    %c128_i32 = arith.constant 128 : i32
    %8 = arith.muli %arg0, %c128_i32 : i32
    %9 = vector.broadcast %8 : i32 to vector<128x12xi32>
    %10 = arith.addi %7, %9 : vector<128x12xi32>
    %c128_i32_7 = arith.constant 128 : i32
    %11 = vector.broadcast %c128_i32_7 : i32 to vector<128x12xi32>
    %12 = arith.cmpi slt, %10, %11 : vector<128x12xi32>
    %cst_8 = arith.constant 0.000000e+00 : f32
    %13 = vector.broadcast %cst_8 : f32 to vector<128x12xf32>
    %14 = arith.select %12, %5, %13 : vector<128x12xi1>, vector<128x12xf32>
    %c0_i32 = arith.constant 0 : i32
    %15 = arith.cmpi eq, %arg0, %c0_i32 : i32
    %16 = arith.extui %15 : i1 to i32
    %c0_i32_9 = arith.constant 0 : i32
    %17 = arith.cmpi ne, %16, %c0_i32_9 : i32
    scf.if %17 {
      %cst_20 = arith.constant 0.000000e+00 : f32
      %29 = vector.broadcast %cst_20 : f32 to vector<1x12xf32>
      %c0_21 = arith.constant 0 : index
      %c0_22 = arith.constant 0 : index
      %30 = vector.load %arg5[%c0_21, %c0_22] : memref<1x12xf32, #tpu.memory_space<vmem>>, vector<1x12xf32>
      tpu.vector_store %arg5[%c0_21, %c0_22], %29 {strides = array<i32>} : memref<1x12xf32, #tpu.memory_space<vmem>>, vector<1x12xf32>,
      %cst_23 = arith.constant 0.000000e+00 : f32
      %31 = vector.broadcast %cst_23 : f32 to vector<1x12xf32>
      %c0_24 = arith.constant 0 : index
      %c0_25 = arith.constant 0 : index
      %32 = vector.load %arg6[%c0_24, %c0_25] : memref<1x12xf32, #tpu.memory_space<vmem>>, vector<1x12xf32>
      tpu.vector_store %arg6[%c0_24, %c0_25], %31 {strides = array<i32>} : memref<1x12xf32, #tpu.memory_space<vmem>>, vector<1x12xf32>,
    } else {
    }
    %c0_10 = arith.constant 0 : index
    %c0_11 = arith.constant 0 : index
    %18 = vector.load %arg5[%c0_10, %c0_11] : memref<1x12xf32, #tpu.memory_space<vmem>>, vector<1x12xf32>
    %cst_12 = arith.constant dense<0.000000e+00> : vector<12xf32>
    %19 = vector.multi_reduction <add>, %14, %cst_12 [0] : vector<128x12xf32> to vector<12xf32>
    %20 = vector.shape_cast %19 : vector<12xf32> to vector<1x12xf32>
    %21 = arith.addf %18, %20 : vector<1x12xf32>
    %c0_13 = arith.constant 0 : index
    %c0_14 = arith.constant 0 : index
    %22 = vector.load %arg5[%c0_13, %c0_14] : memref<1x12xf32, #tpu.memory_space<vmem>>, vector<1x12xf32>
    tpu.vector_store %arg5[%c0_13, %c0_14], %21 {strides = array<i32>} : memref<1x12xf32, #tpu.memory_space<vmem>>, vector<1x12xf32>,
    %c0_15 = arith.constant 0 : index
    %c0_16 = arith.constant 0 : index
    %23 = vector.load %arg6[%c0_15, %c0_16] : memref<1x12xf32, #tpu.memory_space<vmem>>, vector<1x12xf32>
    %24 = arith.mulf %14, %14 : vector<128x12xf32>
    %cst_17 = arith.constant dense<0.000000e+00> : vector<12xf32>
    %25 = vector.multi_reduction <add>, %24, %cst_17 [0] : vector<128x12xf32> to vector<12xf32>
    %26 = vector.shape_cast %25 : vector<12xf32> to vector<1x12xf32>
    %27 = arith.addf %23, %26 : vector<1x12xf32>
    %c0_18 = arith.constant 0 : index
    %c0_19 = arith.constant 0 : index
    %28 = vector.load %arg6[%c0_18, %c0_19] : memref<1x12xf32, #tpu.memory_space<vmem>>, vector<1x12xf32>
    tpu.vector_store %arg6[%c0_18, %c0_19], %27 {strides = array<i32>} : memref<1x12xf32, #tpu.memory_space<vmem>>, vector<1x12xf32>,
    return
  }
  func.func @transform_0(%arg0: i32) -> (i32, i32) {
    %c0_i32 = arith.constant 0 : i32
    %c0_i32_0 = arith.constant 0 : i32
    return %arg0, %c0_i32 : i32, i32
  }
  func.func @transform_1(%arg0: i32) -> (i32, i32) {
    %c0_i32 = arith.constant 0 : i32
    %c0_i32_0 = arith.constant 0 : i32
    %c0_i32_1 = arith.constant 0 : i32
    return %c0_i32, %c0_i32_0 : i32, i32
  }
  func.func @transform_2(%arg0: i32) -> (i32, i32) {
    %c0_i32 = arith.constant 0 : i32
    %c0_i32_0 = arith.constant 0 : i32
    %c0_i32_1 = arith.constant 0 : i32
    return %c0_i32, %c0_i32_0 : i32, i32
  }
  func.func @transform_3(%arg0: i32) -> (i32, i32) {
    %c0_i32 = arith.constant 0 : i32
    %c0_i32_0 = arith.constant 0 : i32
    return %arg0, %c0_i32 : i32, i32
  }
  func.func @transform_4(%arg0: i32) -> (i32, i32) {
    %c0_i32 = arith.constant 0 : i32
    %c0_i32_0 = arith.constant 0 : i32
    %c0_i32_1 = arith.constant 0 : i32
    return %c0_i32, %c0_i32_0 : i32, i32
  }
  func.func @transform_5(%arg0: i32) -> (i32, i32) {
    %c0_i32 = arith.constant 0 : i32
    %c0_i32_0 = arith.constant 0 : i32
    %c0_i32_1 = arith.constant 0 : i32
    return %c0_i32, %c0_i32_0 : i32, i32
  }
}

module attributes {stable_mosaic.version = 11 : i64} {
  func.func @_bn_act_kernel(%arg0: i32, %arg1: memref<128x12xf32, #tpu.memory_space<vmem>>, %arg2: memref<1x12xf32, #tpu.memory_space<vmem>>, %arg3: memref<1x12xf32, #tpu.memory_space<vmem>>, %arg4: memref<128x12xbf16, #tpu.memory_space<vmem>>) attributes {dimension_semantics = [#tpu.dimension_semantics<parallel>], iteration_bounds = array<i64: 1>, scalar_prefetch = 0 : i64, scratch_operands = 0 : i64, tpu.core_type = #tpu.core_type<tc>, window_params = [{transform_indices = @transform_0, window_bounds = array<i64: 128, 12>}, {pipeline_mode = #tpu.pipeline_mode<synchronous>, transform_indices = @transform_1, window_bounds = array<i64: 1, 12>}, {pipeline_mode = #tpu.pipeline_mode<synchronous>, transform_indices = @transform_2, window_bounds = array<i64: 1, 12>}, {transform_indices = @transform_3, window_bounds = array<i64: 128, 12>}]} {
    %c0 = arith.constant 0 : index
    %c0_0 = arith.constant 0 : index
    %0 = vector.load %arg1[%c0, %c0_0] : memref<128x12xf32, #tpu.memory_space<vmem>>, vector<128x12xf32>
    %c0_1 = arith.constant 0 : index
    %c0_2 = arith.constant 0 : index
    %1 = vector.load %arg2[%c0_1, %c0_2] : memref<1x12xf32, #tpu.memory_space<vmem>>, vector<1x12xf32>
    %2 = vector.broadcast %1 : vector<1x12xf32> to vector<128x12xf32>
    %3 = arith.subf %0, %2 : vector<128x12xf32>
    %c0_3 = arith.constant 0 : index
    %c0_4 = arith.constant 0 : index
    %4 = vector.load %arg3[%c0_3, %c0_4] : memref<1x12xf32, #tpu.memory_space<vmem>>, vector<1x12xf32>
    %5 = vector.broadcast %4 : vector<1x12xf32> to vector<128x12xf32>
    %6 = arith.mulf %3, %5 : vector<128x12xf32>
    %cst = arith.constant 0.000000e+00 : f32
    %7 = vector.broadcast %cst : f32 to vector<128x12xf32>
    %8 = arith.subf %7, %6 : vector<128x12xf32>
    %9 = math.exp %8 : vector<128x12xf32>
    %cst_5 = arith.constant 1.000000e+00 : f32
    %10 = vector.broadcast %cst_5 : f32 to vector<128x12xf32>
    %11 = arith.addf %10, %9 : vector<128x12xf32>
    %cst_6 = arith.constant 1.000000e+00 : f32
    %12 = vector.broadcast %cst_6 : f32 to vector<128x12xf32>
    %13 = arith.divf %12, %11 : vector<128x12xf32>
    %14 = arith.mulf %6, %13 : vector<128x12xf32>
    %15 = arith.truncf %14 : vector<128x12xf32> to vector<128x12xbf16>
    %c0_7 = arith.constant 0 : index
    %c0_8 = arith.constant 0 : index
    %16 = vector.load %arg4[%c0_7, %c0_8] : memref<128x12xbf16, #tpu.memory_space<vmem>>, vector<128x12xbf16>
    tpu.vector_store %arg4[%c0_7, %c0_8], %15 {strides = array<i32>} : memref<128x12xbf16, #tpu.memory_space<vmem>>, vector<128x12xbf16>,
    return
  }
  func.func @transform_0(%arg0: i32) -> (i32, i32) {
    %c0_i32 = arith.constant 0 : i32
    %c0_i32_0 = arith.constant 0 : i32
    return %arg0, %c0_i32 : i32, i32
  }
  func.func @transform_1(%arg0: i32) -> (i32, i32) {
    %c0_i32 = arith.constant 0 : i32
    %c0_i32_0 = arith.constant 0 : i32
    %c0_i32_1 = arith.constant 0 : i32
    return %c0_i32, %c0_i32_0 : i32, i32
  }
  func.func @transform_2(%arg0: i32) -> (i32, i32) {
    %c0_i32 = arith.constant 0 : i32
    %c0_i32_0 = arith.constant 0 : i32
    %c0_i32_1 = arith.constant 0 : i32
    return %c0_i32, %c0_i32_0 : i32, i32
  }
  func.func @transform_3(%arg0: i32) -> (i32, i32) {
    %c0_i32 = arith.constant 0 : i32
    %c0_i32_0 = arith.constant 0 : i32
    return %arg0, %c0_i32 : i32, i32
  }
}

</mosaic_0001>

<bundles_post_ra>
// kernel: vae_forward.63
= control target key start
LH: loop header
LB: loop body
LE: loop exit
PB: predicated region body
PF: predicated region fallthrough
CT: control target
= control target key end

     0   :  { %vm668_vm0 = vcmask 19456   ;;  %s1473_s0 = inlined_call_operand.vmem [shape: f32[512,3], index: 0, kind: input, shape index: {}]   ;;  %s1474_s1 = inlined_call_operand.vmem [shape: f32[1,3], index: 1, kind: input, shape index: {}]   ;;  %s1475_s2 = inlined_call_operand.vmem [shape: f32[1,3], index: 2, kind: input, shape index: {}]   ;;  %s1476_s3 = inlined_call_operand.vmem [shape: bf16[512,3], index: 3, kind: output, shape index: {}]  }
   0x1   :  { %v14_v0 = vld [vmem:[%s1473_s0] sm:$0xff]  ;;  %v15_v4 = vld [vmem:[%s1473_s0 + $0x8] sm:$0xff]  ;;  %v16_v5 = vld [vmem:[%s1473_s0 + $0x10] sm:$0xff] }
   0x2   :  { %v893_v1 = vld [vmem:[%s1474_s1] ss:$0 sm:$0xff]  ;;  %v17_v6 = vld [vmem:[%s1473_s0 + $0x18] sm:$0xff]  ;;  %v19_v11 = vld [vmem:[%s1473_s0 + $0x28] sm:$0xff] }
   0x3   :  { %v898_v2 = vld [vmem:[%s1475_s2] ss:$0 sm:$0xff]  ;;  %v85_v3 = vsub.f32 %v14_v0, %v893_v1  ;;  %v86_v7 = vsub.f32 %v15_v4, %v893_v1  ;;  %v87_v8 = vsub.f32 %v16_v5, %v893_v1  ;;  %v88_v9 = vsub.f32 %v17_v6, %v893_v1  ;;  %v20_v12 = vld [vmem:[%s1473_s0 + $0x30] sm:$0xff]  ;;  %v21_v17 = vld [vmem:[%s1473_s0 + $0x38] sm:$0xff] }
   0x4   :  { %v18_v10 = vld [vmem:[%s1473_s0 + $0x20] sm:$0xff]  ;;  %v90_v15 = vsub.f32 %v19_v11, %v893_v1  ;;  %v91_v16 = vsub.f32 %v20_v12, %v893_v1  ;;  %v92_v21 = vsub.f32 %v21_v17, %v893_v1  ;;  %v23_v34 = vld [vmem:[%s1473_s0 + $0x48] sm:$0xff]  ;;  %v24_v38 = vld [vmem:[%s1473_s0 + $0x50] sm:$0xff] }
   0x5   :  { %v156_v13 = vmul.f32 %v898_v2, %v85_v3  ;;  %v89_v14 = vsub.f32 %v18_v10, %v893_v1  ;;  %v157_v18 = vmul.f32 %v898_v2, %v86_v7  ;;  %v158_v19 = vmul.f32 %v898_v2, %v87_v8  ;;  %v22_v33 = vld [vmem:[%s1473_s0 + $0x40] sm:$0xff]  ;;  %v25_v47 = vld [vmem:[%s1473_s0 + $0x58] sm:$0xff]  ;;  %v27_v62 = vld [vmem:[%s1473_s0 + $0x68] sm:$0xff] }
   0x6   :  { %v159_v20 = vmul.f32 %v898_v2, %v88_v9  ;;  %v161_v24 = vmul.f32 %v898_v2, %v90_v15  ;;  %v162_v42 = vmul.f32 %v898_v2, %v91_v16  ;;  %v163_v44 = vmul.f32 %v898_v2, %v92_v21  ;;  %v26_v58 = vld [vmem:[%s1473_s0 + $0x60] sm:$0xff]  ;;  %v28_v63 = vld [vmem:[%s1473_s0 + $0x70] sm:$0xff]  ;;  %v29_v12 = vld [vmem:[%s1473_s0 + $0x78] sm:$0xff] }
   0x7   :  { %vm220_vm1 = vcmp.ge.f32.partialorder %v156_v13, 0.0  ;;  %v284_v22 = vmul.f32 0.01, %v156_v13  ;;  %v160_v23 = vmul.f32 %v898_v2, %v89_v14  ;;  %vm221_vm2 = vcmp.ge.f32.partialorder %v157_v18, 0.0  ;;  %v31_v14 = vld [vmem:[%s1473_s0 + $0x88] sm:$0xff] }
   0x8   :  { %v285_v25 = vmul.f32 0.01, %v157_v18  ;;  %vm222_vm3 = vcmp.ge.f32.partialorder %v158_v19, 0.0  ;;  %v286_v26 = vmul.f32 0.01, %v158_v19  ;;  %vm223_vm4 = vcmp.ge.f32.partialorder %v159_v20, 0.0 }
   0x9   :  { %v348_v27 = vsel %vm220_vm1, %v156_v13, %v284_v22  ;;  %v287_v28 = vmul.f32 0.01, %v159_v20  ;;  %vm224_vm5 = vcmp.ge.f32.partialorder %v160_v23, 0.0  ;;  %v288_v32 = vmul.f32 0.01, %v160_v23  ;;  %v30_v13 = vld [vmem:[%s1473_s0 + $0x80] sm:$0xff] }
   0xa   :  { %v803_v29 = vpack.c.bf16 %v348_v27, %v348_v27  ;;  %v349_v30 = vsel %vm221_vm2, %v157_v18, %v285_v25  ;;  %v350_v31 = vsel %vm222_vm3, %v158_v19, %v286_v26  ;;  %vm225_vm6 = vcmp.ge.f32.partialorder %v161_v24, 0.0  ;;  %v32_v26 = vld [vmem:[%s1473_s0 + $0x90] sm:$0xff] }
   0xb   :  { %v804_v35 = vpack.c.bf16 %v349_v30, %v349_v30  ;;  %v805_v36 = vpack.c.bf16 %v350_v31, %v350_v31  ;;  %v351_v37 = vsel %vm223_vm4, %v159_v20, %v287_v28  ;;  %v352_v40 = vsel %vm224_vm5, %v160_v23, %v288_v32 }
   0xc   :  { %669 = vst.msk [vmem:[%s1476_s3] sm:$0xf] %vm668_vm0, %v803_v29  ;;  %v806_v39 = vpack.c.bf16 %v351_v37, %v351_v37  ;;  %v289_v41 = vmul.f32 0.01, %v161_v24  ;;  %v807_v43 = vpack.c.bf16 %v352_v40, %v352_v40  ;;  %v93_v45 = vsub.f32 %v22_v33, %v893_v1  ;;  %v34_v40 = vld [vmem:[%s1473_s0 + $0xa0] sm:$0xff] }
   0xd   :  { %670 = vst.msk [vmem:[%s1476_s3 + $0x4] sm:$0xf] %vm668_vm0, %v804_v35  ;;  %671 = vst.msk [vmem:[%s1476_s3 + $0x8] sm:$0xf] %vm668_vm0, %v805_v36  ;;  %v94_v46 = vsub.f32 %v23_v34, %v893_v1  ;;  %vm226_vm7 = vcmp.ge.f32.partialorder %v162_v42, 0.0  ;;  %v95_v50 = vsub.f32 %v24_v38, %v893_v1  ;;  %vm227_vm8 = vcmp.ge.f32.partialorder %v163_v44, 0.0 }
   0xe   :  { %672 = vst.msk [vmem:[%s1476_s3 + $0xc] sm:$0xf] %vm668_vm0, %v806_v39  ;;  %v353_v48 = vsel %vm225_vm6, %v161_v24, %v289_v41  ;;  %v290_v49 = vmul.f32 0.01, %v162_v42  ;;  %673 = vst.msk [vmem:[%s1476_s3 + $0x10] sm:$0xf] %vm668_vm0, %v807_v43  ;;  %v164_v53 = vmul.f32 %v898_v2, %v93_v45  ;;  %v96_v57 = vsub.f32 %v25_v47, %v893_v1 }
   0xf   :  { %v808_v51 = vpack.c.bf16 %v353_v48, %v353_v48  ;;  %v291_v52 = vmul.f32 0.01, %v163_v44  ;;  %v165_v55 = vmul.f32 %v898_v2, %v94_v46  ;;  %v166_v56 = vmul.f32 %v898_v2, %v95_v50  ;;  %v33_v39 = vld [vmem:[%s1473_s0 + $0x98] sm:$0xff]  ;;  %v35_v41 = vld [vmem:[%s1473_s0 + $0xa8] sm:$0xff] }
  0x10   :  { %v354_v54 = vsel %vm226_vm7, %v162_v42, %v290_v49  ;;  %vm228_vm9 = vcmp.ge.f32.partialorder %v164_v53, 0.0  ;;  %v292_v61 = vmul.f32 0.01, %v164_v53  ;;  %v167_v6 = vmul.f32 %v898_v2, %v96_v57  ;;  %v38_v57 = vld [vmem:[%s1473_s0 + $0xc0] sm:$0xff] }
  0x11   :  { %674 = vst.msk [vmem:[%s1476_s3 + $0x14] sm:$0xf] %vm668_vm0, %v808_v51  ;;  %v809_v59 = vpack.c.bf16 %v354_v54, %v354_v54  ;;  %v355_v60 = vsel %vm227_vm8, %v163_v44, %v291_v52  ;;  %vm229_vm10 = vcmp.ge.f32.partialorder %v165_v55, 0.0  ;;  %v293_v3 = vmul.f32 0.01, %v165_v55  ;;  %v36_v52 = vld [vmem:[%s1473_s0 + $0xb0] sm:$0xff] }
  0x12   :  { %v810_v0 = vpack.c.bf16 %v355_v60, %v355_v60  ;;  %vm230_vm11 = vcmp.ge.f32.partialorder %v166_v56, 0.0  ;;  %v356_v4 = vsel %vm228_vm9, %v164_v53, %v292_v61  ;;  %v294_v5 = vmul.f32 0.01, %v166_v56  ;;  %v37_v53 = vld [vmem:[%s1473_s0 + $0xb8] sm:$0xff] }
  0x13   :  { %675 = vst.msk [vmem:[%s1476_s3 + $0x18] sm:$0xf] %vm668_vm0, %v809_v59  ;;  %v97_v7 = vsub.f32 %v26_v58, %v893_v1  ;;  %v811_v8 = vpack.c.bf16 %v356_v4, %v356_v4  ;;  %v357_v9 = vsel %vm229_vm10, %v165_v55, %v293_v3  ;;  %v98_v10 = vsub.f32 %v27_v62, %v893_v1 }
  0x14   :  { %676 = vst.msk [vmem:[%s1476_s3 + $0x1c] sm:$0xf] %vm668_vm0, %v810_v0  ;;  %v99_v11 = vsub.f32 %v28_v63, %v893_v1  ;;  %v812_v15 = vpack.c.bf16 %v357_v9, %v357_v9  ;;  %v358_v16 = vsel %vm230_vm11, %v166_v56, %v294_v5  ;;  %vm231_vm12 = vcmp.ge.f32.partialorder %v167_v6, 0.0 }
  0x15   :  { %v295_v17 = vmul.f32 0.01, %v167_v6  ;;  %677 = vst.msk [vmem:[%s1476_s3 + $0x20] sm:$0xf] %vm668_vm0, %v811_v8  ;;  %v813_v18 = vpack.c.bf16 %v358_v16, %v358_v16  ;;  %v168_v19 = vmul.f32 %v898_v2, %v97_v7  ;;  %v169_v20 = vmul.f32 %v898_v2, %v98_v10  ;;  %v39_v7 = vld [vmem:[%s1473_s0 + $0xc8] sm:$0xff] }
  0x16   :  { %v170_v21 = vmul.f32 %v898_v2, %v99_v11  ;;  %678 = vst.msk [vmem:[%s1476_s3 + $0x24] sm:$0xf] %vm668_vm0, %v812_v15  ;;  %v100_v23 = vsub.f32 %v29_v12, %v893_v1  ;;  %v101_v24 = vsub.f32 %v30_v13, %v893_v1  ;;  %v102_v25 = vsub.f32 %v31_v14, %v893_v1 }
  0x17   :  { %v359_v22 = vsel %vm231_vm12, %v167_v6, %v295_v17  ;;  %679 = vst.msk [vmem:[%s1476_s3 + $0x28] sm:$0xf] %vm668_vm0, %v813_v18  ;;  %vm232_vm13 = vcmp.ge.f32.partialorder %v168_v19, 0.0  ;;  %v296_v28 = vmul.f32 0.01, %v168_v19  ;;  %vm233_vm14 = vcmp.ge.f32.partialorder %v169_v20, 0.0 }
  0x18   :  { %v814_v27 = vpack.c.bf16 %v359_v22, %v359_v22  ;;  %v297_v29 = vmul.f32 0.01, %v169_v20  ;;  %vm234_vm15 = vcmp.ge.f32.partialorder %v170_v21, 0.0  ;;  %v298_v30 = vmul.f32 0.01, %v170_v21  ;;  %v40_v18 = vld [vmem:[%s1473_s0 + $0xd0] sm:$0xff] }
  0x19   :  { %v171_v31 = vmul.f32 %v898_v2, %v100_v23  ;;  %v360_v32 = vsel %vm232_vm13, %v168_v19, %v296_v28  ;;  %v172_v33 = vmul.f32 %v898_v2, %v101_v24  ;;  %v173_v34 = vmul.f32 %v898_v2, %v102_v25  ;;  %v41_v22 = vld [vmem:[%s1473_s0 + $0xd8] sm:$0xff]  ;;  %v42_v23 = vld [vmem:[%s1473_s0 + $0xe0] sm:$0xff] }
  0x1a   :  { %680 = vst.msk [vmem:[%s1476_s3 + $0x2c] sm:$0xf] %vm668_vm0, %v814_v27  ;;  %v103_v35 = vsub.f32 %v32_v26, %v893_v1  ;;  %v815_v36 = vpack.c.bf16 %v360_v32, %v360_v32  ;;  %v361_v37 = vsel %vm233_vm14, %v169_v20, %v297_v29  ;;  %v362_v38 = vsel %vm234_vm15, %v170_v21, %v298_v30 }
  0x1b   :  { %vm235_vm1 = vcmp.ge.f32.partialorder %v171_v31, 0.0  ;;  %v816_v42 = vpack.c.bf16 %v361_v37, %v361_v37  ;;  %v817_v43 = vpack.c.bf16 %v362_v38, %v362_v38  ;;  %v299_v44 = vmul.f32 0.01, %v171_v31 }
  0x1c   :  { %vm236_vm2 = vcmp.ge.f32.partialorder %v172_v33, 0.0  ;;  %681 = vst.msk [vmem:[%s1476_s3 + $0x30] sm:$0xf] %vm668_vm0, %v815_v36  ;;  %v300_v45 = vmul.f32 0.01, %v172_v33  ;;  %vm237_vm3 = vcmp.ge.f32.partialorder %v173_v34, 0.0  ;;  %v174_v47 = vmul.f32 %v898_v2, %v103_v35 }
  0x1d   :  { %v301_v46 = vmul.f32 0.01, %v173_v34  ;;  %682 = vst.msk [vmem:[%s1476_s3 + $0x34] sm:$0xf] %vm668_vm0, %v816_v42  ;;  %683 = vst.msk [vmem:[%s1476_s3 + $0x38] sm:$0xf] %vm668_vm0, %v817_v43  ;;  %v363_v48 = vsel %vm235_vm1, %v171_v31, %v299_v44  ;;  %v104_v49 = vsub.f32 %v33_v39, %v893_v1  ;;  %v105_v50 = vsub.f32 %v34_v40, %v893_v1 }
  0x1e   :  { %v106_v51 = vsub.f32 %v35_v41, %v893_v1  ;;  %v818_v54 = vpack.c.bf16 %v363_v48, %v363_v48  ;;  %v364_v55 = vsel %vm236_vm2, %v172_v33, %v300_v45  ;;  %vm238_vm4 = vcmp.ge.f32.partialorder %v174_v47, 0.0  ;;  %v44_v35 = vld [vmem:[%s1473_s0 + $0xf0] sm:$0xff]  ;;  %v45_v36 = vld [vmem:[%s1473_s0 + $0xf8] sm:$0xff]  ;;  %v46_v48 = vld [vmem:[%s1473_s0 + $0x100] sm:$0xff] }
  0x1f   :  { %v365_v56 = vsel %vm237_vm3, %v173_v34, %v301_v46  ;;  %v819_v58 = vpack.c.bf16 %v364_v55, %v364_v55  ;;  %v302_v60 = vmul.f32 0.01, %v174_v47  ;;  %v175_v61 = vmul.f32 %v898_v2, %v104_v49  ;;  %v43_v34 = vld [vmem:[%s1473_s0 + $0xe8] sm:$0xff] }
  0x20   :  { %v820_v59 = vpack.c.bf16 %v365_v56, %v365_v56  ;;  %684 = vst.msk [vmem:[%s1476_s3 + $0x3c] sm:$0xf] %vm668_vm0, %v818_v54  ;;  %v176_v62 = vmul.f32 %v898_v2, %v105_v50  ;;  %v177_v63 = vmul.f32 %v898_v2, %v106_v51  ;;  %v107_v0 = vsub.f32 %v36_v52, %v893_v1 }
  0x21   :  { %v108_v3 = vsub.f32 %v37_v53, %v893_v1  ;;  %685 = vst.msk [vmem:[%s1476_s3 + $0x40] sm:$0xf] %vm668_vm0, %v819_v58  ;;  %v366_v4 = vsel %vm238_vm4, %v174_v47, %v302_v60  ;;  %vm239_vm5 = vcmp.ge.f32.partialorder %v175_v61, 0.0  ;;  %v303_v5 = vmul.f32 0.01, %v175_v61 }
  0x22   :  { %686 = vst.msk [vmem:[%s1476_s3 + $0x44] sm:$0xf] %vm668_vm0, %v820_v59  ;;  %v109_v6 = vsub.f32 %v38_v57, %v893_v1  ;;  %v821_v8 = vpack.c.bf16 %v366_v4, %v366_v4  ;;  %vm240_vm6 = vcmp.ge.f32.partialorder %v176_v62, 0.0  ;;  %v304_v9 = vmul.f32 0.01, %v176_v62 }
  0x23   :  { %vm241_vm7 = vcmp.ge.f32.partialorder %v177_v63, 0.0  ;;  %v367_v10 = vsel %vm239_vm5, %v175_v61, %v303_v5  ;;  %v305_v11 = vmul.f32 0.01, %v177_v63  ;;  %v178_v12 = vmul.f32 %v898_v2, %v107_v0  ;;  %v47_v61 = vld [vmem:[%s1473_s0 + $0x108] sm:$0xff] }
  0x24   :  { %v179_v13 = vmul.f32 %v898_v2, %v108_v3  ;;  %687 = vst.msk [vmem:[%s1476_s3 + $0x48] sm:$0xf] %vm668_vm0, %v821_v8  ;;  %v822_v14 = vpack.c.bf16 %v367_v10, %v367_v10  ;;  %v368_v15 = vsel %vm240_vm6, %v176_v62, %v304_v9  ;;  %v180_v16 = vmul.f32 %v898_v2, %v109_v6  ;;  %v48_v62 = vld [vmem:[%s1473_s0 + $0x110] sm:$0xff] }
  0x25   :  { %v110_v17 = vsub.f32 %v39_v7, %v893_v1  ;;  %v823_v19 = vpack.c.bf16 %v368_v15, %v368_v15  ;;  %v369_v20 = vsel %vm241_vm7, %v177_v63, %v305_v11  ;;  %vm242_vm8 = vcmp.ge.f32.partialorder %v178_v12, 0.0  ;;  %v49_v63 = vld [vmem:[%s1473_s0 + $0x118] sm:$0xff] }
  0x26   :  { %v306_v21 = vmul.f32 0.01, %v178_v12  ;;  %688 = vst.msk [vmem:[%s1476_s3 + $0x4c] sm:$0xf] %vm668_vm0, %v822_v14  ;;  %v824_v24 = vpack.c.bf16 %v369_v20, %v369_v20  ;;  %vm243_vm9 = vcmp.ge.f32.partialorder %v179_v13, 0.0  ;;  %vm244_vm10 = vcmp.ge.f32.partialorder %v180_v16, 0.0 }
  0x27   :  { %v307_v25 = vmul.f32 0.01, %v179_v13  ;;  %689 = vst.msk [vmem:[%s1476_s3 + $0x50] sm:$0xf] %vm668_vm0, %v823_v19  ;;  %v308_v27 = vmul.f32 0.01, %v180_v16  ;;  %v181_v28 = vmul.f32 %v898_v2, %v110_v17  ;;  %v111_v29 = vsub.f32 %v40_v18, %v893_v1 }
  0x28   :  { %v370_v26 = vsel %vm242_vm8, %v178_v12, %v306_v21  ;;  %690 = vst.msk [vmem:[%s1476_s3 + $0x54] sm:$0xf] %vm668_vm0, %v824_v24  ;;  %v112_v32 = vsub.f32 %v41_v22, %v893_v1  ;;  %v113_v33 = vsub.f32 %v42_v23, %v893_v1  ;;  %v114_v45 = vsub.f32 %v43_v34, %v893_v1  ;;  %v50_v12 = vld [vmem:[%s1473_s0 + $0x120] sm:$0xff]  ;;  %v52_v17 = vld [vmem:[%s1473_s0 + $0x130] sm:$0xff] }
  0x29   :  { %v825_v30 = vpack.c.bf16 %v370_v26, %v370_v26  ;;  %v371_v31 = vsel %vm243_vm9, %v179_v13, %v307_v25  ;;  %v372_v38 = vsel %vm244_vm10, %v180_v16, %v308_v27  ;;  %vm245_vm11 = vcmp.ge.f32.partialorder %v181_v28, 0.0  ;;  %v51_v13 = vld [vmem:[%s1473_s0 + $0x128] sm:$0xff] }
  0x2a   :  { %v826_v37 = vpack.c.bf16 %v371_v31, %v371_v31  ;;  %v309_v39 = vmul.f32 0.01, %v181_v28  ;;  %v827_v40 = vpack.c.bf16 %v372_v38, %v372_v38  ;;  %v182_v41 = vmul.f32 %v898_v2, %v111_v29  ;;  %v53_v29 = vld [vmem:[%s1473_s0 + $0x138] sm:$0xff] }
  0x2b   :  { %691 = vst.msk [vmem:[%s1476_s3 + $0x58] sm:$0xf] %vm668_vm0, %v825_v30  ;;  %v183_v42 = vmul.f32 %v898_v2, %v112_v32  ;;  %v184_v43 = vmul.f32 %v898_v2, %v113_v33  ;;  %v115_v46 = vsub.f32 %v44_v35, %v893_v1  ;;  %v116_v47 = vsub.f32 %v45_v36, %v893_v1 }
  0x2c   :  { %692 = vst.msk [vmem:[%s1476_s3 + $0x5c] sm:$0xf] %vm668_vm0, %v826_v37  ;;  %v373_v44 = vsel %vm245_vm11, %v181_v28, %v309_v39  ;;  %693 = vst.msk [vmem:[%s1476_s3 + $0x60] sm:$0xf] %vm668_vm0, %v827_v40  ;;  %vm246_vm12 = vcmp.ge.f32.partialorder %v182_v41, 0.0  ;;  %v185_v53 = vmul.f32 %v898_v2, %v114_v45  ;;  %v117_v57 = vsub.f32 %v46_v48, %v893_v1  ;;  %v54_v40 = vld [vmem:[%s1473_s0 + $0x140] sm:$0xff] }
  0x2d   :  { %v828_v49 = vpack.c.bf16 %v373_v44, %v373_v44  ;;  %v310_v50 = vmul.f32 0.01, %v182_v41  ;;  %vm247_vm13 = vcmp.ge.f32.partialorder %v183_v42, 0.0  ;;  %v311_v51 = vmul.f32 0.01, %v183_v42  ;;  %v55_v44 = vld [vmem:[%s1473_s0 + $0x148] sm:$0xff] }
  0x2e   :  { %vm248_vm14 = vcmp.ge.f32.partialorder %v184_v43, 0.0  ;;  %v312_v52 = vmul.f32 0.01, %v184_v43  ;;  %v186_v55 = vmul.f32 %v898_v2, %v115_v46  ;;  %v187_v56 = vmul.f32 %v898_v2, %v116_v47  ;;  %v56_v45 = vld [vmem:[%s1473_s0 + $0x150] sm:$0xff] }
  0x2f   :  { %694 = vst.msk [vmem:[%s1476_s3 + $0x64] sm:$0xf] %vm668_vm0, %v828_v49  ;;  %v374_v54 = vsel %vm246_vm12, %v182_v41, %v310_v50  ;;  %v375_v59 = vsel %vm247_vm13, %v183_v42, %v311_v51  ;;  %vm249_vm15 = vcmp.ge.f32.partialorder %v185_v53, 0.0  ;;  %v313_v4 = vmul.f32 0.01, %v185_v53 }
  0x30   :  { %v829_v58 = vpack.c.bf16 %v374_v54, %v374_v54  ;;  %v376_v60 = vsel %vm248_vm14, %v184_v43, %v312_v52  ;;  %v830_v0 = vpack.c.bf16 %v375_v59, %v375_v59  ;;  %vm250_vm1 = vcmp.ge.f32.partialorder %v186_v55, 0.0 }
  0x31   :  { %v831_v3 = vpack.c.bf16 %v376_v60, %v376_v60  ;;  %v314_v5 = vmul.f32 0.01, %v186_v55  ;;  %vm251_vm2 = vcmp.ge.f32.partialorder %v187_v56, 0.0  ;;  %v315_v6 = vmul.f32 0.01, %v187_v56 }
  0x32   :  { %695 = vst.msk [vmem:[%s1476_s3 + $0x68] sm:$0xf] %vm668_vm0, %v829_v58  ;;  %v188_v7 = vmul.f32 %v898_v2, %v117_v57  ;;  %696 = vst.msk [vmem:[%s1476_s3 + $0x6c] sm:$0xf] %vm668_vm0, %v830_v0  ;;  %v377_v8 = vsel %vm249_vm15, %v185_v53, %v313_v4  ;;  %v118_v9 = vsub.f32 %v47_v61, %v893_v1  ;;  %v58_v57 = vld [vmem:[%s1473_s0 + $0x160] sm:$0xff]  ;;  %v59_v58 = vld [vmem:[%s1473_s0 + $0x168] sm:$0xff] }
  0x33   :  { %697 = vst.msk [vmem:[%s1476_s3 + $0x70] sm:$0xf] %vm668_vm0, %v831_v3  ;;  %v119_v10 = vsub.f32 %v48_v62, %v893_v1  ;;  %v120_v11 = vsub.f32 %v49_v63, %v893_v1  ;;  %v832_v14 = vpack.c.bf16 %v377_v8, %v377_v8  ;;  %v378_v15 = vsel %vm250_vm1, %v186_v55, %v314_v5  ;;  %v60_v8 = vld [vmem:[%s1473_s0 + $0x170] sm:$0xff] }
  0x34   :  { %v379_v16 = vsel %vm251_vm2, %v187_v56, %v315_v6  ;;  %vm252_vm3 = vcmp.ge.f32.partialorder %v188_v7, 0.0  ;;  %v833_v18 = vpack.c.bf16 %v378_v15, %v378_v15  ;;  %v316_v20 = vmul.f32 0.01, %v188_v7  ;;  %v57_v56 = vld [vmem:[%s1473_s0 + $0x158] sm:$0xff] }
  0x35   :  { %v834_v19 = vpack.c.bf16 %v379_v16, %v379_v16  ;;  %v189_v21 = vmul.f32 %v898_v2, %v118_v9  ;;  %698 = vst.msk [vmem:[%s1476_s3 + $0x74] sm:$0xf] %vm668_vm0, %v832_v14  ;;  %v190_v22 = vmul.f32 %v898_v2, %v119_v10  ;;  %v191_v23 = vmul.f32 %v898_v2, %v120_v11 }
  0x36   :  { %v121_v24 = vsub.f32 %v50_v12, %v893_v1  ;;  %v122_v25 = vsub.f32 %v51_v13, %v893_v1  ;;  %699 = vst.msk [vmem:[%s1476_s3 + $0x78] sm:$0xf] %vm668_vm0, %v833_v18  ;;  %v380_v26 = vsel %vm252_vm3, %v188_v7, %v316_v20  ;;  %v123_v28 = vsub.f32 %v52_v17, %v893_v1 }
  0x37   :  { %700 = vst.msk [vmem:[%s1476_s3 + $0x7c] sm:$0xf] %vm668_vm0, %v834_v19  ;;  %vm253_vm4 = vcmp.ge.f32.partialorder %v189_v21, 0.0  ;;  %v317_v27 = vmul.f32 0.01, %v189_v21  ;;  %v835_v30 = vpack.c.bf16 %v380_v26, %v380_v26  ;;  %vm254_vm5 = vcmp.ge.f32.partialorder %v190_v22, 0.0 }
  0x38   :  { %v318_v31 = vmul.f32 0.01, %v190_v22  ;;  %vm255_vm6 = vcmp.ge.f32.partialorder %v191_v23, 0.0  ;;  %v319_v33 = vmul.f32 0.01, %v191_v23  ;;  %v192_v34 = vmul.f32 %v898_v2, %v121_v24 }
  0x39   :  { %v381_v32 = vsel %vm253_vm4, %v189_v21, %v317_v27  ;;  %v193_v35 = vmul.f32 %v898_v2, %v122_v25  ;;  %701 = vst.msk [vmem:[%s1476_s3 + $0x80] sm:$0xf] %vm668_vm0, %v835_v30  ;;  %v194_v38 = vmul.f32 %v898_v2, %v123_v28  ;;  %v124_v39 = vsub.f32 %v53_v29, %v893_v1  ;;  %v61_v21 = vld [vmem:[%s1473_s0 + $0x178] sm:$0xff] }
  0x3a   :  { %v836_v36 = vpack.c.bf16 %v381_v32, %v381_v32  ;;  %v382_v37 = vsel %vm254_vm5, %v190_v22, %v318_v31  ;;  %v383_v42 = vsel %vm255_vm6, %v191_v23, %v319_v33  ;;  %vm256_vm7 = vcmp.ge.f32.partialorder %v192_v34, 0.0  ;;  %v62_v22 = vld [vmem:[%s1473_s0 + $0x180] sm:$0xff]  ;;  %v63_v23 = vld [vmem:[%s1473_s0 + $0x188] sm:$0xff] }
  0x3b   :  { %v837_v41 = vpack.c.bf16 %v382_v37, %v382_v37  ;;  %v320_v43 = vmul.f32 0.01, %v192_v34  ;;  %v838_v46 = vpack.c.bf16 %v383_v42, %v383_v42  ;;  %vm257_vm8 = vcmp.ge.f32.partialorder %v193_v35, 0.0 }
  0x3c   :  { %702 = vst.msk [vmem:[%s1476_s3 + $0x84] sm:$0xf] %vm668_vm0, %v836_v36  ;;  %v321_v47 = vmul.f32 0.01, %v193_v35  ;;  %vm258_vm9 = vcmp.ge.f32.partialorder %v194_v38, 0.0  ;;  %v195_v50 = vmul.f32 %v898_v2, %v124_v39  ;;  %v125_v51 = vsub.f32 %v54_v40, %v893_v1  ;;  %v66_v39 = vld [vmem:[%s1473_s0 + $0x1a0] sm:$0xff] }
  0x3d   :  { %703 = vst.msk [vmem:[%s1476_s3 + $0x88] sm:$0xf] %vm668_vm0, %v837_v41  ;;  %v384_v48 = vsel %vm256_vm7, %v192_v34, %v320_v43  ;;  %v322_v49 = vmul.f32 0.01, %v194_v38  ;;  %704 = vst.msk [vmem:[%s1476_s3 + $0x8c] sm:$0xf] %vm668_vm0, %v838_v46  ;;  %v126_v54 = vsub.f32 %v55_v44, %v893_v1  ;;  %v127_v55 = vsub.f32 %v56_v45, %v893_v1 }
  0x3e   :  { %v839_v52 = vpack.c.bf16 %v384_v48, %v384_v48  ;;  %v385_v53 = vsel %vm257_vm8, %v193_v35, %v321_v47  ;;  %vm259_vm10 = vcmp.ge.f32.partialorder %v195_v50, 0.0  ;;  %v323_v61 = vmul.f32 0.01, %v195_v50  ;;  %v64_v34 = vld [vmem:[%s1473_s0 + $0x190] sm:$0xff]  ;;  %v65_v35 = vld [vmem:[%s1473_s0 + $0x198] sm:$0xff] }
  0x3f   :  { %v840_v59 = vpack.c.bf16 %v385_v53, %v385_v53  ;;  %v386_v60 = vsel %vm258_vm9, %v194_v38, %v322_v49  ;;  %v196_v63 = vmul.f32 %v898_v2, %v125_v51  ;;  %v197_v0 = vmul.f32 %v898_v2, %v126_v54  ;;  %v67_v51 = vld [vmem:[%s1473_s0 + $0x1a8] sm:$0xff] }
  0x40   :  { %705 = vst.msk [vmem:[%s1476_s3 + $0x90] sm:$0xf] %vm668_vm0, %v839_v52  ;;  %v841_v62 = vpack.c.bf16 %v386_v60, %v386_v60  ;;  %v198_v3 = vmul.f32 %v898_v2, %v127_v55  ;;  %v387_v4 = vsel %vm259_vm10, %v195_v50, %v323_v61  ;;  %v128_v5 = vsub.f32 %v57_v56, %v893_v1 }
  0x41   :  { %706 = vst.msk [vmem:[%s1476_s3 + $0x94] sm:$0xf] %vm668_vm0, %v840_v59  ;;  %v129_v6 = vsub.f32 %v58_v57, %v893_v1  ;;  %v130_v7 = vsub.f32 %v59_v58, %v893_v1  ;;  %v842_v9 = vpack.c.bf16 %v387_v4, %v387_v4  ;;  %vm260_vm11 = vcmp.ge.f32.partialorder %v196_v63, 0.0  ;;  %v69_v4 = vld [vmem:[%s1473_s0 + $0x1b8] sm:$0xff] }
  0x42   :  { %707 = vst.msk [vmem:[%s1476_s3 + $0x98] sm:$0xf] %vm668_vm0, %v841_v62  ;;  %v324_v10 = vmul.f32 0.01, %v196_v63  ;;  %vm261_vm12 = vcmp.ge.f32.partialorder %v197_v0, 0.0  ;;  %vm262_vm13 = vcmp.ge.f32.partialorder %v198_v3, 0.0  ;;  %v199_v13 = vmul.f32 %v898_v2, %v128_v5 }
  0x43   :  { %v325_v11 = vmul.f32 0.01, %v197_v0  ;;  %v326_v12 = vmul.f32 0.01, %v198_v3  ;;  %708 = vst.msk [vmem:[%s1476_s3 + $0x9c] sm:$0xf] %vm668_vm0, %v842_v9  ;;  %v200_v15 = vmul.f32 %v898_v2, %v129_v6  ;;  %v201_v16 = vmul.f32 %v898_v2, %v130_v7 }
  0x44   :  { %v388_v14 = vsel %vm260_vm11, %v196_v63, %v324_v10  ;;  %v131_v17 = vsub.f32 %v60_v8, %v893_v1  ;;  %vm263_vm14 = vcmp.ge.f32.partialorder %v199_v13, 0.0  ;;  %v327_v26 = vmul.f32 0.01, %v199_v13  ;;  %v68_v62 = vld [vmem:[%s1473_s0 + $0x1b0] sm:$0xff]  ;;  %v70_v5 = vld [vmem:[%s1473_s0 + $0x1c0] sm:$0xff] }
  0x45   :  { %v843_v18 = vpack.c.bf16 %v388_v14, %v388_v14  ;;  %v389_v19 = vsel %vm261_vm12, %v197_v0, %v325_v11  ;;  %v390_v20 = vsel %vm262_vm13, %v198_v3, %v326_v12  ;;  %vm264_vm15 = vcmp.ge.f32.partialorder %v200_v15, 0.0 }
  0x46   :  { %v844_v24 = vpack.c.bf16 %v389_v19, %v389_v19  ;;  %v845_v25 = vpack.c.bf16 %v390_v20, %v390_v20  ;;  %v328_v27 = vmul.f32 0.01, %v200_v15  ;;  %vm265_vm1 = vcmp.ge.f32.partialorder %v201_v16, 0.0 }
  0x47   :  { %709 = vst.msk [vmem:[%s1476_s3 + $0xa0] sm:$0xf] %vm668_vm0, %v843_v18  ;;  %v329_v28 = vmul.f32 0.01, %v201_v16  ;;  %v202_v29 = vmul.f32 %v898_v2, %v131_v17  ;;  %v391_v30 = vsel %vm263_vm14, %v199_v13, %v327_v26  ;;  %v132_v31 = vsub.f32 %v61_v21, %v893_v1  ;;  %v72_v17 = vld [vmem:[%s1473_s0 + $0x1d0] sm:$0xff]  ;;  %v73_v18 = vld [vmem:[%s1473_s0 + $0x1d8] sm:$0xff] }
  0x48   :  { %710 = vst.msk [vmem:[%s1476_s3 + $0xa4] sm:$0xf] %vm668_vm0, %v844_v24  ;;  %711 = vst.msk [vmem:[%s1476_s3 + $0xa8] sm:$0xf] %vm668_vm0, %v845_v25  ;;  %v133_v32 = vsub.f32 %v62_v22, %v893_v1  ;;  %v134_v33 = vsub.f32 %v63_v23, %v893_v1  ;;  %v846_v36 = vpack.c.bf16 %v391_v30, %v391_v30  ;;  %v74_v30 = vld [vmem:[%s1473_s0 + $0x1e0] sm:$0xff] }
  0x49   :  { %v392_v37 = vsel %vm264_vm15, %v200_v15, %v328_v27  ;;  %v393_v38 = vsel %vm265_vm1, %v201_v16, %v329_v28  ;;  %vm266_vm2 = vcmp.ge.f32.partialorder %v202_v29, 0.0  ;;  %v330_v42 = vmul.f32 0.01, %v202_v29  ;;  %v71_v16 = vld [vmem:[%s1473_s0 + $0x1c8] sm:$0xff] }
  0x4a   :  { %v847_v40 = vpack.c.bf16 %v392_v37, %v392_v37  ;;  %v848_v41 = vpack.c.bf16 %v393_v38, %v393_v38  ;;  %v203_v43 = vmul.f32 %v898_v2, %v132_v31  ;;  %712 = vst.msk [vmem:[%s1476_s3 + $0xac] sm:$0xf] %vm668_vm0, %v846_v36  ;;  %v204_v44 = vmul.f32 %v898_v2, %v133_v32 }
  0x4b   :  { %v205_v45 = vmul.f32 %v898_v2, %v134_v33  ;;  %v135_v46 = vsub.f32 %v64_v34, %v893_v1  ;;  %v136_v47 = vsub.f32 %v65_v35, %v893_v1  ;;  %v394_v48 = vsel %vm266_vm2, %v202_v29, %v330_v42 }
  0x4c   :  { %713 = vst.msk [vmem:[%s1476_s3 + $0xb0] sm:$0xf] %vm668_vm0, %v847_v40  ;;  %714 = vst.msk [vmem:[%s1476_s3 + $0xb4] sm:$0xf] %vm668_vm0, %v848_v41  ;;  %vm267_vm3 = vcmp.ge.f32.partialorder %v203_v43, 0.0  ;;  %v137_v50 = vsub.f32 %v66_v39, %v893_v1  ;;  %v849_v52 = vpack.c.bf16 %v394_v48, %v394_v48  ;;  %vm268_vm4 = vcmp.ge.f32.partialorder %v204_v44, 0.0 }
  0x4d   :  { %v331_v49 = vmul.f32 0.01, %v203_v43  ;;  %v332_v53 = vmul.f32 0.01, %v204_v44  ;;  %vm269_vm5 = vcmp.ge.f32.partialorder %v205_v45, 0.0  ;;  %v206_v56 = vmul.f32 %v898_v2, %v135_v46 }
  0x4e   :  { %v333_v55 = vmul.f32 0.01, %v205_v45  ;;  %v207_v57 = vmul.f32 %v898_v2, %v136_v47  ;;  %715 = vst.msk [vmem:[%s1476_s3 + $0xb8] sm:$0xf] %vm668_vm0, %v849_v52  ;;  %v208_v60 = vmul.f32 %v898_v2, %v137_v50  ;;  %v138_v61 = vsub.f32 %v67_v51, %v893_v1 }
  0x4f   :  { %v395_v54 = vsel %vm267_vm3, %v203_v43, %v331_v49  ;;  %v396_v59 = vsel %vm268_vm4, %v204_v44, %v332_v53  ;;  %vm270_vm6 = vcmp.ge.f32.partialorder %v206_v56, 0.0  ;;  %v334_v3 = vmul.f32 0.01, %v206_v56  ;;  %v75_v43 = vld [vmem:[%s1473_s0 + $0x1e8] sm:$0xff]  ;;  %v76_v44 = vld [vmem:[%s1473_s0 + $0x1f0] sm:$0xff] }
  0x50   :  { %v850_v58 = vpack.c.bf16 %v395_v54, %v395_v54  ;;  %v851_v63 = vpack.c.bf16 %v396_v59, %v396_v59  ;;  %v397_v0 = vsel %vm269_vm5, %v205_v45, %v333_v55  ;;  %vm271_vm7 = vcmp.ge.f32.partialorder %v207_v57, 0.0  ;;  %v77_v45 = vld [vmem:[%s1473_s0 + $0x1f8] sm:$0xff] }
  0x51   :  { %v852_v6 = vpack.c.bf16 %v397_v0, %v397_v0  ;;  %v335_v7 = vmul.f32 0.01, %v207_v57  ;;  %vm272_vm8 = vcmp.ge.f32.partialorder %v208_v60, 0.0  ;;  %v398_v8 = vsel %vm270_vm6, %v206_v56, %v334_v3 }
  0x52   :  { %716 = vst.msk [vmem:[%s1476_s3 + $0xbc] sm:$0xf] %vm668_vm0, %v850_v58  ;;  %717 = vst.msk [vmem:[%s1476_s3 + $0xc0] sm:$0xf] %vm668_vm0, %v851_v63  ;;  %v336_v9 = vmul.f32 0.01, %v208_v60  ;;  %v209_v10 = vmul.f32 %v898_v2, %v138_v61  ;;  %v139_v11 = vsub.f32 %v68_v62, %v893_v1  ;;  %v853_v12 = vpack.c.bf16 %v398_v8, %v398_v8 }
  0x53   :  { %718 = vst.msk [vmem:[%s1476_s3 + $0xc4] sm:$0xf] %vm668_vm0, %v852_v6  ;;  %v399_v13 = vsel %vm271_vm7, %v207_v57, %v335_v7  ;;  %v140_v14 = vsub.f32 %v69_v4, %v893_v1  ;;  %v141_v15 = vsub.f32 %v70_v5, %v893_v1  ;;  %v142_v27 = vsub.f32 %v71_v16, %v893_v1 }
  0x54   :  { %v854_v19 = vpack.c.bf16 %v399_v13, %v399_v13  ;;  %v400_v20 = vsel %vm272_vm8, %v208_v60, %v336_v9  ;;  %vm273_vm9 = vcmp.ge.f32.partialorder %v209_v10, 0.0  ;;  %v337_v21 = vmul.f32 0.01, %v209_v10  ;;  %719 = vst.msk [vmem:[%s1476_s3 + $0xc8] sm:$0xf] %vm668_vm0, %v853_v12 }
  0x55   :  { %v855_v22 = vpack.c.bf16 %v400_v20, %v400_v20  ;;  %v210_v23 = vmul.f32 %v898_v2, %v139_v11  ;;  %v211_v24 = vmul.f32 %v898_v2, %v140_v14  ;;  %v212_v25 = vmul.f32 %v898_v2, %v141_v15 }
  0x56   :  { %720 = vst.msk [vmem:[%s1476_s3 + $0xcc] sm:$0xf] %vm668_vm0, %v854_v19  ;;  %v401_v26 = vsel %vm273_vm9, %v209_v10, %v337_v21  ;;  %v143_v28 = vsub.f32 %v72_v17, %v893_v1  ;;  %v144_v29 = vsub.f32 %v73_v18, %v893_v1  ;;  %v213_v35 = vmul.f32 %v898_v2, %v142_v27 }
  0x57   :  { %721 = vst.msk [vmem:[%s1476_s3 + $0xd0] sm:$0xf] %vm668_vm0, %v855_v22  ;;  %v856_v31 = vpack.c.bf16 %v401_v26, %v401_v26  ;;  %vm274_vm10 = vcmp.ge.f32.partialorder %v210_v23, 0.0  ;;  %v338_v32 = vmul.f32 0.01, %v210_v23  ;;  %vm275_vm11 = vcmp.ge.f32.partialorder %v211_v24, 0.0 }
  0x58   :  { %v339_v33 = vmul.f32 0.01, %v211_v24  ;;  %vm276_vm12 = vcmp.ge.f32.partialorder %v212_v25, 0.0  ;;  %v340_v34 = vmul.f32 0.01, %v212_v25  ;;  %v214_v37 = vmul.f32 %v898_v2, %v143_v28 }
  0x59   :  { %722 = vst.msk [vmem:[%s1476_s3 + $0xd4] sm:$0xf] %vm668_vm0, %v856_v31  ;;  %v402_v36 = vsel %vm274_vm10, %v210_v23, %v338_v32  ;;  %v215_v38 = vmul.f32 %v898_v2, %v144_v29  ;;  %v145_v39 = vsub.f32 %v74_v30, %v893_v1  ;;  %vm277_vm13 = vcmp.ge.f32.partialorder %v213_v35, 0.0 }
  0x5a   :  { %v857_v40 = vpack.c.bf16 %v402_v36, %v402_v36  ;;  %v403_v41 = vsel %vm275_vm11, %v211_v24, %v339_v33  ;;  %v404_v42 = vsel %vm276_vm12, %v212_v25, %v340_v34  ;;  %v341_v48 = vmul.f32 0.01, %v213_v35 }
  0x5b   :  { %v858_v46 = vpack.c.bf16 %v403_v41, %v403_v41  ;;  %v859_v47 = vpack.c.bf16 %v404_v42, %v404_v42  ;;  %vm278_vm14 = vcmp.ge.f32.partialorder %v214_v37, 0.0  ;;  %v342_v49 = vmul.f32 0.01, %v214_v37 }
  0x5c   :  { %723 = vst.msk [vmem:[%s1476_s3 + $0xd8] sm:$0xf] %vm668_vm0, %v857_v40  ;;  %vm279_vm15 = vcmp.ge.f32.partialorder %v215_v38, 0.0  ;;  %v343_v50 = vmul.f32 0.01, %v215_v38  ;;  %v216_v51 = vmul.f32 %v898_v2, %v145_v39  ;;  %v405_v52 = vsel %vm277_vm13, %v213_v35, %v341_v48 }
  0x5d   :  { %724 = vst.msk [vmem:[%s1476_s3 + $0xdc] sm:$0xf] %vm668_vm0, %v858_v46  ;;  %725 = vst.msk [vmem:[%s1476_s3 + $0xe0] sm:$0xf] %vm668_vm0, %v859_v47  ;;  %v146_v53 = vsub.f32 %v75_v43, %v893_v1  ;;  %v147_v54 = vsub.f32 %v76_v44, %v893_v1  ;;  %v148_v55 = vsub.f32 %v77_v45, %v893_v1 }
  0x5e   :  { %v860_v56 = vpack.c.bf16 %v405_v52, %v405_v52  ;;  %v406_v57 = vsel %vm278_vm14, %v214_v37, %v342_v49  ;;  %v407_v58 = vsel %vm279_vm15, %v215_v38, %v343_v50  ;;  %vm280_vm1 = vcmp.ge.f32.partialorder %v216_v51, 0.0 }
  0x5f   :  { %v861_v59 = vpack.c.bf16 %v406_v57, %v406_v57  ;;  %v862_v60 = vpack.c.bf16 %v407_v58, %v407_v58  ;;  %v344_v61 = vmul.f32 0.01, %v216_v51  ;;  %v217_v62 = vmul.f32 %v898_v2, %v146_v53 }
  0x60   :  { %726 = vst.msk [vmem:[%s1476_s3 + $0xe4] sm:$0xf] %vm668_vm0, %v860_v56  ;;  %v218_v63 = vmul.f32 %v898_v2, %v147_v54  ;;  %v219_v0 = vmul.f32 %v898_v2, %v148_v55 }
  0x61   :  { %727 = vst.msk [vmem:[%s1476_s3 + $0xe8] sm:$0xf] %vm668_vm0, %v861_v59  ;;  %728 = vst.msk [vmem:[%s1476_s3 + $0xec] sm:$0xf] %vm668_vm0, %v862_v60  ;;  %v408_v1 = vsel %vm280_vm1, %v216_v51, %v344_v61  ;;  %vm281_vm2 = vcmp.ge.f32.partialorder %v217_v62, 0.0 }
  0x62   :  { %v345_v3 = vmul.f32 0.01, %v217_v62  ;;  %v863_v4 = vpack.c.bf16 %v408_v1, %v408_v1  ;;  %vm282_vm3 = vcmp.ge.f32.partialorder %v218_v63, 0.0  ;;  %v346_v5 = vmul.f32 0.01, %v218_v63 }
  0x63   :  { %vm283_vm4 = vcmp.ge.f32.partialorder %v219_v0, 0.0  ;;  %v347_v7 = vmul.f32 0.01, %v219_v0 }
  0x64   :  { %v409_v6 = vsel %vm281_vm2, %v217_v62, %v345_v3  ;;  %729 = vst.msk [vmem:[%s1476_s3 + $0xf0] sm:$0xf] %vm668_vm0, %v863_v4  ;;  %v410_v8 = vsel %vm282_vm3, %v218_v63, %v346_v5 }
  0x65   :  { %v864_v2 = vpack.c.bf16 %v409_v6, %v409_v6  ;;  %v865_v9 = vpack.c.bf16 %v410_v8, %v410_v8  ;;  %v411_v10 = vsel %vm283_vm4, %v219_v0, %v347_v7 }
  0x66   :  { %v866_v11 = vpack.c.bf16 %v411_v10, %v411_v10 }
  0x67   :  { %730 = vst.msk [vmem:[%s1476_s3 + $0xf4] sm:$0xf] %vm668_vm0, %v864_v2  ;;  %731 = vst.msk [vmem:[%s1476_s3 + $0xf8] sm:$0xf] %vm668_vm0, %v865_v9 }
  0x68   :  { %732 = vst.msk [vmem:[%s1476_s3 + $0xfc] sm:$0xf] %vm668_vm0, %v866_v11 }

// kernel: vae_forward.62
= control target key start
LH: loop header
LB: loop body
LE: loop exit
PB: predicated region body
PF: predicated region fallthrough
CT: control target
= control target key end

     0   :  { %s1165_s18 = smov 0   ;;  %s1746_s0 = inlined_call_operand.vmem [shape: bf16[512,27], index: 0, kind: input, shape index: {}]   ;;  %s1747_s1 = inlined_call_operand.vmem [shape: bf16[27,3], index: 1, kind: input, shape index: {}]   ;;  %s1748_s2 = inlined_call_operand.vmem [shape: f32[1,3], index: 2, kind: input, shape index: {}]   ;;  %s1749_s3 = inlined_call_operand.vmem [shape: f32[512,3], index: 3, kind: output, shape index: {0}]   ;;  %s1750_s4 = inlined_call_operand.vmem [shape: f32[1,3], index: 4, kind: output, shape index: {1}]   ;;  %s1751_s5 = inlined_call_operand.vmem [shape: f32[1,3], index: 5, kind: output, shape index: {2}]  }
   0x1 LB: > { %s1171_s19 = sadd.s32 4294967295, %s1131_s18   ;;  %p995_p0 = scmp.ge.s32.totalorder %s1131_s18, 1  ;;  %s1131_s18 = sphi %s1165_s18, %s16_s18  }
   0x2   : > { %p183_p1 = scmp.lt.s32.totalorder %s1131_s18, 3 }
   0x4   : > { %p184_p2 = pnand %p995_p0, %p183_p1 }
   0x5   : > { %s996_s22 = sshll.u32 (!%p184_p2), %s1171_s19, 5  ;;  %s1035_s29 = sshll.u32 (!%p184_p2), %s1171_s19, 8 }
   0x6   : > { %187 = sbr.rel (%p184_p2) target bundleno = 335 (0x14f), region = 32  ;;  %p212_p3 = scmp.lt.s32.totalorder (!%p184_p2), %s996_s22, 63 }
   0x7   : > { %p1036_p4 = scmp.ne.s32.totalorder (!%p184_p2), %s1171_s19, 0 }
   0xb   : > { %v1107_v0 = vld [vmem:[%s1747_s1 + $0x8] sm:$0x3f]   ;;  %vm407_vm0 = vcmask 1044480   ;;  %vm408_vm1 = vcmask 1045504   ;;  %v1133_v1 = vmov 65535   ;;  %v1108_v5 = vld [vmem:[%s1747_s1] sm:$0xff]   ;;  %v608_v22 = vlaneseq }
   0xc   : > { %v409_v2 = vsel %vm407_vm0, 4294967295, %v1133_v1  ;;  %s1753_s22 = smov (!%p212_p3, %s996_s22), 63  ;;  %vm358_vm2 = vcmask 220160   ;;  %v1227_v26 = vstv %s1035_s29  ;;  %vm575_vm3 = vcmask 23552   ;;  %v1267_v48 = vld [vmem:[%s1748_s2] ss:$0 sm:$0xff] }
   0xd   : > { %v410_v3 = vsel %vm408_vm1, %v409_v2, 0  ;;  %s997_s25 = sshll.u32 %s1753_s22, 2  ;;  %v1222_v23 = vshrl.u32 %v608_v22, 7  ;;  %s999_s30 = sshll.u32 %s1753_s22, 3 }
   0xe   : > { %v412_v4 = vand.u32 %v1107_v0, %v410_v3  ;;  %s1188_s28 = scalar_lea.vmem %s1746_s0, %s997_s25  ;;  %s1282_s10 = scalar_lea.vmem %s1749_s3, %s999_s30 }
   0xf   : > { %v1109_v6 = vld [vmem:[%s1188_s28] sm:$0xff]   ;;  %v1111_v8 = vld [vmem:[%s1188_s28 + $0x8] sm:$0xff]   ;;  %v1113_v10 = vld [vmem:[%s1188_s28 + $0x10] sm:$0xff]   ;;  %v611_v24 = vadd.s32 16, %v1222_v23  ;;  %v627_v25 = vadd.s32 144, %v1222_v23  ;;  %v625_v27 = vadd.s32 128, %v1222_v23  ;;  %v643_v36 = vadd.s32 %v1227_v26, %v1222_v23 }
  0x10   : > { %1057 = vmatprep.subr.bf16.mxu0 %v412_v4  ;;  %1093 = vmatprep.subr.bf16.mxu1 %v412_v4  ;;  %v1110_v7 = vld [vmem:[%s1188_s28 + $0x40] sm:$0xff]   ;;  %v1112_v9 = vld [vmem:[%s1188_s28 + $0x48] sm:$0xff]   ;;  %v1114_v11 = vld [vmem:[%s1188_s28 + $0x50] sm:$0xff]   ;;  %v612_v28 = vadd.s32 24, %v1222_v23  ;;  %v628_v29 = vadd.s32 152, %v1222_v23  ;;  %v610_v30 = vadd.s32 8, %v1222_v23 }
  0x11   : > { %1058 = vmatpush3.bf16.msra.mxu0 %v412_v4  ;;  %1095 = vmatpush3.bf16.msra.mxu1 %v412_v4  ;;  %v1115_v12 = vld [vmem:[%s1188_s28 + $0x18] sm:$0xff]   ;;  %v1117_v14 = vld [vmem:[%s1188_s28 + $0x20] sm:$0xff]   ;;  %v1119_v16 = vld [vmem:[%s1188_s28 + $0x28] sm:$0xff]   ;;  %v626_v31 = vadd.s32 136, %v1222_v23  ;;  %v645_v32 = vadd.s32 %v1227_v26, %v611_v24  ;;  %v661_v33 = vadd.s32 %v1227_v26, %v627_v25  ;;  %v615_v34 = vadd.s32 48, %v1222_v23 }
  0x12   : > { %1059 = vmatprep.subr.bf16.mxu0 %v1108_v5  ;;  %1094 = vmatprep.subr.bf16.mxu1 %v1108_v5  ;;  %v1116_v13 = vld [vmem:[%s1188_s28 + $0x58] sm:$0xff]   ;;  %v1118_v15 = vld [vmem:[%s1188_s28 + $0x60] sm:$0xff]   ;;  %v1120_v17 = vld [vmem:[%s1188_s28 + $0x68] sm:$0xff]   ;;  %v631_v35 = vadd.s32 176, %v1222_v23  ;;  %v659_v37 = vadd.s32 %v1227_v26, %v625_v27  ;;  %v613_v38 = vadd.s32 32, %v1222_v23  ;;  %v629_v39 = vadd.s32 160, %v1222_v23 }
  0x13   : > { %1061 = vmatprep.mubr.msk.bf16.mxu0 %vm358_vm2, %v1109_v6  ;;  %1077 = vmatprep.mubr.msk.bf16.mxu1 %vm358_vm2, %v1110_v7  ;;  %v1121_v18 = vld [vmem:[%s1188_s28 + $0x30] sm:$0xff]   ;;  %v1123_v20 = vld [vmem:[%s1188_s28 + $0x38] sm:$0xff]   ;;  %v1244_v40 = vadd.s32 %v1227_v26, %v612_v28  ;;  %v1247_v41 = vadd.s32 %v1227_v26, %v628_v29  ;;  %v1250_v42 = vadd.s32 %v1227_v26, %v610_v30  ;;  %v616_v44 = vadd.s32 56, %v1222_v23 }
  0x14   : > { %v1122_v19 = vld [vmem:[%s1188_s28 + $0x70] sm:$0xff]   ;;  %v1124_v21 = vld [vmem:[%s1188_s28 + $0x78] sm:$0xff]   ;;  %v1253_v43 = vadd.s32 %v1227_v26, %v626_v31  ;;  %v632_v45 = vadd.s32 184, %v1222_v23  ;;  %vm677_vm4 = vcmp.lt.s32.totalorder %v645_v32, 512  ;;  %vm693_vm5 = vcmp.lt.s32.totalorder %v661_v33, 512 }
  0x15   : > { %1060 = vmatpush3.bf16.msra.mxu0 %v1108_v5  ;;  %1096 = vmatpush3.bf16.msra.mxu1 %v1108_v5  ;;  %v1259_v46 = vadd.s32 %v1227_v26, %v615_v34  ;;  %v1262_v47 = vadd.s32 %v1227_v26, %v631_v35  ;;  %vm675_vm6 = vcmp.lt.s32.totalorder %v643_v36, 512  ;;  %vm691_vm7 = vcmp.lt.s32.totalorder %v659_v37, 512 }
  0x16   : > { %v1270_v49 = vadd.s32 %v1227_v26, %v613_v38  ;;  %v1273_v50 = vadd.s32 %v1227_v26, %v629_v39  ;;  %vm678_vm8 = vcmp.lt.s32.totalorder %v1244_v40, 512  ;;  %vm694_vm9 = vcmp.lt.s32.totalorder %v1247_v41, 512 }
  0x17   : > { %vm676_vm10 = vcmp.lt.s32.totalorder %v1250_v42, 512  ;;  %vm692_vm11 = vcmp.lt.s32.totalorder %v1253_v43, 512  ;;  %v1285_v53 = vadd.s32 %v1227_v26, %v616_v44  ;;  %v1288_v54 = vadd.s32 %v1227_v26, %v632_v45 }
  0x18   : > { %1062 = vmatmul.mubr.msk.bf16.vlgmr.msra.gmra.mxu0 %vm358_vm2, %v1111_v8  ;;  %1078 = vmatmul.mubr.msk.bf16.vlgmr.msra.gmra.mxu1 %vm358_vm2, %v1112_v9  ;;  %v614_v55 = vadd.s32 40, %v1222_v23  ;;  %v630_v56 = vadd.s32 168, %v1222_v23  ;;  %vm681_vm12 = vcmp.lt.s32.totalorder %v1259_v46, 512  ;;  %vm697_vm13 = vcmp.lt.s32.totalorder %v1262_v47, 512 }
  0x19   : > { %1065 = vmatprep.mubr.msk.bf16.mxu0 %vm358_vm2, %v1113_v10  ;;  %1081 = vmatprep.mubr.msk.bf16.mxu1 %vm358_vm2, %v1114_v11  ;;  %vm679_vm14 = vcmp.lt.s32.totalorder %v1270_v49, 512  ;;  %vm695_vm15 = vcmp.lt.s32.totalorder %v1273_v50, 512  ;;  %v619_v61 = vadd.s32 80, %v1222_v23  ;;  %v635_v62 = vadd.s32 208, %v1222_v23 }
  0x1a   : > { %vm682_vm0 = vcmp.lt.s32.totalorder %v1285_v53, 512  ;;  %vm698_vm1 = vcmp.lt.s32.totalorder %v1288_v54, 512  ;;  %v1315_v5 = vadd.s32 %v1227_v26, %v614_v55  ;;  %v1318_v6 = vadd.s32 %v1227_v26, %v630_v56 }
  0x1b   : > { %v620_v24 = vadd.s32 88, %v1222_v23  ;;  %v636_v25 = vadd.s32 216, %v1222_v23  ;;  %v618_v43 = vadd.s32 72, %v1222_v23  ;;  %v634_v44 = vadd.s32 200, %v1222_v23 }
  0x1c   : > { %v623_v49 = vadd.s32 112, %v1222_v23  ;;  %v639_v56 = vadd.s32 240, %v1222_v23 }
  0x1d   : > { %v1395_v41 = vadd.s32 %v1227_v26, %v620_v24  ;;  %v1398_v42 = vadd.s32 %v1227_v26, %v636_v25  ;;  %v652_v53 = vadd.s32 %v1227_v26, %v618_v43 }
  0x20   : > { %1066 = vmatmul.mubr.msk.bf16.gmra.mxu0 %vm358_vm2, %v1115_v12  ;;  %1082 = vmatmul.mubr.msk.bf16.gmra.mxu1 %vm358_vm2, %v1116_v13  ;;  %v1333_v13 = vadd.s32 %v1227_v26, %v619_v61 }
  0x21   : > { %1069 = vmatprep.mubr.msk.bf16.mxu0 %vm358_vm2, %v1117_v14  ;;  %1085 = vmatprep.mubr.msk.bf16.mxu1 %vm358_vm2, %v1118_v15  ;;  %v1336_v14 = vadd.s32 %v1227_v26, %v635_v62  ;;  %v617_v15 = vadd.s32 64, %v1222_v23  ;;  %v668_v62 = vadd.s32 %v1227_v26, %v634_v44 }
  0x23   : > { %v1375_v33 = vadd.s32 %v1227_v26, %v617_v15 }
  0x28   : > { %1070 = vmatmul.mubr.msk.bf16.gmra.mxu0 %vm358_vm2, %v1119_v16  ;;  %1086 = vmatmul.mubr.msk.bf16.gmra.mxu1 %vm358_vm2, %v1120_v17  ;;  %v633_v16 = vadd.s32 192, %v1222_v23 }
  0x29   : > { %1073 = vmatprep.mubr.msk.bf16.mxu0 %vm358_vm2, %v1121_v18  ;;  %1089 = vmatprep.mubr.msk.bf16.mxu1 %vm358_vm2, %v1122_v19 }
  0x2a   : > { %v1378_v34 = vadd.s32 %v1227_v26, %v633_v16 }
  0x30   : > { %1074 = vmatmul.mubr.msk.bf16.gmra.mxu0 %vm358_vm2, %v1123_v20  ;;  %1090 = vmatmul.mubr.msk.bf16.gmra.mxu1 %vm358_vm2, %v1124_v21  ;;  %vm680_vm2 = vcmp.lt.s32.totalorder %v1315_v5, 512  ;;  %v621_v5 = vadd.s32 96, %v1222_v23 }
  0xd8   : > { %v1063_v51 = vpop.f32.mrf.mxu0  ;;  %v1079_v52 = vpop.f32.mrf.mxu1 }
  0xd9   : > { %v457_v57 = vadd.f32 %v1063_v51, %v1267_v48  ;;  %v521_v58 = vadd.f32 %v1079_v52, %v1267_v48 }
  0xda   : > { %v448_v59 = vpop.f32.mrf.mxu0  ;;  %v512_v60 = vpop.f32.mrf.mxu1 }
  0xdb   : > { %578 = vst.msk [vmem:[%s1282_s10 + $0x10] sm:$0xff] %vm575_vm3, %v457_v57  ;;  %v1303_v63 = vsel %vm677_vm4, %v457_v57, 0.0  ;;  %594 = vst.msk [vmem:[%s1282_s10 + $0x90] sm:$0xff] %vm575_vm3, %v521_v58  ;;  %v1308_v0 = vsel %vm693_vm5, %v521_v58, 0.0  ;;  %v449_v1 = vadd.f32 %v1267_v48, %v448_v59  ;;  %v513_v2 = vadd.f32 %v1267_v48, %v512_v60 }
  0xdc   : > { %v1064_v3 = vpop.f32.mrf.mxu0  ;;  %v1080_v4 = vpop.f32.mrf.mxu1  ;;  %vm696_vm4 = vcmp.lt.s32.totalorder %v1318_v6, 512  ;;  %vm685_vm5 = vcmp.lt.s32.totalorder %v1333_v13, 512  ;;  %v640_v13 = vadd.s32 248, %v1222_v23 }
  0xdd   : > { %576 = vst.msk [vmem:[%s1282_s10] sm:$0xff] %vm575_vm3, %v449_v1  ;;  %v1323_v7 = vsel %vm675_vm6, %v449_v1, 0.0  ;;  %592 = vst.msk [vmem:[%s1282_s10 + $0x80] sm:$0xff] %vm575_vm3, %v513_v2  ;;  %v1328_v8 = vsel %vm691_vm7, %v513_v2, 0.0  ;;  %v460_v9 = vadd.f32 %v1064_v3, %v1267_v48  ;;  %v524_v10 = vadd.f32 %v1080_v4, %v1267_v48 }
  0xde   : > { %v451_v11 = vpop.f32.mrf.mxu0  ;;  %v515_v12 = vpop.f32.mrf.mxu1  ;;  %vm701_vm6 = vcmp.lt.s32.totalorder %v1336_v14, 512  ;;  %vm683_vm7 = vcmp.lt.s32.totalorder %v1375_v33, 512  ;;  %v622_v33 = vadd.s32 104, %v1222_v23 }
  0xdf   : > { %579 = vst.msk [vmem:[%s1282_s10 + $0x18] sm:$0xff] %vm575_vm3, %v460_v9  ;;  %v1344_v17 = vsel %vm678_vm8, %v460_v9, 0.0  ;;  %595 = vst.msk [vmem:[%s1282_s10 + $0x98] sm:$0xff] %vm575_vm3, %v524_v10  ;;  %v1350_v18 = vsel %vm694_vm9, %v524_v10, 0.0  ;;  %v452_v19 = vadd.f32 %v1267_v48, %v451_v11  ;;  %v516_v20 = vadd.f32 %v1267_v48, %v515_v12 }
  0xe0   : > { %v1067_v21 = vpop.f32.mrf.mxu0  ;;  %v1083_v22 = vpop.f32.mrf.mxu1  ;;  %vm699_vm8 = vcmp.lt.s32.totalorder %v1378_v34, 512  ;;  %vm686_vm9 = vcmp.lt.s32.totalorder %v1395_v41, 512  ;;  %v657_v10 = vadd.s32 %v1227_v26, %v623_v49  ;;  %v673_v11 = vadd.s32 %v1227_v26, %v639_v56 }
  0xe1   : > { %577 = vst.msk [vmem:[%s1282_s10 + $0x8] sm:$0xff] %vm575_vm3, %v452_v19  ;;  %v1362_v27 = vsel %vm676_vm10, %v452_v19, 0.0  ;;  %593 = vst.msk [vmem:[%s1282_s10 + $0x88] sm:$0xff] %vm575_vm3, %v516_v20  ;;  %v1368_v28 = vsel %vm692_vm11, %v516_v20, 0.0  ;;  %v473_v29 = vadd.f32 %v1067_v21, %v1267_v48  ;;  %v537_v30 = vadd.f32 %v1083_v22, %v1267_v48 }
  0xe2   : > { %v464_v31 = vpop.f32.mrf.mxu0  ;;  %v528_v32 = vpop.f32.mrf.mxu1  ;;  %vm702_vm10 = vcmp.lt.s32.totalorder %v1398_v42, 512  ;;  %v637_v12 = vadd.s32 224, %v1222_v23  ;;  %vm684_vm11 = vcmp.lt.s32.totalorder %v652_v53, 512  ;;  %v624_v22 = vadd.s32 120, %v1222_v23 }
  0xe3   : > { %582 = vst.msk [vmem:[%s1282_s10 + $0x30] sm:$0xff] %vm575_vm3, %v473_v29  ;;  %v1384_v35 = vsel %vm681_vm12, %v473_v29, 0.0  ;;  %598 = vst.msk [vmem:[%s1282_s10 + $0xb0] sm:$0xff] %vm575_vm3, %v537_v30  ;;  %v1390_v36 = vsel %vm697_vm13, %v537_v30, 0.0  ;;  %v465_v37 = vadd.f32 %v1267_v48, %v464_v31  ;;  %v529_v38 = vadd.f32 %v1267_v48, %v528_v32 }
  0xe4   : > { %v1068_v39 = vpop.f32.mrf.mxu0  ;;  %v1084_v40 = vpop.f32.mrf.mxu1  ;;  %vm700_vm12 = vcmp.lt.s32.totalorder %v668_v62, 512  ;;  %v655_v32 = vadd.s32 %v1227_v26, %v621_v5  ;;  %vm689_vm13 = vcmp.lt.s32.totalorder %v657_v10, 512  ;;  %v674_v41 = vadd.s32 %v1227_v26, %v640_v13 }
  0xe5   : > { %580 = vst.msk [vmem:[%s1282_s10 + $0x20] sm:$0xff] %vm575_vm3, %v465_v37  ;;  %v1406_v45 = vsel %vm679_vm14, %v465_v37, 0.0  ;;  %596 = vst.msk [vmem:[%s1282_s10 + $0xa0] sm:$0xff] %vm575_vm3, %v529_v38  ;;  %v1412_v46 = vsel %vm695_vm15, %v529_v38, 0.0  ;;  %v476_v47 = vadd.f32 %v1068_v39, %v1267_v48  ;;  %v540_v51 = vadd.f32 %v1084_v40, %v1267_v48 }
  0xe6   : > { %v467_v52 = vpop.f32.mrf.mxu0  ;;  %v531_v55 = vpop.f32.mrf.mxu1  ;;  %v671_v37 = vadd.s32 %v1227_v26, %v637_v12  ;;  %v638_v38 = vadd.s32 232, %v1222_v23  ;;  %vm705_vm14 = vcmp.lt.s32.totalorder %v673_v11, 512  ;;  %v658_v23 = vadd.s32 %v1227_v26, %v624_v22 }
  0xe7   : > { %583 = vst.msk [vmem:[%s1282_s10 + $0x38] sm:$0xff] %vm575_vm3, %v476_v47  ;;  %v1424_v50 = vsel %vm682_vm0, %v476_v47, 0.0  ;;  %599 = vst.msk [vmem:[%s1282_s10 + $0xb8] sm:$0xff] %vm575_vm3, %v540_v51  ;;  %v1430_v57 = vsel %vm698_vm1, %v540_v51, 0.0  ;;  %v468_v58 = vadd.f32 %v1267_v48, %v467_v52  ;;  %v532_v59 = vadd.f32 %v1267_v48, %v531_v55 }
  0xe8   : > { %v1071_v60 = vpop.f32.mrf.mxu0  ;;  %v1087_v61 = vpop.f32.mrf.mxu1  ;;  %vm687_vm15 = vcmp.lt.s32.totalorder %v655_v32, 512  ;;  %vm703_vm0 = vcmp.lt.s32.totalorder %v671_v37, 512  ;;  %vm690_vm1 = vcmp.lt.s32.totalorder %v658_v23, 512 }
  0xe9   : > { %581 = vst.msk [vmem:[%s1282_s10 + $0x28] sm:$0xff] %vm575_vm3, %v468_v58  ;;  %v1442_v54 = vsel %vm680_vm2, %v468_v58, 0.0  ;;  %597 = vst.msk [vmem:[%s1282_s10 + $0xa8] sm:$0xff] %vm575_vm3, %v532_v59  ;;  %v1448_v1 = vsel %vm696_vm4, %v532_v59, 0.0  ;;  %v489_v2 = vadd.f32 %v1071_v60, %v1267_v48  ;;  %v553_v3 = vadd.f32 %v1087_v61, %v1267_v48 }
  0xea   : > { %v480_v4 = vpop.f32.mrf.mxu0  ;;  %v544_v9 = vpop.f32.mrf.mxu1  ;;  %v656_v58 = vadd.s32 %v1227_v26, %v622_v33  ;;  %v672_v59 = vadd.s32 %v1227_v26, %v638_v38  ;;  %vm706_vm2 = vcmp.lt.s32.totalorder %v674_v41, 512 }
  0xeb   : > { %586 = vst.msk [vmem:[%s1282_s10 + $0x50] sm:$0xff] %vm575_vm3, %v489_v2  ;;  %v1460_v6 = vsel %vm685_vm5, %v489_v2, 0.0  ;;  %602 = vst.msk [vmem:[%s1282_s10 + $0xd0] sm:$0xff] %vm575_vm3, %v553_v3  ;;  %v1466_v15 = vsel %vm701_vm6, %v553_v3, 0.0  ;;  %v481_v16 = vadd.f32 %v1267_v48, %v480_v4  ;;  %v545_v19 = vadd.f32 %v1267_v48, %v544_v9 }
  0xec   : > { %v1072_v20 = vpop.f32.mrf.mxu0  ;;  %v1088_v21 = vpop.f32.mrf.mxu1  ;;  %vm688_vm4 = vcmp.lt.s32.totalorder %v656_v58, 512  ;;  %vm704_vm5 = vcmp.lt.s32.totalorder %v672_v59, 512 }
  0xed   : > { %584 = vst.msk [vmem:[%s1282_s10 + $0x40] sm:$0xff] %vm575_vm3, %v481_v16  ;;  %v1476_v14 = vsel %vm683_vm7, %v481_v16, 0.0  ;;  %600 = vst.msk [vmem:[%s1282_s10 + $0xc0] sm:$0xff] %vm575_vm3, %v545_v19  ;;  %v1482_v24 = vsel %vm699_vm8, %v545_v19, 0.0  ;;  %v492_v25 = vadd.f32 %v1072_v20, %v1267_v48  ;;  %v556_v29 = vadd.f32 %v1088_v21, %v1267_v48 }
  0xee   : > { %v483_v30 = vpop.f32.mrf.mxu0  ;;  %v547_v31 = vpop.f32.mrf.mxu1 }
  0xef   : > { %587 = vst.msk [vmem:[%s1282_s10 + $0x58] sm:$0xff] %vm575_vm3, %v492_v25  ;;  %v1494_v34 = vsel %vm686_vm9, %v492_v25, 0.0  ;;  %603 = vst.msk [vmem:[%s1282_s10 + $0xd8] sm:$0xff] %vm575_vm3, %v556_v29  ;;  %v1500_v39 = vsel %vm702_vm10, %v556_v29, 0.0  ;;  %v484_v40 = vadd.f32 %v1267_v48, %v483_v30  ;;  %v548_v43 = vadd.f32 %v1267_v48, %v547_v31 }
  0xf0   : > { %v1075_v44 = vpop.f32.mrf.mxu0  ;;  %v1091_v47 = vpop.f32.mrf.mxu1 }
  0xf1   : > { %585 = vst.msk [vmem:[%s1282_s10 + $0x48] sm:$0xff] %vm575_vm3, %v484_v40  ;;  %v1509_v42 = vsel %vm684_vm11, %v484_v40, 0.0  ;;  %601 = vst.msk [vmem:[%s1282_s10 + $0xc8] sm:$0xff] %vm575_vm3, %v548_v43  ;;  %v1514_v51 = vsel %vm700_vm12, %v548_v43, 0.0  ;;  %v505_v52 = vadd.f32 %v1075_v44, %v1267_v48  ;;  %v569_v55 = vadd.f32 %v1091_v47, %v1267_v48 }
  0xf2   : > { %v496_v49 = vpop.f32.mrf.mxu0  ;;  %v560_v56 = vpop.f32.mrf.mxu1 }
  0xf3   : > { %590 = vst.msk [vmem:[%s1282_s10 + $0x70] sm:$0xff] %vm575_vm3, %v505_v52  ;;  %v1523_v60 = vsel %vm689_vm13, %v505_v52, 0.0  ;;  %606 = vst.msk [vmem:[%s1282_s10 + $0xf0] sm:$0xff] %vm575_vm3, %v569_v55  ;;  %v1528_v61 = vsel %vm705_vm14, %v569_v55, 0.0  ;;  %v497_v53 = vadd.f32 %v1267_v48, %v496_v49  ;;  %v561_v62 = vadd.f32 %v1267_v48, %v560_v56 }
  0xf4   : > { %v1076_v2 = vpop.f32.mrf.mxu0  ;;  %v1092_v3 = vpop.f32.mrf.mxu1 }
  0xf5   : > { %588 = vst.msk [vmem:[%s1282_s10 + $0x60] sm:$0xff] %vm575_vm3, %v497_v53  ;;  %v1535_v26 = vsel %vm687_vm15, %v497_v53, 0.0  ;;  %604 = vst.msk [vmem:[%s1282_s10 + $0xe0] sm:$0xff] %vm575_vm3, %v561_v62  ;;  %v1540_v4 = vsel %vm703_vm0, %v561_v62, 0.0  ;;  %v508_v9 = vadd.f32 %v1076_v2, %v1267_v48  ;;  %v572_v10 = vadd.f32 %v1092_v3, %v1267_v48  ;;  %742 = sbr.rel (%p1036_p4) target bundleno = 252 (0xfc), region = 36 }
  0xf6   : > { %v499_v11 = vpop.f32.mrf.mxu0  ;;  %v563_v5 = vpop.f32.mrf.mxu1 }
  0xf7   : > { %591 = vst.msk [vmem:[%s1282_s10 + $0x78] sm:$0xff] %vm575_vm3, %v508_v9  ;;  %v1546_v12 = vsel %vm690_vm1, %v508_v9, 0.0  ;;  %607 = vst.msk [vmem:[%s1282_s10 + $0xf8] sm:$0xff] %vm575_vm3, %v572_v10  ;;  %v1550_v16 = vsel %vm706_vm2, %v572_v10, 0.0  ;;  %v500_v19 = vadd.f32 %v1267_v48, %v499_v11  ;;  %v564_v20 = vadd.f32 %v1267_v48, %v563_v5 }
  0xf9   : > { %589 = vst.msk [vmem:[%s1282_s10 + $0x68] sm:$0xff] %vm575_vm3, %v500_v19  ;;  %v1556_v21 = vsel %vm688_vm4, %v500_v19, 0.0  ;;  %605 = vst.msk [vmem:[%s1282_s10 + $0xe8] sm:$0xff] %vm575_vm3, %v564_v20  ;;  %v1560_v22 = vsel %vm704_vm5, %v564_v20, 0.0 }
  0xfa   : > { %vm743_vm6 = vcmask 16384   ;;  %v1134_v13 = vmov 0.0  }
  0xfb   : > { %744 = vst.msk [vmem:[%s1750_s4] sm:$0x1] %vm743_vm6, %v1134_v13  ;;  %745 = vst.msk [vmem:[%s1751_s5] sm:$0x1] %vm743_vm6, %v1134_v13 }
  0xfc PF: > { %v747_v48 = vsel %vm575_vm3, %v1323_v7, 0.0  ;;  %v748_v25 = vsel %vm575_vm3, %v1362_v27, 0.0  ;;  %v750_v29 = vsel %vm575_vm3, %v1303_v63, 0.0  ;;  %v752_v31 = vsel %vm575_vm3, %v1344_v17, 0.0 }
  0xfd   : > { %v749_v30 = vadd.f32 %v748_v25, %v747_v48  ;;  %v754_v37 = vsel %vm575_vm3, %v1406_v45, 0.0  ;;  %v756_v38 = vsel %vm575_vm3, %v1442_v54, 0.0  ;;  %v758_v43 = vsel %vm575_vm3, %v1384_v35, 0.0 }
  0xfe   : > { %v760_v47 = vsel %vm575_vm3, %v1424_v50, 0.0  ;;  %v762_v41 = vsel %vm575_vm3, %v1476_v14, 0.0  ;;  %v764_v55 = vsel %vm575_vm3, %v1509_v42, 0.0  ;;  %v820_v49 = vmul.f32 %v1323_v7, %v1323_v7 }
  0xff   : > { %v751_v32 = vadd.f32 %v750_v29, %v749_v30  ;;  %v821_v56 = vmul.f32 %v1362_v27, %v1362_v27  ;;  %v822_v59 = vmul.f32 %v1303_v63, %v1303_v63  ;;  %v766_v53 = vsel %vm575_vm3, %v1460_v6, 0.0 }
 0x100   : > { %v823_v62 = vmul.f32 %v1344_v17, %v1344_v17  ;;  %v768_v3 = vsel %vm575_vm3, %v1494_v34, 0.0  ;;  %v824_v7 = vmul.f32 %v1406_v45, %v1406_v45  ;;  %v852_v9 = vsel %vm575_vm3, %v820_v49, 0.0 }
 0x101   : > { %v753_v33 = vadd.f32 %v752_v31, %v751_v32  ;;  %v853_v27 = vsel %vm575_vm3, %v821_v56, 0.0  ;;  %v855_v63 = vsel %vm575_vm3, %v822_v59, 0.0  ;;  %v770_v5 = vsel %vm575_vm3, %v1535_v26, 0.0 }
 0x102   : > { %v854_v11 = vadd.f32 %v853_v27, %v852_v9  ;;  %v825_v17 = vmul.f32 %v1442_v54, %v1442_v54  ;;  %v857_v19 = vsel %vm575_vm3, %v823_v62, 0.0  ;;  %v772_v45 = vsel %vm575_vm3, %v1556_v21, 0.0 }
 0x103   : > { %v755_v40 = vadd.f32 %v754_v37, %v753_v33  ;;  %v826_v48 = vmul.f32 %v1384_v35, %v1384_v35  ;;  %v859_v25 = vsel %vm575_vm3, %v824_v7, 0.0  ;;  %v774_v31 = vsel %vm575_vm3, %v1523_v60, 0.0 }
 0x104   : > { %v856_v13 = vadd.f32 %v855_v63, %v854_v11  ;;  %v827_v54 = vmul.f32 %v1424_v50, %v1424_v50  ;;  %v861_v32 = vsel %vm575_vm3, %v825_v17, 0.0  ;;  %v828_v35 = vmul.f32 %v1476_v14, %v1476_v14 }
 0x105   : > { %v757_v44 = vadd.f32 %v756_v38, %v755_v40  ;;  %v776_v38 = vsel %vm575_vm3, %v1546_v12, 0.0  ;;  %v863_v40 = vsel %vm575_vm3, %v826_v48, 0.0  ;;  %v829_v50 = vmul.f32 %v1509_v42, %v1509_v42 }
 0x106   : > { %v858_v30 = vadd.f32 %v857_v19, %v856_v13  ;;  %v830_v14 = vmul.f32 %v1460_v6, %v1460_v6  ;;  %v867_v49 = vsel %vm575_vm3, %v828_v35, 0.0  ;;  %v782_v59 = vsel %vm575_vm3, %v1308_v0, 0.0 }
 0x107   : > { %v759_v23 = vadd.f32 %v758_v43, %v757_v44  ;;  %v831_v42 = vmul.f32 %v1494_v34, %v1494_v34  ;;  %v832_v6 = vmul.f32 %v1535_v26, %v1535_v26  ;;  %v833_v34 = vmul.f32 %v1556_v21, %v1556_v21 }
 0x108   : > { %v860_v33 = vadd.f32 %v859_v25, %v858_v30  ;;  %v871_v7 = vsel %vm575_vm3, %v830_v14, 0.0  ;;  %v788_v17 = vsel %vm575_vm3, %v1448_v1, 0.0  ;;  %v834_v26 = vmul.f32 %v1523_v60, %v1523_v60 }
 0x109   : > { %v761_v52 = vadd.f32 %v760_v47, %v759_v23  ;;  %v778_v47 = vsel %vm575_vm3, %v1328_v8, 0.0  ;;  %v865_v23 = vsel %vm575_vm3, %v827_v54, 0.0  ;;  %v873_v11 = vsel %vm575_vm3, %v831_v42, 0.0 }
 0x10a   : > { %v862_v44 = vadd.f32 %v861_v32, %v860_v33  ;;  %v875_v19 = vsel %vm575_vm3, %v832_v6, 0.0  ;;  %v835_v21 = vmul.f32 %v1546_v12, %v1546_v12  ;;  %v877_v48 = vsel %vm575_vm3, %v833_v34, 0.0 }
 0x10b   : > { %v763_v58 = vadd.f32 %v762_v41, %v761_v52  ;;  %v792_v30 = vsel %vm575_vm3, %v1430_v57, 0.0  ;;  %v836_v60 = vmul.f32 %v1328_v8, %v1328_v8  ;;  %v837_v12 = vmul.f32 %v1368_v28, %v1368_v28 }
 0x10c   : > { %v864_v52 = vadd.f32 %v863_v40, %v862_v44  ;;  %v881_v33 = vsel %vm575_vm3, %v835_v21, 0.0  ;;  %v796_v40 = vsel %vm575_vm3, %v1514_v51, 0.0  ;;  %v838_v8 = vmul.f32 %v1308_v0, %v1308_v0 }
 0x10d   : > { %v765_v2 = vadd.f32 %v764_v55, %v763_v58  ;;  %v780_v55 = vsel %vm575_vm3, %v1368_v28, 0.0  ;;  %v839_v28 = vmul.f32 %v1350_v18, %v1350_v18  ;;  %v840_v0 = vmul.f32 %v1412_v46, %v1412_v46 }
 0x10e   : > { %v866_v58 = vadd.f32 %v865_v23, %v864_v52  ;;  %v885_v23 = vsel %vm575_vm3, %v837_v12, 0.0  ;;  %v887_v14 = vsel %vm575_vm3, %v838_v8, 0.0  ;;  %v808_v34 = vsel %vm575_vm3, %v1550_v16, 0.0 }
 0x10f   : > { %v767_v10 = vadd.f32 %v766_v53, %v765_v2  ;;  %v869_v53 = vsel %vm575_vm3, %v829_v50, 0.0  ;;  %v798_v50 = vsel %vm575_vm3, %v1466_v15, 0.0  ;;  %vm817_vm7 = vcmask 16384  }
 0x110   : > { %v868_v2 = vadd.f32 %v867_v49, %v866_v58  ;;  %v802_v58 = vsel %vm575_vm3, %v1540_v4, 0.0 }
 0x111   : > { %v769_v20 = vadd.f32 %v768_v3, %v767_v10  ;;  %v784_v3 = vsel %vm575_vm3, %v1350_v18, 0.0  ;;  %v786_v10 = vsel %vm575_vm3, %v1412_v46, 0.0  ;;  %v841_v18 = vmul.f32 %v1448_v1, %v1448_v1 }
 0x112   : > { %v870_v27 = vadd.f32 %v869_v53, %v868_v2  ;;  %v842_v46 = vmul.f32 %v1390_v36, %v1390_v36  ;;  %v891_v2 = vsel %vm575_vm3, %v840_v0, 0.0  ;;  %v843_v1 = vmul.f32 %v1430_v57, %v1430_v57  ;;  %v819_v0 = vld [vmem:[%s1751_s5] sm:$0x1] }
 0x113   : > { %v771_v29 = vadd.f32 %v770_v5, %v769_v20 }
 0x114   : > { %v872_v5 = vadd.f32 %v871_v7, %v870_v27  ;;  %v806_v7 = vsel %vm575_vm3, %v1528_v61, 0.0 }
 0x115   : > { %v773_v37 = vadd.f32 %v772_v45, %v771_v29  ;;  %v790_v45 = vsel %vm575_vm3, %v1390_v36, 0.0  ;;  %v844_v36 = vmul.f32 %v1482_v24, %v1482_v24 }
 0x116   : > { %v874_v13 = vadd.f32 %v873_v11, %v872_v5  ;;  %v895_v11 = vsel %vm575_vm3, %v842_v46, 0.0 }
 0x117   : > { %v775_v43 = vadd.f32 %v774_v31, %v773_v37  ;;  %v879_v31 = vsel %vm575_vm3, %v834_v26, 0.0  ;;  %v794_v37 = vsel %vm575_vm3, %v1482_v24, 0.0  ;;  %v897_v26 = vsel %vm575_vm3, %v843_v1, 0.0 }
 0x118   : > { %v876_v29 = vadd.f32 %v875_v19, %v874_v13  ;;  %v899_v13 = vsel %vm575_vm3, %v844_v36, 0.0  ;;  %v847_v24 = vmul.f32 %v1500_v39, %v1500_v39 }
 0x119   : > { %v777_v41 = vadd.f32 %v776_v38, %v775_v43  ;;  %v883_v43 = vsel %vm575_vm3, %v836_v60, 0.0 }
 0x11a   : > { %v878_v32 = vadd.f32 %v877_v48, %v876_v29 }
 0x11b   : > { %v779_v56 = vadd.f32 %v778_v47, %v777_v41 }
 0x11c   : > { %v880_v35 = vadd.f32 %v879_v31, %v878_v32 }
 0x11d   : > { %v781_v62 = vadd.f32 %v780_v55, %v779_v56  ;;  %v800_v55 = vsel %vm575_vm3, %v1500_v39, 0.0  ;;  %v850_v39 = vmul.f32 %v1528_v61, %v1528_v61 }
 0x11e   : > { %v882_v47 = vadd.f32 %v881_v33, %v880_v35  ;;  %v851_v35 = vmul.f32 %v1550_v16, %v1550_v16 }
 0x11f   : > { %v783_v9 = vadd.f32 %v782_v59, %v781_v62  ;;  %v889_v59 = vsel %vm575_vm3, %v839_v28, 0.0  ;;  %v804_v62 = vsel %vm575_vm3, %v1560_v22, 0.0 }
 0x120   : > { %v884_v52 = vadd.f32 %v883_v43, %v882_v47  ;;  %v911_v43 = vsel %vm575_vm3, %v850_v39, 0.0  ;;  %v913_v47 = vsel %vm575_vm3, %v851_v35, 0.0 }
 0x121   : > { %v785_v63 = vadd.f32 %v784_v3, %v783_v9  ;;  %v893_v9 = vsel %vm575_vm3, %v841_v18, 0.0 }
 0x122   : > { %v886_v56 = vadd.f32 %v885_v23, %v884_v52 }
 0x123   : > { %v787_v20 = vadd.f32 %v786_v10, %v785_v63 }
 0x124   : > { %v888_v53 = vadd.f32 %v887_v14, %v886_v56 }
 0x125   : > { %v789_v25 = vadd.f32 %v788_v17, %v787_v20  ;;  %v845_v17 = vmul.f32 %v1514_v51, %v1514_v51  ;;  %v846_v20 = vmul.f32 %v1466_v15, %v1466_v15  ;;  %v848_v51 = vmul.f32 %v1540_v4, %v1540_v4  ;;  %v746_v4 = vld [vmem:[%s1750_s4] sm:$0x1] }
 0x126   : > { %v890_v6 = vadd.f32 %v889_v59, %v888_v53  ;;  %v849_v15 = vmul.f32 %v1560_v22, %v1560_v22 }
 0x127   : > { %v791_v54 = vadd.f32 %v790_v45, %v789_v25  ;;  %v901_v48 = vsel %vm575_vm3, %v845_v17, 0.0  ;;  %v907_v12 = vsel %vm575_vm3, %v848_v51, 0.0 }
 0x128   : > { %v892_v10 = vadd.f32 %v891_v2, %v890_v6  ;;  %v909_v22 = vsel %vm575_vm3, %v849_v15, 0.0 }
 0x129   : > { %v793_v38 = vadd.f32 %v792_v30, %v791_v54  ;;  %v903_v30 = vsel %vm575_vm3, %v846_v20, 0.0  ;;  %v905_v54 = vsel %vm575_vm3, %v847_v24, 0.0 }
 0x12a   : > { %v894_v5 = vadd.f32 %v893_v9, %v892_v10 }
 0x12b   : > { %v795_v44 = vadd.f32 %v794_v37, %v793_v38 }
 0x12c   : > { %v896_v19 = vadd.f32 %v895_v11, %v894_v5 }
 0x12d   : > { %v797_v41 = vadd.f32 %v796_v40, %v795_v44 }
 0x12e   : > { %v898_v21 = vadd.f32 %v897_v26, %v896_v19 }
 0x12f   : > { %v799_v49 = vadd.f32 %v798_v50, %v797_v41 }
 0x130   : > { %v900_v29 = vadd.f32 %v899_v13, %v898_v21 }
 0x131   : > { %v801_v42 = vadd.f32 %v800_v55, %v799_v49 }
 0x132   : > { %v902_v31 = vadd.f32 %v901_v48, %v900_v29 }
 0x133   : > { %v803_v3 = vadd.f32 %v802_v58, %v801_v42 }
 0x134   : > { %v904_v37 = vadd.f32 %v903_v30, %v902_v31 }
 0x135   : > { %v805_v27 = vadd.f32 %v804_v62, %v803_v3 }
 0x136   : > { %v906_v38 = vadd.f32 %v905_v54, %v904_v37 }
 0x137   : > { %v807_v63 = vadd.f32 %v806_v7, %v805_v27 }
 0x138   : > { %v908_v8 = vadd.f32 %v907_v12, %v906_v38 }
 0x139   : > { %v809_v57 = vadd.f32 %v808_v34, %v807_v63 }
 0x13a   : > { %v910_v61 = vadd.f32 %v909_v22, %v908_v8 }
 0x13b   : > { %v810_v45 = vrot.slane %v809_v57, 4 }
 0x13c   : > { %v912_v50 = vadd.f32 %v911_v43, %v910_v61 }
 0x13d   : > { %v811_v25 = vadd.f32 %v810_v45, %v809_v57 }
 0x13e   : > { %v914_v28 = vadd.f32 %v913_v47, %v912_v50 }
 0x13f   : > { %v812_v60 = vrot.slane %v811_v25, 2 }
 0x140   : > { %v915_v23 = vrot.slane %v914_v28, 4 }
 0x141   : > { %v813_v32 = vadd.f32 %v812_v60, %v811_v25 }
 0x142   : > { %v916_v16 = vadd.f32 %v915_v23, %v914_v28 }
 0x143   : > { %v814_v33 = vrot.slane %v813_v32, 1 }
 0x144   : > { %v917_v41 = vrot.slane %v916_v16, 2 }
 0x145   : > { %v815_v40 = vadd.f32 %v814_v33, %v813_v32 }
 0x146   : > { %v918_v52 = vadd.f32 %v917_v41, %v916_v16 }
 0x147   : > { %v816_v44 = vadd.f32 %v815_v40, %v746_v4 }
 0x148   : > { %v919_v55 = vrot.slane %v918_v52, 1 }
 0x149   : > { %818 = vst.msk [vmem:[%s1750_s4] sm:$0x1] %vm817_vm7, %v816_v44 }
 0x14a   : > { %v920_v14 = vadd.f32 %v919_v55, %v918_v52 }
 0x14c   : > { %v921_v49 = vadd.f32 %v920_v14, %v819_v0 }
 0x14e   : > { %922 = vst.msk [vmem:[%s1751_s5] sm:$0x1] %vm817_vm7, %v921_v49 }
 0x14f PF: > { %s16_s18 = sadd.s32 1, %s1131_s18  }
 0x150   : > { %p13_p5 = scmp.ge.s32.totalorder %s16_s18, 4  }
 0x152   :  { %15 = sbr.rel (!%p13_p5) target bundleno = 1 (0x1), region = 82 }

// kernel: vae_forward.65
= control target key start
LH: loop header
LB: loop body
LE: loop exit
PB: predicated region body
PF: predicated region fallthrough
CT: control target
= control target key end

     0   :  { %vm863_vm0 = vcmask 19456   ;;  %s1946_s0 = inlined_call_operand.vmem [shape: f32[512,3], index: 0, kind: input, shape index: {}]   ;;  %s1947_s1 = inlined_call_operand.vmem [shape: f32[1,3], index: 1, kind: input, shape index: {}]   ;;  %s1948_s2 = inlined_call_operand.vmem [shape: f32[1,3], index: 2, kind: input, shape index: {}]   ;;  %s1949_s3 = inlined_call_operand.vmem [shape: bf16[512,3], index: 3, kind: input, shape index: {}]   ;;  %s1950_s4 = inlined_call_operand.vmem [shape: bf16[512,3], index: 4, kind: output, shape index: {}]  }
   0x1   :  { %v17_v0 = vld [vmem:[%s1946_s0] sm:$0xff]  ;;  %v18_v5 = vld [vmem:[%s1946_s0 + $0x8] sm:$0xff]  ;;  %v19_v6 = vld [vmem:[%s1946_s0 + $0x10] sm:$0xff] }
   0x2   :  { %v1254_v1 = vld [vmem:[%s1947_s1] ss:$0 sm:$0xff]  ;;  %v1190_v11 = vld [vmem:[%s1949_s3 + $0x8] sm:$0xff]   ;;  %v20_v12 = vld [vmem:[%s1946_s0 + $0x18] sm:$0xff] }
   0x3   :  { %v1259_v2 = vld [vmem:[%s1948_s2] ss:$0 sm:$0xff]  ;;  %v88_v3 = vsub.f32 %v17_v0, %v1254_v1  ;;  %v89_v8 = vsub.f32 %v18_v5, %v1254_v1  ;;  %v90_v10 = vsub.f32 %v19_v6, %v1254_v1  ;;  %v1068_v15 = vunpack.c.l.bf16 %v1190_v11  ;;  %v1191_v18 = vld [vmem:[%s1949_s3 + $0x10] sm:$0xff]   ;;  %v22_v19 = vld [vmem:[%s1946_s0 + $0x28] sm:$0xff] }
   0x4   :  { %v1063_v4 = vld [vmem:[%s1949_s3] sm:$0xff]   ;;  %v91_v16 = vsub.f32 %v20_v12, %v1254_v1  ;;  %v1069_v17 = vunpack.c.h.bf16 %v1190_v11  ;;  %v1072_v23 = vunpack.c.l.bf16 %v1191_v18  ;;  %v93_v26 = vsub.f32 %v22_v19, %v1254_v1  ;;  %v23_v39 = vld [vmem:[%s1946_s0 + $0x30] sm:$0xff]  ;;  %v1192_v40 = vld [vmem:[%s1949_s3 + $0x18] sm:$0xff]  }
   0x5   :  { %v1064_v7 = vunpack.c.l.bf16 %v1063_v4  ;;  %v1065_v9 = vunpack.c.h.bf16 %v1063_v4  ;;  %v21_v13 = vld [vmem:[%s1946_s0 + $0x20] sm:$0xff]  ;;  %v159_v14 = vmul.f32 %v1259_v2, %v88_v3  ;;  %v160_v20 = vmul.f32 %v1259_v2, %v89_v8  ;;  %v24_v44 = vld [vmem:[%s1946_s0 + $0x38] sm:$0xff]  ;;  %v26_v55 = vld [vmem:[%s1946_s0 + $0x48] sm:$0xff] }
   0x6   :  { %v161_v21 = vmul.f32 %v1259_v2, %v90_v10  ;;  %v92_v22 = vsub.f32 %v21_v13, %v1254_v1  ;;  %v162_v25 = vmul.f32 %v1259_v2, %v91_v16  ;;  %v164_v35 = vmul.f32 %v1259_v2, %v93_v26  ;;  %v25_v49 = vld [vmem:[%s1946_s0 + $0x40] sm:$0xff]  ;;  %v27_v0 = vld [vmem:[%s1946_s0 + $0x50] sm:$0xff] }
   0x7   :  { %vm223_vm1 = vcmp.ge.f32.partialorder %v159_v14, 0.0  ;;  %v287_v24 = vmul.f32 0.01, %v159_v14  ;;  %vm224_vm2 = vcmp.ge.f32.partialorder %v160_v20, 0.0  ;;  %v288_v27 = vmul.f32 0.01, %v160_v20 }
   0x8   :  { %vm225_vm3 = vcmp.ge.f32.partialorder %v161_v21, 0.0  ;;  %v289_v28 = vmul.f32 0.01, %v161_v21  ;;  %vm226_vm4 = vcmp.ge.f32.partialorder %v162_v25, 0.0  ;;  %v290_v30 = vmul.f32 0.01, %v162_v25 }
   0x9   :  { %v351_v29 = vsel %vm223_vm1, %v159_v14, %v287_v24  ;;  %v163_v31 = vmul.f32 %v1259_v2, %v92_v22  ;;  %v352_v33 = vsel %vm224_vm2, %v160_v20, %v288_v27  ;;  %vm228_vm6 = vcmp.ge.f32.partialorder %v164_v35, 0.0  ;;  %v1193_v50 = vld [vmem:[%s1949_s3 + $0x20] sm:$0xff]   ;;  %v28_v14 = vld [vmem:[%s1946_s0 + $0x58] sm:$0xff]  ;;  %v1195_v26 = vld [vmem:[%s1949_s3 + $0x30] sm:$0xff]  }
   0xa   :  { %v543_v32 = vadd.f32 %v1064_v7, %v351_v29  ;;  %v353_v34 = vsel %vm225_vm3, %v161_v21, %v289_v28  ;;  %v544_v36 = vadd.f32 %v1065_v9, %v352_v33  ;;  %v354_v38 = vsel %vm226_vm4, %v162_v25, %v290_v30  ;;  %v1345_v7 = vld [vmem:[%s1949_s3 + $0x28] sm:$0xff]   ;;  %v29_v25 = vld [vmem:[%s1946_s0 + $0x60] sm:$0xff] }
   0xb   :  { %v545_v37 = vadd.f32 %v1068_v15, %v353_v34  ;;  %vm227_vm5 = vcmp.ge.f32.partialorder %v163_v31, 0.0  ;;  %v546_v42 = vadd.f32 %v1069_v17, %v354_v38  ;;  %v291_v43 = vmul.f32 0.01, %v163_v31 }
   0xc   :  { %v998_v41 = vpack.c.bf16 %v543_v32, %v543_v32  ;;  %v999_v45 = vpack.c.bf16 %v544_v36, %v544_v36  ;;  %v292_v47 = vmul.f32 0.01, %v164_v35  ;;  %v1073_v48 = vunpack.c.h.bf16 %v1191_v18 }
   0xd   :  { %v1000_v46 = vpack.c.bf16 %v545_v37, %v545_v37  ;;  %v1001_v51 = vpack.c.bf16 %v546_v42, %v546_v42  ;;  %v355_v52 = vsel %vm227_vm5, %v163_v31, %v291_v43  ;;  %v94_v53 = vsub.f32 %v23_v39, %v1254_v1  ;;  %v30_v31 = vld [vmem:[%s1946_s0 + $0x68] sm:$0xff]  ;;  %v31_v39 = vld [vmem:[%s1946_s0 + $0x70] sm:$0xff] }
   0xe   :  { %864 = vst.msk [vmem:[%s1950_s4] sm:$0xf] %vm863_vm0, %v998_v41  ;;  %v1076_v54 = vunpack.c.l.bf16 %v1192_v40  ;;  %865 = vst.msk [vmem:[%s1950_s4 + $0x4] sm:$0xf] %vm863_vm0, %v999_v45  ;;  %v547_v56 = vadd.f32 %v1072_v23, %v355_v52  ;;  %v356_v57 = vsel %vm228_vm6, %v164_v35, %v292_v47  ;;  %v95_v58 = vsub.f32 %v24_v44, %v1254_v1  ;;  %v32_v41 = vld [vmem:[%s1946_s0 + $0x78] sm:$0xff] }
   0xf   :  { %866 = vst.msk [vmem:[%s1950_s4 + $0x8] sm:$0xf] %vm863_vm0, %v1000_v46  ;;  %v1077_v59 = vunpack.c.h.bf16 %v1192_v40  ;;  %867 = vst.msk [vmem:[%s1950_s4 + $0xc] sm:$0xf] %vm863_vm0, %v1001_v51  ;;  %v548_v60 = vadd.f32 %v1073_v48, %v356_v57  ;;  %v165_v61 = vmul.f32 %v1259_v2, %v94_v53  ;;  %v96_v62 = vsub.f32 %v25_v49, %v1254_v1  ;;  %v1196_v40 = vld [vmem:[%s1949_s3 + $0x38] sm:$0xff]   ;;  %v33_v53 = vld [vmem:[%s1946_s0 + $0x80] sm:$0xff] }
  0x10   :  { %v1080_v63 = vunpack.c.l.bf16 %v1193_v50  ;;  %v1002_v3 = vpack.c.bf16 %v547_v56, %v547_v56  ;;  %v166_v4 = vmul.f32 %v1259_v2, %v95_v58  ;;  %v97_v5 = vsub.f32 %v26_v55, %v1254_v1 }
  0x11   :  { %v1081_v6 = vunpack.c.h.bf16 %v1193_v50  ;;  %v1003_v8 = vpack.c.bf16 %v548_v60, %v548_v60  ;;  %vm229_vm7 = vcmp.ge.f32.partialorder %v165_v61, 0.0  ;;  %v293_v9 = vmul.f32 0.01, %v165_v61 }
  0x12   :  { %v167_v10 = vmul.f32 %v1259_v2, %v96_v62  ;;  %868 = vst.msk [vmem:[%s1950_s4 + $0x10] sm:$0xf] %vm863_vm0, %v1002_v3  ;;  %vm230_vm8 = vcmp.ge.f32.partialorder %v166_v4, 0.0  ;;  %v294_v11 = vmul.f32 0.01, %v166_v4  ;;  %v168_v12 = vmul.f32 %v1259_v2, %v97_v5  ;;  %v34_v3 = vld [vmem:[%s1946_s0 + $0x88] sm:$0xff] }
  0x13   :  { %v98_v13 = vsub.f32 %v27_v0, %v1254_v1  ;;  %869 = vst.msk [vmem:[%s1950_s4 + $0x14] sm:$0xf] %vm863_vm0, %v1003_v8  ;;  %v357_v15 = vsel %vm229_vm7, %v165_v61, %v293_v9  ;;  %v1084_v17 = vunpack.c.l.bf16 %v1345_v7  ;;  %v99_v24 = vsub.f32 %v28_v14, %v1254_v1  ;;  %v1197_v0 = vld [vmem:[%s1949_s3 + $0x40] sm:$0xff]   ;;  %v35_v14 = vld [vmem:[%s1946_s0 + $0x90] sm:$0xff] }
  0x14   :  { %vm231_vm9 = vcmp.ge.f32.partialorder %v167_v10, 0.0  ;;  %v295_v16 = vmul.f32 0.01, %v167_v10  ;;  %v549_v18 = vadd.f32 %v1076_v54, %v357_v15  ;;  %v358_v19 = vsel %vm230_vm8, %v166_v4, %v294_v11  ;;  %v1198_v15 = vld [vmem:[%s1949_s3 + $0x48] sm:$0xff]  }
  0x15   :  { %vm232_vm10 = vcmp.ge.f32.partialorder %v168_v12, 0.0  ;;  %v296_v20 = vmul.f32 0.01, %v168_v12  ;;  %v550_v21 = vadd.f32 %v1077_v59, %v358_v19  ;;  %v169_v23 = vmul.f32 %v1259_v2, %v98_v13 }
  0x16   :  { %v359_v22 = vsel %vm231_vm9, %v167_v10, %v295_v16  ;;  %v1004_v27 = vpack.c.bf16 %v549_v18, %v549_v18  ;;  %v1085_v30 = vunpack.c.h.bf16 %v1345_v7  ;;  %v170_v36 = vmul.f32 %v1259_v2, %v99_v24  ;;  %v36_v16 = vld [vmem:[%s1946_s0 + $0x98] sm:$0xff] }
  0x17   :  { %v551_v28 = vadd.f32 %v1080_v63, %v359_v22  ;;  %v360_v29 = vsel %vm232_vm10, %v168_v12, %v296_v20  ;;  %v1005_v32 = vpack.c.bf16 %v550_v21, %v550_v21  ;;  %vm233_vm11 = vcmp.ge.f32.partialorder %v169_v23, 0.0 }
  0x18   :  { %v552_v33 = vadd.f32 %v1081_v6, %v360_v29  ;;  %v297_v34 = vmul.f32 0.01, %v169_v23  ;;  %870 = vst.msk [vmem:[%s1950_s4 + $0x18] sm:$0xf] %vm863_vm0, %v1004_v27  ;;  %v100_v37 = vsub.f32 %v29_v25, %v1254_v1  ;;  %v1088_v38 = vunpack.c.l.bf16 %v1195_v26  ;;  %v1199_v29 = vld [vmem:[%s1949_s3 + $0x50] sm:$0xff]  }
  0x19   :  { %v1006_v35 = vpack.c.bf16 %v551_v28, %v551_v28  ;;  %871 = vst.msk [vmem:[%s1950_s4 + $0x1c] sm:$0xf] %vm863_vm0, %v1005_v32  ;;  %v101_v44 = vsub.f32 %v30_v31, %v1254_v1  ;;  %v1089_v45 = vunpack.c.h.bf16 %v1195_v26  ;;  %vm234_vm12 = vcmp.ge.f32.partialorder %v170_v36, 0.0  ;;  %v37_v28 = vld [vmem:[%s1946_s0 + $0xa0] sm:$0xff] }
  0x1a   :  { %v1007_v42 = vpack.c.bf16 %v552_v33, %v552_v33  ;;  %v361_v43 = vsel %vm233_vm11, %v169_v23, %v297_v34  ;;  %v298_v47 = vmul.f32 0.01, %v170_v36  ;;  %v171_v48 = vmul.f32 %v1259_v2, %v100_v37 }
  0x1b   :  { %872 = vst.msk [vmem:[%s1950_s4 + $0x20] sm:$0xf] %vm863_vm0, %v1006_v35  ;;  %v553_v46 = vadd.f32 %v1084_v17, %v361_v43  ;;  %v172_v49 = vmul.f32 %v1259_v2, %v101_v44  ;;  %v102_v50 = vsub.f32 %v31_v39, %v1254_v1  ;;  %v1092_v51 = vunpack.c.l.bf16 %v1196_v40 }
  0x1c   :  { %873 = vst.msk [vmem:[%s1950_s4 + $0x24] sm:$0xf] %vm863_vm0, %v1007_v42  ;;  %v103_v52 = vsub.f32 %v32_v41, %v1254_v1  ;;  %v362_v55 = vsel %vm234_vm12, %v170_v36, %v298_v47  ;;  %vm235_vm13 = vcmp.ge.f32.partialorder %v171_v48, 0.0  ;;  %v299_v56 = vmul.f32 0.01, %v171_v48  ;;  %v39_v42 = vld [vmem:[%s1946_s0 + $0xb0] sm:$0xff] }
  0x1d   :  { %v1008_v54 = vpack.c.bf16 %v553_v46, %v553_v46  ;;  %v554_v57 = vadd.f32 %v1085_v30, %v362_v55  ;;  %vm236_vm14 = vcmp.ge.f32.partialorder %v172_v49, 0.0  ;;  %v300_v58 = vmul.f32 0.01, %v172_v49  ;;  %v38_v30 = vld [vmem:[%s1946_s0 + $0xa8] sm:$0xff] }
  0x1e   :  { %v173_v59 = vmul.f32 %v1259_v2, %v102_v50  ;;  %v363_v60 = vsel %vm235_vm13, %v171_v48, %v299_v56  ;;  %v174_v61 = vmul.f32 %v1259_v2, %v103_v52  ;;  %v1093_v62 = vunpack.c.h.bf16 %v1196_v40 }
  0x1f   :  { %874 = vst.msk [vmem:[%s1950_s4 + $0x28] sm:$0xf] %vm863_vm0, %v1008_v54  ;;  %v104_v63 = vsub.f32 %v33_v53, %v1254_v1  ;;  %v1009_v4 = vpack.c.bf16 %v554_v57, %v554_v57  ;;  %v555_v5 = vadd.f32 %v1088_v38, %v363_v60  ;;  %v364_v6 = vsel %vm236_vm14, %v172_v49, %v300_v58  ;;  %v1200_v53 = vld [vmem:[%s1949_s3 + $0x58] sm:$0xff]  }
  0x20   :  { %vm237_vm15 = vcmp.ge.f32.partialorder %v173_v59, 0.0  ;;  %v556_v7 = vadd.f32 %v1089_v45, %v364_v6  ;;  %v301_v8 = vmul.f32 0.01, %v173_v59  ;;  %vm238_vm1 = vcmp.ge.f32.partialorder %v174_v61, 0.0  ;;  %v40_v54 = vld [vmem:[%s1946_s0 + $0xb8] sm:$0xff] }
  0x21   :  { %v302_v9 = vmul.f32 0.01, %v174_v61  ;;  %875 = vst.msk [vmem:[%s1950_s4 + $0x2c] sm:$0xf] %vm863_vm0, %v1009_v4  ;;  %v1010_v10 = vpack.c.bf16 %v555_v5, %v555_v5  ;;  %v175_v11 = vmul.f32 %v1259_v2, %v104_v63  ;;  %v1096_v12 = vunpack.c.l.bf16 %v1197_v0  ;;  %v1201_v4 = vld [vmem:[%s1949_s3 + $0x60] sm:$0xff]   ;;  %v42_v5 = vld [vmem:[%s1946_s0 + $0xc8] sm:$0xff] }
  0x22   :  { %v105_v13 = vsub.f32 %v34_v3, %v1254_v1  ;;  %v1011_v17 = vpack.c.bf16 %v556_v7, %v556_v7  ;;  %v365_v18 = vsel %vm237_vm15, %v173_v59, %v301_v8  ;;  %v1097_v20 = vunpack.c.h.bf16 %v1197_v0  ;;  %v41_v3 = vld [vmem:[%s1946_s0 + $0xc0] sm:$0xff] }
  0x23   :  { %v366_v19 = vsel %vm238_vm1, %v174_v61, %v302_v9  ;;  %876 = vst.msk [vmem:[%s1950_s4 + $0x30] sm:$0xf] %vm863_vm0, %v1010_v10  ;;  %v557_v21 = vadd.f32 %v1092_v51, %v365_v18  ;;  %vm239_vm2 = vcmp.ge.f32.partialorder %v175_v11, 0.0  ;;  %v303_v23 = vmul.f32 0.01, %v175_v11  ;;  %v1202_v18 = vld [vmem:[%s1949_s3 + $0x68] sm:$0xff]  }
  0x24   :  { %v558_v22 = vadd.f32 %v1093_v62, %v366_v19  ;;  %877 = vst.msk [vmem:[%s1950_s4 + $0x34] sm:$0xf] %vm863_vm0, %v1011_v17  ;;  %v176_v24 = vmul.f32 %v1259_v2, %v105_v13  ;;  %v106_v25 = vsub.f32 %v35_v14, %v1254_v1  ;;  %v1100_v26 = vunpack.c.l.bf16 %v1198_v15  ;;  %v43_v17 = vld [vmem:[%s1946_s0 + $0xd0] sm:$0xff]  ;;  %v44_v19 = vld [vmem:[%s1946_s0 + $0xd8] sm:$0xff] }
  0x25   :  { %v107_v27 = vsub.f32 %v36_v16, %v1254_v1  ;;  %v1012_v31 = vpack.c.bf16 %v557_v21, %v557_v21  ;;  %v367_v33 = vsel %vm239_vm2, %v175_v11, %v303_v23  ;;  %v1101_v34 = vunpack.c.h.bf16 %v1198_v15 }
  0x26   :  { %v1013_v32 = vpack.c.bf16 %v558_v22, %v558_v22  ;;  %v559_v35 = vadd.f32 %v1096_v12, %v367_v33  ;;  %vm240_vm3 = vcmp.ge.f32.partialorder %v176_v24, 0.0  ;;  %v304_v36 = vmul.f32 0.01, %v176_v24 }
  0x27   :  { %v177_v37 = vmul.f32 %v1259_v2, %v106_v25  ;;  %878 = vst.msk [vmem:[%s1950_s4 + $0x38] sm:$0xf] %vm863_vm0, %v1012_v31  ;;  %v178_v38 = vmul.f32 %v1259_v2, %v107_v27  ;;  %v108_v39 = vsub.f32 %v37_v28, %v1254_v1  ;;  %v1104_v40 = vunpack.c.l.bf16 %v1199_v29  ;;  %v45_v31 = vld [vmem:[%s1946_s0 + $0xe0] sm:$0xff] }
  0x28   :  { %879 = vst.msk [vmem:[%s1950_s4 + $0x3c] sm:$0xf] %vm863_vm0, %v1013_v32  ;;  %v109_v41 = vsub.f32 %v38_v30, %v1254_v1  ;;  %v1014_v43 = vpack.c.bf16 %v559_v35, %v559_v35  ;;  %v368_v44 = vsel %vm240_vm3, %v176_v24, %v304_v36  ;;  %v1105_v51 = vunpack.c.h.bf16 %v1199_v29 }
  0x29   :  { %vm241_vm4 = vcmp.ge.f32.partialorder %v177_v37, 0.0  ;;  %v305_v45 = vmul.f32 0.01, %v177_v37  ;;  %v560_v46 = vadd.f32 %v1097_v20, %v368_v44  ;;  %vm242_vm5 = vcmp.ge.f32.partialorder %v178_v38, 0.0 }
  0x2a   :  { %v306_v47 = vmul.f32 0.01, %v178_v38  ;;  %v179_v48 = vmul.f32 %v1259_v2, %v108_v39  ;;  %880 = vst.msk [vmem:[%s1950_s4 + $0x40] sm:$0xf] %vm863_vm0, %v1014_v43  ;;  %v180_v50 = vmul.f32 %v1259_v2, %v109_v41  ;;  %v110_v52 = vsub.f32 %v39_v42, %v1254_v1  ;;  %v1203_v42 = vld [vmem:[%s1949_s3 + $0x70] sm:$0xff]   ;;  %v46_v43 = vld [vmem:[%s1946_s0 + $0xe8] sm:$0xff] }
  0x2b   :  { %v369_v49 = vsel %vm241_vm4, %v177_v37, %v305_v45  ;;  %v1015_v55 = vpack.c.bf16 %v560_v46, %v560_v46  ;;  %v1108_v63 = vunpack.c.l.bf16 %v1200_v53  ;;  %v111_v0 = vsub.f32 %v40_v54, %v1254_v1  ;;  %v47_v54 = vld [vmem:[%s1946_s0 + $0xf0] sm:$0xff] }
  0x2c   :  { %v561_v56 = vadd.f32 %v1100_v26, %v369_v49  ;;  %v370_v57 = vsel %vm242_vm5, %v178_v38, %v306_v47  ;;  %vm243_vm6 = vcmp.ge.f32.partialorder %v179_v48, 0.0  ;;  %v307_v59 = vmul.f32 0.01, %v179_v48 }
  0x2d   :  { %v562_v58 = vadd.f32 %v1101_v34, %v370_v57  ;;  %vm244_vm7 = vcmp.ge.f32.partialorder %v180_v50, 0.0  ;;  %v308_v60 = vmul.f32 0.01, %v180_v50  ;;  %881 = vst.msk [vmem:[%s1950_s4 + $0x44] sm:$0xf] %vm863_vm0, %v1015_v55  ;;  %v181_v62 = vmul.f32 %v1259_v2, %v110_v52  ;;  %v1204_v55 = vld [vmem:[%s1949_s3 + $0x78] sm:$0xff]  }
  0x2e   :  { %v1016_v61 = vpack.c.bf16 %v561_v56, %v561_v56  ;;  %v371_v7 = vsel %vm243_vm6, %v179_v48, %v307_v59  ;;  %v1109_v9 = vunpack.c.h.bf16 %v1200_v53  ;;  %v182_v13 = vmul.f32 %v1259_v2, %v111_v0  ;;  %v48_v56 = vld [vmem:[%s1946_s0 + $0xf8] sm:$0xff] }
  0x2f   :  { %v1017_v6 = vpack.c.bf16 %v562_v58, %v562_v58  ;;  %v372_v8 = vsel %vm244_vm7, %v180_v50, %v308_v60  ;;  %v563_v10 = vadd.f32 %v1104_v40, %v371_v7  ;;  %vm245_vm8 = vcmp.ge.f32.partialorder %v181_v62, 0.0  ;;  %v1205_v7 = vld [vmem:[%s1949_s3 + $0x80] sm:$0xff]  }
  0x30   :  { %882 = vst.msk [vmem:[%s1950_s4 + $0x48] sm:$0xf] %vm863_vm0, %v1016_v61  ;;  %v564_v11 = vadd.f32 %v1105_v51, %v372_v8  ;;  %v309_v12 = vmul.f32 0.01, %v181_v62  ;;  %v112_v14 = vsub.f32 %v41_v3, %v1254_v1  ;;  %v1112_v15 = vunpack.c.l.bf16 %v1201_v4  ;;  %v50_v8 = vld [vmem:[%s1946_s0 + $0x108] sm:$0xff] }
  0x31   :  { %883 = vst.msk [vmem:[%s1950_s4 + $0x4c] sm:$0xf] %vm863_vm0, %v1017_v6  ;;  %v113_v16 = vsub.f32 %v42_v5, %v1254_v1  ;;  %v1018_v20 = vpack.c.bf16 %v563_v10, %v563_v10  ;;  %v1113_v23 = vunpack.c.h.bf16 %v1201_v4  ;;  %vm246_vm9 = vcmp.ge.f32.partialorder %v182_v13, 0.0  ;;  %v49_v6 = vld [vmem:[%s1946_s0 + $0x100] sm:$0xff] }
  0x32   :  { %v1019_v21 = vpack.c.bf16 %v564_v11, %v564_v11  ;;  %v373_v22 = vsel %vm245_vm8, %v181_v62, %v309_v12  ;;  %v310_v25 = vmul.f32 0.01, %v182_v13  ;;  %v183_v26 = vmul.f32 %v1259_v2, %v112_v14 }
  0x33   :  { %v565_v24 = vadd.f32 %v1108_v63, %v373_v22  ;;  %884 = vst.msk [vmem:[%s1950_s4 + $0x50] sm:$0xf] %vm863_vm0, %v1018_v20  ;;  %v184_v27 = vmul.f32 %v1259_v2, %v113_v16  ;;  %v114_v28 = vsub.f32 %v43_v17, %v1254_v1  ;;  %v1116_v29 = vunpack.c.l.bf16 %v1202_v18  ;;  %v51_v20 = vld [vmem:[%s1946_s0 + $0x110] sm:$0xff] }
  0x34   :  { %885 = vst.msk [vmem:[%s1950_s4 + $0x54] sm:$0xf] %vm863_vm0, %v1019_v21  ;;  %v115_v30 = vsub.f32 %v44_v19, %v1254_v1  ;;  %v374_v33 = vsel %vm246_vm9, %v182_v13, %v310_v25  ;;  %vm247_vm10 = vcmp.ge.f32.partialorder %v183_v26, 0.0  ;;  %v311_v34 = vmul.f32 0.01, %v183_v26 }
  0x35   :  { %v1020_v32 = vpack.c.bf16 %v565_v24, %v565_v24  ;;  %v566_v35 = vadd.f32 %v1109_v9, %v374_v33  ;;  %vm248_vm11 = vcmp.ge.f32.partialorder %v184_v27, 0.0  ;;  %v312_v36 = vmul.f32 0.01, %v184_v27 }
  0x36   :  { %v185_v37 = vmul.f32 %v1259_v2, %v114_v28  ;;  %v375_v38 = vsel %vm247_vm10, %v183_v26, %v311_v34  ;;  %v186_v39 = vmul.f32 %v1259_v2, %v115_v30  ;;  %v1117_v40 = vunpack.c.h.bf16 %v1202_v18 }
  0x37   :  { %886 = vst.msk [vmem:[%s1950_s4 + $0x58] sm:$0xf] %vm863_vm0, %v1020_v32  ;;  %v116_v41 = vsub.f32 %v45_v31, %v1254_v1  ;;  %v1021_v44 = vpack.c.bf16 %v566_v35, %v566_v35  ;;  %v567_v45 = vadd.f32 %v1112_v15, %v375_v38  ;;  %v376_v46 = vsel %vm248_vm11, %v184_v27, %v312_v36  ;;  %v1206_v31 = vld [vmem:[%s1949_s3 + $0x88] sm:$0xff]   ;;  %v52_v32 = vld [vmem:[%s1946_s0 + $0x118] sm:$0xff] }
  0x38   :  { %vm249_vm12 = vcmp.ge.f32.partialorder %v185_v37, 0.0  ;;  %v568_v47 = vadd.f32 %v1113_v23, %v376_v46  ;;  %v313_v48 = vmul.f32 0.01, %v185_v37  ;;  %vm250_vm13 = vcmp.ge.f32.partialorder %v186_v39, 0.0 }
  0x39   :  { %v314_v49 = vmul.f32 0.01, %v186_v39  ;;  %887 = vst.msk [vmem:[%s1950_s4 + $0x5c] sm:$0xf] %vm863_vm0, %v1021_v44  ;;  %v1022_v50 = vpack.c.bf16 %v567_v45, %v567_v45  ;;  %v187_v51 = vmul.f32 %v1259_v2, %v116_v41  ;;  %v1120_v52 = vunpack.c.l.bf16 %v1203_v42  ;;  %v1207_v44 = vld [vmem:[%s1949_s3 + $0x90] sm:$0xff]   ;;  %v54_v45 = vld [vmem:[%s1946_s0 + $0x128] sm:$0xff] }
  0x3a   :  { %v117_v53 = vsub.f32 %v46_v43, %v1254_v1  ;;  %v1023_v57 = vpack.c.bf16 %v568_v47, %v568_v47  ;;  %v377_v58 = vsel %vm249_vm12, %v185_v37, %v313_v48  ;;  %v1121_v60 = vunpack.c.h.bf16 %v1203_v42  ;;  %v53_v43 = vld [vmem:[%s1946_s0 + $0x120] sm:$0xff] }
  0x3b   :  { %v378_v59 = vsel %vm250_vm13, %v186_v39, %v314_v49  ;;  %888 = vst.msk [vmem:[%s1950_s4 + $0x60] sm:$0xf] %vm863_vm0, %v1022_v50  ;;  %v569_v61 = vadd.f32 %v1116_v29, %v377_v58  ;;  %vm251_vm14 = vcmp.ge.f32.partialorder %v187_v51, 0.0  ;;  %v315_v63 = vmul.f32 0.01, %v187_v51  ;;  %v1208_v58 = vld [vmem:[%s1949_s3 + $0x98] sm:$0xff]  }
  0x3c   :  { %v570_v62 = vadd.f32 %v1117_v40, %v378_v59  ;;  %889 = vst.msk [vmem:[%s1950_s4 + $0x64] sm:$0xf] %vm863_vm0, %v1023_v57  ;;  %v188_v0 = vmul.f32 %v1259_v2, %v117_v53  ;;  %v118_v3 = vsub.f32 %v47_v54, %v1254_v1  ;;  %v1124_v4 = vunpack.c.l.bf16 %v1204_v55  ;;  %v55_v57 = vld [vmem:[%s1946_s0 + $0x130] sm:$0xff]  ;;  %v56_v59 = vld [vmem:[%s1946_s0 + $0x138] sm:$0xff] }
  0x3d   :  { %v119_v5 = vsub.f32 %v48_v56, %v1254_v1  ;;  %v1024_v9 = vpack.c.bf16 %v569_v61, %v569_v61  ;;  %v379_v11 = vsel %vm251_vm14, %v187_v51, %v315_v63  ;;  %v1125_v12 = vunpack.c.h.bf16 %v1204_v55 }
  0x3e   :  { %v1025_v10 = vpack.c.bf16 %v570_v62, %v570_v62  ;;  %v571_v13 = vadd.f32 %v1120_v52, %v379_v11  ;;  %vm252_vm15 = vcmp.ge.f32.partialorder %v188_v0, 0.0  ;;  %v316_v14 = vmul.f32 0.01, %v188_v0 }
  0x3f   :  { %v189_v15 = vmul.f32 %v1259_v2, %v118_v3  ;;  %890 = vst.msk [vmem:[%s1950_s4 + $0x68] sm:$0xf] %vm863_vm0, %v1024_v9  ;;  %v190_v16 = vmul.f32 %v1259_v2, %v119_v5  ;;  %v120_v17 = vsub.f32 %v49_v6, %v1254_v1  ;;  %v1128_v18 = vunpack.c.l.bf16 %v1205_v7  ;;  %v57_v9 = vld [vmem:[%s1946_s0 + $0x140] sm:$0xff] }
  0x40   :  { %891 = vst.msk [vmem:[%s1950_s4 + $0x6c] sm:$0xf] %vm863_vm0, %v1025_v10  ;;  %v121_v19 = vsub.f32 %v50_v8, %v1254_v1  ;;  %v1026_v21 = vpack.c.bf16 %v571_v13, %v571_v13  ;;  %v380_v22 = vsel %vm252_vm15, %v188_v0, %v316_v14  ;;  %v1129_v29 = vunpack.c.h.bf16 %v1205_v7 }
  0x41   :  { %vm253_vm1 = vcmp.ge.f32.partialorder %v189_v15, 0.0  ;;  %v317_v23 = vmul.f32 0.01, %v189_v15  ;;  %v572_v24 = vadd.f32 %v1121_v60, %v380_v22  ;;  %vm254_vm2 = vcmp.ge.f32.partialorder %v190_v16, 0.0 }
  0x42   :  { %v318_v25 = vmul.f32 0.01, %v190_v16  ;;  %v191_v26 = vmul.f32 %v1259_v2, %v120_v17  ;;  %892 = vst.msk [vmem:[%s1950_s4 + $0x70] sm:$0xf] %vm863_vm0, %v1026_v21  ;;  %v192_v28 = vmul.f32 %v1259_v2, %v121_v19  ;;  %v122_v30 = vsub.f32 %v51_v20, %v1254_v1  ;;  %v1209_v20 = vld [vmem:[%s1949_s3 + $0xa0] sm:$0xff]   ;;  %v58_v21 = vld [vmem:[%s1946_s0 + $0x148] sm:$0xff] }
  0x43   :  { %v381_v27 = vsel %vm253_vm1, %v189_v15, %v317_v23  ;;  %v1027_v33 = vpack.c.bf16 %v572_v24, %v572_v24  ;;  %v1132_v41 = vunpack.c.l.bf16 %v1206_v31  ;;  %v123_v42 = vsub.f32 %v52_v32, %v1254_v1  ;;  %v59_v32 = vld [vmem:[%s1946_s0 + $0x150] sm:$0xff] }
  0x44   :  { %v573_v34 = vadd.f32 %v1124_v4, %v381_v27  ;;  %v382_v35 = vsel %vm254_vm2, %v190_v16, %v318_v25  ;;  %vm255_vm3 = vcmp.ge.f32.partialorder %v191_v26, 0.0  ;;  %v319_v37 = vmul.f32 0.01, %v191_v26 }
  0x45   :  { %v574_v36 = vadd.f32 %v1125_v12, %v382_v35  ;;  %vm256_vm4 = vcmp.ge.f32.partialorder %v192_v28, 0.0  ;;  %v320_v38 = vmul.f32 0.01, %v192_v28  ;;  %893 = vst.msk [vmem:[%s1950_s4 + $0x74] sm:$0xf] %vm863_vm0, %v1027_v33  ;;  %v193_v40 = vmul.f32 %v1259_v2, %v122_v30  ;;  %v1210_v33 = vld [vmem:[%s1949_s3 + $0xa8] sm:$0xff]  }
  0x46   :  { %v1028_v39 = vpack.c.bf16 %v573_v34, %v573_v34  ;;  %v383_v47 = vsel %vm255_vm3, %v191_v26, %v319_v37  ;;  %v1133_v49 = vunpack.c.h.bf16 %v1206_v31  ;;  %v194_v53 = vmul.f32 %v1259_v2, %v123_v42  ;;  %v60_v34 = vld [vmem:[%s1946_s0 + $0x158] sm:$0xff] }
  0x47   :  { %v1029_v46 = vpack.c.bf16 %v574_v36, %v574_v36  ;;  %v384_v48 = vsel %vm256_vm4, %v192_v28, %v320_v38  ;;  %v575_v50 = vadd.f32 %v1128_v18, %v383_v47  ;;  %vm257_vm5 = vcmp.ge.f32.partialorder %v193_v40, 0.0  ;;  %v1211_v47 = vld [vmem:[%s1949_s3 + $0xb0] sm:$0xff]  }
  0x48   :  { %894 = vst.msk [vmem:[%s1950_s4 + $0x78] sm:$0xf] %vm863_vm0, %v1028_v39  ;;  %v576_v51 = vadd.f32 %v1129_v29, %v384_v48  ;;  %v321_v52 = vmul.f32 0.01, %v193_v40  ;;  %v124_v54 = vsub.f32 %v53_v43, %v1254_v1  ;;  %v1136_v55 = vunpack.c.l.bf16 %v1207_v44  ;;  %v62_v48 = vld [vmem:[%s1946_s0 + $0x168] sm:$0xff] }
  0x49   :  { %895 = vst.msk [vmem:[%s1950_s4 + $0x7c] sm:$0xf] %vm863_vm0, %v1029_v46  ;;  %v125_v56 = vsub.f32 %v54_v45, %v1254_v1  ;;  %v1030_v60 = vpack.c.bf16 %v575_v50, %v575_v50  ;;  %v1137_v63 = vunpack.c.h.bf16 %v1207_v44  ;;  %vm258_vm6 = vcmp.ge.f32.partialorder %v194_v53, 0.0  ;;  %v61_v46 = vld [vmem:[%s1946_s0 + $0x160] sm:$0xff] }
  0x4a   :  { %v1031_v61 = vpack.c.bf16 %v576_v51, %v576_v51  ;;  %v385_v62 = vsel %vm257_vm5, %v193_v40, %v321_v52  ;;  %v322_v3 = vmul.f32 0.01, %v194_v53  ;;  %v195_v4 = vmul.f32 %v1259_v2, %v124_v54 }
  0x4b   :  { %v577_v0 = vadd.f32 %v1132_v41, %v385_v62  ;;  %896 = vst.msk [vmem:[%s1950_s4 + $0x80] sm:$0xf] %vm863_vm0, %v1030_v60  ;;  %v196_v5 = vmul.f32 %v1259_v2, %v125_v56  ;;  %v126_v6 = vsub.f32 %v55_v57, %v1254_v1  ;;  %v1140_v7 = vunpack.c.l.bf16 %v1208_v58  ;;  %v63_v60 = vld [vmem:[%s1946_s0 + $0x170] sm:$0xff] }
  0x4c   :  { %897 = vst.msk [vmem:[%s1950_s4 + $0x84] sm:$0xf] %vm863_vm0, %v1031_v61  ;;  %v127_v8 = vsub.f32 %v56_v59, %v1254_v1  ;;  %v386_v11 = vsel %vm258_vm6, %v194_v53, %v322_v3  ;;  %vm259_vm7 = vcmp.ge.f32.partialorder %v195_v4, 0.0  ;;  %v323_v12 = vmul.f32 0.01, %v195_v4 }
  0x4d   :  { %v1032_v10 = vpack.c.bf16 %v577_v0, %v577_v0  ;;  %v578_v13 = vadd.f32 %v1133_v49, %v386_v11  ;;  %vm260_vm8 = vcmp.ge.f32.partialorder %v196_v5, 0.0  ;;  %v324_v14 = vmul.f32 0.01, %v196_v5 }
  0x4e   :  { %v197_v15 = vmul.f32 %v1259_v2, %v126_v6  ;;  %v387_v16 = vsel %vm259_vm7, %v195_v4, %v323_v12  ;;  %v198_v17 = vmul.f32 %v1259_v2, %v127_v8  ;;  %v1141_v18 = vunpack.c.h.bf16 %v1208_v58 }
  0x4f   :  { %898 = vst.msk [vmem:[%s1950_s4 + $0x88] sm:$0xf] %vm863_vm0, %v1032_v10  ;;  %v128_v19 = vsub.f32 %v57_v9, %v1254_v1  ;;  %v1033_v22 = vpack.c.bf16 %v578_v13, %v578_v13  ;;  %v579_v23 = vadd.f32 %v1136_v55, %v387_v16  ;;  %v388_v24 = vsel %vm260_vm8, %v196_v5, %v324_v14  ;;  %v1212_v9 = vld [vmem:[%s1949_s3 + $0xb8] sm:$0xff]  }
  0x50   :  { %vm261_vm9 = vcmp.ge.f32.partialorder %v197_v15, 0.0  ;;  %v580_v25 = vadd.f32 %v1137_v63, %v388_v24  ;;  %v325_v26 = vmul.f32 0.01, %v197_v15  ;;  %vm262_vm10 = vcmp.ge.f32.partialorder %v198_v17, 0.0  ;;  %v64_v10 = vld [vmem:[%s1946_s0 + $0x178] sm:$0xff] }
  0x51   :  { %v326_v27 = vmul.f32 0.01, %v198_v17  ;;  %899 = vst.msk [vmem:[%s1950_s4 + $0x8c] sm:$0xf] %vm863_vm0, %v1033_v22  ;;  %v1034_v28 = vpack.c.bf16 %v579_v23, %v579_v23  ;;  %v199_v29 = vmul.f32 %v1259_v2, %v128_v19  ;;  %v1144_v30 = vunpack.c.l.bf16 %v1209_v20  ;;  %v1213_v22 = vld [vmem:[%s1949_s3 + $0xc0] sm:$0xff]   ;;  %v66_v23 = vld [vmem:[%s1946_s0 + $0x188] sm:$0xff] }
  0x52   :  { %v129_v31 = vsub.f32 %v58_v21, %v1254_v1  ;;  %v1035_v35 = vpack.c.bf16 %v580_v25, %v580_v25  ;;  %v389_v36 = vsel %vm261_vm9, %v197_v15, %v325_v26  ;;  %v1145_v38 = vunpack.c.h.bf16 %v1209_v20  ;;  %v65_v21 = vld [vmem:[%s1946_s0 + $0x180] sm:$0xff] }
  0x53   :  { %v390_v37 = vsel %vm262_vm10, %v198_v17, %v326_v27  ;;  %900 = vst.msk [vmem:[%s1950_s4 + $0x90] sm:$0xf] %vm863_vm0, %v1034_v28  ;;  %v581_v39 = vadd.f32 %v1140_v7, %v389_v36  ;;  %vm263_vm11 = vcmp.ge.f32.partialorder %v199_v29, 0.0  ;;  %v327_v41 = vmul.f32 0.01, %v199_v29  ;;  %v1214_v36 = vld [vmem:[%s1949_s3 + $0xc8] sm:$0xff]  }
  0x54   :  { %v582_v40 = vadd.f32 %v1141_v18, %v390_v37  ;;  %901 = vst.msk [vmem:[%s1950_s4 + $0x94] sm:$0xf] %vm863_vm0, %v1035_v35  ;;  %v200_v42 = vmul.f32 %v1259_v2, %v129_v31  ;;  %v130_v43 = vsub.f32 %v59_v32, %v1254_v1  ;;  %v1148_v44 = vunpack.c.l.bf16 %v1210_v33  ;;  %v67_v35 = vld [vmem:[%s1946_s0 + $0x190] sm:$0xff]  ;;  %v68_v37 = vld [vmem:[%s1946_s0 + $0x198] sm:$0xff] }
  0x55   :  { %v131_v45 = vsub.f32 %v60_v34, %v1254_v1  ;;  %v1036_v49 = vpack.c.bf16 %v581_v39, %v581_v39  ;;  %v391_v51 = vsel %vm263_vm11, %v199_v29, %v327_v41  ;;  %v1149_v52 = vunpack.c.h.bf16 %v1210_v33 }
  0x56   :  { %v1037_v50 = vpack.c.bf16 %v582_v40, %v582_v40  ;;  %v583_v53 = vadd.f32 %v1144_v30, %v391_v51  ;;  %vm264_vm12 = vcmp.ge.f32.partialorder %v200_v42, 0.0  ;;  %v328_v54 = vmul.f32 0.01, %v200_v42 }
  0x57   :  { %v201_v55 = vmul.f32 %v1259_v2, %v130_v43  ;;  %902 = vst.msk [vmem:[%s1950_s4 + $0x98] sm:$0xf] %vm863_vm0, %v1036_v49  ;;  %v202_v56 = vmul.f32 %v1259_v2, %v131_v45  ;;  %v132_v57 = vsub.f32 %v61_v46, %v1254_v1  ;;  %v1152_v58 = vunpack.c.l.bf16 %v1211_v47  ;;  %v1785_v45 = vld [vmem:[%s1947_s1] ss:$0 sm:$0xff] }
  0x58   :  { %903 = vst.msk [vmem:[%s1950_s4 + $0x9c] sm:$0xf] %vm863_vm0, %v1037_v50  ;;  %v133_v59 = vsub.f32 %v62_v48, %v1254_v1  ;;  %v1038_v61 = vpack.c.bf16 %v583_v53, %v583_v53  ;;  %v392_v62 = vsel %vm264_vm12, %v200_v42, %v328_v54  ;;  %v1153_v7 = vunpack.c.h.bf16 %v1211_v47  ;;  %v69_v49 = vld [vmem:[%s1946_s0 + $0x1a0] sm:$0xff] }
  0x59   :  { %vm265_vm13 = vcmp.ge.f32.partialorder %v201_v55, 0.0  ;;  %v329_v63 = vmul.f32 0.01, %v201_v55  ;;  %v584_v0 = vadd.f32 %v1145_v38, %v392_v62  ;;  %vm266_vm14 = vcmp.ge.f32.partialorder %v202_v56, 0.0  ;;  %v1795_v54 = vld [vmem:[%s1948_s2] ss:$0 sm:$0xff] }
  0x5a   :  { %v330_v3 = vmul.f32 0.01, %v202_v56  ;;  %v203_v4 = vmul.f32 %v1259_v2, %v132_v57  ;;  %904 = vst.msk [vmem:[%s1950_s4 + $0xa0] sm:$0xf] %vm863_vm0, %v1038_v61  ;;  %v204_v6 = vmul.f32 %v1259_v2, %v133_v59  ;;  %v134_v8 = vsub.f32 %v63_v60, %v1254_v1  ;;  %v1215_v60 = vld [vmem:[%s1949_s3 + $0xd0] sm:$0xff]   ;;  %v70_v61 = vld [vmem:[%s1946_s0 + $0x1a8] sm:$0xff] }
  0x5b   :  { %v393_v5 = vsel %vm265_vm13, %v201_v55, %v329_v63  ;;  %v1039_v11 = vpack.c.bf16 %v584_v0, %v584_v0  ;;  %v1156_v19 = vunpack.c.l.bf16 %v1212_v9  ;;  %v135_v20 = vsub.f32 %v64_v10, %v1254_v1  ;;  %v71_v10 = vld [vmem:[%s1946_s0 + $0x1b0] sm:$0xff] }
  0x5c   :  { %v585_v12 = vadd.f32 %v1148_v44, %v393_v5  ;;  %v394_v13 = vsel %vm266_vm14, %v202_v56, %v330_v3  ;;  %vm267_vm15 = vcmp.ge.f32.partialorder %v203_v4, 0.0  ;;  %v331_v15 = vmul.f32 0.01, %v203_v4 }
  0x5d   :  { %v586_v14 = vadd.f32 %v1149_v52, %v394_v13  ;;  %vm268_vm1 = vcmp.ge.f32.partialorder %v204_v6, 0.0  ;;  %v332_v16 = vmul.f32 0.01, %v204_v6  ;;  %905 = vst.msk [vmem:[%s1950_s4 + $0xa4] sm:$0xf] %vm863_vm0, %v1039_v11  ;;  %v205_v18 = vmul.f32 %v1259_v2, %v134_v8  ;;  %v1216_v11 = vld [vmem:[%s1949_s3 + $0xd8] sm:$0xff]  }
  0x5e   :  { %v1040_v17 = vpack.c.bf16 %v585_v12, %v585_v12  ;;  %v395_v25 = vsel %vm267_vm15, %v203_v4, %v331_v15  ;;  %v1157_v27 = vunpack.c.h.bf16 %v1212_v9  ;;  %v206_v31 = vmul.f32 %v1259_v2, %v135_v20  ;;  %v72_v12 = vld [vmem:[%s1946_s0 + $0x1b8] sm:$0xff] }
  0x5f   :  { %v1041_v24 = vpack.c.bf16 %v586_v14, %v586_v14  ;;  %v396_v26 = vsel %vm268_vm1, %v204_v6, %v332_v16  ;;  %v587_v28 = vadd.f32 %v1152_v58, %v395_v25  ;;  %vm269_vm2 = vcmp.ge.f32.partialorder %v205_v18, 0.0  ;;  %v1217_v25 = vld [vmem:[%s1949_s3 + $0xe0] sm:$0xff]  }
  0x60   :  { %906 = vst.msk [vmem:[%s1950_s4 + $0xa8] sm:$0xf] %vm863_vm0, %v1040_v17  ;;  %v588_v29 = vadd.f32 %v1153_v7, %v396_v26  ;;  %v333_v30 = vmul.f32 0.01, %v205_v18  ;;  %v136_v32 = vsub.f32 %v65_v21, %v1254_v1  ;;  %v1160_v33 = vunpack.c.l.bf16 %v1213_v22  ;;  %v74_v26 = vld [vmem:[%s1946_s0 + $0x1c8] sm:$0xff] }
  0x61   :  { %907 = vst.msk [vmem:[%s1950_s4 + $0xac] sm:$0xf] %vm863_vm0, %v1041_v24  ;;  %v137_v34 = vsub.f32 %v66_v23, %v1254_v1  ;;  %v1042_v38 = vpack.c.bf16 %v587_v28, %v587_v28  ;;  %v1161_v41 = vunpack.c.h.bf16 %v1213_v22  ;;  %vm270_vm3 = vcmp.ge.f32.partialorder %v206_v31, 0.0  ;;  %v73_v24 = vld [vmem:[%s1946_s0 + $0x1c0] sm:$0xff] }
  0x62   :  { %v1043_v39 = vpack.c.bf16 %v588_v29, %v588_v29  ;;  %v397_v40 = vsel %vm269_vm2, %v205_v18, %v333_v30  ;;  %v334_v43 = vmul.f32 0.01, %v206_v31  ;;  %v207_v1 = vmul.f32 %v1259_v2, %v136_v32 }
  0x63   :  { %v589_v42 = vadd.f32 %v1156_v19, %v397_v40  ;;  %908 = vst.msk [vmem:[%s1950_s4 + $0xb0] sm:$0xf] %vm863_vm0, %v1042_v38  ;;  %v208_v44 = vmul.f32 %v1259_v2, %v137_v34  ;;  %v138_v46 = vsub.f32 %v67_v35, %v1785_v45  ;;  %v1164_v47 = vunpack.c.l.bf16 %v1214_v36  ;;  %v75_v38 = vld [vmem:[%s1946_s0 + $0x1d0] sm:$0xff] }
  0x64   :  { %909 = vst.msk [vmem:[%s1950_s4 + $0xb4] sm:$0xf] %vm863_vm0, %v1043_v39  ;;  %v139_v48 = vsub.f32 %v68_v37, %v1785_v45  ;;  %v398_v51 = vsel %vm270_vm3, %v206_v31, %v334_v43  ;;  %vm271_vm4 = vcmp.ge.f32.partialorder %v207_v1, 0.0  ;;  %v335_v52 = vmul.f32 0.01, %v207_v1 }
  0x65   :  { %v1044_v50 = vpack.c.bf16 %v589_v42, %v589_v42  ;;  %v590_v53 = vadd.f32 %v1157_v27, %v398_v51  ;;  %vm272_vm5 = vcmp.ge.f32.partialorder %v208_v44, 0.0  ;;  %v336_v2 = vmul.f32 0.01, %v208_v44 }
  0x66   :  { %v209_v55 = vmul.f32 %v1795_v54, %v138_v46  ;;  %v399_v56 = vsel %vm271_vm4, %v207_v1, %v335_v52  ;;  %v210_v57 = vmul.f32 %v1795_v54, %v139_v48  ;;  %v1165_v58 = vunpack.c.h.bf16 %v1214_v36 }
  0x67   :  { %910 = vst.msk [vmem:[%s1950_s4 + $0xb8] sm:$0xf] %vm863_vm0, %v1044_v50  ;;  %v140_v59 = vsub.f32 %v69_v49, %v1785_v45  ;;  %v1045_v62 = vpack.c.bf16 %v590_v53, %v590_v53  ;;  %v591_v63 = vadd.f32 %v1160_v33, %v399_v56  ;;  %v400_v0 = vsel %vm272_vm5, %v208_v44, %v336_v2  ;;  %v76_v49 = vld [vmem:[%s1946_s0 + $0x1d8] sm:$0xff]  ;;  %v1218_v53 = vld [vmem:[%s1949_s3 + $0xe8] sm:$0xff]  }
  0x68   :  { %vm273_vm6 = vcmp.ge.f32.partialorder %v209_v55, 0.0  ;;  %v592_v3 = vadd.f32 %v1161_v41, %v400_v0  ;;  %v337_v4 = vmul.f32 0.01, %v209_v55  ;;  %vm274_vm7 = vcmp.ge.f32.partialorder %v210_v57, 0.0 }
  0x69   :  { %v338_v5 = vmul.f32 0.01, %v210_v57  ;;  %911 = vst.msk [vmem:[%s1950_s4 + $0xbc] sm:$0xf] %vm863_vm0, %v1045_v62  ;;  %v1046_v6 = vpack.c.bf16 %v591_v63, %v591_v63  ;;  %v211_v7 = vmul.f32 %v1795_v54, %v140_v59  ;;  %v1168_v8 = vunpack.c.l.bf16 %v1215_v60 }
  0x6a   :  { %v141_v9 = vsub.f32 %v70_v61, %v1785_v45  ;;  %v1047_v13 = vpack.c.bf16 %v592_v3, %v592_v3  ;;  %v401_v14 = vsel %vm273_vm6, %v209_v55, %v337_v4  ;;  %v1169_v16 = vunpack.c.h.bf16 %v1215_v60  ;;  %v77_v60 = vld [vmem:[%s1946_s0 + $0x1e0] sm:$0xff]  ;;  %v78_v61 = vld [vmem:[%s1946_s0 + $0x1e8] sm:$0xff]  ;;  %v1219_v4 = vld [vmem:[%s1949_s3 + $0xf0] sm:$0xff]  }
  0x6b   :  { %v402_v15 = vsel %vm274_vm7, %v210_v57, %v338_v5  ;;  %912 = vst.msk [vmem:[%s1950_s4 + $0xc0] sm:$0xf] %vm863_vm0, %v1046_v6  ;;  %v593_v17 = vadd.f32 %v1164_v47, %v401_v14  ;;  %vm275_vm8 = vcmp.ge.f32.partialorder %v211_v7, 0.0  ;;  %v339_v19 = vmul.f32 0.01, %v211_v7 }
  0x6c   :  { %v594_v18 = vadd.f32 %v1165_v58, %v402_v15  ;;  %913 = vst.msk [vmem:[%s1950_s4 + $0xc4] sm:$0xf] %vm863_vm0, %v1047_v13  ;;  %v212_v20 = vmul.f32 %v1795_v54, %v141_v9  ;;  %v142_v21 = vsub.f32 %v71_v10, %v1785_v45  ;;  %v1172_v22 = vunpack.c.l.bf16 %v1216_v11  ;;  %v80_v13 = vld [vmem:[%s1946_s0 + $0x1f8] sm:$0xff] }
  0x6d   :  { %v143_v23 = vsub.f32 %v72_v12, %v1785_v45  ;;  %v1048_v27 = vpack.c.bf16 %v593_v17, %v593_v17  ;;  %v403_v29 = vsel %vm275_vm8, %v211_v7, %v339_v19  ;;  %v1173_v30 = vunpack.c.h.bf16 %v1216_v11  ;;  %v79_v12 = vld [vmem:[%s1946_s0 + $0x1f0] sm:$0xff] }
  0x6e   :  { %v1049_v28 = vpack.c.bf16 %v594_v18, %v594_v18  ;;  %v595_v31 = vadd.f32 %v1168_v8, %v403_v29  ;;  %vm276_vm9 = vcmp.ge.f32.partialorder %v212_v20, 0.0  ;;  %v340_v32 = vmul.f32 0.01, %v212_v20 }
  0x6f   :  { %v213_v33 = vmul.f32 %v1795_v54, %v142_v21  ;;  %914 = vst.msk [vmem:[%s1950_s4 + $0xc8] sm:$0xf] %vm863_vm0, %v1048_v27  ;;  %v214_v34 = vmul.f32 %v1795_v54, %v143_v23  ;;  %v144_v35 = vsub.f32 %v73_v24, %v1785_v45  ;;  %v1176_v36 = vunpack.c.l.bf16 %v1217_v25  ;;  %v1220_v24 = vld [vmem:[%s1949_s3 + $0xf8] sm:$0xff]  }
  0x70   :  { %915 = vst.msk [vmem:[%s1950_s4 + $0xcc] sm:$0xf] %vm863_vm0, %v1049_v28  ;;  %v145_v37 = vsub.f32 %v74_v26, %v1785_v45  ;;  %v1050_v39 = vpack.c.bf16 %v595_v31, %v595_v31  ;;  %v404_v40 = vsel %vm276_vm9, %v212_v20, %v340_v32  ;;  %v1177_v47 = vunpack.c.h.bf16 %v1217_v25 }
  0x71   :  { %vm277_vm10 = vcmp.ge.f32.partialorder %v213_v33, 0.0  ;;  %v341_v41 = vmul.f32 0.01, %v213_v33  ;;  %v596_v42 = vadd.f32 %v1169_v16, %v404_v40  ;;  %vm278_vm11 = vcmp.ge.f32.partialorder %v214_v34, 0.0 }
  0x72   :  { %v342_v43 = vmul.f32 0.01, %v214_v34  ;;  %v215_v1 = vmul.f32 %v1795_v54, %v144_v35  ;;  %916 = vst.msk [vmem:[%s1950_s4 + $0xd0] sm:$0xf] %vm863_vm0, %v1050_v39  ;;  %v216_v46 = vmul.f32 %v1795_v54, %v145_v37  ;;  %v146_v48 = vsub.f32 %v75_v38, %v1785_v45 }
  0x73   :  { %v405_v44 = vsel %vm277_vm10, %v213_v33, %v341_v41  ;;  %v1051_v50 = vpack.c.bf16 %v596_v42, %v596_v42  ;;  %v147_v59 = vsub.f32 %v76_v49, %v1785_v45  ;;  %v1180_v3 = vunpack.c.l.bf16 %v1218_v53 }
  0x74   :  { %v597_v51 = vadd.f32 %v1172_v22, %v405_v44  ;;  %v406_v52 = vsel %vm278_vm11, %v214_v34, %v342_v43  ;;  %vm279_vm12 = vcmp.ge.f32.partialorder %v215_v1, 0.0  ;;  %v343_v55 = vmul.f32 0.01, %v215_v1 }
  0x75   :  { %v598_v2 = vadd.f32 %v1173_v30, %v406_v52  ;;  %vm280_vm13 = vcmp.ge.f32.partialorder %v216_v46, 0.0  ;;  %v344_v56 = vmul.f32 0.01, %v216_v46  ;;  %917 = vst.msk [vmem:[%s1950_s4 + $0xd4] sm:$0xf] %vm863_vm0, %v1051_v50  ;;  %v217_v58 = vmul.f32 %v1795_v54, %v146_v48 }
  0x76   :  { %v1052_v57 = vpack.c.bf16 %v597_v51, %v597_v51  ;;  %v407_v63 = vsel %vm279_vm12, %v215_v1, %v343_v55  ;;  %v218_v8 = vmul.f32 %v1795_v54, %v147_v59  ;;  %v1181_v9 = vunpack.c.h.bf16 %v1218_v53 }
  0x77   :  { %v1053_v62 = vpack.c.bf16 %v598_v2, %v598_v2  ;;  %v408_v0 = vsel %vm280_vm13, %v216_v46, %v344_v56  ;;  %v599_v5 = vadd.f32 %v1176_v36, %v407_v63  ;;  %vm281_vm14 = vcmp.ge.f32.partialorder %v217_v58, 0.0 }
  0x78   :  { %918 = vst.msk [vmem:[%s1950_s4 + $0xd8] sm:$0xf] %vm863_vm0, %v1052_v57  ;;  %v600_v6 = vadd.f32 %v1177_v47, %v408_v0  ;;  %v345_v7 = vmul.f32 0.01, %v217_v58  ;;  %v148_v10 = vsub.f32 %v77_v60, %v1785_v45  ;;  %v149_v11 = vsub.f32 %v78_v61, %v1785_v45 }
  0x79   :  { %919 = vst.msk [vmem:[%s1950_s4 + $0xdc] sm:$0xf] %vm863_vm0, %v1053_v62  ;;  %v1054_v14 = vpack.c.bf16 %v599_v5, %v599_v5  ;;  %v1184_v17 = vunpack.c.l.bf16 %v1219_v4  ;;  %vm282_vm15 = vcmp.ge.f32.partialorder %v218_v8, 0.0  ;;  %v346_v19 = vmul.f32 0.01, %v218_v8 }
  0x7a   :  { %v1055_v15 = vpack.c.bf16 %v600_v6, %v600_v6  ;;  %v409_v16 = vsel %vm281_vm14, %v217_v58, %v345_v7  ;;  %v219_v20 = vmul.f32 %v1795_v54, %v148_v10  ;;  %v220_v21 = vmul.f32 %v1795_v54, %v149_v11 }
  0x7b   :  { %v601_v18 = vadd.f32 %v1180_v3, %v409_v16  ;;  %920 = vst.msk [vmem:[%s1950_s4 + $0xe0] sm:$0xf] %vm863_vm0, %v1054_v14  ;;  %v1185_v22 = vunpack.c.h.bf16 %v1219_v4  ;;  %v150_v23 = vsub.f32 %v79_v12, %v1785_v45  ;;  %v151_v25 = vsub.f32 %v80_v13, %v1785_v45 }
  0x7c   :  { %921 = vst.msk [vmem:[%s1950_s4 + $0xe4] sm:$0xf] %vm863_vm0, %v1055_v15  ;;  %v410_v27 = vsel %vm282_vm15, %v218_v8, %v346_v19  ;;  %vm283_vm1 = vcmp.ge.f32.partialorder %v219_v20, 0.0  ;;  %v347_v28 = vmul.f32 0.01, %v219_v20  ;;  %vm284_vm2 = vcmp.ge.f32.partialorder %v220_v21, 0.0 }
  0x7d   :  { %v1056_v26 = vpack.c.bf16 %v601_v18, %v601_v18  ;;  %v602_v29 = vadd.f32 %v1181_v9, %v410_v27  ;;  %v348_v30 = vmul.f32 0.01, %v220_v21  ;;  %v221_v31 = vmul.f32 %v1795_v54, %v150_v23 }
  0x7e   :  { %v411_v32 = vsel %vm283_vm1, %v219_v20, %v347_v28  ;;  %v1188_v33 = vunpack.c.l.bf16 %v1220_v24  ;;  %v222_v34 = vmul.f32 %v1795_v54, %v151_v25  ;;  %v1189_v35 = vunpack.c.h.bf16 %v1220_v24 }
  0x7f   :  { %922 = vst.msk [vmem:[%s1950_s4 + $0xe8] sm:$0xf] %vm863_vm0, %v1056_v26  ;;  %v1057_v45 = vpack.c.bf16 %v602_v29, %v602_v29  ;;  %v603_v36 = vadd.f32 %v1184_v17, %v411_v32  ;;  %v412_v37 = vsel %vm284_vm2, %v220_v21, %v348_v30  ;;  %vm285_vm3 = vcmp.ge.f32.partialorder %v221_v31, 0.0 }
  0x80   :  { %v604_v38 = vadd.f32 %v1185_v22, %v412_v37  ;;  %v349_v39 = vmul.f32 0.01, %v221_v31  ;;  %vm286_vm4 = vcmp.ge.f32.partialorder %v222_v34, 0.0  ;;  %v350_v40 = vmul.f32 0.01, %v222_v34 }
  0x81   :  { %923 = vst.msk [vmem:[%s1950_s4 + $0xec] sm:$0xf] %vm863_vm0, %v1057_v45  ;;  %v1058_v41 = vpack.c.bf16 %v603_v36, %v603_v36 }
  0x82   :  { %v1059_v42 = vpack.c.bf16 %v604_v38, %v604_v38  ;;  %v413_v43 = vsel %vm285_vm3, %v221_v31, %v349_v39  ;;  %v414_v1 = vsel %vm286_vm4, %v222_v34, %v350_v40 }
  0x83   :  { %924 = vst.msk [vmem:[%s1950_s4 + $0xf0] sm:$0xf] %vm863_vm0, %v1058_v41  ;;  %v605_v54 = vadd.f32 %v1188_v33, %v413_v43  ;;  %v606_v44 = vadd.f32 %v1189_v35, %v414_v1 }
  0x84   :  { %925 = vst.msk [vmem:[%s1950_s4 + $0xf4] sm:$0xf] %vm863_vm0, %v1059_v42 }
  0x85   :  { %v1060_v46 = vpack.c.bf16 %v605_v54, %v605_v54  ;;  %v1061_v47 = vpack.c.bf16 %v606_v44, %v606_v44 }
  0x87   :  { %926 = vst.msk [vmem:[%s1950_s4 + $0xf8] sm:$0xf] %vm863_vm0, %v1060_v46  ;;  %927 = vst.msk [vmem:[%s1950_s4 + $0xfc] sm:$0xf] %vm863_vm0, %v1061_v47 }

// kernel: vae_forward.71
= control target key start
LH: loop header
LB: loop body
LE: loop exit
PB: predicated region body
PF: predicated region fallthrough
CT: control target
= control target key end

     0   :  { %vm188_vm0 = vcmask 60416   ;;  %s417_s0 = inlined_call_operand.vmem [shape: f32[128,8], index: 0, kind: input, shape index: {}]   ;;  %s418_s1 = inlined_call_operand.vmem [shape: f32[1,8], index: 1, kind: input, shape index: {}]   ;;  %s419_s2 = inlined_call_operand.vmem [shape: f32[1,8], index: 2, kind: input, shape index: {}]   ;;  %s420_s3 = inlined_call_operand.vmem [shape: bf16[128,8], index: 3, kind: output, shape index: {}]  }
   0x1   :  { %v14_v0 = vld [vmem:[%s417_s0] sm:$0xff]  ;;  %v15_v4 = vld [vmem:[%s417_s0 + $0x8] sm:$0xff]  ;;  %v16_v5 = vld [vmem:[%s417_s0 + $0x10] sm:$0xff] }
   0x2   :  { %v269_v1 = vld [vmem:[%s418_s1] ss:$0 sm:$0xff]  ;;  %v17_v6 = vld [vmem:[%s417_s0 + $0x18] sm:$0xff]  ;;  %v19_v11 = vld [vmem:[%s417_s0 + $0x28] sm:$0xff] }
   0x3   :  { %v274_v2 = vld [vmem:[%s419_s2] ss:$0 sm:$0xff]  ;;  %v37_v3 = vsub.f32 %v14_v0, %v269_v1  ;;  %v38_v7 = vsub.f32 %v15_v4, %v269_v1  ;;  %v39_v8 = vsub.f32 %v16_v5, %v269_v1  ;;  %v40_v9 = vsub.f32 %v17_v6, %v269_v1  ;;  %v20_v12 = vld [vmem:[%s417_s0 + $0x30] sm:$0xff]  ;;  %v21_v17 = vld [vmem:[%s417_s0 + $0x38] sm:$0xff] }
   0x4   :  { %v18_v10 = vld [vmem:[%s417_s0 + $0x20] sm:$0xff]  ;;  %v42_v15 = vsub.f32 %v19_v11, %v269_v1  ;;  %v43_v16 = vsub.f32 %v20_v12, %v269_v1  ;;  %v44_v21 = vsub.f32 %v21_v17, %v269_v1  ;;  %v23_v34 = vld [vmem:[%s417_s0 + $0x48] sm:$0xff]  ;;  %v24_v38 = vld [vmem:[%s417_s0 + $0x50] sm:$0xff] }
   0x5   :  { %v60_v13 = vmul.f32 %v274_v2, %v37_v3  ;;  %v41_v14 = vsub.f32 %v18_v10, %v269_v1  ;;  %v61_v18 = vmul.f32 %v274_v2, %v38_v7  ;;  %v62_v19 = vmul.f32 %v274_v2, %v39_v8  ;;  %v22_v33 = vld [vmem:[%s417_s0 + $0x40] sm:$0xff]  ;;  %v25_v47 = vld [vmem:[%s417_s0 + $0x58] sm:$0xff]  ;;  %v27_v62 = vld [vmem:[%s417_s0 + $0x68] sm:$0xff] }
   0x6   :  { %v63_v20 = vmul.f32 %v274_v2, %v40_v9  ;;  %v65_v24 = vmul.f32 %v274_v2, %v42_v15  ;;  %v66_v42 = vmul.f32 %v274_v2, %v43_v16  ;;  %v67_v44 = vmul.f32 %v274_v2, %v44_v21  ;;  %v26_v58 = vld [vmem:[%s417_s0 + $0x60] sm:$0xff]  ;;  %v28_v63 = vld [vmem:[%s417_s0 + $0x70] sm:$0xff]  ;;  %v29_v12 = vld [vmem:[%s417_s0 + $0x78] sm:$0xff] }
   0x7   :  { %vm76_vm1 = vcmp.ge.f32.partialorder %v60_v13, 0.0  ;;  %v92_v22 = vmul.f32 0.01, %v60_v13  ;;  %v64_v23 = vmul.f32 %v274_v2, %v41_v14  ;;  %vm77_vm2 = vcmp.ge.f32.partialorder %v61_v18, 0.0 }
   0x8   :  { %v93_v25 = vmul.f32 0.01, %v61_v18  ;;  %vm78_vm3 = vcmp.ge.f32.partialorder %v62_v19, 0.0  ;;  %v94_v26 = vmul.f32 0.01, %v62_v19  ;;  %vm79_vm4 = vcmp.ge.f32.partialorder %v63_v20, 0.0 }
   0x9   :  { %v108_v27 = vsel %vm76_vm1, %v60_v13, %v92_v22  ;;  %v95_v28 = vmul.f32 0.01, %v63_v20  ;;  %vm80_vm5 = vcmp.ge.f32.partialorder %v64_v23, 0.0  ;;  %v96_v32 = vmul.f32 0.01, %v64_v23 }
   0xa   :  { %v227_v29 = vpack.c.bf16 %v108_v27, %v108_v27  ;;  %v109_v30 = vsel %vm77_vm2, %v61_v18, %v93_v25  ;;  %v110_v31 = vsel %vm78_vm3, %v62_v19, %v94_v26  ;;  %vm81_vm6 = vcmp.ge.f32.partialorder %v65_v24, 0.0 }
   0xb   :  { %v228_v35 = vpack.c.bf16 %v109_v30, %v109_v30  ;;  %v229_v36 = vpack.c.bf16 %v110_v31, %v110_v31  ;;  %v111_v37 = vsel %vm79_vm4, %v63_v20, %v95_v28  ;;  %v112_v40 = vsel %vm80_vm5, %v64_v23, %v96_v32 }
   0xc   :  { %189 = vst.msk [vmem:[%s420_s3] sm:$0xf] %vm188_vm0, %v227_v29  ;;  %v230_v39 = vpack.c.bf16 %v111_v37, %v111_v37  ;;  %v97_v41 = vmul.f32 0.01, %v65_v24  ;;  %v231_v43 = vpack.c.bf16 %v112_v40, %v112_v40  ;;  %v45_v45 = vsub.f32 %v22_v33, %v269_v1 }
   0xd   :  { %190 = vst.msk [vmem:[%s420_s3 + $0x4] sm:$0xf] %vm188_vm0, %v228_v35  ;;  %191 = vst.msk [vmem:[%s420_s3 + $0x8] sm:$0xf] %vm188_vm0, %v229_v36  ;;  %v46_v46 = vsub.f32 %v23_v34, %v269_v1  ;;  %vm82_vm7 = vcmp.ge.f32.partialorder %v66_v42, 0.0  ;;  %v47_v50 = vsub.f32 %v24_v38, %v269_v1  ;;  %vm83_vm8 = vcmp.ge.f32.partialorder %v67_v44, 0.0 }
   0xe   :  { %192 = vst.msk [vmem:[%s420_s3 + $0xc] sm:$0xf] %vm188_vm0, %v230_v39  ;;  %v113_v48 = vsel %vm81_vm6, %v65_v24, %v97_v41  ;;  %v98_v49 = vmul.f32 0.01, %v66_v42  ;;  %193 = vst.msk [vmem:[%s420_s3 + $0x10] sm:$0xf] %vm188_vm0, %v231_v43  ;;  %v68_v53 = vmul.f32 %v274_v2, %v45_v45  ;;  %v48_v57 = vsub.f32 %v25_v47, %v269_v1 }
   0xf   :  { %v232_v51 = vpack.c.bf16 %v113_v48, %v113_v48  ;;  %v99_v52 = vmul.f32 0.01, %v67_v44  ;;  %v69_v55 = vmul.f32 %v274_v2, %v46_v46  ;;  %v70_v56 = vmul.f32 %v274_v2, %v47_v50 }
  0x10   :  { %v114_v54 = vsel %vm82_vm7, %v66_v42, %v98_v49  ;;  %vm84_vm9 = vcmp.ge.f32.partialorder %v68_v53, 0.0  ;;  %v100_v61 = vmul.f32 0.01, %v68_v53  ;;  %v71_v6 = vmul.f32 %v274_v2, %v48_v57 }
  0x11   :  { %194 = vst.msk [vmem:[%s420_s3 + $0x14] sm:$0xf] %vm188_vm0, %v232_v51  ;;  %v233_v59 = vpack.c.bf16 %v114_v54, %v114_v54  ;;  %v115_v60 = vsel %vm83_vm8, %v67_v44, %v99_v52  ;;  %vm85_vm10 = vcmp.ge.f32.partialorder %v69_v55, 0.0  ;;  %v101_v3 = vmul.f32 0.01, %v69_v55 }
  0x12   :  { %v234_v0 = vpack.c.bf16 %v115_v60, %v115_v60  ;;  %vm86_vm11 = vcmp.ge.f32.partialorder %v70_v56, 0.0  ;;  %v116_v4 = vsel %vm84_vm9, %v68_v53, %v100_v61  ;;  %v102_v5 = vmul.f32 0.01, %v70_v56 }
  0x13   :  { %195 = vst.msk [vmem:[%s420_s3 + $0x18] sm:$0xf] %vm188_vm0, %v233_v59  ;;  %v49_v7 = vsub.f32 %v26_v58, %v269_v1  ;;  %v235_v8 = vpack.c.bf16 %v116_v4, %v116_v4  ;;  %v117_v9 = vsel %vm85_vm10, %v69_v55, %v101_v3  ;;  %v50_v10 = vsub.f32 %v27_v62, %v269_v1 }
  0x14   :  { %196 = vst.msk [vmem:[%s420_s3 + $0x1c] sm:$0xf] %vm188_vm0, %v234_v0  ;;  %v51_v11 = vsub.f32 %v28_v63, %v269_v1  ;;  %v236_v13 = vpack.c.bf16 %v117_v9, %v117_v9  ;;  %v118_v14 = vsel %vm86_vm11, %v70_v56, %v102_v5  ;;  %vm87_vm12 = vcmp.ge.f32.partialorder %v71_v6, 0.0 }
  0x15   :  { %v103_v15 = vmul.f32 0.01, %v71_v6  ;;  %197 = vst.msk [vmem:[%s420_s3 + $0x20] sm:$0xf] %vm188_vm0, %v235_v8  ;;  %v237_v16 = vpack.c.bf16 %v118_v14, %v118_v14  ;;  %v72_v17 = vmul.f32 %v274_v2, %v49_v7  ;;  %v73_v18 = vmul.f32 %v274_v2, %v50_v10 }
  0x16   :  { %v74_v19 = vmul.f32 %v274_v2, %v51_v11  ;;  %198 = vst.msk [vmem:[%s420_s3 + $0x24] sm:$0xf] %vm188_vm0, %v236_v13  ;;  %v52_v21 = vsub.f32 %v29_v12, %v269_v1 }
  0x17   :  { %v119_v20 = vsel %vm87_vm12, %v71_v6, %v103_v15  ;;  %199 = vst.msk [vmem:[%s420_s3 + $0x28] sm:$0xf] %vm188_vm0, %v237_v16  ;;  %vm88_vm13 = vcmp.ge.f32.partialorder %v72_v17, 0.0  ;;  %v104_v23 = vmul.f32 0.01, %v72_v17  ;;  %vm89_vm14 = vcmp.ge.f32.partialorder %v73_v18, 0.0 }
  0x18   :  { %v238_v22 = vpack.c.bf16 %v119_v20, %v119_v20  ;;  %v105_v24 = vmul.f32 0.01, %v73_v18  ;;  %vm90_vm15 = vcmp.ge.f32.partialorder %v74_v19, 0.0  ;;  %v106_v25 = vmul.f32 0.01, %v74_v19 }
  0x19   :  { %v75_v26 = vmul.f32 %v274_v2, %v52_v21  ;;  %v120_v1 = vsel %vm88_vm13, %v72_v17, %v104_v23 }
  0x1a   :  { %200 = vst.msk [vmem:[%s420_s3 + $0x2c] sm:$0xf] %vm188_vm0, %v238_v22  ;;  %v239_v27 = vpack.c.bf16 %v120_v1, %v120_v1  ;;  %v121_v28 = vsel %vm89_vm14, %v73_v18, %v105_v24  ;;  %v122_v29 = vsel %vm90_vm15, %v74_v19, %v106_v25 }
  0x1b   :  { %vm91_vm1 = vcmp.ge.f32.partialorder %v75_v26, 0.0  ;;  %v240_v30 = vpack.c.bf16 %v121_v28, %v121_v28  ;;  %v241_v31 = vpack.c.bf16 %v122_v29, %v122_v29  ;;  %v107_v32 = vmul.f32 0.01, %v75_v26 }
  0x1c   :  { %201 = vst.msk [vmem:[%s420_s3 + $0x30] sm:$0xf] %vm188_vm0, %v239_v27 }
  0x1d   :  { %202 = vst.msk [vmem:[%s420_s3 + $0x34] sm:$0xf] %vm188_vm0, %v240_v30  ;;  %203 = vst.msk [vmem:[%s420_s3 + $0x38] sm:$0xf] %vm188_vm0, %v241_v31  ;;  %v123_v2 = vsel %vm91_vm1, %v75_v26, %v107_v32 }
  0x1e   :  { %v242_v33 = vpack.c.bf16 %v123_v2, %v123_v2 }
  0x20   :  { %204 = vst.msk [vmem:[%s420_s3 + $0x3c] sm:$0xf] %vm188_vm0, %v242_v33 }

// kernel: vae_forward.70
= control target key start
LH: loop header
LB: loop body
LE: loop exit
PB: predicated region body
PF: predicated region fallthrough
CT: control target
= control target key end

     0   :  { %vm121_vm0 = vcmask 1044480   ;;  %vm122_vm1 = vcmask 1045504   ;;  %v490_v1 = vmov 65535   ;;  %vm96_vm2 = vcmask 220160   ;;  %s729_s1 = inlined_call_operand.vmem [shape: bf16[27,8], index: 1, kind: input, shape index: {}]   ;;  %s730_s0 = inlined_call_operand.vmem [shape: bf16[128,27], index: 0, kind: input, shape index: {}]   ;;  %s731_s4 = inlined_call_operand.vmem [shape: f32[1,8], index: 4, kind: output, shape index: {1}]   ;;  %s732_s5 = inlined_call_operand.vmem [shape: f32[1,8], index: 5, kind: output, shape index: {2}]   ;;  %s733_s2 = inlined_call_operand.vmem [shape: f32[1,8], index: 2, kind: input, shape index: {}]   ;;  %s734_s3 = inlined_call_operand.vmem [shape: f32[128,8], index: 3, kind: output, shape index: {0}]  }
   0x1   :  { %v480_v0 = vld [vmem:[%s729_s1 + $0x8] sm:$0x3f]   ;;  %v123_v2 = vsel %vm121_vm0, 4294967295, %v490_v1  ;;  %v482_v4 = vld [vmem:[%s730_s0] sm:$0xff]   ;;  %v484_v10 = vld [vmem:[%s730_s0 + $0x10] sm:$0xff]   ;;  %vm313_vm3 = vcmask 57344  }
   0x2   :  { %v124_v3 = vsel %vm122_vm1, %v123_v2, 0  ;;  %v481_v6 = vld [vmem:[%s729_s1] sm:$0xff]   ;;  %458 = vmatprep.mubr.msk.bf16.mxu0 %vm96_vm2, %v482_v4  ;;  %v483_v8 = vld [vmem:[%s730_s0 + $0x8] sm:$0xff]   ;;  %v488_v11 = vld [vmem:[%s730_s0 + $0x30] sm:$0xff]   ;;  %v491_v14 = vmov 0.0   ;;  %vm225_vm4 = vcmask 64512  }
   0x3   :  { %v126_v5 = vand.u32 %v480_v0, %v124_v3  ;;  %v486_v7 = vld [vmem:[%s730_s0 + $0x20] sm:$0xff]   ;;  %v487_v9 = vld [vmem:[%s730_s0 + $0x28] sm:$0xff]   ;;  %v485_v12 = vld [vmem:[%s730_s0 + $0x18] sm:$0xff]   ;;  %314 = vst.msk [vmem:[%s731_s4] sm:$0x1] %vm313_vm3, %v491_v14 }
   0x4   :  { %466 = vmatprep.mubr.msk.bf16.mxu1 %vm96_vm2, %v486_v7  ;;  %v489_v13 = vld [vmem:[%s730_s0 + $0x38] sm:$0xff]   ;;  %315 = vst.msk [vmem:[%s732_s5] sm:$0x1] %vm313_vm3, %v491_v14  ;;  %v571_v15 = vld [vmem:[%s733_s2] ss:$0 sm:$0xff] }
   0x5   :  { %454 = vmatprep.subr.bf16.mxu0 %v126_v5  ;;  %474 = vmatprep.subr.bf16.mxu1 %v126_v5 }
   0x6   :  { %455 = vmatpush3.bf16.msra.mxu0 %v126_v5  ;;  %476 = vmatpush3.bf16.msra.mxu1 %v126_v5 }
   0x7   :  { %456 = vmatprep.subr.bf16.mxu0 %v481_v6  ;;  %475 = vmatprep.subr.bf16.mxu1 %v481_v6 }
   0xa   :  { %457 = vmatpush3.bf16.msra.mxu0 %v481_v6  ;;  %477 = vmatpush3.bf16.msra.mxu1 %v481_v6 }
   0xd   :  { %459 = vmatmul.mubr.msk.bf16.vlgmr.msra.gmra.mxu0 %vm96_vm2, %v483_v8  ;;  %467 = vmatmul.mubr.msk.bf16.vlgmr.msra.gmra.mxu1 %vm96_vm2, %v487_v9 }
   0xe   :  { %462 = vmatprep.mubr.msk.bf16.mxu0 %vm96_vm2, %v484_v10  ;;  %470 = vmatprep.mubr.msk.bf16.mxu1 %vm96_vm2, %v488_v11 }
  0x15   :  { %463 = vmatmul.mubr.msk.bf16.gmra.mxu0 %vm96_vm2, %v485_v12  ;;  %471 = vmatmul.mubr.msk.bf16.gmra.mxu1 %vm96_vm2, %v489_v13 }
  0xcd   :  { %v460_v16 = vpop.f32.mrf.mxu0  ;;  %v468_v17 = vpop.f32.mrf.mxu1 }
  0xce   :  { %v171_v18 = vadd.f32 %v460_v16, %v571_v15  ;;  %v575_v19 = vadd.f32 %v468_v17, %v571_v15 }
  0xcf   :  { %v162_v20 = vpop.f32.mrf.mxu0  ;;  %v194_v21 = vpop.f32.mrf.mxu1 }
  0xd0   :  { %228 = vst.msk [vmem:[%s734_s3 + $0x10] sm:$0xff] %vm225_vm4, %v171_v18  ;;  %v163_v22 = vadd.f32 %v571_v15, %v162_v20  ;;  %236 = vst.msk [vmem:[%s734_s3 + $0x50] sm:$0xff] %vm225_vm4, %v575_v19  ;;  %v588_v24 = vadd.f32 %v571_v15, %v194_v21  ;;  %v360_v32 = vmul.f32 %v171_v18, %v171_v18  ;;  %v320_v40 = vsel %vm225_vm4, %v171_v18, 0.0 }
  0xd1   :  { %v461_v23 = vpop.f32.mrf.mxu0  ;;  %v469_v25 = vpop.f32.mrf.mxu1 }
  0xd2   :  { %226 = vst.msk [vmem:[%s734_s3] sm:$0xff] %vm225_vm4, %v163_v22  ;;  %v174_v26 = vadd.f32 %v461_v23, %v571_v15  ;;  %234 = vst.msk [vmem:[%s734_s3 + $0x40] sm:$0xff] %vm225_vm4, %v588_v24  ;;  %v601_v28 = vadd.f32 %v469_v25, %v571_v15  ;;  %v358_v30 = vmul.f32 %v163_v22, %v163_v22  ;;  %v317_v36 = vsel %vm225_vm4, %v163_v22, 0.0 }
  0xd3   :  { %v165_v27 = vpop.f32.mrf.mxu0  ;;  %v197_v29 = vpop.f32.mrf.mxu1  ;;  %v377_v53 = vsel %vm225_vm4, %v360_v32, 0.0  ;;  %v366_v20 = vmul.f32 %v588_v24, %v588_v24 }
  0xd4   :  { %229 = vst.msk [vmem:[%s734_s3 + $0x18] sm:$0xff] %vm225_vm4, %v174_v26  ;;  %v166_v31 = vadd.f32 %v571_v15, %v165_v27  ;;  %237 = vst.msk [vmem:[%s734_s3 + $0x58] sm:$0xff] %vm225_vm4, %v601_v28  ;;  %v614_v34 = vadd.f32 %v571_v15, %v197_v29  ;;  %v374_v44 = vsel %vm225_vm4, %v358_v30, 0.0  ;;  %v361_v45 = vmul.f32 %v174_v26, %v174_v26 }
  0xd5   :  { %v464_v33 = vpop.f32.mrf.mxu0  ;;  %v472_v35 = vpop.f32.mrf.mxu1  ;;  %v322_v54 = vsel %vm225_vm4, %v174_v26, 0.0  ;;  %v368_v29 = vmul.f32 %v575_v19, %v575_v19  ;;  %v389_v30 = vsel %vm225_vm4, %v366_v20, 0.0 }
  0xd6   :  { %227 = vst.msk [vmem:[%s734_s3 + $0x8] sm:$0xff] %vm225_vm4, %v166_v31  ;;  %v318_v37 = vsel %vm225_vm4, %v166_v31, 0.0  ;;  %v359_v38 = vmul.f32 %v166_v31, %v166_v31  ;;  %v187_v39 = vadd.f32 %v464_v33, %v571_v15  ;;  %235 = vst.msk [vmem:[%s734_s3 + $0x48] sm:$0xff] %vm225_vm4, %v614_v34  ;;  %v637_v51 = vadd.f32 %v472_v35, %v571_v15 }
  0xd7   :  { %v319_v41 = vadd.f32 %v318_v37, %v317_v36  ;;  %v178_v42 = vpop.f32.mrf.mxu0  ;;  %v210_v43 = vpop.f32.mrf.mxu1  ;;  %v379_v60 = vsel %vm225_vm4, %v361_v45, 0.0  ;;  %v367_v25 = vmul.f32 %v614_v34, %v614_v34  ;;  %v334_v31 = vsel %vm225_vm4, %v614_v34, 0.0 }
  0xd8   :  { %v375_v46 = vsel %vm225_vm4, %v359_v38, 0.0  ;;  %232 = vst.msk [vmem:[%s734_s3 + $0x30] sm:$0xff] %vm225_vm4, %v187_v39  ;;  %v179_v47 = vadd.f32 %v571_v15, %v178_v42  ;;  %240 = vst.msk [vmem:[%s734_s3 + $0x70] sm:$0xff] %vm225_vm4, %v637_v51  ;;  %v364_v63 = vmul.f32 %v187_v39, %v187_v39  ;;  %v211_v2 = vadd.f32 %v571_v15, %v210_v43 }
  0xd9   :  { %v321_v48 = vadd.f32 %v320_v40, %v319_v41  ;;  %v376_v49 = vadd.f32 %v375_v46, %v374_v44  ;;  %v465_v50 = vpop.f32.mrf.mxu0  ;;  %v473_v52 = vpop.f32.mrf.mxu1  ;;  %v328_v10 = vsel %vm225_vm4, %v187_v39, 0.0  ;;  %v336_v35 = vsel %vm225_vm4, %v575_v19, 0.0 }
  0xda   :  { %230 = vst.msk [vmem:[%s734_s3 + $0x20] sm:$0xff] %vm225_vm4, %v179_v47  ;;  %v362_v55 = vmul.f32 %v179_v47, %v179_v47  ;;  %v190_v56 = vadd.f32 %v465_v50, %v571_v15  ;;  %v324_v61 = vsel %vm225_vm4, %v179_v47, 0.0  ;;  %v222_v7 = vadd.f32 %v473_v52, %v571_v15  ;;  %238 = vst.msk [vmem:[%s734_s3 + $0x60] sm:$0xff] %vm225_vm4, %v211_v2 }
  0xdb   :  { %v378_v57 = vadd.f32 %v377_v53, %v376_v49  ;;  %v323_v58 = vadd.f32 %v322_v54, %v321_v48  ;;  %v181_v59 = vpop.f32.mrf.mxu0  ;;  %v213_v3 = vpop.f32.mrf.mxu1  ;;  %v385_v17 = vsel %vm225_vm4, %v364_v63, 0.0  ;;  %v391_v36 = vsel %vm225_vm4, %v367_v25, 0.0 }
  0xdc   :  { %233 = vst.msk [vmem:[%s734_s3 + $0x38] sm:$0xff] %vm225_vm4, %v190_v56  ;;  %v182_v62 = vadd.f32 %v571_v15, %v181_v59  ;;  %v381_v4 = vsel %vm225_vm4, %v362_v55, 0.0  ;;  %v365_v11 = vmul.f32 %v190_v56, %v190_v56  ;;  %241 = vst.msk [vmem:[%s734_s3 + $0x78] sm:$0xff] %vm225_vm4, %v222_v7  ;;  %v214_v13 = vadd.f32 %v571_v15, %v213_v3 }
  0xdd   :  { %v325_v0 = vadd.f32 %v324_v61, %v323_v58  ;;  %v380_v1 = vadd.f32 %v379_v60, %v378_v57  ;;  %v330_v18 = vsel %vm225_vm4, %v190_v56, 0.0  ;;  %v332_v15 = vsel %vm225_vm4, %v588_v24, 0.0 }
  0xde   :  { %231 = vst.msk [vmem:[%s734_s3 + $0x28] sm:$0xff] %vm225_vm4, %v182_v62  ;;  %v326_v5 = vsel %vm225_vm4, %v182_v62, 0.0  ;;  %v363_v6 = vmul.f32 %v182_v62, %v182_v62  ;;  %239 = vst.msk [vmem:[%s734_s3 + $0x68] sm:$0xff] %vm225_vm4, %v214_v13  ;;  %v387_v23 = vsel %vm225_vm4, %v365_v11, 0.0  ;;  %v369_v24 = vmul.f32 %v601_v28, %v601_v28 }
  0xdf   :  { %v382_v8 = vadd.f32 %v381_v4, %v380_v1  ;;  %v327_v9 = vadd.f32 %v326_v5, %v325_v0  ;;  %v393_v39 = vsel %vm225_vm4, %v368_v29, 0.0  ;;  %v338_v40 = vsel %vm225_vm4, %v601_v28, 0.0 }
  0xe0   :  { %v383_v12 = vsel %vm225_vm4, %v363_v6, 0.0  ;;  %v370_v41 = vmul.f32 %v211_v2, %v211_v2  ;;  %v395_v43 = vsel %vm225_vm4, %v369_v24, 0.0  ;;  %v340_v44 = vsel %vm225_vm4, %v211_v2, 0.0 }
  0xe1   :  { %v329_v14 = vadd.f32 %v328_v10, %v327_v9  ;;  %v384_v16 = vadd.f32 %v383_v12, %v382_v8  ;;  %v371_v19 = vmul.f32 %v214_v13, %v214_v13  ;;  %v372_v47 = vmul.f32 %v637_v51, %v637_v51  ;;  %v316_v8 = vld [vmem:[%s731_s4] sm:$0x1] }
  0xe2   :  { %v397_v48 = vsel %vm225_vm4, %v370_v41, 0.0  ;;  %v342_v49 = vsel %vm225_vm4, %v214_v13, 0.0  ;;  %v344_v28 = vsel %vm225_vm4, %v637_v51, 0.0  ;;  %v373_v53 = vmul.f32 %v222_v7, %v222_v7  ;;  %v357_v10 = vld [vmem:[%s732_s5] sm:$0x1] }
  0xe3   :  { %v386_v21 = vadd.f32 %v385_v17, %v384_v16  ;;  %v331_v22 = vadd.f32 %v330_v18, %v329_v14  ;;  %v399_v54 = vsel %vm225_vm4, %v371_v19, 0.0  ;;  %v401_v57 = vsel %vm225_vm4, %v372_v47, 0.0 }
  0xe4   :  { %v346_v58 = vsel %vm225_vm4, %v222_v7, 0.0  ;;  %v403_v61 = vsel %vm225_vm4, %v373_v53, 0.0 }
  0xe5   :  { %v333_v26 = vadd.f32 %v332_v15, %v331_v22  ;;  %v388_v27 = vadd.f32 %v387_v23, %v386_v21 }
  0xe7   :  { %v335_v32 = vadd.f32 %v334_v31, %v333_v26  ;;  %v390_v33 = vadd.f32 %v389_v30, %v388_v27 }
  0xe9   :  { %v337_v37 = vadd.f32 %v336_v35, %v335_v32  ;;  %v392_v38 = vadd.f32 %v391_v36, %v390_v33 }
  0xeb   :  { %v394_v42 = vadd.f32 %v393_v39, %v392_v38  ;;  %v339_v34 = vadd.f32 %v338_v40, %v337_v37 }
  0xed   :  { %v341_v45 = vadd.f32 %v340_v44, %v339_v34  ;;  %v396_v46 = vadd.f32 %v395_v43, %v394_v42 }
  0xef   :  { %v398_v50 = vadd.f32 %v397_v48, %v396_v46  ;;  %v343_v52 = vadd.f32 %v342_v49, %v341_v45 }
  0xf1   :  { %v345_v55 = vadd.f32 %v344_v28, %v343_v52  ;;  %v400_v56 = vadd.f32 %v399_v54, %v398_v50 }
  0xf3   :  { %v347_v59 = vadd.f32 %v346_v58, %v345_v55  ;;  %v402_v60 = vadd.f32 %v401_v57, %v400_v56 }
  0xf5   :  { %v348_v62 = vrot.slane %v347_v59, 4  ;;  %v404_v63 = vadd.f32 %v403_v61, %v402_v60 }
  0xf7   :  { %v349_v0 = vadd.f32 %v348_v62, %v347_v59  ;;  %v405_v1 = vrot.slane %v404_v63, 4 }
  0xf9   :  { %v350_v2 = vrot.slane %v349_v0, 2  ;;  %v406_v3 = vadd.f32 %v405_v1, %v404_v63 }
  0xfb   :  { %v351_v51 = vadd.f32 %v350_v2, %v349_v0  ;;  %v407_v4 = vrot.slane %v406_v3, 2 }
  0xfd   :  { %v352_v5 = vrot.slane %v351_v51, 1  ;;  %v408_v6 = vadd.f32 %v407_v4, %v406_v3 }
  0xff   :  { %v353_v9 = vadd.f32 %v352_v5, %v351_v51  ;;  %v409_v7 = vrot.slane %v408_v6, 1 }
 0x101   :  { %v354_v11 = vadd.f32 %v353_v9, %v316_v8  ;;  %v410_v12 = vadd.f32 %v409_v7, %v408_v6 }
 0x103   :  { %356 = vst.msk [vmem:[%s731_s4] sm:$0x1] %vm313_vm3, %v354_v11  ;;  %v411_v13 = vadd.f32 %v410_v12, %v357_v10 }
 0x105   :  { %412 = vst.msk [vmem:[%s732_s5] sm:$0x1] %vm313_vm3, %v411_v13 }

// kernel: vae_forward.75
= control target key start
LH: loop header
LB: loop body
LE: loop exit
PB: predicated region body
PF: predicated region fallthrough
CT: control target
= control target key end

     0   :  { %vm239_vm0 = vcmask 60416   ;;  %s537_s0 = inlined_call_operand.vmem [shape: f32[128,8], index: 0, kind: input, shape index: {}]   ;;  %s538_s1 = inlined_call_operand.vmem [shape: f32[1,8], index: 1, kind: input, shape index: {}]   ;;  %s539_s2 = inlined_call_operand.vmem [shape: f32[1,8], index: 2, kind: input, shape index: {}]   ;;  %s540_s3 = inlined_call_operand.vmem [shape: bf16[128,8], index: 3, kind: input, shape index: {}]   ;;  %s541_s4 = inlined_call_operand.vmem [shape: bf16[128,8], index: 4, kind: output, shape index: {}]  }
   0x1   :  { %v17_v0 = vld [vmem:[%s537_s0] sm:$0xff]  ;;  %v18_v5 = vld [vmem:[%s537_s0 + $0x8] sm:$0xff]  ;;  %v19_v6 = vld [vmem:[%s537_s0 + $0x10] sm:$0xff] }
   0x2   :  { %v364_v1 = vld [vmem:[%s538_s1] ss:$0 sm:$0xff]  ;;  %v326_v11 = vld [vmem:[%s540_s3 + $0x8] sm:$0xff]   ;;  %v20_v12 = vld [vmem:[%s537_s0 + $0x18] sm:$0xff] }
   0x3   :  { %v369_v2 = vld [vmem:[%s539_s2] ss:$0 sm:$0xff]  ;;  %v40_v3 = vsub.f32 %v17_v0, %v364_v1  ;;  %v41_v8 = vsub.f32 %v18_v5, %v364_v1  ;;  %v42_v10 = vsub.f32 %v19_v6, %v364_v1  ;;  %v300_v15 = vunpack.c.l.bf16 %v326_v11  ;;  %v327_v18 = vld [vmem:[%s540_s3 + $0x10] sm:$0xff]   ;;  %v22_v19 = vld [vmem:[%s537_s0 + $0x28] sm:$0xff] }
   0x4   :  { %v295_v4 = vld [vmem:[%s540_s3] sm:$0xff]   ;;  %v43_v16 = vsub.f32 %v20_v12, %v364_v1  ;;  %v301_v17 = vunpack.c.h.bf16 %v326_v11  ;;  %v304_v23 = vunpack.c.l.bf16 %v327_v18  ;;  %v45_v26 = vsub.f32 %v22_v19, %v364_v1  ;;  %v23_v39 = vld [vmem:[%s537_s0 + $0x30] sm:$0xff]  ;;  %v328_v43 = vld [vmem:[%s540_s3 + $0x18] sm:$0xff]  }
   0x5   :  { %v296_v7 = vunpack.c.l.bf16 %v295_v4  ;;  %v297_v9 = vunpack.c.h.bf16 %v295_v4  ;;  %v21_v13 = vld [vmem:[%s537_s0 + $0x20] sm:$0xff]  ;;  %v63_v14 = vmul.f32 %v369_v2, %v40_v3  ;;  %v64_v20 = vmul.f32 %v369_v2, %v41_v8  ;;  %v24_v44 = vld [vmem:[%s537_s0 + $0x38] sm:$0xff]  ;;  %v26_v54 = vld [vmem:[%s537_s0 + $0x48] sm:$0xff] }
   0x6   :  { %v65_v21 = vmul.f32 %v369_v2, %v42_v10  ;;  %v44_v22 = vsub.f32 %v21_v13, %v364_v1  ;;  %v66_v25 = vmul.f32 %v369_v2, %v43_v16  ;;  %v68_v35 = vmul.f32 %v369_v2, %v45_v26  ;;  %v25_v49 = vld [vmem:[%s537_s0 + $0x40] sm:$0xff]  ;;  %v27_v63 = vld [vmem:[%s537_s0 + $0x50] sm:$0xff]  ;;  %v28_v12 = vld [vmem:[%s537_s0 + $0x58] sm:$0xff] }
   0x7   :  { %vm79_vm1 = vcmp.ge.f32.partialorder %v63_v14, 0.0  ;;  %v95_v24 = vmul.f32 0.01, %v63_v14  ;;  %vm80_vm2 = vcmp.ge.f32.partialorder %v64_v20, 0.0  ;;  %v96_v27 = vmul.f32 0.01, %v64_v20 }
   0x8   :  { %vm81_vm3 = vcmp.ge.f32.partialorder %v65_v21, 0.0  ;;  %v97_v28 = vmul.f32 0.01, %v65_v21  ;;  %vm82_vm4 = vcmp.ge.f32.partialorder %v66_v25, 0.0  ;;  %v98_v30 = vmul.f32 0.01, %v66_v25 }
   0x9   :  { %v111_v29 = vsel %vm79_vm1, %v63_v14, %v95_v24  ;;  %v67_v31 = vmul.f32 %v369_v2, %v44_v22  ;;  %v112_v33 = vsel %vm80_vm2, %v64_v20, %v96_v27  ;;  %vm84_vm6 = vcmp.ge.f32.partialorder %v68_v35, 0.0  ;;  %v329_v53 = vld [vmem:[%s540_s3 + $0x20] sm:$0xff]   ;;  %v330_v16 = vld [vmem:[%s540_s3 + $0x28] sm:$0xff]  }
   0xa   :  { %v159_v32 = vadd.f32 %v296_v7, %v111_v29  ;;  %v113_v34 = vsel %vm81_vm3, %v65_v21, %v97_v28  ;;  %v160_v36 = vadd.f32 %v297_v9, %v112_v33  ;;  %v114_v38 = vsel %vm82_vm4, %v66_v25, %v98_v30  ;;  %v29_v24 = vld [vmem:[%s537_s0 + $0x60] sm:$0xff]  ;;  %v331_v29 = vld [vmem:[%s540_s3 + $0x30] sm:$0xff]   ;;  %v30_v30 = vld [vmem:[%s537_s0 + $0x68] sm:$0xff] }
   0xb   :  { %v161_v37 = vadd.f32 %v300_v15, %v113_v34  ;;  %vm83_vm5 = vcmp.ge.f32.partialorder %v67_v31, 0.0  ;;  %v162_v41 = vadd.f32 %v301_v17, %v114_v38  ;;  %v99_v42 = vmul.f32 0.01, %v67_v31  ;;  %v31_v38 = vld [vmem:[%s537_s0 + $0x70] sm:$0xff] }
   0xc   :  { %v278_v40 = vpack.c.bf16 %v159_v32, %v159_v32  ;;  %v279_v45 = vpack.c.bf16 %v160_v36, %v160_v36  ;;  %v100_v47 = vmul.f32 0.01, %v68_v35  ;;  %v305_v48 = vunpack.c.h.bf16 %v327_v18 }
   0xd   :  { %v280_v46 = vpack.c.bf16 %v161_v37, %v161_v37  ;;  %v281_v50 = vpack.c.bf16 %v162_v41, %v162_v41  ;;  %v115_v51 = vsel %vm83_vm5, %v67_v31, %v99_v42  ;;  %v46_v52 = vsub.f32 %v23_v39, %v364_v1  ;;  %v32_v39 = vld [vmem:[%s537_s0 + $0x78] sm:$0xff] }
   0xe   :  { %240 = vst.msk [vmem:[%s541_s4] sm:$0xf] %vm239_vm0, %v278_v40  ;;  %241 = vst.msk [vmem:[%s541_s4 + $0x4] sm:$0xf] %vm239_vm0, %v279_v45  ;;  %v163_v55 = vadd.f32 %v304_v23, %v115_v51  ;;  %v116_v56 = vsel %vm84_vm6, %v68_v35, %v100_v47  ;;  %v308_v57 = vunpack.c.l.bf16 %v328_v43  ;;  %v47_v58 = vsub.f32 %v24_v44, %v364_v1 }
   0xf   :  { %242 = vst.msk [vmem:[%s541_s4 + $0x8] sm:$0xf] %vm239_vm0, %v280_v46  ;;  %243 = vst.msk [vmem:[%s541_s4 + $0xc] sm:$0xf] %vm239_vm0, %v281_v50  ;;  %v164_v59 = vadd.f32 %v305_v48, %v116_v56  ;;  %v69_v60 = vmul.f32 %v369_v2, %v46_v52  ;;  %v309_v61 = vunpack.c.h.bf16 %v328_v43  ;;  %v48_v62 = vsub.f32 %v25_v49, %v364_v1  ;;  %v332_v50 = vld [vmem:[%s540_s3 + $0x38] sm:$0xff]  }
  0x10   :  { %v282_v0 = vpack.c.bf16 %v163_v55, %v163_v55  ;;  %v70_v3 = vmul.f32 %v369_v2, %v47_v58  ;;  %v312_v4 = vunpack.c.l.bf16 %v329_v53  ;;  %v49_v5 = vsub.f32 %v26_v54, %v364_v1 }
  0x11   :  { %v283_v6 = vpack.c.bf16 %v164_v59, %v164_v59  ;;  %vm85_vm7 = vcmp.ge.f32.partialorder %v69_v60, 0.0  ;;  %v101_v7 = vmul.f32 0.01, %v69_v60  ;;  %v71_v8 = vmul.f32 %v369_v2, %v48_v62 }
  0x12   :  { %244 = vst.msk [vmem:[%s541_s4 + $0x10] sm:$0xf] %vm239_vm0, %v282_v0  ;;  %vm86_vm8 = vcmp.ge.f32.partialorder %v70_v3, 0.0  ;;  %v102_v9 = vmul.f32 0.01, %v70_v3  ;;  %v72_v10 = vmul.f32 %v369_v2, %v49_v5  ;;  %v50_v11 = vsub.f32 %v27_v63, %v364_v1 }
  0x13   :  { %245 = vst.msk [vmem:[%s541_s4 + $0x14] sm:$0xf] %vm239_vm0, %v283_v6  ;;  %v117_v13 = vsel %vm85_vm7, %v69_v60, %v101_v7  ;;  %vm87_vm9 = vcmp.ge.f32.partialorder %v71_v8, 0.0  ;;  %v103_v14 = vmul.f32 0.01, %v71_v8  ;;  %v313_v15 = vunpack.c.h.bf16 %v329_v53 }
  0x14   :  { %v165_v17 = vadd.f32 %v308_v57, %v117_v13  ;;  %v118_v18 = vsel %vm86_vm8, %v70_v3, %v102_v9  ;;  %vm88_vm10 = vcmp.ge.f32.partialorder %v72_v10, 0.0  ;;  %v104_v19 = vmul.f32 0.01, %v72_v10 }
  0x15   :  { %v166_v20 = vadd.f32 %v309_v61, %v118_v18  ;;  %v119_v21 = vsel %vm87_vm9, %v71_v8, %v103_v14  ;;  %v73_v22 = vmul.f32 %v369_v2, %v50_v11  ;;  %v51_v23 = vsub.f32 %v28_v12, %v364_v1 }
  0x16   :  { %v284_v25 = vpack.c.bf16 %v165_v17, %v165_v17  ;;  %v167_v26 = vadd.f32 %v312_v4, %v119_v21  ;;  %v120_v27 = vsel %vm88_vm10, %v72_v10, %v104_v19  ;;  %v316_v28 = vunpack.c.l.bf16 %v330_v16 }
  0x17   :  { %v285_v31 = vpack.c.bf16 %v166_v20, %v166_v20  ;;  %v168_v32 = vadd.f32 %v313_v15, %v120_v27  ;;  %vm89_vm11 = vcmp.ge.f32.partialorder %v73_v22, 0.0  ;;  %v105_v33 = vmul.f32 0.01, %v73_v22 }
  0x18   :  { %246 = vst.msk [vmem:[%s541_s4 + $0x18] sm:$0xf] %vm239_vm0, %v284_v25  ;;  %v286_v34 = vpack.c.bf16 %v167_v26, %v167_v26  ;;  %v74_v35 = vmul.f32 %v369_v2, %v51_v23  ;;  %v317_v36 = vunpack.c.h.bf16 %v330_v16  ;;  %v52_v37 = vsub.f32 %v29_v24, %v364_v1 }
  0x19   :  { %247 = vst.msk [vmem:[%s541_s4 + $0x1c] sm:$0xf] %vm239_vm0, %v285_v31  ;;  %v287_v40 = vpack.c.bf16 %v168_v32, %v168_v32  ;;  %v121_v41 = vsel %vm89_vm11, %v73_v22, %v105_v33  ;;  %v320_v42 = vunpack.c.l.bf16 %v331_v29  ;;  %v53_v43 = vsub.f32 %v30_v30, %v364_v1 }
  0x1a   :  { %248 = vst.msk [vmem:[%s541_s4 + $0x20] sm:$0xf] %vm239_vm0, %v286_v34  ;;  %v169_v44 = vadd.f32 %v316_v28, %v121_v41  ;;  %vm90_vm12 = vcmp.ge.f32.partialorder %v74_v35, 0.0  ;;  %v106_v45 = vmul.f32 0.01, %v74_v35  ;;  %v75_v46 = vmul.f32 %v369_v2, %v52_v37 }
  0x1b   :  { %249 = vst.msk [vmem:[%s541_s4 + $0x24] sm:$0xf] %vm239_vm0, %v287_v40  ;;  %v76_v47 = vmul.f32 %v369_v2, %v53_v43  ;;  %v321_v48 = vunpack.c.h.bf16 %v331_v29  ;;  %v54_v49 = vsub.f32 %v31_v38, %v364_v1  ;;  %v55_v51 = vsub.f32 %v32_v39, %v364_v1 }
  0x1c   :  { %v288_v52 = vpack.c.bf16 %v169_v44, %v169_v44  ;;  %v122_v53 = vsel %vm90_vm12, %v74_v35, %v106_v45  ;;  %vm91_vm13 = vcmp.ge.f32.partialorder %v75_v46, 0.0  ;;  %v107_v54 = vmul.f32 0.01, %v75_v46 }
  0x1d   :  { %v170_v55 = vadd.f32 %v317_v36, %v122_v53  ;;  %vm92_vm14 = vcmp.ge.f32.partialorder %v76_v47, 0.0  ;;  %v108_v56 = vmul.f32 0.01, %v76_v47  ;;  %v77_v57 = vmul.f32 %v369_v2, %v54_v49 }
  0x1e   :  { %250 = vst.msk [vmem:[%s541_s4 + $0x28] sm:$0xf] %vm239_vm0, %v288_v52  ;;  %v123_v58 = vsel %vm91_vm13, %v75_v46, %v107_v54  ;;  %v324_v59 = vunpack.c.l.bf16 %v332_v50  ;;  %v78_v60 = vmul.f32 %v369_v2, %v55_v51  ;;  %v325_v61 = vunpack.c.h.bf16 %v332_v50 }
  0x1f   :  { %v289_v1 = vpack.c.bf16 %v170_v55, %v170_v55  ;;  %v171_v62 = vadd.f32 %v320_v42, %v123_v58  ;;  %v124_v63 = vsel %vm92_vm14, %v76_v47, %v108_v56  ;;  %vm93_vm15 = vcmp.ge.f32.partialorder %v77_v57, 0.0 }
  0x20   :  { %v172_v0 = vadd.f32 %v321_v48, %v124_v63  ;;  %v109_v3 = vmul.f32 0.01, %v77_v57  ;;  %vm94_vm1 = vcmp.ge.f32.partialorder %v78_v60, 0.0  ;;  %v110_v4 = vmul.f32 0.01, %v78_v60 }
  0x21   :  { %251 = vst.msk [vmem:[%s541_s4 + $0x2c] sm:$0xf] %vm239_vm0, %v289_v1  ;;  %v290_v5 = vpack.c.bf16 %v171_v62, %v171_v62 }
  0x22   :  { %v291_v6 = vpack.c.bf16 %v172_v0, %v172_v0  ;;  %v125_v7 = vsel %vm93_vm15, %v77_v57, %v109_v3  ;;  %v126_v8 = vsel %vm94_vm1, %v78_v60, %v110_v4 }
  0x23   :  { %252 = vst.msk [vmem:[%s541_s4 + $0x30] sm:$0xf] %vm239_vm0, %v290_v5  ;;  %v173_v2 = vadd.f32 %v324_v59, %v125_v7  ;;  %v174_v9 = vadd.f32 %v325_v61, %v126_v8 }
  0x24   :  { %253 = vst.msk [vmem:[%s541_s4 + $0x34] sm:$0xf] %vm239_vm0, %v291_v6 }
  0x25   :  { %v292_v10 = vpack.c.bf16 %v173_v2, %v173_v2  ;;  %v293_v11 = vpack.c.bf16 %v174_v9, %v174_v9 }
  0x27   :  { %254 = vst.msk [vmem:[%s541_s4 + $0x38] sm:$0xf] %vm239_vm0, %v292_v10  ;;  %255 = vst.msk [vmem:[%s541_s4 + $0x3c] sm:$0xf] %vm239_vm0, %v293_v11 }

// kernel: vae_forward.72
= control target key start
LH: loop header
LB: loop body
LE: loop exit
PB: predicated region body
PF: predicated region fallthrough
CT: control target
= control target key end

     0   :  { %vm142_vm0 = vcmask 1043456   ;;  %vm117_vm1 = vcmask 588800   ;;  %vm331_vm2 = vcmask 57344   ;;  %v530_v14 = vmov 0.0   ;;  %s777_s1 = inlined_call_operand.vmem [shape: bf16[72,8], index: 1, kind: input, shape index: {}]   ;;  %s778_s0 = inlined_call_operand.vmem [shape: bf16[128,72], index: 0, kind: input, shape index: {}]   ;;  %s779_s4 = inlined_call_operand.vmem [shape: f32[1,8], index: 4, kind: output, shape index: {1}]   ;;  %s780_s5 = inlined_call_operand.vmem [shape: f32[1,8], index: 5, kind: output, shape index: {2}]   ;;  %s781_s2 = inlined_call_operand.vmem [shape: f32[1,8], index: 2, kind: input, shape index: {}]   ;;  %s782_s3 = inlined_call_operand.vmem [shape: f32[128,8], index: 3, kind: output, shape index: {0}]  }
   0x1   :  { %v517_v0 = vld [vmem:[%s777_s1 + $0x20] ss:$0 sps:$4 sm:$0xff]   ;;  %v518_v1 = vld [vmem:[%s777_s1 + $0x18] sm:$0xff]   ;;  %v519_v3 = vld [vmem:[%s777_s1 + $0x10] sm:$0xff]   ;;  %332 = vst.msk [vmem:[%s779_s4] sm:$0x1] %vm331_vm2, %v530_v14 }
   0x2   :  { %514 = vmatprep.subr.msk.bf16.mxu0 %vm142_vm0, %v517_v0  ;;  %v144_v2 = vsel %vm142_vm0, %v517_v0, 0  ;;  %515 = vmatprep.subr.msk.bf16.mxu1 %vm142_vm0, %v517_v0  ;;  %v522_v4 = vld [vmem:[%s778_s0] sm:$0xff]   ;;  %v520_v5 = vld [vmem:[%s777_s1 + $0x8] sm:$0xff]   ;;  %v524_v10 = vld [vmem:[%s778_s0 + $0x10] sm:$0xff]   ;;  %333 = vst.msk [vmem:[%s780_s5] sm:$0x1] %vm331_vm2, %v530_v14 }
   0x3   :  { %479 = vmatpush3.bf16.msra.mxu0 %v144_v2  ;;  %509 = vmatpush3.bf16.msra.mxu1 %v144_v2  ;;  %v526_v6 = vld [vmem:[%s778_s0 + $0x20] sm:$0xff]   ;;  %v523_v8 = vld [vmem:[%s778_s0 + $0x8] sm:$0xff]   ;;  %v528_v11 = vld [vmem:[%s778_s0 + $0x30] sm:$0xff]   ;;  %vm243_vm3 = vcmask 64512  }
   0x4   :  { %480 = vmatprep.subr.bf16.mxu0 %v518_v1  ;;  %505 = vmatprep.subr.bf16.mxu1 %v518_v1  ;;  %v521_v7 = vld [vmem:[%s777_s1] sm:$0xff]   ;;  %v527_v9 = vld [vmem:[%s778_s0 + $0x28] sm:$0xff]   ;;  %v525_v12 = vld [vmem:[%s778_s0 + $0x18] sm:$0xff]  }
   0x5   :  { %488 = vmatprep.mubr.msk.bf16.mxu0 %vm117_vm1, %v522_v4  ;;  %496 = vmatprep.mubr.msk.bf16.mxu1 %vm117_vm1, %v526_v6  ;;  %v529_v13 = vld [vmem:[%s778_s0 + $0x38] sm:$0xff]   ;;  %v619_v15 = vld [vmem:[%s781_s2] ss:$0 sm:$0xff] }
   0x7   :  { %481 = vmatpush3.bf16.msra.mxu0 %v518_v1  ;;  %510 = vmatpush3.bf16.msra.mxu1 %v518_v1 }
   0x8   :  { %482 = vmatprep.subr.bf16.mxu0 %v519_v3  ;;  %506 = vmatprep.subr.bf16.mxu1 %v519_v3 }
   0xb   :  { %483 = vmatpush3.bf16.msra.mxu0 %v519_v3  ;;  %511 = vmatpush3.bf16.msra.mxu1 %v519_v3 }
   0xc   :  { %484 = vmatprep.subr.bf16.mxu0 %v520_v5  ;;  %507 = vmatprep.subr.bf16.mxu1 %v520_v5 }
   0xf   :  { %485 = vmatpush3.bf16.msra.mxu0 %v520_v5  ;;  %512 = vmatpush3.bf16.msra.mxu1 %v520_v5 }
  0x10   :  { %486 = vmatprep.subr.bf16.mxu0 %v521_v7  ;;  %508 = vmatprep.subr.bf16.mxu1 %v521_v7 }
  0x13   :  { %487 = vmatpush3.bf16.msra.mxu0 %v521_v7  ;;  %513 = vmatpush3.bf16.msra.mxu1 %v521_v7 }
  0x16   :  { %489 = vmatmul.mubr.msk.bf16.vlgmr.msra.gmra.mxu0 %vm117_vm1, %v523_v8  ;;  %497 = vmatmul.mubr.msk.bf16.vlgmr.msra.gmra.mxu1 %vm117_vm1, %v527_v9 }
  0x17   :  { %492 = vmatprep.mubr.msk.bf16.mxu0 %vm117_vm1, %v524_v10  ;;  %500 = vmatprep.mubr.msk.bf16.mxu1 %vm117_vm1, %v528_v11 }
  0x1e   :  { %493 = vmatmul.mubr.msk.bf16.gmra.mxu0 %vm117_vm1, %v525_v12  ;;  %501 = vmatmul.mubr.msk.bf16.gmra.mxu1 %vm117_vm1, %v529_v13 }
  0xd6   :  { %v490_v16 = vpop.f32.mrf.mxu0  ;;  %v498_v17 = vpop.f32.mrf.mxu1 }
  0xd7   :  { %v189_v18 = vadd.f32 %v490_v16, %v619_v15  ;;  %v623_v19 = vadd.f32 %v498_v17, %v619_v15 }
  0xd8   :  { %v180_v20 = vpop.f32.mrf.mxu0  ;;  %v212_v21 = vpop.f32.mrf.mxu1 }
  0xd9   :  { %246 = vst.msk [vmem:[%s782_s3 + $0x10] sm:$0xff] %vm243_vm3, %v189_v18  ;;  %v181_v22 = vadd.f32 %v619_v15, %v180_v20  ;;  %254 = vst.msk [vmem:[%s782_s3 + $0x50] sm:$0xff] %vm243_vm3, %v623_v19  ;;  %v636_v24 = vadd.f32 %v619_v15, %v212_v21  ;;  %v378_v32 = vmul.f32 %v189_v18, %v189_v18  ;;  %v338_v40 = vsel %vm243_vm3, %v189_v18, 0.0 }
  0xda   :  { %v491_v23 = vpop.f32.mrf.mxu0  ;;  %v499_v25 = vpop.f32.mrf.mxu1 }
  0xdb   :  { %244 = vst.msk [vmem:[%s782_s3] sm:$0xff] %vm243_vm3, %v181_v22  ;;  %v192_v26 = vadd.f32 %v491_v23, %v619_v15  ;;  %252 = vst.msk [vmem:[%s782_s3 + $0x40] sm:$0xff] %vm243_vm3, %v636_v24  ;;  %v649_v28 = vadd.f32 %v499_v25, %v619_v15  ;;  %v376_v30 = vmul.f32 %v181_v22, %v181_v22  ;;  %v335_v36 = vsel %vm243_vm3, %v181_v22, 0.0 }
  0xdc   :  { %v183_v27 = vpop.f32.mrf.mxu0  ;;  %v215_v29 = vpop.f32.mrf.mxu1  ;;  %v395_v53 = vsel %vm243_vm3, %v378_v32, 0.0  ;;  %v384_v20 = vmul.f32 %v636_v24, %v636_v24 }
  0xdd   :  { %247 = vst.msk [vmem:[%s782_s3 + $0x18] sm:$0xff] %vm243_vm3, %v192_v26  ;;  %v184_v31 = vadd.f32 %v619_v15, %v183_v27  ;;  %255 = vst.msk [vmem:[%s782_s3 + $0x58] sm:$0xff] %vm243_vm3, %v649_v28  ;;  %v662_v34 = vadd.f32 %v619_v15, %v215_v29  ;;  %v392_v44 = vsel %vm243_vm3, %v376_v30, 0.0  ;;  %v379_v45 = vmul.f32 %v192_v26, %v192_v26 }
  0xde   :  { %v494_v33 = vpop.f32.mrf.mxu0  ;;  %v502_v35 = vpop.f32.mrf.mxu1  ;;  %v340_v54 = vsel %vm243_vm3, %v192_v26, 0.0  ;;  %v386_v29 = vmul.f32 %v623_v19, %v623_v19  ;;  %v407_v30 = vsel %vm243_vm3, %v384_v20, 0.0 }
  0xdf   :  { %245 = vst.msk [vmem:[%s782_s3 + $0x8] sm:$0xff] %vm243_vm3, %v184_v31  ;;  %v336_v37 = vsel %vm243_vm3, %v184_v31, 0.0  ;;  %v377_v38 = vmul.f32 %v184_v31, %v184_v31  ;;  %v205_v39 = vadd.f32 %v494_v33, %v619_v15  ;;  %253 = vst.msk [vmem:[%s782_s3 + $0x48] sm:$0xff] %vm243_vm3, %v662_v34  ;;  %v685_v51 = vadd.f32 %v502_v35, %v619_v15 }
  0xe0   :  { %v337_v41 = vadd.f32 %v336_v37, %v335_v36  ;;  %v196_v42 = vpop.f32.mrf.mxu0  ;;  %v228_v43 = vpop.f32.mrf.mxu1  ;;  %v397_v60 = vsel %vm243_vm3, %v379_v45, 0.0  ;;  %v385_v25 = vmul.f32 %v662_v34, %v662_v34  ;;  %v352_v31 = vsel %vm243_vm3, %v662_v34, 0.0 }
  0xe1   :  { %v393_v46 = vsel %vm243_vm3, %v377_v38, 0.0  ;;  %250 = vst.msk [vmem:[%s782_s3 + $0x30] sm:$0xff] %vm243_vm3, %v205_v39  ;;  %v197_v47 = vadd.f32 %v619_v15, %v196_v42  ;;  %258 = vst.msk [vmem:[%s782_s3 + $0x70] sm:$0xff] %vm243_vm3, %v685_v51  ;;  %v382_v63 = vmul.f32 %v205_v39, %v205_v39  ;;  %v229_v2 = vadd.f32 %v619_v15, %v228_v43 }
  0xe2   :  { %v339_v48 = vadd.f32 %v338_v40, %v337_v41  ;;  %v394_v49 = vadd.f32 %v393_v46, %v392_v44  ;;  %v495_v50 = vpop.f32.mrf.mxu0  ;;  %v503_v52 = vpop.f32.mrf.mxu1  ;;  %v346_v10 = vsel %vm243_vm3, %v205_v39, 0.0  ;;  %v354_v35 = vsel %vm243_vm3, %v623_v19, 0.0 }
  0xe3   :  { %248 = vst.msk [vmem:[%s782_s3 + $0x20] sm:$0xff] %vm243_vm3, %v197_v47  ;;  %v380_v55 = vmul.f32 %v197_v47, %v197_v47  ;;  %v208_v56 = vadd.f32 %v495_v50, %v619_v15  ;;  %v342_v61 = vsel %vm243_vm3, %v197_v47, 0.0  ;;  %v240_v7 = vadd.f32 %v503_v52, %v619_v15  ;;  %256 = vst.msk [vmem:[%s782_s3 + $0x60] sm:$0xff] %vm243_vm3, %v229_v2 }
  0xe4   :  { %v396_v57 = vadd.f32 %v395_v53, %v394_v49  ;;  %v341_v58 = vadd.f32 %v340_v54, %v339_v48  ;;  %v199_v59 = vpop.f32.mrf.mxu0  ;;  %v231_v3 = vpop.f32.mrf.mxu1  ;;  %v403_v17 = vsel %vm243_vm3, %v382_v63, 0.0  ;;  %v409_v36 = vsel %vm243_vm3, %v385_v25, 0.0 }
  0xe5   :  { %251 = vst.msk [vmem:[%s782_s3 + $0x38] sm:$0xff] %vm243_vm3, %v208_v56  ;;  %v200_v62 = vadd.f32 %v619_v15, %v199_v59  ;;  %v399_v4 = vsel %vm243_vm3, %v380_v55, 0.0  ;;  %v383_v11 = vmul.f32 %v208_v56, %v208_v56  ;;  %259 = vst.msk [vmem:[%s782_s3 + $0x78] sm:$0xff] %vm243_vm3, %v240_v7  ;;  %v232_v13 = vadd.f32 %v619_v15, %v231_v3 }
  0xe6   :  { %v343_v0 = vadd.f32 %v342_v61, %v341_v58  ;;  %v398_v1 = vadd.f32 %v397_v60, %v396_v57  ;;  %v348_v18 = vsel %vm243_vm3, %v208_v56, 0.0  ;;  %v350_v15 = vsel %vm243_vm3, %v636_v24, 0.0 }
  0xe7   :  { %249 = vst.msk [vmem:[%s782_s3 + $0x28] sm:$0xff] %vm243_vm3, %v200_v62  ;;  %v344_v5 = vsel %vm243_vm3, %v200_v62, 0.0  ;;  %v381_v6 = vmul.f32 %v200_v62, %v200_v62  ;;  %257 = vst.msk [vmem:[%s782_s3 + $0x68] sm:$0xff] %vm243_vm3, %v232_v13  ;;  %v405_v23 = vsel %vm243_vm3, %v383_v11, 0.0  ;;  %v387_v24 = vmul.f32 %v649_v28, %v649_v28 }
  0xe8   :  { %v400_v8 = vadd.f32 %v399_v4, %v398_v1  ;;  %v345_v9 = vadd.f32 %v344_v5, %v343_v0  ;;  %v411_v39 = vsel %vm243_vm3, %v386_v29, 0.0  ;;  %v356_v40 = vsel %vm243_vm3, %v649_v28, 0.0 }
  0xe9   :  { %v401_v12 = vsel %vm243_vm3, %v381_v6, 0.0  ;;  %v388_v41 = vmul.f32 %v229_v2, %v229_v2  ;;  %v413_v43 = vsel %vm243_vm3, %v387_v24, 0.0  ;;  %v358_v44 = vsel %vm243_vm3, %v229_v2, 0.0 }
  0xea   :  { %v347_v14 = vadd.f32 %v346_v10, %v345_v9  ;;  %v402_v16 = vadd.f32 %v401_v12, %v400_v8  ;;  %v389_v19 = vmul.f32 %v232_v13, %v232_v13  ;;  %v390_v47 = vmul.f32 %v685_v51, %v685_v51  ;;  %v334_v8 = vld [vmem:[%s779_s4] sm:$0x1] }
  0xeb   :  { %v415_v48 = vsel %vm243_vm3, %v388_v41, 0.0  ;;  %v360_v49 = vsel %vm243_vm3, %v232_v13, 0.0  ;;  %v362_v28 = vsel %vm243_vm3, %v685_v51, 0.0  ;;  %v391_v53 = vmul.f32 %v240_v7, %v240_v7  ;;  %v375_v10 = vld [vmem:[%s780_s5] sm:$0x1] }
  0xec   :  { %v404_v21 = vadd.f32 %v403_v17, %v402_v16  ;;  %v349_v22 = vadd.f32 %v348_v18, %v347_v14  ;;  %v417_v54 = vsel %vm243_vm3, %v389_v19, 0.0  ;;  %v419_v57 = vsel %vm243_vm3, %v390_v47, 0.0 }
  0xed   :  { %v364_v58 = vsel %vm243_vm3, %v240_v7, 0.0  ;;  %v421_v61 = vsel %vm243_vm3, %v391_v53, 0.0 }
  0xee   :  { %v351_v26 = vadd.f32 %v350_v15, %v349_v22  ;;  %v406_v27 = vadd.f32 %v405_v23, %v404_v21 }
  0xf0   :  { %v353_v32 = vadd.f32 %v352_v31, %v351_v26  ;;  %v408_v33 = vadd.f32 %v407_v30, %v406_v27 }
  0xf2   :  { %v355_v37 = vadd.f32 %v354_v35, %v353_v32  ;;  %v410_v38 = vadd.f32 %v409_v36, %v408_v33 }
  0xf4   :  { %v412_v42 = vadd.f32 %v411_v39, %v410_v38  ;;  %v357_v34 = vadd.f32 %v356_v40, %v355_v37 }
  0xf6   :  { %v359_v45 = vadd.f32 %v358_v44, %v357_v34  ;;  %v414_v46 = vadd.f32 %v413_v43, %v412_v42 }
  0xf8   :  { %v416_v50 = vadd.f32 %v415_v48, %v414_v46  ;;  %v361_v52 = vadd.f32 %v360_v49, %v359_v45 }
  0xfa   :  { %v363_v55 = vadd.f32 %v362_v28, %v361_v52  ;;  %v418_v56 = vadd.f32 %v417_v54, %v416_v50 }
  0xfc   :  { %v365_v59 = vadd.f32 %v364_v58, %v363_v55  ;;  %v420_v60 = vadd.f32 %v419_v57, %v418_v56 }
  0xfe   :  { %v366_v62 = vrot.slane %v365_v59, 4  ;;  %v422_v63 = vadd.f32 %v421_v61, %v420_v60 }
 0x100   :  { %v367_v0 = vadd.f32 %v366_v62, %v365_v59  ;;  %v423_v1 = vrot.slane %v422_v63, 4 }
 0x102   :  { %v368_v2 = vrot.slane %v367_v0, 2  ;;  %v424_v3 = vadd.f32 %v423_v1, %v422_v63 }
 0x104   :  { %v369_v51 = vadd.f32 %v368_v2, %v367_v0  ;;  %v425_v4 = vrot.slane %v424_v3, 2 }
 0x106   :  { %v370_v5 = vrot.slane %v369_v51, 1  ;;  %v426_v6 = vadd.f32 %v425_v4, %v424_v3 }
 0x108   :  { %v371_v9 = vadd.f32 %v370_v5, %v369_v51  ;;  %v427_v7 = vrot.slane %v426_v6, 1 }
 0x10a   :  { %v372_v11 = vadd.f32 %v371_v9, %v334_v8  ;;  %v428_v12 = vadd.f32 %v427_v7, %v426_v6 }
 0x10c   :  { %374 = vst.msk [vmem:[%s779_s4] sm:$0x1] %vm331_vm2, %v372_v11  ;;  %v429_v13 = vadd.f32 %v428_v12, %v375_v10 }
 0x10e   :  { %430 = vst.msk [vmem:[%s780_s5] sm:$0x1] %vm331_vm2, %v429_v13 }

// kernel: vae_forward.81
= control target key start
LH: loop header
LB: loop body
LE: loop exit
PB: predicated region body
PF: predicated region fallthrough
CT: control target
= control target key end

     0   :  { %vm68_vm3 = vcmask 125952   ;;  %s137_s0 = inlined_call_operand.vmem [shape: f32[32,16], index: 0, kind: input, shape index: {}]   ;;  %s138_s1 = inlined_call_operand.vmem [shape: f32[1,16], index: 1, kind: input, shape index: {}]   ;;  %s139_s2 = inlined_call_operand.vmem [shape: f32[1,16], index: 2, kind: input, shape index: {}]   ;;  %s140_s3 = inlined_call_operand.vmem [shape: bf16[32,16], index: 3, kind: output, shape index: {}]  }
   0x1   :  { %v14_v0 = vld [vmem:[%s137_s0] sm:$0xff]  ;;  %v15_v4 = vld [vmem:[%s137_s0 + $0x8] sm:$0xff]  ;;  %v16_v5 = vld [vmem:[%s137_s0 + $0x10] sm:$0xff] }
   0x2   :  { %v77_v1 = vld [vmem:[%s138_s1] ss:$0 sm:$0xff]  ;;  %v17_v6 = vld [vmem:[%s137_s0 + $0x18] sm:$0xff] }
   0x3   :  { %v78_v2 = vld [vmem:[%s139_s2] ss:$0 sm:$0xff]  ;;  %v25_v3 = vsub.f32 %v14_v0, %v77_v1  ;;  %v26_v7 = vsub.f32 %v15_v4, %v77_v1  ;;  %v27_v8 = vsub.f32 %v16_v5, %v77_v1  ;;  %v28_v9 = vsub.f32 %v17_v6, %v77_v1 }
   0x5   :  { %v36_v10 = vmul.f32 %v78_v2, %v25_v3  ;;  %v37_v11 = vmul.f32 %v78_v2, %v26_v7  ;;  %v38_v12 = vmul.f32 %v78_v2, %v27_v8  ;;  %v39_v13 = vmul.f32 %v78_v2, %v28_v9 }
   0x7   :  { %vm40_vm0 = vcmp.ge.f32.partialorder %v36_v10, 0.0  ;;  %v44_v14 = vmul.f32 0.01, %v36_v10  ;;  %vm41_vm1 = vcmp.ge.f32.partialorder %v37_v11, 0.0  ;;  %v45_v15 = vmul.f32 0.01, %v37_v11 }
   0x8   :  { %vm42_vm2 = vcmp.ge.f32.partialorder %v38_v12, 0.0  ;;  %v46_v16 = vmul.f32 0.01, %v38_v12  ;;  %vm43_vm4 = vcmp.ge.f32.partialorder %v39_v13, 0.0  ;;  %v47_v18 = vmul.f32 0.01, %v39_v13 }
   0x9   :  { %v48_v17 = vsel %vm40_vm0, %v36_v10, %v44_v14  ;;  %v49_v20 = vsel %vm41_vm1, %v37_v11, %v45_v15 }
   0xa   :  { %v83_v19 = vpack.c.bf16 %v48_v17, %v48_v17  ;;  %v50_v21 = vsel %vm42_vm2, %v38_v12, %v46_v16  ;;  %v84_v22 = vpack.c.bf16 %v49_v20, %v49_v20  ;;  %v51_v24 = vsel %vm43_vm4, %v39_v13, %v47_v18 }
   0xb   :  { %v85_v23 = vpack.c.bf16 %v50_v21, %v50_v21  ;;  %v86_v25 = vpack.c.bf16 %v51_v24, %v51_v24 }
   0xc   :  { %69 = vst.msk [vmem:[%s140_s3] sm:$0xf] %vm68_vm3, %v83_v19  ;;  %70 = vst.msk [vmem:[%s140_s3 + $0x4] sm:$0xf] %vm68_vm3, %v84_v22 }
   0xd   :  { %71 = vst.msk [vmem:[%s140_s3 + $0x8] sm:$0xf] %vm68_vm3, %v85_v23  ;;  %72 = vst.msk [vmem:[%s140_s3 + $0xc] sm:$0xf] %vm68_vm3, %v86_v25 }

// kernel: vae_forward.80
= control target key start
LH: loop header
LB: loop body
LE: loop exit
PB: predicated region body
PF: predicated region fallthrough
CT: control target
= control target key end

     0   :  { %vm82_vm0 = vcmask 1043456   ;;  %vm75_vm1 = vcmask 588800   ;;  %vm163_vm2 = vcmask 122880   ;;  %v255_v8 = vmov 0.0   ;;  %s356_s1 = inlined_call_operand.vmem [shape: bf16[72,16], index: 1, kind: input, shape index: {}]   ;;  %s357_s0 = inlined_call_operand.vmem [shape: bf16[32,72], index: 0, kind: input, shape index: {}]   ;;  %s358_s4 = inlined_call_operand.vmem [shape: f32[1,16], index: 4, kind: output, shape index: {1}]   ;;  %s359_s5 = inlined_call_operand.vmem [shape: f32[1,16], index: 5, kind: output, shape index: {2}]   ;;  %s360_s2 = inlined_call_operand.vmem [shape: f32[1,16], index: 2, kind: input, shape index: {}]   ;;  %s361_s3 = inlined_call_operand.vmem [shape: f32[32,16], index: 3, kind: output, shape index: {0}]  }
   0x1   :  { %v248_v0 = vld [vmem:[%s356_s1 + $0x20] ss:$0 sps:$4 sm:$0xff]   ;;  %v249_v1 = vld [vmem:[%s356_s1 + $0x18] sm:$0xff]   ;;  %v250_v3 = vld [vmem:[%s356_s1 + $0x10] sm:$0xff]   ;;  %164 = vst.msk [vmem:[%s358_s4] sm:$0x1] %vm163_vm2, %v255_v8 }
   0x2   :  { %246 = vmatprep.subr.msk.bf16.mxu0 %vm82_vm0, %v248_v0  ;;  %v84_v2 = vsel %vm82_vm0, %v248_v0, 0  ;;  %v253_v4 = vld [vmem:[%s357_s0] sm:$0xff]   ;;  %v251_v5 = vld [vmem:[%s356_s1 + $0x8] sm:$0xff]   ;;  %165 = vst.msk [vmem:[%s359_s5] sm:$0x1] %vm163_vm2, %v255_v8  ;;  %vm135_vm3 = vcmask 130048  }
   0x3   :  { %233 = vmatpush3.bf16.msra.mxu0 %v84_v2  ;;  %242 = vmatprep.mubr.msk.bf16.mxu0 %vm75_vm1, %v253_v4  ;;  %v252_v6 = vld [vmem:[%s356_s1] sm:$0xff]   ;;  %v254_v7 = vld [vmem:[%s357_s0 + $0x8] sm:$0xff]  }
   0x4   :  { %234 = vmatprep.subr.bf16.mxu0 %v249_v1  ;;  %v215_v9 = vld [vmem:[%s360_s2] ss:$0 sm:$0xff] }
   0x7   :  { %235 = vmatpush3.bf16.msra.mxu0 %v249_v1 }
   0x8   :  { %236 = vmatprep.subr.bf16.mxu0 %v250_v3  ;;  %v166_v45 = vld [vmem:[%s358_s4] sm:$0x1] }
   0x9   :  { %v183_v48 = vld [vmem:[%s359_s5] sm:$0x1] }
   0xb   :  { %237 = vmatpush3.bf16.msra.mxu0 %v250_v3 }
   0xc   :  { %238 = vmatprep.subr.bf16.mxu0 %v251_v5 }
   0xf   :  { %239 = vmatpush3.bf16.msra.mxu0 %v251_v5 }
  0x10   :  { %240 = vmatprep.subr.bf16.mxu0 %v252_v6 }
  0x13   :  { %241 = vmatpush3.bf16.msra.mxu0 %v252_v6 }
  0x16   :  { %243 = vmatmul.mubr.msk.bf16.vlgmr.msra.gmra.mxu0 %vm75_vm1, %v254_v7 }
  0xd6   :  { %v244_v10 = vpop.f32.mrf.mxu0 }
  0xd7   :  { %v129_v11 = vadd.f32 %v244_v10, %v215_v9 }
  0xd8   :  { %v120_v12 = vpop.f32.mrf.mxu0 }
  0xd9   :  { %138 = vst.msk [vmem:[%s361_s3 + $0x10] sm:$0xff] %vm135_vm3, %v129_v11  ;;  %v121_v13 = vadd.f32 %v215_v9, %v120_v12  ;;  %v186_v19 = vmul.f32 %v129_v11, %v129_v11  ;;  %v170_v24 = vsel %vm135_vm3, %v129_v11, 0.0 }
  0xda   :  { %v245_v14 = vpop.f32.mrf.mxu0 }
  0xdb   :  { %136 = vst.msk [vmem:[%s361_s3] sm:$0xff] %vm135_vm3, %v121_v13  ;;  %v132_v15 = vadd.f32 %v245_v14, %v215_v9  ;;  %v184_v17 = vmul.f32 %v121_v13, %v121_v13  ;;  %v167_v20 = vsel %vm135_vm3, %v121_v13, 0.0  ;;  %v191_v30 = vsel %vm135_vm3, %v186_v19, 0.0 }
  0xdc   :  { %v123_v16 = vpop.f32.mrf.mxu0 }
  0xdd   :  { %139 = vst.msk [vmem:[%s361_s3 + $0x18] sm:$0xff] %vm135_vm3, %v132_v15  ;;  %v124_v18 = vadd.f32 %v215_v9, %v123_v16  ;;  %v188_v25 = vsel %vm135_vm3, %v184_v17, 0.0  ;;  %v187_v26 = vmul.f32 %v132_v15, %v132_v15  ;;  %v172_v31 = vsel %vm135_vm3, %v132_v15, 0.0 }
  0xdf   :  { %137 = vst.msk [vmem:[%s361_s3 + $0x8] sm:$0xff] %vm135_vm3, %v124_v18  ;;  %v168_v21 = vsel %vm135_vm3, %v124_v18, 0.0  ;;  %v185_v22 = vmul.f32 %v124_v18, %v124_v18  ;;  %v193_v34 = vsel %vm135_vm3, %v187_v26, 0.0 }
  0xe0   :  { %v169_v23 = vadd.f32 %v168_v21, %v167_v20 }
  0xe1   :  { %v189_v27 = vsel %vm135_vm3, %v185_v22, 0.0 }
  0xe2   :  { %v171_v28 = vadd.f32 %v170_v24, %v169_v23  ;;  %v190_v29 = vadd.f32 %v189_v27, %v188_v25 }
  0xe4   :  { %v173_v32 = vadd.f32 %v172_v31, %v171_v28  ;;  %v192_v33 = vadd.f32 %v191_v30, %v190_v29 }
  0xe6   :  { %v174_v35 = vrot.slane %v173_v32, 4  ;;  %v194_v36 = vadd.f32 %v193_v34, %v192_v33 }
  0xe8   :  { %v175_v37 = vadd.f32 %v174_v35, %v173_v32  ;;  %v195_v38 = vrot.slane %v194_v36, 4 }
  0xea   :  { %v176_v39 = vrot.slane %v175_v37, 2  ;;  %v196_v40 = vadd.f32 %v195_v38, %v194_v36 }
  0xec   :  { %v177_v41 = vadd.f32 %v176_v39, %v175_v37  ;;  %v197_v42 = vrot.slane %v196_v40, 2 }
  0xee   :  { %v178_v43 = vrot.slane %v177_v41, 1  ;;  %v198_v44 = vadd.f32 %v197_v42, %v196_v40 }
  0xf0   :  { %v179_v46 = vadd.f32 %v178_v43, %v177_v41  ;;  %v199_v47 = vrot.slane %v198_v44, 1 }
  0xf2   :  { %v180_v49 = vadd.f32 %v179_v46, %v166_v45  ;;  %v200_v50 = vadd.f32 %v199_v47, %v198_v44 }
  0xf4   :  { %182 = vst.msk [vmem:[%s358_s4] sm:$0x1] %vm163_vm2, %v180_v49  ;;  %v201_v51 = vadd.f32 %v200_v50, %v183_v48 }
  0xf6   :  { %202 = vst.msk [vmem:[%s359_s5] sm:$0x1] %vm163_vm2, %v201_v51 }

// kernel: vae_forward.85
= control target key start
LH: loop header
LB: loop body
LE: loop exit
PB: predicated region body
PF: predicated region fallthrough
CT: control target
= control target key end

     0   :  { %vm83_vm4 = vcmask 125952   ;;  %s172_s0 = inlined_call_operand.vmem [shape: f32[32,16], index: 0, kind: input, shape index: {}]   ;;  %s173_s1 = inlined_call_operand.vmem [shape: f32[1,16], index: 1, kind: input, shape index: {}]   ;;  %s174_s2 = inlined_call_operand.vmem [shape: f32[1,16], index: 2, kind: input, shape index: {}]   ;;  %s175_s3 = inlined_call_operand.vmem [shape: bf16[32,16], index: 3, kind: input, shape index: {}]   ;;  %s176_s4 = inlined_call_operand.vmem [shape: bf16[32,16], index: 4, kind: output, shape index: {}]  }
   0x1   :  { %v17_v0 = vld [vmem:[%s172_s0] sm:$0xff]  ;;  %v18_v5 = vld [vmem:[%s172_s0 + $0x8] sm:$0xff]  ;;  %v19_v6 = vld [vmem:[%s172_s0 + $0x10] sm:$0xff] }
   0x2   :  { %v92_v1 = vld [vmem:[%s173_s1] ss:$0 sm:$0xff]  ;;  %v110_v9 = vld [vmem:[%s175_s3 + $0x8] sm:$0xff]   ;;  %v20_v10 = vld [vmem:[%s172_s0 + $0x18] sm:$0xff] }
   0x3   :  { %v93_v2 = vld [vmem:[%s174_s2] ss:$0 sm:$0xff]  ;;  %v28_v3 = vsub.f32 %v17_v0, %v92_v1  ;;  %v29_v7 = vsub.f32 %v18_v5, %v92_v1  ;;  %v30_v8 = vsub.f32 %v19_v6, %v92_v1  ;;  %v31_v13 = vsub.f32 %v20_v10, %v92_v1 }
   0x4   :  { %v103_v4 = vld [vmem:[%s175_s3] sm:$0xff]   ;;  %v108_v17 = vunpack.c.l.bf16 %v110_v9  ;;  %v109_v20 = vunpack.c.h.bf16 %v110_v9 }
   0x5   :  { %v39_v11 = vmul.f32 %v93_v2, %v28_v3  ;;  %v104_v12 = vunpack.c.l.bf16 %v103_v4  ;;  %v40_v14 = vmul.f32 %v93_v2, %v29_v7  ;;  %v105_v15 = vunpack.c.h.bf16 %v103_v4 }
   0x6   :  { %v41_v16 = vmul.f32 %v93_v2, %v30_v8  ;;  %v42_v19 = vmul.f32 %v93_v2, %v31_v13 }
   0x7   :  { %vm43_vm0 = vcmp.ge.f32.partialorder %v39_v11, 0.0  ;;  %v47_v18 = vmul.f32 0.01, %v39_v11  ;;  %vm44_vm1 = vcmp.ge.f32.partialorder %v40_v14, 0.0  ;;  %v48_v21 = vmul.f32 0.01, %v40_v14 }
   0x8   :  { %vm45_vm2 = vcmp.ge.f32.partialorder %v41_v16, 0.0  ;;  %v49_v22 = vmul.f32 0.01, %v41_v16  ;;  %vm46_vm3 = vcmp.ge.f32.partialorder %v42_v19, 0.0  ;;  %v50_v24 = vmul.f32 0.01, %v42_v19 }
   0x9   :  { %v51_v23 = vsel %vm43_vm0, %v39_v11, %v47_v18  ;;  %v52_v26 = vsel %vm44_vm1, %v40_v14, %v48_v21 }
   0xa   :  { %v63_v25 = vadd.f32 %v104_v12, %v51_v23  ;;  %v53_v27 = vsel %vm45_vm2, %v41_v16, %v49_v22  ;;  %v64_v28 = vadd.f32 %v105_v15, %v52_v26  ;;  %v54_v30 = vsel %vm46_vm3, %v42_v19, %v50_v24 }
   0xb   :  { %v65_v29 = vadd.f32 %v108_v17, %v53_v27  ;;  %v66_v32 = vadd.f32 %v109_v20, %v54_v30 }
   0xc   :  { %v98_v31 = vpack.c.bf16 %v63_v25, %v63_v25  ;;  %v99_v33 = vpack.c.bf16 %v64_v28, %v64_v28 }
   0xd   :  { %v100_v34 = vpack.c.bf16 %v65_v29, %v65_v29  ;;  %v101_v35 = vpack.c.bf16 %v66_v32, %v66_v32 }
   0xe   :  { %84 = vst.msk [vmem:[%s176_s4] sm:$0xf] %vm83_vm4, %v98_v31  ;;  %85 = vst.msk [vmem:[%s176_s4 + $0x4] sm:$0xf] %vm83_vm4, %v99_v33 }
   0xf   :  { %86 = vst.msk [vmem:[%s176_s4 + $0x8] sm:$0xf] %vm83_vm4, %v100_v34  ;;  %87 = vst.msk [vmem:[%s176_s4 + $0xc] sm:$0xf] %vm83_vm4, %v101_v35 }

// kernel: vae_forward.82
= control target key start
LH: loop header
LB: loop body
LE: loop exit
PB: predicated region body
PF: predicated region fallthrough
CT: control target
= control target key end

     0   :  { %v305_v0 = vmov 0   ;;  %vm119_vm0 = vcmask 130048   ;;  %vm202_vm1 = vcmask 122880   ;;  %v306_v14 = vmov 0.0   ;;  %s427_s1 = inlined_call_operand.vmem [shape: bf16[144,16], index: 1, kind: input, shape index: {}]   ;;  %s428_s0 = inlined_call_operand.vmem [shape: bf16[32,144], index: 0, kind: input, shape index: {}]   ;;  %s429_s4 = inlined_call_operand.vmem [shape: f32[1,16], index: 4, kind: output, shape index: {1}]   ;;  %s430_s5 = inlined_call_operand.vmem [shape: f32[1,16], index: 5, kind: output, shape index: {2}]   ;;  %s431_s2 = inlined_call_operand.vmem [shape: f32[1,16], index: 2, kind: input, shape index: {}]   ;;  %s432_s3 = inlined_call_operand.vmem [shape: f32[32,16], index: 3, kind: output, shape index: {0}]  }
   0x1   :  { %126 = vmatprep.subr.bf16.mxu0 %v305_v0  ;;  %270 = vmatprep.subr.bf16.mxu1 %v305_v0  ;;  %v290_v1 = vld [vmem:[%s427_s1 + $0x38] sm:$0xff]   ;;  %v291_v2 = vld [vmem:[%s427_s1 + $0x30] sm:$0xff]   ;;  %v292_v3 = vld [vmem:[%s427_s1 + $0x28] sm:$0xff]   ;;  %203 = vst.msk [vmem:[%s429_s4] sm:$0x1] %vm202_vm1, %v306_v14 }
   0x2   :  { %127 = vmatpush1.bf16.msra.mxu0 %v290_v1  ;;  %279 = vmatpush1.bf16.msra.mxu1 %v290_v1  ;;  %v293_v4 = vld [vmem:[%s427_s1 + $0x20] sm:$0xff]   ;;  %v304_v6 = vld [vmem:[%s428_s0 + $0x14] ss:$8 sps:$4 sm:$0xff]   ;;  %v296_v9 = vld [vmem:[%s427_s1 + $0x8] sm:$0xff]   ;;  %204 = vst.msk [vmem:[%s430_s5] sm:$0x1] %vm202_vm1, %v306_v14 }
   0x3   :  { %128 = vmatprep.subr.bf16.mxu0 %v305_v0  ;;  %271 = vmatprep.subr.bf16.mxu1 %v305_v0  ;;  %v301_v5 = vld [vmem:[%s428_s0 + $0x4] ss:$8 sps:$4 sm:$0xff]   ;;  %v294_v7 = vld [vmem:[%s427_s1 + $0x18] sm:$0xff]   ;;  %v295_v8 = vld [vmem:[%s427_s1 + $0x10] sm:$0xff]  }
   0x4   :  { %268 = vmatprep.mubr.msk.bf16.mxu0 %vm119_vm0, %v301_v5  ;;  %269 = vmatprep.mubr.msk.bf16.mxu1 %vm119_vm0, %v304_v6  ;;  %v297_v10 = vld [vmem:[%s427_s1] sm:$0xff]   ;;  %v302_v13 = vld [vmem:[%s428_s0 + $0x10] ss:$8 sps:$4 sm:$0xff]  }
   0x5   :  { %v298_v11 = vld [vmem:[%s427_s1 + $0x40] sm:$0xff]  }
   0x6   :  { %129 = vmatpush1.bf16.msra.mxu0 %v291_v2  ;;  %280 = vmatpush1.bf16.msra.mxu1 %v291_v2  ;;  %v299_v12 = vld [vmem:[%s428_s0] ss:$8 sps:$4 sm:$0xff]  }
   0x7   :  { %130 = vmatprep.subr.bf16.mxu0 %v305_v0  ;;  %272 = vmatprep.subr.bf16.mxu1 %v305_v0  ;;  %v254_v15 = vld [vmem:[%s431_s2] ss:$0 sm:$0xff] }
   0x8   :  { %v205_v55 = vld [vmem:[%s429_s4] sm:$0x1] }
   0x9   :  { %v222_v58 = vld [vmem:[%s430_s5] sm:$0x1] }
   0xa   :  { %131 = vmatpush1.bf16.msra.mxu0 %v292_v3  ;;  %281 = vmatpush1.bf16.msra.mxu1 %v292_v3 }
   0xb   :  { %132 = vmatprep.subr.bf16.mxu0 %v305_v0  ;;  %273 = vmatprep.subr.bf16.mxu1 %v305_v0 }
   0xe   :  { %133 = vmatpush1.bf16.msra.mxu0 %v293_v4  ;;  %282 = vmatpush1.bf16.msra.mxu1 %v293_v4 }
   0xf   :  { %134 = vmatprep.subr.bf16.mxu0 %v305_v0  ;;  %274 = vmatprep.subr.bf16.mxu1 %v305_v0 }
  0x12   :  { %135 = vmatpush1.bf16.msra.mxu0 %v294_v7  ;;  %283 = vmatpush1.bf16.msra.mxu1 %v294_v7 }
  0x13   :  { %136 = vmatprep.subr.bf16.mxu0 %v305_v0  ;;  %275 = vmatprep.subr.bf16.mxu1 %v305_v0 }
  0x16   :  { %137 = vmatpush1.bf16.msra.mxu0 %v295_v8  ;;  %284 = vmatpush1.bf16.msra.mxu1 %v295_v8 }
  0x17   :  { %138 = vmatprep.subr.bf16.mxu0 %v305_v0  ;;  %276 = vmatprep.subr.bf16.mxu1 %v305_v0 }
  0x1a   :  { %139 = vmatpush1.bf16.msra.mxu0 %v296_v9  ;;  %285 = vmatpush1.bf16.msra.mxu1 %v296_v9 }
  0x1b   :  { %140 = vmatprep.subr.bf16.mxu0 %v305_v0  ;;  %277 = vmatprep.subr.bf16.mxu1 %v305_v0 }
  0x1e   :  { %141 = vmatpush1.bf16.msra.mxu0 %v297_v10  ;;  %286 = vmatpush1.bf16.msra.mxu1 %v297_v10 }
  0x1f   :  { %156 = vmatprep.subr.bf16.mxu0 %v305_v0  ;;  %278 = vmatprep.subr.bf16.mxu1 %v305_v0 }
  0x22   :  { %157 = vmatpush2.bf16.msra.mxu0 %v298_v11  ;;  %287 = vmatpush2.bf16.msra.mxu1 %v298_v11 }
  0x25   :  { %159 = vmatmul.mubr.bf16.vlgmr.msra.gmra.mxu0 %v299_v12  ;;  %167 = vmatmul.mubr.bf16.vlgmr.msra.gmra.mxu1 %v302_v13 }
  0xe5   :  { %v160_v16 = vpop.f32.mrf.mxu0  ;;  %v168_v17 = vpop.f32.mrf.mxu1 }
  0xe6   :  { %v161_v18 = vadd.f32 %v254_v15, %v160_v16  ;;  %v169_v19 = vadd.f32 %v254_v15, %v168_v17 }
  0xe7   :  { %v162_v20 = vpop.f32.mrf.mxu0  ;;  %v170_v21 = vpop.f32.mrf.mxu1 }
  0xe8   :  { %175 = vst.msk [vmem:[%s432_s3] sm:$0xff] %vm119_vm0, %v161_v18  ;;  %177 = vst.msk [vmem:[%s432_s3 + $0x10] sm:$0xff] %vm119_vm0, %v169_v19  ;;  %v223_v24 = vmul.f32 %v161_v18, %v161_v18  ;;  %v206_v29 = vsel %vm119_vm0, %v161_v18, 0.0  ;;  %v225_v30 = vmul.f32 %v169_v19, %v169_v19  ;;  %v209_v35 = vsel %vm119_vm0, %v169_v19, 0.0 }
  0xe9   :  { %v163_v22 = vpop.f32.mrf.mxu0  ;;  %v171_v23 = vpop.f32.mrf.mxu1 }
  0xea   :  { %v164_v25 = vadd.f32 %v254_v15, %v163_v22  ;;  %v172_v26 = vadd.f32 %v254_v15, %v171_v23  ;;  %v227_v34 = vsel %vm119_vm0, %v223_v24, 0.0  ;;  %v230_v40 = vsel %vm119_vm0, %v225_v30, 0.0 }
  0xeb   :  { %v165_v27 = vpop.f32.mrf.mxu0  ;;  %v173_v28 = vpop.f32.mrf.mxu1 }
  0xec   :  { %176 = vst.msk [vmem:[%s432_s3 + $0x8] sm:$0xff] %vm119_vm0, %v164_v25  ;;  %v207_v31 = vsel %vm119_vm0, %v164_v25, 0.0  ;;  %v224_v32 = vmul.f32 %v164_v25, %v164_v25  ;;  %178 = vst.msk [vmem:[%s432_s3 + $0x18] sm:$0xff] %vm119_vm0, %v172_v26  ;;  %v226_v37 = vmul.f32 %v172_v26, %v172_v26  ;;  %v211_v41 = vsel %vm119_vm0, %v172_v26, 0.0 }
  0xed   :  { %v208_v33 = vadd.f32 %v207_v31, %v206_v29 }
  0xee   :  { %v228_v36 = vsel %vm119_vm0, %v224_v32, 0.0  ;;  %v232_v44 = vsel %vm119_vm0, %v226_v37, 0.0 }
  0xef   :  { %v229_v38 = vadd.f32 %v228_v36, %v227_v34  ;;  %v210_v39 = vadd.f32 %v209_v35, %v208_v33 }
  0xf1   :  { %v212_v42 = vadd.f32 %v211_v41, %v210_v39  ;;  %v231_v43 = vadd.f32 %v230_v40, %v229_v38 }
  0xf3   :  { %v213_v45 = vrot.slane %v212_v42, 4  ;;  %v233_v46 = vadd.f32 %v232_v44, %v231_v43 }
  0xf5   :  { %v214_v47 = vadd.f32 %v213_v45, %v212_v42  ;;  %v234_v48 = vrot.slane %v233_v46, 4 }
  0xf7   :  { %v215_v49 = vrot.slane %v214_v47, 2  ;;  %v235_v50 = vadd.f32 %v234_v48, %v233_v46 }
  0xf9   :  { %v216_v51 = vadd.f32 %v215_v49, %v214_v47  ;;  %v236_v52 = vrot.slane %v235_v50, 2 }
  0xfb   :  { %v217_v53 = vrot.slane %v216_v51, 1  ;;  %v237_v54 = vadd.f32 %v236_v52, %v235_v50 }
  0xfd   :  { %v218_v56 = vadd.f32 %v217_v53, %v216_v51  ;;  %v238_v57 = vrot.slane %v237_v54, 1 }
  0xff   :  { %v219_v59 = vadd.f32 %v218_v56, %v205_v55  ;;  %v239_v60 = vadd.f32 %v238_v57, %v237_v54 }
 0x101   :  { %221 = vst.msk [vmem:[%s429_s4] sm:$0x1] %vm202_vm1, %v219_v59  ;;  %v240_v61 = vadd.f32 %v239_v60, %v222_v58 }
 0x103   :  { %241 = vst.msk [vmem:[%s430_s5] sm:$0x1] %vm202_vm1, %v240_v61 }

// kernel: vae_forward.91
= control target key start
LH: loop header
LB: loop body
LE: loop exit
PB: predicated region body
PF: predicated region fallthrough
CT: control target
= control target key end

     0   :  { %vm35_vm1 = vcmask 257024   ;;  %s75_s0 = inlined_call_operand.vmem [shape: f32[8,32], index: 0, kind: input, shape index: {}]   ;;  %s76_s1 = inlined_call_operand.vmem [shape: f32[1,32], index: 1, kind: input, shape index: {}]   ;;  %s77_s2 = inlined_call_operand.vmem [shape: f32[1,32], index: 2, kind: input, shape index: {}]   ;;  %s78_s3 = inlined_call_operand.vmem [shape: bf16[8,32], index: 3, kind: output, shape index: {}]  }
   0x1   :  { %v14_v0 = vld [vmem:[%s75_s0] sm:$0xff] }
   0x2   :  { %v41_v1 = vld [vmem:[%s76_s1] ss:$0 sm:$0xff] }
   0x3   :  { %v42_v2 = vld [vmem:[%s77_s2] ss:$0 sm:$0xff]  ;;  %v22_v3 = vsub.f32 %v14_v0, %v41_v1 }
   0x5   :  { %v30_v4 = vmul.f32 %v42_v2, %v22_v3 }
   0x7   :  { %vm31_vm0 = vcmp.ge.f32.partialorder %v30_v4, 0.0  ;;  %v32_v5 = vmul.f32 0.01, %v30_v4 }
   0x9   :  { %v33_v6 = vsel %vm31_vm0, %v30_v4, %v32_v5 }
   0xa   :  { %v34_v7 = vpack.c.bf16 %v33_v6, %v33_v6 }
   0xc   :  { %36 = vst.msk [vmem:[%s78_s3] sm:$0xf] %vm35_vm1, %v34_v7 }

// kernel: vae_forward.90
= control target key start
LH: loop header
LB: loop body
LE: loop exit
PB: predicated region body
PF: predicated region fallthrough
CT: control target
= control target key end

     0   :  { %v224_v0 = vmov 0   ;;  %vm104_vm0 = vcmask 130048   ;;  %vm161_vm1 = vcmask 253952   ;;  %v225_v13 = vmov 0.0   ;;  %s314_s1 = inlined_call_operand.vmem [shape: bf16[144,32], index: 1, kind: input, shape index: {}]   ;;  %s315_s0 = inlined_call_operand.vmem [shape: bf16[8,144], index: 0, kind: input, shape index: {}]   ;;  %s316_s4 = inlined_call_operand.vmem [shape: f32[1,32], index: 4, kind: output, shape index: {1}]   ;;  %s317_s5 = inlined_call_operand.vmem [shape: f32[1,32], index: 5, kind: output, shape index: {2}]   ;;  %s318_s2 = inlined_call_operand.vmem [shape: f32[1,32], index: 2, kind: input, shape index: {}]   ;;  %s319_s3 = inlined_call_operand.vmem [shape: f32[8,32], index: 3, kind: output, shape index: {0}]  }
   0x1   :  { %108 = vmatprep.subr.bf16.mxu0 %v224_v0  ;;  %v213_v1 = vld [vmem:[%s314_s1 + $0x38] sm:$0xff]   ;;  %v214_v2 = vld [vmem:[%s314_s1 + $0x30] sm:$0xff]   ;;  %v215_v3 = vld [vmem:[%s314_s1 + $0x28] sm:$0xff]   ;;  %162 = vst.msk [vmem:[%s316_s4] sm:$0x1] %vm161_vm1, %v225_v13  ;;  %vm148_vm2 = vcmask 261120  }
   0x2   :  { %109 = vmatpush1.bf16.msra.mxu0 %v213_v1  ;;  %v18_v4 = vld [vmem:[%s315_s0] sm:$0xff]  ;;  %v217_v7 = vld [vmem:[%s314_s1 + $0x18] sm:$0xff]   ;;  %v218_v8 = vld [vmem:[%s314_s1 + $0x10] sm:$0xff]   ;;  %163 = vst.msk [vmem:[%s317_s5] sm:$0x1] %vm161_vm1, %v225_v13 }
   0x3   :  { %110 = vmatprep.subr.bf16.mxu0 %v224_v0  ;;  %v216_v5 = vld [vmem:[%s314_s1 + $0x20] sm:$0xff]   ;;  %v200_v6 = vcombine.high %v18_v4, %v18_v4  ;;  %v219_v9 = vld [vmem:[%s314_s1 + $0x8] sm:$0xff]   ;;  %v199_v12 = vcombine.low %v18_v4, %v18_v4 }
   0x4   :  { %v220_v10 = vld [vmem:[%s314_s1] sm:$0xff]  }
   0x5   :  { %210 = vmatprep.mubr.msk.bf16.mxu0 %vm104_vm0, %v200_v6  ;;  %v221_v11 = vld [vmem:[%s314_s1 + $0x40] sm:$0xff]  }
   0x6   :  { %111 = vmatpush1.bf16.msra.mxu0 %v214_v2  ;;  %v198_v14 = vld [vmem:[%s318_s2] ss:$0 sm:$0xff] }
   0x7   :  { %112 = vmatprep.subr.bf16.mxu0 %v224_v0 }
   0x8   :  { %v164_v32 = vld [vmem:[%s316_s4] sm:$0x1] }
   0x9   :  { %v175_v35 = vld [vmem:[%s317_s5] sm:$0x1] }
   0xa   :  { %113 = vmatpush1.bf16.msra.mxu0 %v215_v3 }
   0xb   :  { %114 = vmatprep.subr.bf16.mxu0 %v224_v0 }
   0xe   :  { %115 = vmatpush1.bf16.msra.mxu0 %v216_v5 }
   0xf   :  { %116 = vmatprep.subr.bf16.mxu0 %v224_v0 }
  0x12   :  { %117 = vmatpush1.bf16.msra.mxu0 %v217_v7 }
  0x13   :  { %118 = vmatprep.subr.bf16.mxu0 %v224_v0 }
  0x16   :  { %119 = vmatpush1.bf16.msra.mxu0 %v218_v8 }
  0x17   :  { %120 = vmatprep.subr.bf16.mxu0 %v224_v0 }
  0x1a   :  { %121 = vmatpush1.bf16.msra.mxu0 %v219_v9 }
  0x1b   :  { %122 = vmatprep.subr.bf16.mxu0 %v224_v0 }
  0x1e   :  { %123 = vmatpush1.bf16.msra.mxu0 %v220_v10 }
  0x1f   :  { %138 = vmatprep.subr.bf16.mxu0 %v224_v0 }
  0x22   :  { %139 = vmatpush2.bf16.msra.mxu0 %v221_v11 }
  0x25   :  { %141 = vmatmul.mubr.bf16.vlgmr.msra.gmra.mxu0 %v199_v12 }
  0xe5   :  { %v142_v15 = vpop.f32.mrf.mxu0 }
  0xe6   :  { %v143_v16 = vadd.f32 %v198_v14, %v142_v15 }
  0xe7   :  { %v144_v17 = vpop.f32.mrf.mxu0 }
  0xe8   :  { %149 = vst.msk [vmem:[%s319_s3] sm:$0xff] %vm148_vm2, %v143_v16  ;;  %v165_v18 = vsel %vm148_vm2, %v143_v16, 0.0  ;;  %v176_v19 = vmul.f32 %v143_v16, %v143_v16 }
  0xe9   :  { %v166_v20 = vrot.slane %v165_v18, 4  ;;  %v145_v21 = vpop.f32.mrf.mxu0 }
  0xea   :  { %v177_v22 = vsel %vm148_vm2, %v176_v19, 0.0 }
  0xeb   :  { %v167_v23 = vadd.f32 %v166_v20, %v165_v18  ;;  %v178_v24 = vrot.slane %v177_v22, 4  ;;  %v146_v25 = vpop.f32.mrf.mxu0 }
  0xed   :  { %v168_v26 = vrot.slane %v167_v23, 2  ;;  %v179_v27 = vadd.f32 %v178_v24, %v177_v22 }
  0xef   :  { %v169_v28 = vadd.f32 %v168_v26, %v167_v23  ;;  %v180_v29 = vrot.slane %v179_v27, 2 }
  0xf1   :  { %v170_v30 = vrot.slane %v169_v28, 1  ;;  %v181_v31 = vadd.f32 %v180_v29, %v179_v27 }
  0xf3   :  { %v171_v33 = vadd.f32 %v170_v30, %v169_v28  ;;  %v182_v34 = vrot.slane %v181_v31, 1 }
  0xf5   :  { %v172_v36 = vadd.f32 %v171_v33, %v164_v32  ;;  %v183_v37 = vadd.f32 %v182_v34, %v181_v31 }
  0xf7   :  { %174 = vst.msk [vmem:[%s316_s4] sm:$0x1] %vm161_vm1, %v172_v36  ;;  %v184_v38 = vadd.f32 %v183_v37, %v175_v35 }
  0xf9   :  { %185 = vst.msk [vmem:[%s317_s5] sm:$0x1] %vm161_vm1, %v184_v38 }

// kernel: vae_forward.92
= control target key start
LH: loop header
LB: loop body
LE: loop exit
PB: predicated region body
PF: predicated region fallthrough
CT: control target
= control target key end

     0   :  { %v181_v0 = vmov 0.0   ;;  %vm182_vm0 = vmmov 0   ;;  %vm127_vm1 = vcmask 123904   ;;  %s236_s1 = inlined_call_operand.vmem [shape: bf16[128,16], index: 1, kind: input, shape index: {}]   ;;  %s237_s0 = inlined_call_operand.vmem [shape: bf16[2,128], index: 0, kind: input, shape index: {}]   ;;  %s238_s2 = inlined_call_operand.vmem [shape: f32[1,16], index: 2, kind: input, shape index: {}]   ;;  %s239_s3 = inlined_call_operand.vmem [shape: f32[2,16], index: 3, kind: output, shape index: {}]  }
   0x1   :  { %151 = vmatprep.subr.bf16.mxu0 %v181_v0  ;;  %v173_v1 = vld [vmem:[%s236_s1 + $0x38] sm:$0xff]   ;;  %167 = vmatprep.mubr.msk.bf16.mxu0 %vm182_vm0, %v181_v0  ;;  %v174_v2 = vld [vmem:[%s236_s1 + $0x30] sm:$0xff]   ;;  %v175_v3 = vld [vmem:[%s236_s1 + $0x28] sm:$0xff]  }
   0x2   :  { %152 = vmatpush3.bf16.msra.mxu0 %v173_v1  ;;  %v176_v4 = vld [vmem:[%s236_s1 + $0x20] sm:$0xff]   ;;  %v177_v5 = vld [vmem:[%s236_s1 + $0x18] sm:$0xff]   ;;  %v178_v6 = vld [vmem:[%s236_s1 + $0x10] sm:$0xff]  }
   0x3   :  { %153 = vmatprep.subr.bf16.mxu0 %v181_v0  ;;  %v179_v7 = vld [vmem:[%s236_s1 + $0x8] sm:$0xff]   ;;  %v180_v8 = vld [vmem:[%s236_s1] sm:$0xff]  }
   0x4   :  { %v15_v9 = vld [vmem:[%s237_s0] sm:$0x1] }
   0x5   :  { %v133_v10 = vld [vmem:[%s238_s2] ss:$0 sm:$0xff] }
   0x6   :  { %154 = vmatpush3.bf16.msra.mxu0 %v174_v2 }
   0x7   :  { %155 = vmatprep.subr.bf16.mxu0 %v181_v0 }
   0xa   :  { %156 = vmatpush3.bf16.msra.mxu0 %v175_v3 }
   0xb   :  { %157 = vmatprep.subr.bf16.mxu0 %v181_v0 }
   0xe   :  { %158 = vmatpush3.bf16.msra.mxu0 %v176_v4 }
   0xf   :  { %159 = vmatprep.subr.bf16.mxu0 %v181_v0 }
  0x12   :  { %160 = vmatpush3.bf16.msra.mxu0 %v177_v5 }
  0x13   :  { %161 = vmatprep.subr.bf16.mxu0 %v181_v0 }
  0x16   :  { %162 = vmatpush3.bf16.msra.mxu0 %v178_v6 }
  0x17   :  { %163 = vmatprep.subr.bf16.mxu0 %v181_v0 }
  0x1a   :  { %164 = vmatpush3.bf16.msra.mxu0 %v179_v7 }
  0x1b   :  { %165 = vmatprep.subr.bf16.mxu0 %v181_v0 }
  0x1e   :  { %166 = vmatpush3.bf16.msra.mxu0 %v180_v8 }
  0x21   :  { %168 = vmatmul.mubr.bf16.vlgmr.msra.gmra.mxu0 %v15_v9 }
  0xe1   :  { %v121_v11 = vpop.f32.mrf.mxu0 }
  0xe2   :  { %v122_v12 = vadd.f32 %v133_v10, %v121_v11 }
  0xe3   :  { %v169_v13 = vpop.f32.mrf.mxu0 }
  0xe4   :  { %128 = vst.msk [vmem:[%s239_s3] sm:$0x3] %vm127_vm1, %v122_v12 }
  0xe5   :  { %v124_v14 = vpop.f32.mrf.mxu0 }
  0xe7   :  { %v170_v15 = vpop.f32.mrf.mxu0 }

// kernel: vae_forward.93
= control target key start
LH: loop header
LB: loop body
LE: loop exit
PB: predicated region body
PF: predicated region fallthrough
CT: control target
= control target key end

     0   :  { %vm28_vm0 = vcmask 1043456   ;;  %v89_v0 = vmov 0.0   ;;  %vm90_vm1 = vmmov 0   ;;  %vm24_vm2 = vcmask 64512   ;;  %s123_s1 = inlined_call_operand.vmem [shape: bf16[8,128], index: 1, kind: input, shape index: {}]   ;;  %s124_s0 = inlined_call_operand.vmem [shape: bf16[2,8], index: 0, kind: input, shape index: {}]   ;;  %s125_s2 = inlined_call_operand.vmem [shape: f32[1,128], index: 2, kind: input, shape index: {}]   ;;  %s126_s3 = inlined_call_operand.vmem [shape: f32[2,128], index: 3, kind: output, shape index: {}]  }
   0x1   :  { %81 = vmatprep.subr.bf16.mxu0 %v89_v0  ;;  %v16_v1 = vld [vmem:[%s123_s1] sm:$0xf]  ;;  %83 = vmatprep.mubr.msk.bf16.mxu0 %vm90_vm1, %v89_v0 }
   0x2   :  { %v30_v2 = vsel %vm28_vm0, %v16_v1, 0  ;;  %v15_v3 = vld [vmem:[%s124_s0] sm:$0x1] }
   0x3   :  { %82 = vmatpush3.bf16.msra.mxu0 %v30_v2  ;;  %v77_v4 = vld [vmem:[%s125_s2] ss:$0 sm:$0xff] }
   0x6   :  { %84 = vmatmul.mubr.msk.bf16.vlgmr.msra.gmra.mxu0 %vm24_vm2, %v15_v3 }
  0xc6   :  { %v66_v5 = vpop.f32.mrf.mxu0 }
  0xc7   :  { %v67_v6 = vadd.f32 %v77_v4, %v66_v5 }
  0xc8   :  { %v85_v7 = vpop.f32.mrf.mxu0 }
  0xc9   :  { %72 = vst [vmem:[%s126_s3] sm:$0x3] %v67_v6 }
  0xca   :  { %v69_v8 = vpop.f32.mrf.mxu0 }
  0xcc   :  { %v86_v9 = vpop.f32.mrf.mxu0 }

// kernel: vae_forward.97
= control target key start
LH: loop header
LB: loop body
LE: loop exit
PB: predicated region body
PF: predicated region fallthrough
CT: control target
= control target key end

     0   :  { %vm41_vm1 = vcmask 257024   ;;  %s89_s0 = inlined_call_operand.vmem [shape: f32[8,32], index: 0, kind: input, shape index: {}]   ;;  %s90_s1 = inlined_call_operand.vmem [shape: f32[1,32], index: 1, kind: input, shape index: {}]   ;;  %s91_s2 = inlined_call_operand.vmem [shape: f32[1,32], index: 2, kind: input, shape index: {}]   ;;  %s92_s3 = inlined_call_operand.vmem [shape: bf16[8,32], index: 3, kind: input, shape index: {}]   ;;  %s93_s4 = inlined_call_operand.vmem [shape: bf16[8,32], index: 4, kind: output, shape index: {}]  }
   0x1   :  { %v17_v0 = vld [vmem:[%s89_s0] sm:$0xff] }
   0x2   :  { %v47_v1 = vld [vmem:[%s90_s1] ss:$0 sm:$0xff] }
   0x3   :  { %v48_v2 = vld [vmem:[%s91_s2] ss:$0 sm:$0xff]  ;;  %v25_v3 = vsub.f32 %v17_v0, %v47_v1 }
   0x4   :  { %v37_v4 = vld [vmem:[%s92_s3] sm:$0xf] }
   0x5   :  { %v33_v5 = vmul.f32 %v48_v2, %v25_v3  ;;  %v38_v6 = vunpack.c.l.bf16 %v37_v4 }
   0x7   :  { %vm34_vm0 = vcmp.ge.f32.partialorder %v33_v5, 0.0  ;;  %v35_v7 = vmul.f32 0.01, %v33_v5 }
   0x9   :  { %v36_v8 = vsel %vm34_vm0, %v33_v5, %v35_v7 }
   0xa   :  { %v39_v9 = vadd.f32 %v38_v6, %v36_v8 }
   0xc   :  { %v40_v10 = vpack.c.bf16 %v39_v9, %v39_v9 }
   0xe   :  { %42 = vst.msk [vmem:[%s93_s4] sm:$0xf] %vm41_vm1, %v40_v10 }

// kernel: vae_forward.94
= control target key start
LH: loop header
LB: loop body
LE: loop exit
PB: predicated region body
PF: predicated region fallthrough
CT: control target
= control target key end

     0   :  { %vm277_vm0 = vcmask 253952   ;;  %v393_v1 = vmov 0.0   ;;  %vm394_vm1 = vmmov 0   ;;  %vm181_vm2 = vcmask 261120   ;;  %s517_s1 = inlined_call_operand.vmem [shape: bf16[288,32], index: 1, kind: input, shape index: {}]   ;;  %s518_s4 = inlined_call_operand.vmem [shape: f32[1,32], index: 4, kind: output, shape index: {1}]   ;;  %s519_s5 = inlined_call_operand.vmem [shape: f32[1,32], index: 5, kind: output, shape index: {2}]   ;;  %s520_s0 = inlined_call_operand.vmem [shape: bf16[8,288], index: 0, kind: input, shape index: {}]   ;;  %s521_s2 = inlined_call_operand.vmem [shape: f32[1,32], index: 2, kind: input, shape index: {}]   ;;  %s522_s3 = inlined_call_operand.vmem [shape: f32[8,32], index: 3, kind: output, shape index: {0}]  }
   0x1   :  { %v372_v0 = vld [vmem:[%s517_s1 + $0x78] sm:$0xff]   ;;  %362 = vmatprep.subr.bf16.mxu1 %v393_v1  ;;  %278 = vst.msk [vmem:[%s518_s4] sm:$0x1] %vm277_vm0, %v393_v1  ;;  %279 = vst.msk [vmem:[%s519_s5] sm:$0x1] %vm277_vm0, %v393_v1  ;;  %366 = vmatprep.mubr.msk.bf16.mxu1 %vm394_vm1, %v393_v1  ;;  %v374_v3 = vld [vmem:[%s517_s1 + $0x70] sm:$0xff]  }
   0x2   :  { %v373_v2 = vld [vmem:[%s517_s1 + $0x38] sm:$0xff]   ;;  %337 = vmatprep.subr.bf16.mxu0 %v372_v0  ;;  %v375_v4 = vld [vmem:[%s517_s1 + $0x30] sm:$0xff]   ;;  %v376_v5 = vld [vmem:[%s517_s1 + $0x68] sm:$0xff]  }
   0x3   :  { %338 = vmatpush3.bf16.msra.mxu0 %v373_v2  ;;  %v377_v6 = vld [vmem:[%s517_s1 + $0x28] sm:$0xff]   ;;  %v378_v7 = vld [vmem:[%s517_s1 + $0x60] sm:$0xff]   ;;  %v380_v9 = vld [vmem:[%s517_s1 + $0x58] sm:$0xff]  }
   0x4   :  { %339 = vmatprep.subr.bf16.mxu0 %v374_v3  ;;  %v379_v8 = vld [vmem:[%s517_s1 + $0x20] sm:$0xff]   ;;  %v381_v10 = vld [vmem:[%s517_s1 + $0x18] sm:$0xff]   ;;  %v386_v11 = vld [vmem:[%s517_s1 + $0x88] sm:$0xff]  }
   0x5   :  { %v382_v12 = vld [vmem:[%s517_s1 + $0x50] sm:$0xff]   ;;  %363 = vmatpush3.bf16.msra.mxu1 %v386_v11  ;;  %v389_v13 = vld [vmem:[%s517_s1 + $0x80] sm:$0xff]   ;;  %v384_v17 = vld [vmem:[%s517_s1 + $0x48] sm:$0xff]  }
   0x6   :  { %364 = vmatprep.subr.bf16.mxu1 %v393_v1  ;;  %v18_v14 = vld [vmem:[%s520_s0] sm:$0xff]  ;;  %v383_v15 = vld [vmem:[%s517_s1 + $0x10] sm:$0xff]   ;;  %v392_v18 = vld [vmem:[%s520_s0 + $0x8] ss:$0 sps:$4 sm:$0xff]  }
   0x7   :  { %340 = vmatpush3.bf16.msra.mxu0 %v375_v4  ;;  %v316_v16 = vcombine.high %v18_v14, %v18_v14  ;;  %v385_v19 = vld [vmem:[%s517_s1 + $0x8] sm:$0xff]   ;;  %v387_v20 = vld [vmem:[%s517_s1 + $0x40] sm:$0xff]   ;;  %v315_v22 = vcombine.low %v18_v14, %v18_v14 }
   0x8   :  { %341 = vmatprep.subr.bf16.mxu0 %v376_v5  ;;  %v388_v21 = vld [vmem:[%s517_s1] sm:$0xff]  }
   0x9   :  { %365 = vmatpush3.bf16.msra.mxu1 %v389_v13  ;;  %217 = vmatprep.mubr.bf16.mxu0 %v316_v16  ;;  %v314_v28 = vld [vmem:[%s521_s2] ss:$0 sm:$0xff] }
   0xa   :  { %v280_v47 = vld [vmem:[%s518_s4] sm:$0x1] }
   0xb   :  { %342 = vmatpush3.bf16.msra.mxu0 %v377_v6  ;;  %v291_v50 = vld [vmem:[%s519_s5] sm:$0x1] }
   0xc   :  { %343 = vmatprep.subr.bf16.mxu0 %v378_v7  ;;  %367 = vmatmul.mubr.msk.bf16.vlgmr.msra.gmra.mxu1 %vm181_vm2, %v392_v18 }
   0xf   :  { %344 = vmatpush3.bf16.msra.mxu0 %v379_v8 }
  0x10   :  { %345 = vmatprep.subr.bf16.mxu0 %v380_v9 }
  0x13   :  { %346 = vmatpush3.bf16.msra.mxu0 %v381_v10 }
  0x14   :  { %347 = vmatprep.subr.bf16.mxu0 %v382_v12 }
  0x17   :  { %348 = vmatpush3.bf16.msra.mxu0 %v383_v15 }
  0x18   :  { %349 = vmatprep.subr.bf16.mxu0 %v384_v17 }
  0x1b   :  { %350 = vmatpush3.bf16.msra.mxu0 %v385_v19 }
  0x1c   :  { %351 = vmatprep.subr.bf16.mxu0 %v387_v20 }
  0x1f   :  { %352 = vmatpush3.bf16.msra.mxu0 %v388_v21 }
  0x22   :  { %218 = vmatmul.mubr.bf16.vlgmr.msra.gmra.mxu0 %v315_v22 }
  0xcc   :  { %v259_v23 = vpop.f32.mrf.mxu1 }
  0xce   :  { %v368_v24 = vpop.f32.mrf.mxu1 }
  0xd0   :  { %v262_v25 = vpop.f32.mrf.mxu1 }
  0xd2   :  { %v369_v26 = vpop.f32.mrf.mxu1 }
  0xe2   :  { %v353_v27 = vpop.f32.mrf.mxu0 }
  0xe4   :  { %v354_v29 = vpop.f32.mrf.mxu0 }
  0xe5   :  { %v355_v30 = vadd.f32 %v354_v29, %v353_v27 }
  0xe6   :  { %v356_v31 = vpop.f32.mrf.mxu0 }
  0xe7   :  { %v220_v32 = vadd.f32 %v355_v30, %v314_v28 }
  0xe8   :  { %v357_v33 = vpop.f32.mrf.mxu0 }
  0xe9   :  { %v260_v34 = vadd.f32 %v259_v23, %v220_v32 }
  0xeb   :  { %265 = vst.msk [vmem:[%s522_s3] sm:$0xff] %vm181_vm2, %v260_v34  ;;  %v281_v35 = vsel %vm181_vm2, %v260_v34, 0.0  ;;  %v292_v36 = vmul.f32 %v260_v34, %v260_v34 }
  0xec   :  { %v282_v37 = vrot.slane %v281_v35, 4 }
  0xed   :  { %v293_v38 = vsel %vm181_vm2, %v292_v36, 0.0 }
  0xee   :  { %v283_v39 = vadd.f32 %v282_v37, %v281_v35  ;;  %v294_v40 = vrot.slane %v293_v38, 4 }
  0xf0   :  { %v284_v41 = vrot.slane %v283_v39, 2  ;;  %v295_v42 = vadd.f32 %v294_v40, %v293_v38 }
  0xf2   :  { %v285_v43 = vadd.f32 %v284_v41, %v283_v39  ;;  %v296_v44 = vrot.slane %v295_v42, 2 }
  0xf4   :  { %v286_v45 = vrot.slane %v285_v43, 1  ;;  %v297_v46 = vadd.f32 %v296_v44, %v295_v42 }
  0xf6   :  { %v287_v48 = vadd.f32 %v286_v45, %v285_v43  ;;  %v298_v49 = vrot.slane %v297_v46, 1 }
  0xf8   :  { %v288_v51 = vadd.f32 %v287_v48, %v280_v47  ;;  %v299_v52 = vadd.f32 %v298_v49, %v297_v46 }
  0xfa   :  { %290 = vst.msk [vmem:[%s518_s4] sm:$0x1] %vm277_vm0, %v288_v51  ;;  %v300_v53 = vadd.f32 %v299_v52, %v291_v50 }
  0xfc   :  { %301 = vst.msk [vmem:[%s519_s5] sm:$0x1] %vm277_vm0, %v300_v53 }

// kernel: vae_forward.102
= control target key start
LH: loop header
LB: loop body
LE: loop exit
PB: predicated region body
PF: predicated region fallthrough
CT: control target
= control target key end

     0   :  { %vm278_vm0 = vcmask 516096   ;;  %v394_v1 = vmov 0.0   ;;  %vm395_vm1 = vmmov 0   ;;  %vm181_vm2 = vcmask 261120   ;;  %s514_s1 = inlined_call_operand.vmem [shape: bf16[288,64], index: 1, kind: input, shape index: {}]   ;;  %s515_s4 = inlined_call_operand.vmem [shape: f32[1,64], index: 4, kind: output, shape index: {1}]   ;;  %s516_s5 = inlined_call_operand.vmem [shape: f32[1,64], index: 5, kind: output, shape index: {2}]   ;;  %s517_s0 = inlined_call_operand.vmem [shape: bf16[8,288], index: 0, kind: input, shape index: {}]   ;;  %s518_s2 = inlined_call_operand.vmem [shape: f32[1,64], index: 2, kind: input, shape index: {}]   ;;  %s519_s3 = inlined_call_operand.vmem [shape: f32[8,64], index: 3, kind: output, shape index: {0}]  }
   0x1   :  { %v373_v0 = vld [vmem:[%s514_s1 + $0x78] sm:$0xff]   ;;  %363 = vmatprep.subr.bf16.mxu1 %v394_v1  ;;  %279 = vst.msk [vmem:[%s515_s4] sm:$0x1] %vm278_vm0, %v394_v1  ;;  %280 = vst.msk [vmem:[%s516_s5] sm:$0x1] %vm278_vm0, %v394_v1  ;;  %367 = vmatprep.mubr.msk.bf16.mxu1 %vm395_vm1, %v394_v1  ;;  %v375_v3 = vld [vmem:[%s514_s1 + $0x70] sm:$0xff]  }
   0x2   :  { %v374_v2 = vld [vmem:[%s514_s1 + $0x38] sm:$0xff]   ;;  %338 = vmatprep.subr.bf16.mxu0 %v373_v0  ;;  %v376_v4 = vld [vmem:[%s514_s1 + $0x30] sm:$0xff]   ;;  %v377_v5 = vld [vmem:[%s514_s1 + $0x68] sm:$0xff]   ;;  %vm265_vm3 = vcmask 523264  }
   0x3   :  { %339 = vmatpush3.bf16.msra.mxu0 %v374_v2  ;;  %v378_v6 = vld [vmem:[%s514_s1 + $0x28] sm:$0xff]   ;;  %v379_v7 = vld [vmem:[%s514_s1 + $0x60] sm:$0xff]   ;;  %v381_v9 = vld [vmem:[%s514_s1 + $0x58] sm:$0xff]  }
   0x4   :  { %340 = vmatprep.subr.bf16.mxu0 %v375_v3  ;;  %v380_v8 = vld [vmem:[%s514_s1 + $0x20] sm:$0xff]   ;;  %v382_v10 = vld [vmem:[%s514_s1 + $0x18] sm:$0xff]   ;;  %v387_v11 = vld [vmem:[%s514_s1 + $0x88] sm:$0xff]  }
   0x5   :  { %v383_v12 = vld [vmem:[%s514_s1 + $0x50] sm:$0xff]   ;;  %364 = vmatpush3.bf16.msra.mxu1 %v387_v11  ;;  %v390_v13 = vld [vmem:[%s514_s1 + $0x80] sm:$0xff]   ;;  %v385_v17 = vld [vmem:[%s514_s1 + $0x48] sm:$0xff]  }
   0x6   :  { %365 = vmatprep.subr.bf16.mxu1 %v394_v1  ;;  %v18_v14 = vld [vmem:[%s517_s0] sm:$0xff]  ;;  %v384_v15 = vld [vmem:[%s514_s1 + $0x10] sm:$0xff]   ;;  %v393_v18 = vld [vmem:[%s517_s0 + $0x8] ss:$0 sps:$4 sm:$0xff]  }
   0x7   :  { %341 = vmatpush3.bf16.msra.mxu0 %v376_v4  ;;  %v317_v16 = vcombine.high %v18_v14, %v18_v14  ;;  %v386_v19 = vld [vmem:[%s514_s1 + $0x8] sm:$0xff]   ;;  %v388_v20 = vld [vmem:[%s514_s1 + $0x40] sm:$0xff]   ;;  %v316_v22 = vcombine.low %v18_v14, %v18_v14 }
   0x8   :  { %342 = vmatprep.subr.bf16.mxu0 %v377_v5  ;;  %v389_v21 = vld [vmem:[%s514_s1] sm:$0xff]  }
   0x9   :  { %366 = vmatpush3.bf16.msra.mxu1 %v390_v13  ;;  %217 = vmatprep.mubr.bf16.mxu0 %v317_v16  ;;  %v315_v28 = vld [vmem:[%s518_s2] ss:$0 sm:$0xff] }
   0xa   :  { %v281_v47 = vld [vmem:[%s515_s4] sm:$0x1] }
   0xb   :  { %343 = vmatpush3.bf16.msra.mxu0 %v378_v6  ;;  %v292_v50 = vld [vmem:[%s516_s5] sm:$0x1] }
   0xc   :  { %344 = vmatprep.subr.bf16.mxu0 %v379_v7  ;;  %368 = vmatmul.mubr.msk.bf16.vlgmr.msra.gmra.mxu1 %vm181_vm2, %v393_v18 }
   0xf   :  { %345 = vmatpush3.bf16.msra.mxu0 %v380_v8 }
  0x10   :  { %346 = vmatprep.subr.bf16.mxu0 %v381_v9 }
  0x13   :  { %347 = vmatpush3.bf16.msra.mxu0 %v382_v10 }
  0x14   :  { %348 = vmatprep.subr.bf16.mxu0 %v383_v12 }
  0x17   :  { %349 = vmatpush3.bf16.msra.mxu0 %v384_v15 }
  0x18   :  { %350 = vmatprep.subr.bf16.mxu0 %v385_v17 }
  0x1b   :  { %351 = vmatpush3.bf16.msra.mxu0 %v386_v19 }
  0x1c   :  { %352 = vmatprep.subr.bf16.mxu0 %v388_v20 }
  0x1f   :  { %353 = vmatpush3.bf16.msra.mxu0 %v389_v21 }
  0x22   :  { %218 = vmatmul.mubr.bf16.vlgmr.msra.gmra.mxu0 %v316_v22 }
  0xcc   :  { %v259_v23 = vpop.f32.mrf.mxu1 }
  0xce   :  { %v369_v24 = vpop.f32.mrf.mxu1 }
  0xd0   :  { %v262_v25 = vpop.f32.mrf.mxu1 }
  0xd2   :  { %v370_v26 = vpop.f32.mrf.mxu1 }
  0xe2   :  { %v354_v27 = vpop.f32.mrf.mxu0 }
  0xe4   :  { %v355_v29 = vpop.f32.mrf.mxu0 }
  0xe5   :  { %v356_v30 = vadd.f32 %v355_v29, %v354_v27 }
  0xe6   :  { %v357_v31 = vpop.f32.mrf.mxu0 }
  0xe7   :  { %v220_v32 = vadd.f32 %v356_v30, %v315_v28 }
  0xe8   :  { %v358_v33 = vpop.f32.mrf.mxu0 }
  0xe9   :  { %v260_v34 = vadd.f32 %v259_v23, %v220_v32 }
  0xeb   :  { %266 = vst.msk [vmem:[%s519_s3] sm:$0xff] %vm265_vm3, %v260_v34  ;;  %v282_v35 = vsel %vm265_vm3, %v260_v34, 0.0  ;;  %v293_v36 = vmul.f32 %v260_v34, %v260_v34 }
  0xec   :  { %v283_v37 = vrot.slane %v282_v35, 4 }
  0xed   :  { %v294_v38 = vsel %vm265_vm3, %v293_v36, 0.0 }
  0xee   :  { %v284_v39 = vadd.f32 %v283_v37, %v282_v35  ;;  %v295_v40 = vrot.slane %v294_v38, 4 }
  0xf0   :  { %v285_v41 = vrot.slane %v284_v39, 2  ;;  %v296_v42 = vadd.f32 %v295_v40, %v294_v38 }
  0xf2   :  { %v286_v43 = vadd.f32 %v285_v41, %v284_v39  ;;  %v297_v44 = vrot.slane %v296_v42, 2 }
  0xf4   :  { %v287_v45 = vrot.slane %v286_v43, 1  ;;  %v298_v46 = vadd.f32 %v297_v44, %v296_v42 }
  0xf6   :  { %v288_v48 = vadd.f32 %v287_v45, %v286_v43  ;;  %v299_v49 = vrot.slane %v298_v46, 1 }
  0xf8   :  { %v289_v51 = vadd.f32 %v288_v48, %v281_v47  ;;  %v300_v52 = vadd.f32 %v299_v49, %v298_v46 }
  0xfa   :  { %291 = vst.msk [vmem:[%s515_s4] sm:$0x1] %vm278_vm0, %v289_v51  ;;  %v301_v53 = vadd.f32 %v300_v52, %v292_v50 }
  0xfc   :  { %302 = vst.msk [vmem:[%s516_s5] sm:$0x1] %vm278_vm0, %v301_v53 }

// kernel: vae_forward.103
= control target key start
LH: loop header
LB: loop body
LE: loop exit
PB: predicated region body
PF: predicated region fallthrough
CT: control target
= control target key end

     0   :  { %vm39_vm0 = vcmask 519168   ;;  %s83_s0 = inlined_call_operand.vmem [shape: f32[8,64], index: 0, kind: input, shape index: {}]   ;;  %s84_s1 = inlined_call_operand.vmem [shape: f32[1,64], index: 1, kind: input, shape index: {}]   ;;  %s85_s2 = inlined_call_operand.vmem [shape: f32[1,64], index: 2, kind: input, shape index: {}]   ;;  %s86_s3 = inlined_call_operand.vmem [shape: bf16[8,64], index: 3, kind: output, shape index: {}]  }
   0x1   :  { %v14_v0 = vld [vmem:[%s83_s0] sm:$0xff] }
   0x2   :  { %v45_v1 = vld [vmem:[%s84_s1] ss:$0 sm:$0xff] }
   0x3   :  { %v46_v2 = vld [vmem:[%s85_s2] ss:$0 sm:$0xff]  ;;  %v22_v3 = vsub.f32 %v14_v0, %v45_v1 }
   0x5   :  { %v30_v4 = vmul.f32 %v46_v2, %v22_v3 }
   0x7   :  { %v31_v5 = vsub.f32 0.0, %v30_v4 }
   0x9   :  { %v32_v6 = vmul.f32 1.442695, %v31_v5 }
   0xb   :  { %47 = vpow2.f32 %v32_v6 }
  0x18   :  { %v48_v7 = vpop.eup %47 }
  0x19   :  { %v34_v8 = vadd.f32 1.0, %v48_v7 }
  0x1b   :  { %49 = vrcp.f32 %v34_v8 }
  0x28   :  { %v50_v9 = vpop.eup %49 }
  0x29   :  { %v37_v10 = vmul.f32 %v50_v9, %v30_v4 }
  0x2b   :  { %v38_v11 = vpack.c.bf16 %v37_v10, %v37_v10 }
  0x2d   :  { %40 = vst.msk [vmem:[%s86_s3] sm:$0xf] %vm39_vm0, %v38_v11 }

// kernel: vae_forward.112
= control target key start
LH: loop header
LB: loop body
LE: loop exit
PB: predicated region body
PF: predicated region fallthrough
CT: control target
= control target key end

     0   :  { %v306_v0 = vmov 0   ;;  %vm119_vm0 = vcmask 130048   ;;  %vm203_vm1 = vcmask 253952   ;;  %v307_v14 = vmov 0.0   ;;  %s426_s1 = inlined_call_operand.vmem [shape: bf16[144,32], index: 1, kind: input, shape index: {}]   ;;  %s427_s0 = inlined_call_operand.vmem [shape: bf16[32,144], index: 0, kind: input, shape index: {}]   ;;  %s428_s4 = inlined_call_operand.vmem [shape: f32[1,32], index: 4, kind: output, shape index: {1}]   ;;  %s429_s5 = inlined_call_operand.vmem [shape: f32[1,32], index: 5, kind: output, shape index: {2}]   ;;  %s430_s2 = inlined_call_operand.vmem [shape: f32[1,32], index: 2, kind: input, shape index: {}]   ;;  %s431_s3 = inlined_call_operand.vmem [shape: f32[32,32], index: 3, kind: output, shape index: {0}]  }
   0x1   :  { %126 = vmatprep.subr.bf16.mxu0 %v306_v0  ;;  %271 = vmatprep.subr.bf16.mxu1 %v306_v0  ;;  %v291_v1 = vld [vmem:[%s426_s1 + $0x38] sm:$0xff]   ;;  %v292_v2 = vld [vmem:[%s426_s1 + $0x30] sm:$0xff]   ;;  %v293_v3 = vld [vmem:[%s426_s1 + $0x28] sm:$0xff]   ;;  %204 = vst.msk [vmem:[%s428_s4] sm:$0x1] %vm203_vm1, %v307_v14  ;;  %vm175_vm2 = vcmask 261120  }
   0x2   :  { %127 = vmatpush1.bf16.msra.mxu0 %v291_v1  ;;  %280 = vmatpush1.bf16.msra.mxu1 %v291_v1  ;;  %v294_v4 = vld [vmem:[%s426_s1 + $0x20] sm:$0xff]   ;;  %v305_v6 = vld [vmem:[%s427_s0 + $0x14] ss:$8 sps:$4 sm:$0xff]   ;;  %v297_v9 = vld [vmem:[%s426_s1 + $0x8] sm:$0xff]   ;;  %205 = vst.msk [vmem:[%s429_s5] sm:$0x1] %vm203_vm1, %v307_v14 }
   0x3   :  { %128 = vmatprep.subr.bf16.mxu0 %v306_v0  ;;  %272 = vmatprep.subr.bf16.mxu1 %v306_v0  ;;  %v302_v5 = vld [vmem:[%s427_s0 + $0x4] ss:$8 sps:$4 sm:$0xff]   ;;  %v295_v7 = vld [vmem:[%s426_s1 + $0x18] sm:$0xff]   ;;  %v296_v8 = vld [vmem:[%s426_s1 + $0x10] sm:$0xff]  }
   0x4   :  { %269 = vmatprep.mubr.msk.bf16.mxu0 %vm119_vm0, %v302_v5  ;;  %270 = vmatprep.mubr.msk.bf16.mxu1 %vm119_vm0, %v305_v6  ;;  %v298_v10 = vld [vmem:[%s426_s1] sm:$0xff]   ;;  %v303_v13 = vld [vmem:[%s427_s0 + $0x10] ss:$8 sps:$4 sm:$0xff]  }
   0x5   :  { %v299_v11 = vld [vmem:[%s426_s1 + $0x40] sm:$0xff]  }
   0x6   :  { %129 = vmatpush1.bf16.msra.mxu0 %v292_v2  ;;  %281 = vmatpush1.bf16.msra.mxu1 %v292_v2  ;;  %v300_v12 = vld [vmem:[%s427_s0] ss:$8 sps:$4 sm:$0xff]  }
   0x7   :  { %130 = vmatprep.subr.bf16.mxu0 %v306_v0  ;;  %273 = vmatprep.subr.bf16.mxu1 %v306_v0  ;;  %v255_v15 = vld [vmem:[%s430_s2] ss:$0 sm:$0xff] }
   0x8   :  { %v206_v55 = vld [vmem:[%s428_s4] sm:$0x1] }
   0x9   :  { %v223_v58 = vld [vmem:[%s429_s5] sm:$0x1] }
   0xa   :  { %131 = vmatpush1.bf16.msra.mxu0 %v293_v3  ;;  %282 = vmatpush1.bf16.msra.mxu1 %v293_v3 }
   0xb   :  { %132 = vmatprep.subr.bf16.mxu0 %v306_v0  ;;  %274 = vmatprep.subr.bf16.mxu1 %v306_v0 }
   0xe   :  { %133 = vmatpush1.bf16.msra.mxu0 %v294_v4  ;;  %283 = vmatpush1.bf16.msra.mxu1 %v294_v4 }
   0xf   :  { %134 = vmatprep.subr.bf16.mxu0 %v306_v0  ;;  %275 = vmatprep.subr.bf16.mxu1 %v306_v0 }
  0x12   :  { %135 = vmatpush1.bf16.msra.mxu0 %v295_v7  ;;  %284 = vmatpush1.bf16.msra.mxu1 %v295_v7 }
  0x13   :  { %136 = vmatprep.subr.bf16.mxu0 %v306_v0  ;;  %276 = vmatprep.subr.bf16.mxu1 %v306_v0 }
  0x16   :  { %137 = vmatpush1.bf16.msra.mxu0 %v296_v8  ;;  %285 = vmatpush1.bf16.msra.mxu1 %v296_v8 }
  0x17   :  { %138 = vmatprep.subr.bf16.mxu0 %v306_v0  ;;  %277 = vmatprep.subr.bf16.mxu1 %v306_v0 }
  0x1a   :  { %139 = vmatpush1.bf16.msra.mxu0 %v297_v9  ;;  %286 = vmatpush1.bf16.msra.mxu1 %v297_v9 }
  0x1b   :  { %140 = vmatprep.subr.bf16.mxu0 %v306_v0  ;;  %278 = vmatprep.subr.bf16.mxu1 %v306_v0 }
  0x1e   :  { %141 = vmatpush1.bf16.msra.mxu0 %v298_v10  ;;  %287 = vmatpush1.bf16.msra.mxu1 %v298_v10 }
  0x1f   :  { %156 = vmatprep.subr.bf16.mxu0 %v306_v0  ;;  %279 = vmatprep.subr.bf16.mxu1 %v306_v0 }
  0x22   :  { %157 = vmatpush2.bf16.msra.mxu0 %v299_v11  ;;  %288 = vmatpush2.bf16.msra.mxu1 %v299_v11 }
  0x25   :  { %159 = vmatmul.mubr.bf16.vlgmr.msra.gmra.mxu0 %v300_v12  ;;  %167 = vmatmul.mubr.bf16.vlgmr.msra.gmra.mxu1 %v303_v13 }
  0xe5   :  { %v160_v16 = vpop.f32.mrf.mxu0  ;;  %v168_v17 = vpop.f32.mrf.mxu1 }
  0xe6   :  { %v161_v18 = vadd.f32 %v255_v15, %v160_v16  ;;  %v169_v19 = vadd.f32 %v255_v15, %v168_v17 }
  0xe7   :  { %v162_v20 = vpop.f32.mrf.mxu0  ;;  %v170_v21 = vpop.f32.mrf.mxu1 }
  0xe8   :  { %176 = vst.msk [vmem:[%s431_s3] sm:$0xff] %vm175_vm2, %v161_v18  ;;  %178 = vst.msk [vmem:[%s431_s3 + $0x10] sm:$0xff] %vm175_vm2, %v169_v19  ;;  %v224_v24 = vmul.f32 %v161_v18, %v161_v18  ;;  %v207_v29 = vsel %vm175_vm2, %v161_v18, 0.0  ;;  %v226_v30 = vmul.f32 %v169_v19, %v169_v19  ;;  %v210_v35 = vsel %vm175_vm2, %v169_v19, 0.0 }
  0xe9   :  { %v163_v22 = vpop.f32.mrf.mxu0  ;;  %v171_v23 = vpop.f32.mrf.mxu1 }
  0xea   :  { %v164_v25 = vadd.f32 %v255_v15, %v163_v22  ;;  %v172_v26 = vadd.f32 %v255_v15, %v171_v23  ;;  %v228_v34 = vsel %vm175_vm2, %v224_v24, 0.0  ;;  %v231_v40 = vsel %vm175_vm2, %v226_v30, 0.0 }
  0xeb   :  { %v165_v27 = vpop.f32.mrf.mxu0  ;;  %v173_v28 = vpop.f32.mrf.mxu1 }
  0xec   :  { %177 = vst.msk [vmem:[%s431_s3 + $0x8] sm:$0xff] %vm175_vm2, %v164_v25  ;;  %v208_v31 = vsel %vm175_vm2, %v164_v25, 0.0  ;;  %v225_v32 = vmul.f32 %v164_v25, %v164_v25  ;;  %179 = vst.msk [vmem:[%s431_s3 + $0x18] sm:$0xff] %vm175_vm2, %v172_v26  ;;  %v227_v37 = vmul.f32 %v172_v26, %v172_v26  ;;  %v212_v41 = vsel %vm175_vm2, %v172_v26, 0.0 }
  0xed   :  { %v209_v33 = vadd.f32 %v208_v31, %v207_v29 }
  0xee   :  { %v229_v36 = vsel %vm175_vm2, %v225_v32, 0.0  ;;  %v233_v44 = vsel %vm175_vm2, %v227_v37, 0.0 }
  0xef   :  { %v230_v38 = vadd.f32 %v229_v36, %v228_v34  ;;  %v211_v39 = vadd.f32 %v210_v35, %v209_v33 }
  0xf1   :  { %v213_v42 = vadd.f32 %v212_v41, %v211_v39  ;;  %v232_v43 = vadd.f32 %v231_v40, %v230_v38 }
  0xf3   :  { %v214_v45 = vrot.slane %v213_v42, 4  ;;  %v234_v46 = vadd.f32 %v233_v44, %v232_v43 }
  0xf5   :  { %v215_v47 = vadd.f32 %v214_v45, %v213_v42  ;;  %v235_v48 = vrot.slane %v234_v46, 4 }
  0xf7   :  { %v216_v49 = vrot.slane %v215_v47, 2  ;;  %v236_v50 = vadd.f32 %v235_v48, %v234_v46 }
  0xf9   :  { %v217_v51 = vadd.f32 %v216_v49, %v215_v47  ;;  %v237_v52 = vrot.slane %v236_v50, 2 }
  0xfb   :  { %v218_v53 = vrot.slane %v217_v51, 1  ;;  %v238_v54 = vadd.f32 %v237_v52, %v236_v50 }
  0xfd   :  { %v219_v56 = vadd.f32 %v218_v53, %v217_v51  ;;  %v239_v57 = vrot.slane %v238_v54, 1 }
  0xff   :  { %v220_v59 = vadd.f32 %v219_v56, %v206_v55  ;;  %v240_v60 = vadd.f32 %v239_v57, %v238_v54 }
 0x101   :  { %222 = vst.msk [vmem:[%s428_s4] sm:$0x1] %vm203_vm1, %v220_v59  ;;  %v241_v61 = vadd.f32 %v240_v60, %v223_v58 }
 0x103   :  { %242 = vst.msk [vmem:[%s429_s5] sm:$0x1] %vm203_vm1, %v241_v61 }

// kernel: vae_forward.113
= control target key start
LH: loop header
LB: loop body
LE: loop exit
PB: predicated region body
PF: predicated region fallthrough
CT: control target
= control target key end

     0   :  { %vm84_vm0 = vcmask 257024   ;;  %s169_s0 = inlined_call_operand.vmem [shape: f32[32,32], index: 0, kind: input, shape index: {}]   ;;  %s170_s1 = inlined_call_operand.vmem [shape: f32[1,32], index: 1, kind: input, shape index: {}]   ;;  %s171_s2 = inlined_call_operand.vmem [shape: f32[1,32], index: 2, kind: input, shape index: {}]   ;;  %s172_s3 = inlined_call_operand.vmem [shape: bf16[32,32], index: 3, kind: output, shape index: {}]  }
   0x1   :  { %v14_v0 = vld [vmem:[%s169_s0] sm:$0xff]  ;;  %v15_v4 = vld [vmem:[%s169_s0 + $0x8] sm:$0xff]  ;;  %v16_v5 = vld [vmem:[%s169_s0 + $0x10] sm:$0xff] }
   0x2   :  { %v93_v1 = vld [vmem:[%s170_s1] ss:$0 sm:$0xff]  ;;  %v17_v6 = vld [vmem:[%s169_s0 + $0x18] sm:$0xff] }
   0x3   :  { %v94_v2 = vld [vmem:[%s171_s2] ss:$0 sm:$0xff]  ;;  %v25_v3 = vsub.f32 %v14_v0, %v93_v1  ;;  %v26_v7 = vsub.f32 %v15_v4, %v93_v1  ;;  %v27_v8 = vsub.f32 %v16_v5, %v93_v1  ;;  %v28_v9 = vsub.f32 %v17_v6, %v93_v1 }
   0x5   :  { %v36_v10 = vmul.f32 %v94_v2, %v25_v3  ;;  %v37_v11 = vmul.f32 %v94_v2, %v26_v7  ;;  %v38_v12 = vmul.f32 %v94_v2, %v27_v8  ;;  %v39_v13 = vmul.f32 %v94_v2, %v28_v9 }
   0x7   :  { %v40_v14 = vsub.f32 0.0, %v36_v10  ;;  %v41_v15 = vsub.f32 0.0, %v37_v11  ;;  %v42_v16 = vsub.f32 0.0, %v38_v12  ;;  %v43_v17 = vsub.f32 0.0, %v39_v13 }
   0x9   :  { %v44_v18 = vmul.f32 1.442695, %v40_v14  ;;  %v46_v19 = vmul.f32 1.442695, %v41_v15  ;;  %v48_v20 = vmul.f32 1.442695, %v42_v16 }
   0xa   :  { %v50_v21 = vmul.f32 1.442695, %v43_v17 }
   0xb   :  { %103 = vpow2.f32 %v44_v18 }
   0xc   :  { %105 = vpow2.f32 %v46_v19 }
   0xd   :  { %107 = vpow2.f32 %v48_v20 }
   0xe   :  { %109 = vpow2.f32 %v50_v21 }
  0x18   :  { %v104_v22 = vpop.eup %103 }
  0x19   :  { %v106_v23 = vpop.eup %105  ;;  %v52_v24 = vadd.f32 1.0, %v104_v22 }
  0x1a   :  { %v108_v25 = vpop.eup %107  ;;  %v53_v26 = vadd.f32 1.0, %v106_v23 }
  0x1b   :  { %v110_v27 = vpop.eup %109  ;;  %111 = vrcp.f32 %v52_v24  ;;  %v54_v28 = vadd.f32 1.0, %v108_v25 }
  0x1c   :  { %113 = vrcp.f32 %v53_v26  ;;  %v55_v29 = vadd.f32 1.0, %v110_v27 }
  0x1d   :  { %115 = vrcp.f32 %v54_v28 }
  0x1e   :  { %117 = vrcp.f32 %v55_v29 }
  0x28   :  { %v112_v30 = vpop.eup %111 }
  0x29   :  { %v114_v31 = vpop.eup %113  ;;  %v64_v32 = vmul.f32 %v112_v30, %v36_v10 }
  0x2a   :  { %v116_v33 = vpop.eup %115  ;;  %v65_v34 = vmul.f32 %v114_v31, %v37_v11 }
  0x2b   :  { %v118_v35 = vpop.eup %117  ;;  %v99_v36 = vpack.c.bf16 %v64_v32, %v64_v32  ;;  %v66_v37 = vmul.f32 %v116_v33, %v38_v12 }
  0x2c   :  { %v100_v38 = vpack.c.bf16 %v65_v34, %v65_v34  ;;  %v67_v39 = vmul.f32 %v118_v35, %v39_v13 }
  0x2d   :  { %85 = vst.msk [vmem:[%s172_s3] sm:$0xf] %vm84_vm0, %v99_v36  ;;  %v101_v40 = vpack.c.bf16 %v66_v37, %v66_v37 }
  0x2e   :  { %86 = vst.msk [vmem:[%s172_s3 + $0x4] sm:$0xf] %vm84_vm0, %v100_v38  ;;  %v102_v41 = vpack.c.bf16 %v67_v39, %v67_v39 }
  0x2f   :  { %87 = vst.msk [vmem:[%s172_s3 + $0x8] sm:$0xf] %vm84_vm0, %v101_v40 }
  0x30   :  { %88 = vst.msk [vmem:[%s172_s3 + $0xc] sm:$0xf] %vm84_vm0, %v102_v41 }

// kernel: vae_forward.122
= control target key start
LH: loop header
LB: loop body
LE: loop exit
PB: predicated region body
PF: predicated region fallthrough
CT: control target
= control target key end

     0   :  { %vm142_vm0 = vcmask 1043456   ;;  %vm117_vm1 = vcmask 588800   ;;  %vm331_vm2 = vcmask 90112   ;;  %v530_v14 = vmov 0.0   ;;  %s777_s1 = inlined_call_operand.vmem [shape: bf16[72,12], index: 1, kind: input, shape index: {}]   ;;  %s778_s0 = inlined_call_operand.vmem [shape: bf16[128,72], index: 0, kind: input, shape index: {}]   ;;  %s779_s4 = inlined_call_operand.vmem [shape: f32[1,12], index: 4, kind: output, shape index: {1}]   ;;  %s780_s5 = inlined_call_operand.vmem [shape: f32[1,12], index: 5, kind: output, shape index: {2}]   ;;  %s781_s2 = inlined_call_operand.vmem [shape: f32[1,12], index: 2, kind: input, shape index: {}]   ;;  %s782_s3 = inlined_call_operand.vmem [shape: f32[128,12], index: 3, kind: output, shape index: {0}]  }
   0x1   :  { %v517_v0 = vld [vmem:[%s777_s1 + $0x20] ss:$0 sps:$4 sm:$0xff]   ;;  %v518_v1 = vld [vmem:[%s777_s1 + $0x18] sm:$0xff]   ;;  %v519_v3 = vld [vmem:[%s777_s1 + $0x10] sm:$0xff]   ;;  %332 = vst.msk [vmem:[%s779_s4] sm:$0x1] %vm331_vm2, %v530_v14 }
   0x2   :  { %514 = vmatprep.subr.msk.bf16.mxu0 %vm142_vm0, %v517_v0  ;;  %v144_v2 = vsel %vm142_vm0, %v517_v0, 0  ;;  %515 = vmatprep.subr.msk.bf16.mxu1 %vm142_vm0, %v517_v0  ;;  %v522_v4 = vld [vmem:[%s778_s0] sm:$0xff]   ;;  %v520_v5 = vld [vmem:[%s777_s1 + $0x8] sm:$0xff]   ;;  %v524_v10 = vld [vmem:[%s778_s0 + $0x10] sm:$0xff]   ;;  %333 = vst.msk [vmem:[%s780_s5] sm:$0x1] %vm331_vm2, %v530_v14 }
   0x3   :  { %479 = vmatpush3.bf16.msra.mxu0 %v144_v2  ;;  %509 = vmatpush3.bf16.msra.mxu1 %v144_v2  ;;  %v526_v6 = vld [vmem:[%s778_s0 + $0x20] sm:$0xff]   ;;  %v523_v8 = vld [vmem:[%s778_s0 + $0x8] sm:$0xff]   ;;  %v528_v11 = vld [vmem:[%s778_s0 + $0x30] sm:$0xff]   ;;  %vm243_vm3 = vcmask 97280  }
   0x4   :  { %480 = vmatprep.subr.bf16.mxu0 %v518_v1  ;;  %505 = vmatprep.subr.bf16.mxu1 %v518_v1  ;;  %v521_v7 = vld [vmem:[%s777_s1] sm:$0xff]   ;;  %v527_v9 = vld [vmem:[%s778_s0 + $0x28] sm:$0xff]   ;;  %v525_v12 = vld [vmem:[%s778_s0 + $0x18] sm:$0xff]  }
   0x5   :  { %488 = vmatprep.mubr.msk.bf16.mxu0 %vm117_vm1, %v522_v4  ;;  %496 = vmatprep.mubr.msk.bf16.mxu1 %vm117_vm1, %v526_v6  ;;  %v529_v13 = vld [vmem:[%s778_s0 + $0x38] sm:$0xff]   ;;  %v619_v15 = vld [vmem:[%s781_s2] ss:$0 sm:$0xff] }
   0x7   :  { %481 = vmatpush3.bf16.msra.mxu0 %v518_v1  ;;  %510 = vmatpush3.bf16.msra.mxu1 %v518_v1 }
   0x8   :  { %482 = vmatprep.subr.bf16.mxu0 %v519_v3  ;;  %506 = vmatprep.subr.bf16.mxu1 %v519_v3 }
   0xb   :  { %483 = vmatpush3.bf16.msra.mxu0 %v519_v3  ;;  %511 = vmatpush3.bf16.msra.mxu1 %v519_v3 }
   0xc   :  { %484 = vmatprep.subr.bf16.mxu0 %v520_v5  ;;  %507 = vmatprep.subr.bf16.mxu1 %v520_v5 }
   0xf   :  { %485 = vmatpush3.bf16.msra.mxu0 %v520_v5  ;;  %512 = vmatpush3.bf16.msra.mxu1 %v520_v5 }
  0x10   :  { %486 = vmatprep.subr.bf16.mxu0 %v521_v7  ;;  %508 = vmatprep.subr.bf16.mxu1 %v521_v7 }
  0x13   :  { %487 = vmatpush3.bf16.msra.mxu0 %v521_v7  ;;  %513 = vmatpush3.bf16.msra.mxu1 %v521_v7 }
  0x16   :  { %489 = vmatmul.mubr.msk.bf16.vlgmr.msra.gmra.mxu0 %vm117_vm1, %v523_v8  ;;  %497 = vmatmul.mubr.msk.bf16.vlgmr.msra.gmra.mxu1 %vm117_vm1, %v527_v9 }
  0x17   :  { %492 = vmatprep.mubr.msk.bf16.mxu0 %vm117_vm1, %v524_v10  ;;  %500 = vmatprep.mubr.msk.bf16.mxu1 %vm117_vm1, %v528_v11 }
  0x1e   :  { %493 = vmatmul.mubr.msk.bf16.gmra.mxu0 %vm117_vm1, %v525_v12  ;;  %501 = vmatmul.mubr.msk.bf16.gmra.mxu1 %vm117_vm1, %v529_v13 }
  0xd6   :  { %v490_v16 = vpop.f32.mrf.mxu0  ;;  %v498_v17 = vpop.f32.mrf.mxu1 }
  0xd7   :  { %v189_v18 = vadd.f32 %v490_v16, %v619_v15  ;;  %v623_v19 = vadd.f32 %v498_v17, %v619_v15 }
  0xd8   :  { %v180_v20 = vpop.f32.mrf.mxu0  ;;  %v212_v21 = vpop.f32.mrf.mxu1 }
  0xd9   :  { %246 = vst.msk [vmem:[%s782_s3 + $0x10] sm:$0xff] %vm243_vm3, %v189_v18  ;;  %v181_v22 = vadd.f32 %v619_v15, %v180_v20  ;;  %254 = vst.msk [vmem:[%s782_s3 + $0x50] sm:$0xff] %vm243_vm3, %v623_v19  ;;  %v636_v24 = vadd.f32 %v619_v15, %v212_v21  ;;  %v378_v32 = vmul.f32 %v189_v18, %v189_v18  ;;  %v338_v40 = vsel %vm243_vm3, %v189_v18, 0.0 }
  0xda   :  { %v491_v23 = vpop.f32.mrf.mxu0  ;;  %v499_v25 = vpop.f32.mrf.mxu1 }
  0xdb   :  { %244 = vst.msk [vmem:[%s782_s3] sm:$0xff] %vm243_vm3, %v181_v22  ;;  %v192_v26 = vadd.f32 %v491_v23, %v619_v15  ;;  %252 = vst.msk [vmem:[%s782_s3 + $0x40] sm:$0xff] %vm243_vm3, %v636_v24  ;;  %v649_v28 = vadd.f32 %v499_v25, %v619_v15  ;;  %v376_v30 = vmul.f32 %v181_v22, %v181_v22  ;;  %v335_v36 = vsel %vm243_vm3, %v181_v22, 0.0 }
  0xdc   :  { %v183_v27 = vpop.f32.mrf.mxu0  ;;  %v215_v29 = vpop.f32.mrf.mxu1  ;;  %v395_v53 = vsel %vm243_vm3, %v378_v32, 0.0  ;;  %v384_v20 = vmul.f32 %v636_v24, %v636_v24 }
  0xdd   :  { %247 = vst.msk [vmem:[%s782_s3 + $0x18] sm:$0xff] %vm243_vm3, %v192_v26  ;;  %v184_v31 = vadd.f32 %v619_v15, %v183_v27  ;;  %255 = vst.msk [vmem:[%s782_s3 + $0x58] sm:$0xff] %vm243_vm3, %v649_v28  ;;  %v662_v34 = vadd.f32 %v619_v15, %v215_v29  ;;  %v392_v44 = vsel %vm243_vm3, %v376_v30, 0.0  ;;  %v379_v45 = vmul.f32 %v192_v26, %v192_v26 }
  0xde   :  { %v494_v33 = vpop.f32.mrf.mxu0  ;;  %v502_v35 = vpop.f32.mrf.mxu1  ;;  %v340_v54 = vsel %vm243_vm3, %v192_v26, 0.0  ;;  %v386_v29 = vmul.f32 %v623_v19, %v623_v19  ;;  %v407_v30 = vsel %vm243_vm3, %v384_v20, 0.0 }
  0xdf   :  { %245 = vst.msk [vmem:[%s782_s3 + $0x8] sm:$0xff] %vm243_vm3, %v184_v31  ;;  %v336_v37 = vsel %vm243_vm3, %v184_v31, 0.0  ;;  %v377_v38 = vmul.f32 %v184_v31, %v184_v31  ;;  %v205_v39 = vadd.f32 %v494_v33, %v619_v15  ;;  %253 = vst.msk [vmem:[%s782_s3 + $0x48] sm:$0xff] %vm243_vm3, %v662_v34  ;;  %v685_v51 = vadd.f32 %v502_v35, %v619_v15 }
  0xe0   :  { %v337_v41 = vadd.f32 %v336_v37, %v335_v36  ;;  %v196_v42 = vpop.f32.mrf.mxu0  ;;  %v228_v43 = vpop.f32.mrf.mxu1  ;;  %v397_v60 = vsel %vm243_vm3, %v379_v45, 0.0  ;;  %v385_v25 = vmul.f32 %v662_v34, %v662_v34  ;;  %v352_v31 = vsel %vm243_vm3, %v662_v34, 0.0 }
  0xe1   :  { %v393_v46 = vsel %vm243_vm3, %v377_v38, 0.0  ;;  %250 = vst.msk [vmem:[%s782_s3 + $0x30] sm:$0xff] %vm243_vm3, %v205_v39  ;;  %v197_v47 = vadd.f32 %v619_v15, %v196_v42  ;;  %258 = vst.msk [vmem:[%s782_s3 + $0x70] sm:$0xff] %vm243_vm3, %v685_v51  ;;  %v382_v63 = vmul.f32 %v205_v39, %v205_v39  ;;  %v229_v2 = vadd.f32 %v619_v15, %v228_v43 }
  0xe2   :  { %v339_v48 = vadd.f32 %v338_v40, %v337_v41  ;;  %v394_v49 = vadd.f32 %v393_v46, %v392_v44  ;;  %v495_v50 = vpop.f32.mrf.mxu0  ;;  %v503_v52 = vpop.f32.mrf.mxu1  ;;  %v346_v10 = vsel %vm243_vm3, %v205_v39, 0.0  ;;  %v354_v35 = vsel %vm243_vm3, %v623_v19, 0.0 }
  0xe3   :  { %248 = vst.msk [vmem:[%s782_s3 + $0x20] sm:$0xff] %vm243_vm3, %v197_v47  ;;  %v380_v55 = vmul.f32 %v197_v47, %v197_v47  ;;  %v208_v56 = vadd.f32 %v495_v50, %v619_v15  ;;  %v342_v61 = vsel %vm243_vm3, %v197_v47, 0.0  ;;  %v240_v7 = vadd.f32 %v503_v52, %v619_v15  ;;  %256 = vst.msk [vmem:[%s782_s3 + $0x60] sm:$0xff] %vm243_vm3, %v229_v2 }
  0xe4   :  { %v396_v57 = vadd.f32 %v395_v53, %v394_v49  ;;  %v341_v58 = vadd.f32 %v340_v54, %v339_v48  ;;  %v199_v59 = vpop.f32.mrf.mxu0  ;;  %v231_v3 = vpop.f32.mrf.mxu1  ;;  %v403_v17 = vsel %vm243_vm3, %v382_v63, 0.0  ;;  %v409_v36 = vsel %vm243_vm3, %v385_v25, 0.0 }
  0xe5   :  { %251 = vst.msk [vmem:[%s782_s3 + $0x38] sm:$0xff] %vm243_vm3, %v208_v56  ;;  %v200_v62 = vadd.f32 %v619_v15, %v199_v59  ;;  %v399_v4 = vsel %vm243_vm3, %v380_v55, 0.0  ;;  %v383_v11 = vmul.f32 %v208_v56, %v208_v56  ;;  %259 = vst.msk [vmem:[%s782_s3 + $0x78] sm:$0xff] %vm243_vm3, %v240_v7  ;;  %v232_v13 = vadd.f32 %v619_v15, %v231_v3 }
  0xe6   :  { %v343_v0 = vadd.f32 %v342_v61, %v341_v58  ;;  %v398_v1 = vadd.f32 %v397_v60, %v396_v57  ;;  %v348_v18 = vsel %vm243_vm3, %v208_v56, 0.0  ;;  %v350_v15 = vsel %vm243_vm3, %v636_v24, 0.0 }
  0xe7   :  { %249 = vst.msk [vmem:[%s782_s3 + $0x28] sm:$0xff] %vm243_vm3, %v200_v62  ;;  %v344_v5 = vsel %vm243_vm3, %v200_v62, 0.0  ;;  %v381_v6 = vmul.f32 %v200_v62, %v200_v62  ;;  %257 = vst.msk [vmem:[%s782_s3 + $0x68] sm:$0xff] %vm243_vm3, %v232_v13  ;;  %v405_v23 = vsel %vm243_vm3, %v383_v11, 0.0  ;;  %v387_v24 = vmul.f32 %v649_v28, %v649_v28 }
  0xe8   :  { %v400_v8 = vadd.f32 %v399_v4, %v398_v1  ;;  %v345_v9 = vadd.f32 %v344_v5, %v343_v0  ;;  %v411_v39 = vsel %vm243_vm3, %v386_v29, 0.0  ;;  %v356_v40 = vsel %vm243_vm3, %v649_v28, 0.0 }
  0xe9   :  { %v401_v12 = vsel %vm243_vm3, %v381_v6, 0.0  ;;  %v388_v41 = vmul.f32 %v229_v2, %v229_v2  ;;  %v413_v43 = vsel %vm243_vm3, %v387_v24, 0.0  ;;  %v358_v44 = vsel %vm243_vm3, %v229_v2, 0.0 }
  0xea   :  { %v347_v14 = vadd.f32 %v346_v10, %v345_v9  ;;  %v402_v16 = vadd.f32 %v401_v12, %v400_v8  ;;  %v389_v19 = vmul.f32 %v232_v13, %v232_v13  ;;  %v390_v47 = vmul.f32 %v685_v51, %v685_v51  ;;  %v334_v8 = vld [vmem:[%s779_s4] sm:$0x1] }
  0xeb   :  { %v415_v48 = vsel %vm243_vm3, %v388_v41, 0.0  ;;  %v360_v49 = vsel %vm243_vm3, %v232_v13, 0.0  ;;  %v362_v28 = vsel %vm243_vm3, %v685_v51, 0.0  ;;  %v391_v53 = vmul.f32 %v240_v7, %v240_v7  ;;  %v375_v10 = vld [vmem:[%s780_s5] sm:$0x1] }
  0xec   :  { %v404_v21 = vadd.f32 %v403_v17, %v402_v16  ;;  %v349_v22 = vadd.f32 %v348_v18, %v347_v14  ;;  %v417_v54 = vsel %vm243_vm3, %v389_v19, 0.0  ;;  %v419_v57 = vsel %vm243_vm3, %v390_v47, 0.0 }
  0xed   :  { %v364_v58 = vsel %vm243_vm3, %v240_v7, 0.0  ;;  %v421_v61 = vsel %vm243_vm3, %v391_v53, 0.0 }
  0xee   :  { %v351_v26 = vadd.f32 %v350_v15, %v349_v22  ;;  %v406_v27 = vadd.f32 %v405_v23, %v404_v21 }
  0xf0   :  { %v353_v32 = vadd.f32 %v352_v31, %v351_v26  ;;  %v408_v33 = vadd.f32 %v407_v30, %v406_v27 }
  0xf2   :  { %v355_v37 = vadd.f32 %v354_v35, %v353_v32  ;;  %v410_v38 = vadd.f32 %v409_v36, %v408_v33 }
  0xf4   :  { %v412_v42 = vadd.f32 %v411_v39, %v410_v38  ;;  %v357_v34 = vadd.f32 %v356_v40, %v355_v37 }
  0xf6   :  { %v359_v45 = vadd.f32 %v358_v44, %v357_v34  ;;  %v414_v46 = vadd.f32 %v413_v43, %v412_v42 }
  0xf8   :  { %v416_v50 = vadd.f32 %v415_v48, %v414_v46  ;;  %v361_v52 = vadd.f32 %v360_v49, %v359_v45 }
  0xfa   :  { %v363_v55 = vadd.f32 %v362_v28, %v361_v52  ;;  %v418_v56 = vadd.f32 %v417_v54, %v416_v50 }
  0xfc   :  { %v365_v59 = vadd.f32 %v364_v58, %v363_v55  ;;  %v420_v60 = vadd.f32 %v419_v57, %v418_v56 }
  0xfe   :  { %v366_v62 = vrot.slane %v365_v59, 4  ;;  %v422_v63 = vadd.f32 %v421_v61, %v420_v60 }
 0x100   :  { %v367_v0 = vadd.f32 %v366_v62, %v365_v59  ;;  %v423_v1 = vrot.slane %v422_v63, 4 }
 0x102   :  { %v368_v2 = vrot.slane %v367_v0, 2  ;;  %v424_v3 = vadd.f32 %v423_v1, %v422_v63 }
 0x104   :  { %v369_v51 = vadd.f32 %v368_v2, %v367_v0  ;;  %v425_v4 = vrot.slane %v424_v3, 2 }
 0x106   :  { %v370_v5 = vrot.slane %v369_v51, 1  ;;  %v426_v6 = vadd.f32 %v425_v4, %v424_v3 }
 0x108   :  { %v371_v9 = vadd.f32 %v370_v5, %v369_v51  ;;  %v427_v7 = vrot.slane %v426_v6, 1 }
 0x10a   :  { %v372_v11 = vadd.f32 %v371_v9, %v334_v8  ;;  %v428_v12 = vadd.f32 %v427_v7, %v426_v6 }
 0x10c   :  { %374 = vst.msk [vmem:[%s779_s4] sm:$0x1] %vm331_vm2, %v372_v11  ;;  %v429_v13 = vadd.f32 %v428_v12, %v375_v10 }
 0x10e   :  { %430 = vst.msk [vmem:[%s780_s5] sm:$0x1] %vm331_vm2, %v429_v13 }

// kernel: vae_forward.123
= control target key start
LH: loop header
LB: loop body
LE: loop exit
PB: predicated region body
PF: predicated region fallthrough
CT: control target
= control target key end

     0   :  { %vm252_vm0 = vcmask 93184   ;;  %s609_s0 = inlined_call_operand.vmem [shape: f32[128,12], index: 0, kind: input, shape index: {}]   ;;  %s610_s1 = inlined_call_operand.vmem [shape: f32[1,12], index: 1, kind: input, shape index: {}]   ;;  %s611_s2 = inlined_call_operand.vmem [shape: f32[1,12], index: 2, kind: input, shape index: {}]   ;;  %s612_s3 = inlined_call_operand.vmem [shape: bf16[128,12], index: 3, kind: output, shape index: {}]  }
   0x1   :  { %v14_v0 = vld [vmem:[%s609_s0] sm:$0xff]  ;;  %v15_v4 = vld [vmem:[%s609_s0 + $0x8] sm:$0xff]  ;;  %v16_v5 = vld [vmem:[%s609_s0 + $0x10] sm:$0xff] }
   0x2   :  { %v397_v1 = vld [vmem:[%s610_s1] ss:$0 sm:$0xff]  ;;  %v17_v6 = vld [vmem:[%s609_s0 + $0x18] sm:$0xff]  ;;  %v19_v11 = vld [vmem:[%s609_s0 + $0x28] sm:$0xff] }
   0x3   :  { %v402_v2 = vld [vmem:[%s611_s2] ss:$0 sm:$0xff]  ;;  %v37_v3 = vsub.f32 %v14_v0, %v397_v1  ;;  %v38_v7 = vsub.f32 %v15_v4, %v397_v1  ;;  %v39_v8 = vsub.f32 %v16_v5, %v397_v1  ;;  %v40_v9 = vsub.f32 %v17_v6, %v397_v1  ;;  %v20_v12 = vld [vmem:[%s609_s0 + $0x30] sm:$0xff]  ;;  %v21_v17 = vld [vmem:[%s609_s0 + $0x38] sm:$0xff] }
   0x4   :  { %v18_v10 = vld [vmem:[%s609_s0 + $0x20] sm:$0xff]  ;;  %v42_v15 = vsub.f32 %v19_v11, %v397_v1  ;;  %v43_v16 = vsub.f32 %v20_v12, %v397_v1  ;;  %v44_v21 = vsub.f32 %v21_v17, %v397_v1  ;;  %v23_v31 = vld [vmem:[%s609_s0 + $0x48] sm:$0xff]  ;;  %v24_v32 = vld [vmem:[%s609_s0 + $0x50] sm:$0xff] }
   0x5   :  { %v427_v13 = vmul.f32 %v402_v2, %v37_v3  ;;  %v41_v14 = vsub.f32 %v18_v10, %v397_v1  ;;  %v436_v18 = vmul.f32 %v402_v2, %v38_v7  ;;  %v439_v19 = vmul.f32 %v402_v2, %v39_v8  ;;  %v22_v26 = vld [vmem:[%s609_s0 + $0x40] sm:$0xff]  ;;  %v25_v33 = vld [vmem:[%s609_s0 + $0x58] sm:$0xff]  ;;  %v27_v52 = vld [vmem:[%s609_s0 + $0x68] sm:$0xff] }
   0x6   :  { %v442_v20 = vmul.f32 %v402_v2, %v40_v9  ;;  %v450_v24 = vmul.f32 %v402_v2, %v42_v15  ;;  %v453_v25 = vmul.f32 %v402_v2, %v43_v16  ;;  %v462_v30 = vmul.f32 %v402_v2, %v44_v21  ;;  %v26_v38 = vld [vmem:[%s609_s0 + $0x60] sm:$0xff]  ;;  %v28_v59 = vld [vmem:[%s609_s0 + $0x70] sm:$0xff]  ;;  %v29_v15 = vld [vmem:[%s609_s0 + $0x78] sm:$0xff] }
   0x7   :  { %v76_v22 = vsub.f32 0.0, %v427_v13  ;;  %v447_v23 = vmul.f32 %v402_v2, %v41_v14  ;;  %v77_v27 = vsub.f32 0.0, %v436_v18  ;;  %v78_v28 = vsub.f32 0.0, %v439_v19 }
   0x8   :  { %v79_v29 = vsub.f32 0.0, %v442_v20  ;;  %v81_v36 = vsub.f32 0.0, %v450_v24  ;;  %v82_v37 = vsub.f32 0.0, %v453_v25  ;;  %v45_v42 = vsub.f32 %v22_v26, %v397_v1 }
   0x9   :  { %v92_v34 = vmul.f32 1.442695, %v76_v22  ;;  %v80_v35 = vsub.f32 0.0, %v447_v23  ;;  %v94_v39 = vmul.f32 1.442695, %v77_v27  ;;  %v83_v46 = vsub.f32 0.0, %v462_v30 }
   0xa   :  { %v96_v40 = vmul.f32 1.442695, %v78_v28  ;;  %v98_v41 = vmul.f32 1.442695, %v79_v29  ;;  %v102_v44 = vmul.f32 1.442695, %v81_v36  ;;  %v482_v47 = vmul.f32 %v402_v2, %v45_v42 }
   0xb   :  { %307 = vpow2.f32 %v92_v34  ;;  %v100_v43 = vmul.f32 1.442695, %v80_v35  ;;  %v104_v45 = vmul.f32 1.442695, %v82_v37  ;;  %v46_v48 = vsub.f32 %v23_v31, %v397_v1 }
   0xc   :  { %309 = vpow2.f32 %v94_v39  ;;  %v47_v49 = vsub.f32 %v24_v32, %v397_v1  ;;  %v48_v50 = vsub.f32 %v25_v33, %v397_v1  ;;  %v49_v51 = vsub.f32 %v26_v38, %v397_v1 }
   0xd   :  { %311 = vpow2.f32 %v96_v40  ;;  %v106_v53 = vmul.f32 1.442695, %v83_v46  ;;  %v84_v54 = vsub.f32 0.0, %v482_v47  ;;  %v493_v55 = vmul.f32 %v402_v2, %v46_v48 }
   0xe   :  { %313 = vpow2.f32 %v98_v41  ;;  %v496_v56 = vmul.f32 %v402_v2, %v47_v49  ;;  %v499_v57 = vmul.f32 %v402_v2, %v48_v50  ;;  %v502_v58 = vmul.f32 %v402_v2, %v49_v51 }
   0xf   :  { %315 = vpow2.f32 %v100_v43  ;;  %v108_v60 = vmul.f32 1.442695, %v84_v54  ;;  %v85_v61 = vsub.f32 0.0, %v493_v55  ;;  %v50_v62 = vsub.f32 %v27_v52, %v397_v1 }
  0x10   :  { %317 = vpow2.f32 %v102_v44  ;;  %v86_v63 = vsub.f32 0.0, %v496_v56  ;;  %v87_v0 = vsub.f32 0.0, %v499_v57  ;;  %v88_v3 = vsub.f32 0.0, %v502_v58 }
  0x11   :  { %319 = vpow2.f32 %v104_v45  ;;  %v110_v4 = vmul.f32 1.442695, %v85_v61  ;;  %v513_v5 = vmul.f32 %v402_v2, %v50_v62  ;;  %v51_v6 = vsub.f32 %v28_v59, %v397_v1 }
  0x12   :  { %321 = vpow2.f32 %v106_v53  ;;  %v112_v7 = vmul.f32 1.442695, %v86_v63  ;;  %v114_v8 = vmul.f32 1.442695, %v87_v0  ;;  %v116_v9 = vmul.f32 1.442695, %v88_v3 }
  0x13   :  { %323 = vpow2.f32 %v108_v60  ;;  %v89_v10 = vsub.f32 0.0, %v513_v5  ;;  %v518_v11 = vmul.f32 %v402_v2, %v51_v6  ;;  %v52_v26 = vsub.f32 %v29_v15, %v397_v1 }
  0x14   :  { %325 = vpow2.f32 %v110_v4 }
  0x15   :  { %327 = vpow2.f32 %v112_v7  ;;  %v118_v12 = vmul.f32 1.442695, %v89_v10  ;;  %v90_v14 = vsub.f32 0.0, %v518_v11  ;;  %v526_v36 = vmul.f32 %v402_v2, %v52_v26 }
  0x16   :  { %329 = vpow2.f32 %v114_v8 }
  0x17   :  { %331 = vpow2.f32 %v116_v9  ;;  %v120_v17 = vmul.f32 1.442695, %v90_v14  ;;  %v91_v44 = vsub.f32 0.0, %v526_v36 }
  0x18   :  { %v308_v16 = vpop.eup %307  ;;  %333 = vpow2.f32 %v118_v12 }
  0x19   :  { %v310_v21 = vpop.eup %309  ;;  %v124_v22 = vadd.f32 1.0, %v308_v16  ;;  %335 = vpow2.f32 %v120_v17  ;;  %v122_v53 = vmul.f32 1.442695, %v91_v44 }
  0x1a   :  { %v312_v27 = vpop.eup %311  ;;  %v125_v28 = vadd.f32 1.0, %v310_v21 }
  0x1b   :  { %v314_v29 = vpop.eup %313  ;;  %337 = vrcp.f32 %v124_v22  ;;  %v126_v31 = vadd.f32 1.0, %v312_v27 }
  0x1c   :  { %v316_v32 = vpop.eup %315  ;;  %339 = vrcp.f32 %v125_v28  ;;  %v127_v33 = vadd.f32 1.0, %v314_v29 }
  0x1d   :  { %v318_v34 = vpop.eup %317  ;;  %341 = vrcp.f32 %v126_v31  ;;  %v128_v35 = vadd.f32 1.0, %v316_v32 }
  0x1e   :  { %v320_v37 = vpop.eup %319  ;;  %343 = vrcp.f32 %v127_v33  ;;  %v129_v38 = vadd.f32 1.0, %v318_v34 }
  0x1f   :  { %v322_v39 = vpop.eup %321  ;;  %345 = vrcp.f32 %v128_v35  ;;  %v130_v1 = vadd.f32 1.0, %v320_v37 }
  0x20   :  { %v324_v40 = vpop.eup %323  ;;  %347 = vrcp.f32 %v129_v38  ;;  %v131_v41 = vadd.f32 1.0, %v322_v39 }
  0x21   :  { %v326_v42 = vpop.eup %325  ;;  %349 = vrcp.f32 %v130_v1  ;;  %v132_v43 = vadd.f32 1.0, %v324_v40 }
  0x22   :  { %v328_v45 = vpop.eup %327  ;;  %351 = vrcp.f32 %v131_v41  ;;  %v133_v46 = vadd.f32 1.0, %v326_v42 }
  0x23   :  { %v330_v48 = vpop.eup %329  ;;  %353 = vrcp.f32 %v132_v43  ;;  %v134_v2 = vadd.f32 1.0, %v328_v45 }
  0x24   :  { %v332_v49 = vpop.eup %331  ;;  %355 = vrcp.f32 %v133_v46  ;;  %v135_v50 = vadd.f32 1.0, %v330_v48 }
  0x25   :  { %v334_v51 = vpop.eup %333  ;;  %357 = vrcp.f32 %v134_v2  ;;  %v136_v52 = vadd.f32 1.0, %v332_v49 }
  0x26   :  { %359 = vrcp.f32 %v135_v50  ;;  %v137_v54 = vadd.f32 1.0, %v334_v51  ;;  %v336_v59 = vpop.eup %335 }
  0x27   :  { %361 = vrcp.f32 %v136_v52  ;;  %v138_v61 = vadd.f32 1.0, %v336_v59 }
  0x28   :  { %v338_v60 = vpop.eup %337  ;;  %363 = vrcp.f32 %v137_v54 }
  0x29   :  { %v340_v62 = vpop.eup %339  ;;  %v172_v63 = vmul.f32 %v338_v60, %v427_v13  ;;  %365 = vpow2.f32 %v122_v53 }
  0x2a   :  { %v342_v0 = vpop.eup %341  ;;  %v173_v3 = vmul.f32 %v340_v62, %v436_v18  ;;  %367 = vrcp.f32 %v138_v61 }
  0x2b   :  { %v344_v4 = vpop.eup %343  ;;  %v291_v6 = vpack.c.bf16 %v172_v63, %v172_v63  ;;  %v174_v7 = vmul.f32 %v342_v0, %v439_v19 }
  0x2c   :  { %v346_v8 = vpop.eup %345  ;;  %v292_v9 = vpack.c.bf16 %v173_v3, %v173_v3  ;;  %v175_v10 = vmul.f32 %v344_v4, %v442_v20 }
  0x2d   :  { %v348_v12 = vpop.eup %347  ;;  %253 = vst.msk [vmem:[%s612_s3] sm:$0xf] %vm252_vm0, %v291_v6  ;;  %v293_v13 = vpack.c.bf16 %v174_v7, %v174_v7  ;;  %v176_v14 = vmul.f32 %v346_v8, %v447_v23 }
  0x2e   :  { %v350_v15 = vpop.eup %349  ;;  %254 = vst.msk [vmem:[%s612_s3 + $0x4] sm:$0xf] %vm252_vm0, %v292_v9  ;;  %v294_v18 = vpack.c.bf16 %v175_v10, %v175_v10  ;;  %v177_v19 = vmul.f32 %v348_v12, %v450_v24 }
  0x2f   :  { %v352_v16 = vpop.eup %351  ;;  %255 = vst.msk [vmem:[%s612_s3 + $0x8] sm:$0xf] %vm252_vm0, %v293_v13  ;;  %v295_v20 = vpack.c.bf16 %v176_v14, %v176_v14  ;;  %v178_v17 = vmul.f32 %v350_v15, %v453_v25 }
  0x30   :  { %v354_v21 = vpop.eup %353  ;;  %256 = vst.msk [vmem:[%s612_s3 + $0xc] sm:$0xf] %vm252_vm0, %v294_v18  ;;  %v296_v23 = vpack.c.bf16 %v177_v19, %v177_v19  ;;  %v179_v22 = vmul.f32 %v352_v16, %v462_v30 }
  0x31   :  { %v356_v26 = vpop.eup %355  ;;  %257 = vst.msk [vmem:[%s612_s3 + $0x10] sm:$0xf] %vm252_vm0, %v295_v20  ;;  %v297_v24 = vpack.c.bf16 %v178_v17, %v178_v17  ;;  %v180_v27 = vmul.f32 %v354_v21, %v482_v47 }
  0x32   :  { %v358_v28 = vpop.eup %357  ;;  %258 = vst.msk [vmem:[%s612_s3 + $0x14] sm:$0xf] %vm252_vm0, %v296_v23  ;;  %v298_v25 = vpack.c.bf16 %v179_v22, %v179_v22  ;;  %v181_v29 = vmul.f32 %v356_v26, %v493_v55 }
  0x33   :  { %v360_v31 = vpop.eup %359  ;;  %259 = vst.msk [vmem:[%s612_s3 + $0x18] sm:$0xf] %vm252_vm0, %v297_v24  ;;  %v299_v30 = vpack.c.bf16 %v180_v27, %v180_v27  ;;  %v182_v32 = vmul.f32 %v358_v28, %v496_v56 }
  0x34   :  { %v362_v33 = vpop.eup %361  ;;  %260 = vst.msk [vmem:[%s612_s3 + $0x1c] sm:$0xf] %vm252_vm0, %v298_v25  ;;  %v300_v47 = vpack.c.bf16 %v181_v29, %v181_v29  ;;  %v183_v34 = vmul.f32 %v360_v31, %v499_v57 }
  0x35   :  { %v364_v35 = vpop.eup %363  ;;  %261 = vst.msk [vmem:[%s612_s3 + $0x20] sm:$0xf] %vm252_vm0, %v299_v30  ;;  %v301_v55 = vpack.c.bf16 %v182_v32, %v182_v32  ;;  %v184_v37 = vmul.f32 %v362_v33, %v502_v58 }
  0x36   :  { %v366_v38 = vpop.eup %365  ;;  %262 = vst.msk [vmem:[%s612_s3 + $0x24] sm:$0xf] %vm252_vm0, %v300_v47  ;;  %v302_v56 = vpack.c.bf16 %v183_v34, %v183_v34  ;;  %v185_v39 = vmul.f32 %v364_v35, %v513_v5 }
  0x37   :  { %v368_v1 = vpop.eup %367  ;;  %263 = vst.msk [vmem:[%s612_s3 + $0x28] sm:$0xf] %vm252_vm0, %v301_v55  ;;  %v303_v57 = vpack.c.bf16 %v184_v37, %v184_v37  ;;  %v139_v40 = vadd.f32 1.0, %v366_v38 }
  0x38   :  { %264 = vst.msk [vmem:[%s612_s3 + $0x2c] sm:$0xf] %vm252_vm0, %v302_v56  ;;  %v304_v58 = vpack.c.bf16 %v185_v39, %v185_v39  ;;  %v186_v41 = vmul.f32 %v368_v1, %v518_v11 }
  0x39   :  { %265 = vst.msk [vmem:[%s612_s3 + $0x30] sm:$0xf] %vm252_vm0, %v303_v57  ;;  %369 = vrcp.f32 %v139_v40 }
  0x3a   :  { %266 = vst.msk [vmem:[%s612_s3 + $0x34] sm:$0xf] %vm252_vm0, %v304_v58  ;;  %v305_v5 = vpack.c.bf16 %v186_v41, %v186_v41 }
  0x3c   :  { %267 = vst.msk [vmem:[%s612_s3 + $0x38] sm:$0xf] %vm252_vm0, %v305_v5 }
  0x46   :  { %v370_v42 = vpop.eup %369 }
  0x47   :  { %v187_v11 = vmul.f32 %v370_v42, %v526_v36 }
  0x49   :  { %v306_v43 = vpack.c.bf16 %v187_v11, %v187_v11 }
  0x4b   :  { %268 = vst.msk [vmem:[%s612_s3 + $0x3c] sm:$0xf] %vm252_vm0, %v306_v43 }

</bundles_post_ra>
